<compile_context>
chip_gen: v7x
topology: tpu7x:2x2x1
jax: 0.10.0
libtpu: 0.0.40
codegen_flags: <defaults>
</compile_context>

<pallas_src>
import functools
import math

import jax
import jax.numpy as jnp
from jax.experimental import pallas as pl
from jax.experimental.pallas import tpu as pltpu

# ----------------------------- model dims -----------------------------------
B = 2          # batch
T = 8          # target (decoder) sequence length
S = 8          # source (memory) sequence length
D = 32         # d_model  (layer.size)
NH = 4         # attention heads
DK = D // NH   # per-head dim
DFF = 64       # feed-forward hidden dim
NLAYERS = 2    # N decoder layers
EPS = 1e-6     # LayerNorm eps (annotated transformer default)


# ----------------------------- in-kernel helpers -----------------------------
def _layer_norm(x, a2, b2):
    """Annotated-transformer LayerNorm: a2*(x-mean)/(std+eps)+b2, unbiased std
    (ddof=1, matching torch.std).  Divide goes through the EUP reciprocal."""
    mean = jnp.mean(x, axis=-1, keepdims=True)
    d = x - mean
    var = jnp.sum(d * d, axis=-1, keepdims=True) * (1.0 / (x.shape[-1] - 1))
    inv = pl.reciprocal(jnp.sqrt(var) + EPS, approx=True)
    return a2 * (d * inv) + b2


def _mha(xq_bf, xkv_bf, bias, qkvw_ref, qkvb_ref, ow_ref, ob_ref,
         layer, which, *, nh, bsz, tq, tk, dmodel, dk):
    """Multi-head attention with per-head weight blocks (leading-axis indexed)
    and the output projection distributed over heads (no concat).

    xq_bf : (bsz*tq, D) bf16   query-side input (already LayerNorm'd)
    xkv_bf: (bsz*tk, D) bf16   key/value-side input
    bias  : (bsz, tq, tk) f32  additive mask bias (0 / -1e9)
    Returns the full sublayer output  sum_h(oh @ Wo_h) + b_o  in f32.
    """
    scale = 1.0 / math.sqrt(dk)
    base = (layer * 2 + which) * 3 * nh       # flat index into per-head QKV blocks
    obase = (layer * 2 + which) * nh          # flat index into per-head Wo blocks
    out = jnp.zeros((bsz * tq, dmodel), jnp.float32)
    for h in range(nh):
        q = (jnp.dot(xq_bf, qkvw_ref[base + 0 * nh + h],
                     preferred_element_type=jnp.float32) + qkvb_ref[base + 0 * nh + h])
        k = (jnp.dot(xkv_bf, qkvw_ref[base + 1 * nh + h],
                     preferred_element_type=jnp.float32) + qkvb_ref[base + 1 * nh + h])
        v = (jnp.dot(xkv_bf, qkvw_ref[base + 2 * nh + h],
                     preferred_element_type=jnp.float32) + qkvb_ref[base + 2 * nh + h])
        q3 = q.reshape(bsz, tq, dk).astype(jnp.bfloat16)
        k3 = k.reshape(bsz, tk, dk).astype(jnp.bfloat16)
        v3 = v.reshape(bsz, tk, dk).astype(jnp.bfloat16)

        s = jnp.einsum('bqd,bkd->bqk', q3, k3,
                       preferred_element_type=jnp.float32) * scale + bias
        m = jnp.max(s, axis=-1, keepdims=True)
        e = jnp.exp(s - m)
        p = e * pl.reciprocal(jnp.sum(e, axis=-1, keepdims=True), approx=True)

        oh = jnp.einsum('bqk,bkd->bqd', p.astype(jnp.bfloat16), v3,
                        preferred_element_type=jnp.float32)
        # distributed output projection: accumulate oh @ Wo[head-rows]
        out = out + jnp.dot(oh.reshape(bsz * tq, dk).astype(jnp.bfloat16),
                            ow_ref[obase + h], preferred_element_type=jnp.float32)
    return out + ob_ref[layer * 2 + which]


# ----------------------------- fused kernel ----------------------------------
def decoder_kernel(x_ref, mem_ref, tb_ref, sb_ref,
                   qkvw_ref, qkvb_ref, ow_ref, ob_ref,
                   f1w_ref, f1b_ref, f2w_ref, f2b_ref,
                   lna_ref, lnb_ref, o_ref, *,
                   nlayers, nh, bsz, tlen, slen, dmodel):
    dk = dmodel // nh
    x = x_ref[...]                                  # (bsz*T, D) f32 residual stream
    mem_bf = mem_ref[...].astype(jnp.bfloat16)      # memory only feeds matmuls
    tgt_bias = tb_ref[...]                          # (bsz, T, T) additive
    src_bias = sb_ref[...]                          # (bsz, T, S) additive

    for l in range(nlayers):                        # unrolled; weights stay resident
        # --- sublayer 0: masked self-attention --------------------------------
        xn = _layer_norm(x, lna_ref[3 * l], lnb_ref[3 * l]).astype(jnp.bfloat16)
        x = x + _mha(xn, xn, tgt_bias, qkvw_ref, qkvb_ref, ow_ref, ob_ref,
                     l, 0, nh=nh, bsz=bsz, tq=tlen, tk=tlen, dmodel=dmodel, dk=dk)

        # --- sublayer 1: cross-attention over memory (memory NOT normed) ------
        xn = _layer_norm(x, lna_ref[3 * l + 1], lnb_ref[3 * l + 1]).astype(jnp.bfloat16)
        x = x + _mha(xn, mem_bf, src_bias, qkvw_ref, qkvb_ref, ow_ref, ob_ref,
                     l, 1, nh=nh, bsz=bsz, tq=tlen, tk=slen, dmodel=dmodel, dk=dk)

        # --- sublayer 2: position-wise feed-forward ----------------------------
        xn = _layer_norm(x, lna_ref[3 * l + 2], lnb_ref[3 * l + 2]).astype(jnp.bfloat16)
        h1 = jnp.maximum(
            jnp.dot(xn, f1w_ref[l], preferred_element_type=jnp.float32) + f1b_ref[l],
            0.0)
        x = x + (jnp.dot(h1.astype(jnp.bfloat16), f2w_ref[l],
                         preferred_element_type=jnp.float32) + f2b_ref[l])

    # final decoder LayerNorm
    o_ref[...] = _layer_norm(x, lna_ref[3 * nlayers], lnb_ref[3 * nlayers])


# ----------------------------- wrapper ----------------------------------------
def _wants_batch_grid():
    """v7x has 2 TensorCores/chip -> shard the batch across them via a
    'parallel' grid axis.  v5e/v6e are single-TC: grid steps only add
    overhead, so keep the grid-less fused call there."""
    try:
        kind = jax.devices()[0].device_kind.lower()
    except Exception:
        return False
    return ("v7" in kind) or ("7x" in kind)


def _full_block_spec(arr):
    nd = arr.ndim
    return pl.BlockSpec(arr.shape, lambda i: (0,) * nd)


def decoder_forward(x, memory, src_mask, tgt_mask, params, *, force_batch_grid=None):
    """x:(B,T,D)  memory:(B,S,D)  src_mask:(B,1,S)  tgt_mask:(B,T,T)"""
    b, t, d = x.shape
    s = memory.shape[1]

    # fold batch into the matmul M dimension (rows are batch-major)
    x2 = x.reshape(b * t, d).astype(jnp.float32)
    m2 = memory.reshape(b * s, d).astype(jnp.float32)
    # additive mask bias (0 where allowed, -1e9 where masked), built once here
    tgt_bias = ((tgt_mask.astype(jnp.float32) - 1.0) * 1e9)                        # (B,T,T)
    src_bias = jnp.broadcast_to((src_mask.astype(jnp.float32) - 1.0) * 1e9, (b, t, s))

    weight_args = (params["attn_qkv_w"], params["attn_qkv_b"],
                   params["attn_o_w"], params["attn_o_b"],
                   params["ffn_w1"], params["ffn_b1"],
                   params["ffn_w2"], params["ffn_b2"],
                   params["ln_a"], params["ln_b"])

    use_grid = _wants_batch_grid() if force_batch_grid is None else force_batch_grid

    if use_grid and b > 1:
        # v7x path: one batch element per grid step, both TensorCores busy.
        kernel = functools.partial(decoder_kernel, nlayers=NLAYERS, nh=NH,
                                   bsz=1, tlen=t, slen=s, dmodel=d)
        in_specs = [
            pl.BlockSpec((t, d), lambda i: (i, 0)),         # x rows of batch i
            pl.BlockSpec((s, d), lambda i: (i, 0)),         # memory rows of batch i
            pl.BlockSpec((1, t, t), lambda i: (i, 0, 0)),   # tgt bias
            pl.BlockSpec((1, t, s), lambda i: (i, 0, 0)),   # src bias
        ] + [_full_block_spec(w) for w in weight_args]
        out2 = pl.pallas_call(
            kernel,
            out_shape=jax.ShapeDtypeStruct((b * t, d), jnp.float32),
            grid=(b,),
            in_specs=in_specs,
            out_specs=pl.BlockSpec((t, d), lambda i: (i, 0)),
            compiler_params=pltpu.CompilerParams(dimension_semantics=("parallel",)),
        )(x2, m2, tgt_bias, src_bias, *weight_args)
    else:
        # v5e/v6e path: grid-less, everything VMEM-resident, one launch.
        kernel = functools.partial(decoder_kernel, nlayers=NLAYERS, nh=NH,
                                   bsz=b, tlen=t, slen=s, dmodel=d)
        out2 = pl.pallas_call(
            kernel,
            out_shape=jax.ShapeDtypeStruct((b * t, d), jnp.float32),
        )(x2, m2, tgt_bias, src_bias, *weight_args)

    return out2.reshape(b, t, d)


# ----------------------------- parameter init ---------------------------------
def init_params(key):
    """Per-head attention weight blocks on leading axes (no lane-axis slicing
    in-kernel), matmul weights stored bf16, biases / LayerNorm params f32.

    Flat-index layouts (all static, computed in the unrolled kernel):
      attn_qkv_w : (L*2*3*NH, D, dk)   row ((l*2+a)*3 + j)*NH + h,  a∈{self,cross}, j∈{q,k,v}
      attn_qkv_b : (L*2*3*NH, dk)
      attn_o_w   : (L*2*NH,   dk, D)   row (l*2+a)*NH + h   (per-head rows of W_o)
      attn_o_b   : (L*2,      D)
      ln_a/ln_b  : (3*L+1, D)          row 3*l+j, final norm at row 3*L
    """
    keys = jax.random.split(key, 8)
    wdt = jnp.bfloat16
    qkv_w = 0.02 * jax.random.normal(keys[0], (NLAYERS, 2, 3, NH, D, DK), jnp.float32)
    qkv_b = 0.02 * jax.random.normal(keys[1], (NLAYERS, 2, 3, NH, DK), jnp.float32)
    o_w = 0.02 * jax.random.normal(keys[2], (NLAYERS, 2, NH, DK, D), jnp.float32)
    o_b = 0.02 * jax.random.normal(keys[3], (NLAYERS, 2, D), jnp.float32)
    return {
        "attn_qkv_w": qkv_w.reshape(-1, D, DK).astype(wdt),
        "attn_qkv_b": qkv_b.reshape(-1, DK),
        "attn_o_w": o_w.reshape(-1, DK, D).astype(wdt),
        "attn_o_b": o_b.reshape(-1, D),
        "ffn_w1": (0.02 * jax.random.normal(keys[4], (NLAYERS, D, DFF), jnp.float32)).astype(wdt),
        "ffn_b1": 0.02 * jax.random.normal(keys[5], (NLAYERS, DFF), jnp.float32),
        "ffn_w2": (0.02 * jax.random.normal(keys[6], (NLAYERS, DFF, D), jnp.float32)).astype(wdt),
        "ffn_b2": 0.02 * jax.random.normal(keys[7], (NLAYERS, D), jnp.float32),
        "ln_a": jnp.ones((NLAYERS * 3 + 1, D), jnp.float32),
        "ln_b": jnp.zeros((NLAYERS * 3 + 1, D), jnp.float32),
    }


# ----------------------------- main --------------------------------------------
if __name__ == "__main__":
    key = jax.random.PRNGKey(0)
    kx, km, kp = jax.random.split(key, 3)

    x = jax.random.normal(kx, (B, T, D), jnp.float32)        # decoder input
    memory = jax.random.normal(km, (B, S, D), jnp.float32)   # encoder output
    # causal mask (B, T, T) and full source mask (B, 1, S), as 0/1 floats
    tgt_mask = jnp.broadcast_to(
        jnp.tril(jnp.ones((T, T), jnp.float32)), (B, T, T))
    src_mask = jnp.ones((B, 1, S), jnp.float32)

    params = init_params(kp)

    out = decoder_forward(x, memory, src_mask, tgt_mask, params)
    out = jax.block_until_ready(out)
    assert out.shape == (B, T, D)
    assert bool(jnp.all(jnp.isfinite(out)))
    print("KERNEL_OK")
</pallas_src>

<mosaic_0001>
module attributes {stable_mosaic.version = 11 : i64} {
  func.func @decoder_kernel(%arg0: memref<16x32xf32, #tpu.memory_space<vmem>>, %arg1: memref<16x32xf32, #tpu.memory_space<vmem>>, %arg2: memref<2x8x8xf32, #tpu.memory_space<vmem>>, %arg3: memref<2x8x8xf32, #tpu.memory_space<vmem>>, %arg4: memref<48x32x8xbf16, #tpu.memory_space<vmem>>, %arg5: memref<48x8xf32, #tpu.memory_space<vmem>>, %arg6: memref<16x8x32xbf16, #tpu.memory_space<vmem>>, %arg7: memref<4x32xf32, #tpu.memory_space<vmem>>, %arg8: memref<2x32x64xbf16, #tpu.memory_space<vmem>>, %arg9: memref<2x64xf32, #tpu.memory_space<vmem>>, %arg10: memref<2x64x32xbf16, #tpu.memory_space<vmem>>, %arg11: memref<2x32xf32, #tpu.memory_space<vmem>>, %arg12: memref<7x32xf32, #tpu.memory_space<vmem>>, %arg13: memref<7x32xf32, #tpu.memory_space<vmem>>, %arg14: memref<16x32xf32, #tpu.memory_space<vmem>>) attributes {dimension_semantics = [], scalar_prefetch = 0 : i64, scratch_operands = 0 : i64, tpu.core_type = #tpu.core_type<tc>} {
    %c0 = arith.constant 0 : index
    %c0_0 = arith.constant 0 : index
    %0 = vector.load %arg0[%c0, %c0_0] : memref<16x32xf32, #tpu.memory_space<vmem>>, vector<16x32xf32>
    %c0_1 = arith.constant 0 : index
    %c0_2 = arith.constant 0 : index
    %1 = vector.load %arg1[%c0_1, %c0_2] : memref<16x32xf32, #tpu.memory_space<vmem>>, vector<16x32xf32>
    %2 = arith.truncf %1 : vector<16x32xf32> to vector<16x32xbf16>
    %c0_3 = arith.constant 0 : index
    %c0_4 = arith.constant 0 : index
    %c0_5 = arith.constant 0 : index
    %3 = vector.load %arg2[%c0_3, %c0_4, %c0_5] : memref<2x8x8xf32, #tpu.memory_space<vmem>>, vector<2x8x8xf32>
    %c0_6 = arith.constant 0 : index
    %c0_7 = arith.constant 0 : index
    %c0_8 = arith.constant 0 : index
    %4 = vector.load %arg3[%c0_6, %c0_7, %c0_8] : memref<2x8x8xf32, #tpu.memory_space<vmem>>, vector<2x8x8xf32>
    %c0_9 = arith.constant 0 : index
    %c0_10 = arith.constant 0 : index
    %5 = vector.load %arg12[%c0_9, %c0_10] : memref<7x32xf32, #tpu.memory_space<vmem>>, vector<1x32xf32>
    %6 = vector.shape_cast %5 : vector<1x32xf32> to vector<32xf32>
    %c0_11 = arith.constant 0 : index
    %c0_12 = arith.constant 0 : index
    %7 = vector.load %arg13[%c0_11, %c0_12] : memref<7x32xf32, #tpu.memory_space<vmem>>, vector<1x32xf32>
    %8 = vector.shape_cast %7 : vector<1x32xf32> to vector<32xf32>
    %cst = arith.constant dense<0.000000e+00> : vector<16xf32>
    %9 = vector.multi_reduction <add>, %0, %cst [1] : vector<16x32xf32> to vector<16xf32>
    %10 = vector.shape_cast %9 : vector<16xf32> to vector<16x1xf32>
    %cst_13 = arith.constant 3.200000e+01 : f32
    %11 = vector.broadcast %cst_13 : f32 to vector<16x1xf32>
    %12 = arith.divf %10, %11 : vector<16x1xf32>
    %13 = vector.broadcast %12 : vector<16x1xf32> to vector<16x32xf32>
    %14 = arith.subf %0, %13 : vector<16x32xf32>
    %15 = arith.mulf %14, %14 : vector<16x32xf32>
    %cst_14 = arith.constant dense<0.000000e+00> : vector<16xf32>
    %16 = vector.multi_reduction <add>, %15, %cst_14 [1] : vector<16x32xf32> to vector<16xf32>
    %17 = vector.shape_cast %16 : vector<16xf32> to vector<16x1xf32>
    %cst_15 = arith.constant 0.0322580636 : f32
    %18 = vector.broadcast %cst_15 : f32 to vector<16x1xf32>
    %19 = arith.mulf %17, %18 : vector<16x1xf32>
    %20 = math.sqrt %19 : vector<16x1xf32>
    %cst_16 = arith.constant 9.99999997E-7 : f32
    %21 = vector.broadcast %cst_16 : f32 to vector<16x1xf32>
    %22 = arith.addf %20, %21 : vector<16x1xf32>
    %23 = tpu.reciprocal %22 {approx = true} : vector<16x1xf32> -> vector<16x1xf32>
    %24 = vector.broadcast %23 : vector<16x1xf32> to vector<16x32xf32>
    %25 = arith.mulf %14, %24 : vector<16x32xf32>
    %26 = vector.shape_cast %6 : vector<32xf32> to vector<1x32xf32>
    %27 = vector.broadcast %26 : vector<1x32xf32> to vector<16x32xf32>
    %28 = arith.mulf %27, %25 : vector<16x32xf32>
    %29 = vector.shape_cast %8 : vector<32xf32> to vector<1x32xf32>
    %30 = vector.broadcast %29 : vector<1x32xf32> to vector<16x32xf32>
    %31 = arith.addf %28, %30 : vector<16x32xf32>
    %32 = arith.truncf %31 : vector<16x32xf32> to vector<16x32xbf16>
    %cst_17 = arith.constant 0.000000e+00 : f32
    %33 = vector.broadcast %cst_17 : f32 to vector<16x32xf32>
    %c0_18 = arith.constant 0 : index
    %c0_19 = arith.constant 0 : index
    %c0_20 = arith.constant 0 : index
    %34 = vector.load %arg4[%c0_18, %c0_19, %c0_20] : memref<48x32x8xbf16, #tpu.memory_space<vmem>>, vector<1x32x8xbf16>
    %35 = vector.shape_cast %34 : vector<1x32x8xbf16> to vector<32x8xbf16>
    %cst_21 = arith.constant dense<0.000000e+00> : vector<16x8xf32>
    %36 = tpu.matmul %32, %35, %cst_21 {dimension_numbers = #tpu.dot_dimension_numbers<[1], [0], [0], [1], [0, 0, 1, 1], [], []>} : vector<16x32xbf16>, vector<32x8xbf16>, vector<16x8xf32> -> vector<16x8xf32>
    %c0_22 = arith.constant 0 : index
    %c0_23 = arith.constant 0 : index
    %37 = vector.load %arg5[%c0_22, %c0_23] : memref<48x8xf32, #tpu.memory_space<vmem>>, vector<1x8xf32>
    %38 = vector.shape_cast %37 : vector<1x8xf32> to vector<8xf32>
    %39 = vector.shape_cast %38 : vector<8xf32> to vector<1x8xf32>
    %40 = vector.broadcast %39 : vector<1x8xf32> to vector<16x8xf32>
    %41 = arith.addf %36, %40 : vector<16x8xf32>
    %c4 = arith.constant 4 : index
    %c0_24 = arith.constant 0 : index
    %c0_25 = arith.constant 0 : index
    %42 = vector.load %arg4[%c4, %c0_24, %c0_25] : memref<48x32x8xbf16, #tpu.memory_space<vmem>>, vector<1x32x8xbf16>
    %43 = vector.shape_cast %42 : vector<1x32x8xbf16> to vector<32x8xbf16>
    %cst_26 = arith.constant dense<0.000000e+00> : vector<16x8xf32>
    %44 = tpu.matmul %32, %43, %cst_26 {dimension_numbers = #tpu.dot_dimension_numbers<[1], [0], [0], [1], [0, 0, 1, 1], [], []>} : vector<16x32xbf16>, vector<32x8xbf16>, vector<16x8xf32> -> vector<16x8xf32>
    %c4_27 = arith.constant 4 : index
    %c0_28 = arith.constant 0 : index
    %45 = vector.load %arg5[%c4_27, %c0_28] : memref<48x8xf32, #tpu.memory_space<vmem>>, vector<1x8xf32>
    %46 = vector.shape_cast %45 : vector<1x8xf32> to vector<8xf32>
    %47 = vector.shape_cast %46 : vector<8xf32> to vector<1x8xf32>
    %48 = vector.broadcast %47 : vector<1x8xf32> to vector<16x8xf32>
    %49 = arith.addf %44, %48 : vector<16x8xf32>
    %c8 = arith.constant 8 : index
    %c0_29 = arith.constant 0 : index
    %c0_30 = arith.constant 0 : index
    %50 = vector.load %arg4[%c8, %c0_29, %c0_30] : memref<48x32x8xbf16, #tpu.memory_space<vmem>>, vector<1x32x8xbf16>
    %51 = vector.shape_cast %50 : vector<1x32x8xbf16> to vector<32x8xbf16>
    %cst_31 = arith.constant dense<0.000000e+00> : vector<16x8xf32>
    %52 = tpu.matmul %32, %51, %cst_31 {dimension_numbers = #tpu.dot_dimension_numbers<[1], [0], [0], [1], [0, 0, 1, 1], [], []>} : vector<16x32xbf16>, vector<32x8xbf16>, vector<16x8xf32> -> vector<16x8xf32>
    %c8_32 = arith.constant 8 : index
    %c0_33 = arith.constant 0 : index
    %53 = vector.load %arg5[%c8_32, %c0_33] : memref<48x8xf32, #tpu.memory_space<vmem>>, vector<1x8xf32>
    %54 = vector.shape_cast %53 : vector<1x8xf32> to vector<8xf32>
    %55 = vector.shape_cast %54 : vector<8xf32> to vector<1x8xf32>
    %56 = vector.broadcast %55 : vector<1x8xf32> to vector<16x8xf32>
    %57 = arith.addf %52, %56 : vector<16x8xf32>
    %58 = vector.shape_cast %41 : vector<16x8xf32> to vector<2x8x8xf32>
    %59 = arith.truncf %58 : vector<2x8x8xf32> to vector<2x8x8xbf16>
    %60 = vector.shape_cast %49 : vector<16x8xf32> to vector<2x8x8xf32>
    %61 = arith.truncf %60 : vector<2x8x8xf32> to vector<2x8x8xbf16>
    %62 = vector.shape_cast %57 : vector<16x8xf32> to vector<2x8x8xf32>
    %63 = arith.truncf %62 : vector<2x8x8xf32> to vector<2x8x8xbf16>
    "tpu.trace_start"() <{level = 10 : i32, message = "bqd,bkd->bqk"}> : () -> ()
    %cst_34 = arith.constant dense<0.000000e+00> : vector<2x8x8xf32>
    %64 = tpu.matmul %59, %61, %cst_34 {dimension_numbers = #tpu.dot_dimension_numbers<[2], [2], [1], [1], [0, 0, 0, 1, 1, 1], [0], [0]>} : vector<2x8x8xbf16>, vector<2x8x8xbf16>, vector<2x8x8xf32> -> vector<2x8x8xf32>
    "tpu.trace_stop"() : () -> ()
    %cst_35 = arith.constant 0.353553385 : f32
    %65 = vector.broadcast %cst_35 : f32 to vector<2x8x8xf32>
    %66 = arith.mulf %64, %65 : vector<2x8x8xf32>
    %67 = arith.addf %66, %3 : vector<2x8x8xf32>
    %cst_36 = arith.constant dense<0xFF800000> : vector<2x8xf32>
    %68 = vector.multi_reduction <maximumf>, %67, %cst_36 [2] : vector<2x8x8xf32> to vector<2x8xf32>
    %69 = vector.shape_cast %68 : vector<2x8xf32> to vector<2x8x1xf32>
    %70 = vector.broadcast %69 : vector<2x8x1xf32> to vector<2x8x8xf32>
    %71 = arith.subf %67, %70 : vector<2x8x8xf32>
    %72 = math.exp %71 : vector<2x8x8xf32>
    %cst_37 = arith.constant dense<0.000000e+00> : vector<2x8xf32>
    %73 = vector.multi_reduction <add>, %72, %cst_37 [2] : vector<2x8x8xf32> to vector<2x8xf32>
    %74 = vector.shape_cast %73 : vector<2x8xf32> to vector<2x8x1xf32>
    %75 = tpu.reciprocal %74 {approx = true} : vector<2x8x1xf32> -> vector<2x8x1xf32>
    %76 = vector.broadcast %75 : vector<2x8x1xf32> to vector<2x8x8xf32>
    %77 = arith.mulf %72, %76 : vector<2x8x8xf32>
    %78 = arith.truncf %77 : vector<2x8x8xf32> to vector<2x8x8xbf16>
    "tpu.trace_start"() <{level = 10 : i32, message = "bqk,bkd->bqd"}> : () -> ()
    %cst_38 = arith.constant dense<0.000000e+00> : vector<2x8x8xf32>
    %79 = tpu.matmul %78, %63, %cst_38 {dimension_numbers = #tpu.dot_dimension_numbers<[2], [1], [1], [2], [0, 0, 0, 1, 1, 2], [0], [0]>} : vector<2x8x8xbf16>, vector<2x8x8xbf16>, vector<2x8x8xf32> -> vector<2x8x8xf32>
    "tpu.trace_stop"() : () -> ()
    %80 = vector.shape_cast %79 : vector<2x8x8xf32> to vector<16x8xf32>
    %81 = arith.truncf %80 : vector<16x8xf32> to vector<16x8xbf16>
    %c0_39 = arith.constant 0 : index
    %c0_40 = arith.constant 0 : index
    %c0_41 = arith.constant 0 : index
    %82 = vector.load %arg6[%c0_39, %c0_40, %c0_41] : memref<16x8x32xbf16, #tpu.memory_space<vmem>>, vector<1x8x32xbf16>
    %83 = vector.shape_cast %82 : vector<1x8x32xbf16> to vector<8x32xbf16>
    %cst_42 = arith.constant dense<0.000000e+00> : vector<16x32xf32>
    %84 = tpu.matmul %81, %83, %cst_42 {dimension_numbers = #tpu.dot_dimension_numbers<[1], [0], [0], [1], [0, 0, 1, 1], [], []>} : vector<16x8xbf16>, vector<8x32xbf16>, vector<16x32xf32> -> vector<16x32xf32>
    %85 = arith.addf %33, %84 : vector<16x32xf32>
    %c1 = arith.constant 1 : index
    %c0_43 = arith.constant 0 : index
    %c0_44 = arith.constant 0 : index
    %86 = vector.load %arg4[%c1, %c0_43, %c0_44] : memref<48x32x8xbf16, #tpu.memory_space<vmem>>, vector<1x32x8xbf16>
    %87 = vector.shape_cast %86 : vector<1x32x8xbf16> to vector<32x8xbf16>
    %cst_45 = arith.constant dense<0.000000e+00> : vector<16x8xf32>
    %88 = tpu.matmul %32, %87, %cst_45 {dimension_numbers = #tpu.dot_dimension_numbers<[1], [0], [0], [1], [0, 0, 1, 1], [], []>} : vector<16x32xbf16>, vector<32x8xbf16>, vector<16x8xf32> -> vector<16x8xf32>
    %c1_46 = arith.constant 1 : index
    %c0_47 = arith.constant 0 : index
    %89 = vector.load %arg5[%c1_46, %c0_47] : memref<48x8xf32, #tpu.memory_space<vmem>>, vector<1x8xf32>
    %90 = vector.shape_cast %89 : vector<1x8xf32> to vector<8xf32>
    %91 = vector.shape_cast %90 : vector<8xf32> to vector<1x8xf32>
    %92 = vector.broadcast %91 : vector<1x8xf32> to vector<16x8xf32>
    %93 = arith.addf %88, %92 : vector<16x8xf32>
    %c5 = arith.constant 5 : index
    %c0_48 = arith.constant 0 : index
    %c0_49 = arith.constant 0 : index
    %94 = vector.load %arg4[%c5, %c0_48, %c0_49] : memref<48x32x8xbf16, #tpu.memory_space<vmem>>, vector<1x32x8xbf16>
    %95 = vector.shape_cast %94 : vector<1x32x8xbf16> to vector<32x8xbf16>
    %cst_50 = arith.constant dense<0.000000e+00> : vector<16x8xf32>
    %96 = tpu.matmul %32, %95, %cst_50 {dimension_numbers = #tpu.dot_dimension_numbers<[1], [0], [0], [1], [0, 0, 1, 1], [], []>} : vector<16x32xbf16>, vector<32x8xbf16>, vector<16x8xf32> -> vector<16x8xf32>
    %c5_51 = arith.constant 5 : index
    %c0_52 = arith.constant 0 : index
    %97 = vector.load %arg5[%c5_51, %c0_52] : memref<48x8xf32, #tpu.memory_space<vmem>>, vector<1x8xf32>
    %98 = vector.shape_cast %97 : vector<1x8xf32> to vector<8xf32>
    %99 = vector.shape_cast %98 : vector<8xf32> to vector<1x8xf32>
    %100 = vector.broadcast %99 : vector<1x8xf32> to vector<16x8xf32>
    %101 = arith.addf %96, %100 : vector<16x8xf32>
    %c9 = arith.constant 9 : index
    %c0_53 = arith.constant 0 : index
    %c0_54 = arith.constant 0 : index
    %102 = vector.load %arg4[%c9, %c0_53, %c0_54] : memref<48x32x8xbf16, #tpu.memory_space<vmem>>, vector<1x32x8xbf16>
    %103 = vector.shape_cast %102 : vector<1x32x8xbf16> to vector<32x8xbf16>
    %cst_55 = arith.constant dense<0.000000e+00> : vector<16x8xf32>
    %104 = tpu.matmul %32, %103, %cst_55 {dimension_numbers = #tpu.dot_dimension_numbers<[1], [0], [0], [1], [0, 0, 1, 1], [], []>} : vector<16x32xbf16>, vector<32x8xbf16>, vector<16x8xf32> -> vector<16x8xf32>
    %c9_56 = arith.constant 9 : index
    %c0_57 = arith.constant 0 : index
    %105 = vector.load %arg5[%c9_56, %c0_57] : memref<48x8xf32, #tpu.memory_space<vmem>>, vector<1x8xf32>
    %106 = vector.shape_cast %105 : vector<1x8xf32> to vector<8xf32>
    %107 = vector.shape_cast %106 : vector<8xf32> to vector<1x8xf32>
    %108 = vector.broadcast %107 : vector<1x8xf32> to vector<16x8xf32>
    %109 = arith.addf %104, %108 : vector<16x8xf32>
    %110 = vector.shape_cast %93 : vector<16x8xf32> to vector<2x8x8xf32>
    %111 = arith.truncf %110 : vector<2x8x8xf32> to vector<2x8x8xbf16>
    %112 = vector.shape_cast %101 : vector<16x8xf32> to vector<2x8x8xf32>
    %113 = arith.truncf %112 : vector<2x8x8xf32> to vector<2x8x8xbf16>
    %114 = vector.shape_cast %109 : vector<16x8xf32> to vector<2x8x8xf32>
    %115 = arith.truncf %114 : vector<2x8x8xf32> to vector<2x8x8xbf16>
    "tpu.trace_start"() <{level = 10 : i32, message = "bqd,bkd->bqk"}> : () -> ()
    %cst_58 = arith.constant dense<0.000000e+00> : vector<2x8x8xf32>
    %116 = tpu.matmul %111, %113, %cst_58 {dimension_numbers = #tpu.dot_dimension_numbers<[2], [2], [1], [1], [0, 0, 0, 1, 1, 1], [0], [0]>} : vector<2x8x8xbf16>, vector<2x8x8xbf16>, vector<2x8x8xf32> -> vector<2x8x8xf32>
    "tpu.trace_stop"() : () -> ()
    %cst_59 = arith.constant 0.353553385 : f32
    %117 = vector.broadcast %cst_59 : f32 to vector<2x8x8xf32>
    %118 = arith.mulf %116, %117 : vector<2x8x8xf32>
    %119 = arith.addf %118, %3 : vector<2x8x8xf32>
    %cst_60 = arith.constant dense<0xFF800000> : vector<2x8xf32>
    %120 = vector.multi_reduction <maximumf>, %119, %cst_60 [2] : vector<2x8x8xf32> to vector<2x8xf32>
    %121 = vector.shape_cast %120 : vector<2x8xf32> to vector<2x8x1xf32>
    %122 = vector.broadcast %121 : vector<2x8x1xf32> to vector<2x8x8xf32>
    %123 = arith.subf %119, %122 : vector<2x8x8xf32>
    %124 = math.exp %123 : vector<2x8x8xf32>
    %cst_61 = arith.constant dense<0.000000e+00> : vector<2x8xf32>
    %125 = vector.multi_reduction <add>, %124, %cst_61 [2] : vector<2x8x8xf32> to vector<2x8xf32>
    %126 = vector.shape_cast %125 : vector<2x8xf32> to vector<2x8x1xf32>
    %127 = tpu.reciprocal %126 {approx = true} : vector<2x8x1xf32> -> vector<2x8x1xf32>
    %128 = vector.broadcast %127 : vector<2x8x1xf32> to vector<2x8x8xf32>
    %129 = arith.mulf %124, %128 : vector<2x8x8xf32>
    %130 = arith.truncf %129 : vector<2x8x8xf32> to vector<2x8x8xbf16>
    "tpu.trace_start"() <{level = 10 : i32, message = "bqk,bkd->bqd"}> : () -> ()
    %cst_62 = arith.constant dense<0.000000e+00> : vector<2x8x8xf32>
    %131 = tpu.matmul %130, %115, %cst_62 {dimension_numbers = #tpu.dot_dimension_numbers<[2], [1], [1], [2], [0, 0, 0, 1, 1, 2], [0], [0]>} : vector<2x8x8xbf16>, vector<2x8x8xbf16>, vector<2x8x8xf32> -> vector<2x8x8xf32>
    "tpu.trace_stop"() : () -> ()
    %132 = vector.shape_cast %131 : vector<2x8x8xf32> to vector<16x8xf32>
    %133 = arith.truncf %132 : vector<16x8xf32> to vector<16x8xbf16>
    %c1_63 = arith.constant 1 : index
    %c0_64 = arith.constant 0 : index
    %c0_65 = arith.constant 0 : index
    %134 = vector.load %arg6[%c1_63, %c0_64, %c0_65] : memref<16x8x32xbf16, #tpu.memory_space<vmem>>, vector<1x8x32xbf16>
    %135 = vector.shape_cast %134 : vector<1x8x32xbf16> to vector<8x32xbf16>
    %cst_66 = arith.constant dense<0.000000e+00> : vector<16x32xf32>
    %136 = tpu.matmul %133, %135, %cst_66 {dimension_numbers = #tpu.dot_dimension_numbers<[1], [0], [0], [1], [0, 0, 1, 1], [], []>} : vector<16x8xbf16>, vector<8x32xbf16>, vector<16x32xf32> -> vector<16x32xf32>
    %137 = arith.addf %85, %136 : vector<16x32xf32>
    %c2 = arith.constant 2 : index
    %c0_67 = arith.constant 0 : index
    %c0_68 = arith.constant 0 : index
    %138 = vector.load %arg4[%c2, %c0_67, %c0_68] : memref<48x32x8xbf16, #tpu.memory_space<vmem>>, vector<1x32x8xbf16>
    %139 = vector.shape_cast %138 : vector<1x32x8xbf16> to vector<32x8xbf16>
    %cst_69 = arith.constant dense<0.000000e+00> : vector<16x8xf32>
    %140 = tpu.matmul %32, %139, %cst_69 {dimension_numbers = #tpu.dot_dimension_numbers<[1], [0], [0], [1], [0, 0, 1, 1], [], []>} : vector<16x32xbf16>, vector<32x8xbf16>, vector<16x8xf32> -> vector<16x8xf32>
    %c2_70 = arith.constant 2 : index
    %c0_71 = arith.constant 0 : index
    %141 = vector.load %arg5[%c2_70, %c0_71] : memref<48x8xf32, #tpu.memory_space<vmem>>, vector<1x8xf32>
    %142 = vector.shape_cast %141 : vector<1x8xf32> to vector<8xf32>
    %143 = vector.shape_cast %142 : vector<8xf32> to vector<1x8xf32>
    %144 = vector.broadcast %143 : vector<1x8xf32> to vector<16x8xf32>
    %145 = arith.addf %140, %144 : vector<16x8xf32>
    %c6 = arith.constant 6 : index
    %c0_72 = arith.constant 0 : index
    %c0_73 = arith.constant 0 : index
    %146 = vector.load %arg4[%c6, %c0_72, %c0_73] : memref<48x32x8xbf16, #tpu.memory_space<vmem>>, vector<1x32x8xbf16>
    %147 = vector.shape_cast %146 : vector<1x32x8xbf16> to vector<32x8xbf16>
    %cst_74 = arith.constant dense<0.000000e+00> : vector<16x8xf32>
    %148 = tpu.matmul %32, %147, %cst_74 {dimension_numbers = #tpu.dot_dimension_numbers<[1], [0], [0], [1], [0, 0, 1, 1], [], []>} : vector<16x32xbf16>, vector<32x8xbf16>, vector<16x8xf32> -> vector<16x8xf32>
    %c6_75 = arith.constant 6 : index
    %c0_76 = arith.constant 0 : index
    %149 = vector.load %arg5[%c6_75, %c0_76] : memref<48x8xf32, #tpu.memory_space<vmem>>, vector<1x8xf32>
    %150 = vector.shape_cast %149 : vector<1x8xf32> to vector<8xf32>
    %151 = vector.shape_cast %150 : vector<8xf32> to vector<1x8xf32>
    %152 = vector.broadcast %151 : vector<1x8xf32> to vector<16x8xf32>
    %153 = arith.addf %148, %152 : vector<16x8xf32>
    %c10 = arith.constant 10 : index
    %c0_77 = arith.constant 0 : index
    %c0_78 = arith.constant 0 : index
    %154 = vector.load %arg4[%c10, %c0_77, %c0_78] : memref<48x32x8xbf16, #tpu.memory_space<vmem>>, vector<1x32x8xbf16>
    %155 = vector.shape_cast %154 : vector<1x32x8xbf16> to vector<32x8xbf16>
    %cst_79 = arith.constant dense<0.000000e+00> : vector<16x8xf32>
    %156 = tpu.matmul %32, %155, %cst_79 {dimension_numbers = #tpu.dot_dimension_numbers<[1], [0], [0], [1], [0, 0, 1, 1], [], []>} : vector<16x32xbf16>, vector<32x8xbf16>, vector<16x8xf32> -> vector<16x8xf32>
    %c10_80 = arith.constant 10 : index
    %c0_81 = arith.constant 0 : index
    %157 = vector.load %arg5[%c10_80, %c0_81] : memref<48x8xf32, #tpu.memory_space<vmem>>, vector<1x8xf32>
    %158 = vector.shape_cast %157 : vector<1x8xf32> to vector<8xf32>
    %159 = vector.shape_cast %158 : vector<8xf32> to vector<1x8xf32>
    %160 = vector.broadcast %159 : vector<1x8xf32> to vector<16x8xf32>
    %161 = arith.addf %156, %160 : vector<16x8xf32>
    %162 = vector.shape_cast %145 : vector<16x8xf32> to vector<2x8x8xf32>
    %163 = arith.truncf %162 : vector<2x8x8xf32> to vector<2x8x8xbf16>
    %164 = vector.shape_cast %153 : vector<16x8xf32> to vector<2x8x8xf32>
    %165 = arith.truncf %164 : vector<2x8x8xf32> to vector<2x8x8xbf16>
    %166 = vector.shape_cast %161 : vector<16x8xf32> to vector<2x8x8xf32>
    %167 = arith.truncf %166 : vector<2x8x8xf32> to vector<2x8x8xbf16>
    "tpu.trace_start"() <{level = 10 : i32, message = "bqd,bkd->bqk"}> : () -> ()
    %cst_82 = arith.constant dense<0.000000e+00> : vector<2x8x8xf32>
    %168 = tpu.matmul %163, %165, %cst_82 {dimension_numbers = #tpu.dot_dimension_numbers<[2], [2], [1], [1], [0, 0, 0, 1, 1, 1], [0], [0]>} : vector<2x8x8xbf16>, vector<2x8x8xbf16>, vector<2x8x8xf32> -> vector<2x8x8xf32>
    "tpu.trace_stop"() : () -> ()
    %cst_83 = arith.constant 0.353553385 : f32
    %169 = vector.broadcast %cst_83 : f32 to vector<2x8x8xf32>
    %170 = arith.mulf %168, %169 : vector<2x8x8xf32>
    %171 = arith.addf %170, %3 : vector<2x8x8xf32>
    %cst_84 = arith.constant dense<0xFF800000> : vector<2x8xf32>
    %172 = vector.multi_reduction <maximumf>, %171, %cst_84 [2] : vector<2x8x8xf32> to vector<2x8xf32>
    %173 = vector.shape_cast %172 : vector<2x8xf32> to vector<2x8x1xf32>
    %174 = vector.broadcast %173 : vector<2x8x1xf32> to vector<2x8x8xf32>
    %175 = arith.subf %171, %174 : vector<2x8x8xf32>
    %176 = math.exp %175 : vector<2x8x8xf32>
    %cst_85 = arith.constant dense<0.000000e+00> : vector<2x8xf32>
    %177 = vector.multi_reduction <add>, %176, %cst_85 [2] : vector<2x8x8xf32> to vector<2x8xf32>
    %178 = vector.shape_cast %177 : vector<2x8xf32> to vector<2x8x1xf32>
    %179 = tpu.reciprocal %178 {approx = true} : vector<2x8x1xf32> -> vector<2x8x1xf32>
    %180 = vector.broadcast %179 : vector<2x8x1xf32> to vector<2x8x8xf32>
    %181 = arith.mulf %176, %180 : vector<2x8x8xf32>
    %182 = arith.truncf %181 : vector<2x8x8xf32> to vector<2x8x8xbf16>
    "tpu.trace_start"() <{level = 10 : i32, message = "bqk,bkd->bqd"}> : () -> ()
    %cst_86 = arith.constant dense<0.000000e+00> : vector<2x8x8xf32>
    %183 = tpu.matmul %182, %167, %cst_86 {dimension_numbers = #tpu.dot_dimension_numbers<[2], [1], [1], [2], [0, 0, 0, 1, 1, 2], [0], [0]>} : vector<2x8x8xbf16>, vector<2x8x8xbf16>, vector<2x8x8xf32> -> vector<2x8x8xf32>
    "tpu.trace_stop"() : () -> ()
    %184 = vector.shape_cast %183 : vector<2x8x8xf32> to vector<16x8xf32>
    %185 = arith.truncf %184 : vector<16x8xf32> to vector<16x8xbf16>
    %c2_87 = arith.constant 2 : index
    %c0_88 = arith.constant 0 : index
    %c0_89 = arith.constant 0 : index
    %186 = vector.load %arg6[%c2_87, %c0_88, %c0_89] : memref<16x8x32xbf16, #tpu.memory_space<vmem>>, vector<1x8x32xbf16>
    %187 = vector.shape_cast %186 : vector<1x8x32xbf16> to vector<8x32xbf16>
    %cst_90 = arith.constant dense<0.000000e+00> : vector<16x32xf32>
    %188 = tpu.matmul %185, %187, %cst_90 {dimension_numbers = #tpu.dot_dimension_numbers<[1], [0], [0], [1], [0, 0, 1, 1], [], []>} : vector<16x8xbf16>, vector<8x32xbf16>, vector<16x32xf32> -> vector<16x32xf32>
    %189 = arith.addf %137, %188 : vector<16x32xf32>
    %c3 = arith.constant 3 : index
    %c0_91 = arith.constant 0 : index
    %c0_92 = arith.constant 0 : index
    %190 = vector.load %arg4[%c3, %c0_91, %c0_92] : memref<48x32x8xbf16, #tpu.memory_space<vmem>>, vector<1x32x8xbf16>
    %191 = vector.shape_cast %190 : vector<1x32x8xbf16> to vector<32x8xbf16>
    %cst_93 = arith.constant dense<0.000000e+00> : vector<16x8xf32>
    %192 = tpu.matmul %32, %191, %cst_93 {dimension_numbers = #tpu.dot_dimension_numbers<[1], [0], [0], [1], [0, 0, 1, 1], [], []>} : vector<16x32xbf16>, vector<32x8xbf16>, vector<16x8xf32> -> vector<16x8xf32>
    %c3_94 = arith.constant 3 : index
    %c0_95 = arith.constant 0 : index
    %193 = vector.load %arg5[%c3_94, %c0_95] : memref<48x8xf32, #tpu.memory_space<vmem>>, vector<1x8xf32>
    %194 = vector.shape_cast %193 : vector<1x8xf32> to vector<8xf32>
    %195 = vector.shape_cast %194 : vector<8xf32> to vector<1x8xf32>
    %196 = vector.broadcast %195 : vector<1x8xf32> to vector<16x8xf32>
    %197 = arith.addf %192, %196 : vector<16x8xf32>
    %c7 = arith.constant 7 : index
    %c0_96 = arith.constant 0 : index
    %c0_97 = arith.constant 0 : index
    %198 = vector.load %arg4[%c7, %c0_96, %c0_97] : memref<48x32x8xbf16, #tpu.memory_space<vmem>>, vector<1x32x8xbf16>
    %199 = vector.shape_cast %198 : vector<1x32x8xbf16> to vector<32x8xbf16>
    %cst_98 = arith.constant dense<0.000000e+00> : vector<16x8xf32>
    %200 = tpu.matmul %32, %199, %cst_98 {dimension_numbers = #tpu.dot_dimension_numbers<[1], [0], [0], [1], [0, 0, 1, 1], [], []>} : vector<16x32xbf16>, vector<32x8xbf16>, vector<16x8xf32> -> vector<16x8xf32>
    %c7_99 = arith.constant 7 : index
    %c0_100 = arith.constant 0 : index
    %201 = vector.load %arg5[%c7_99, %c0_100] : memref<48x8xf32, #tpu.memory_space<vmem>>, vector<1x8xf32>
    %202 = vector.shape_cast %201 : vector<1x8xf32> to vector<8xf32>
    %203 = vector.shape_cast %202 : vector<8xf32> to vector<1x8xf32>
    %204 = vector.broadcast %203 : vector<1x8xf32> to vector<16x8xf32>
    %205 = arith.addf %200, %204 : vector<16x8xf32>
    %c11 = arith.constant 11 : index
    %c0_101 = arith.constant 0 : index
    %c0_102 = arith.constant 0 : index
    %206 = vector.load %arg4[%c11, %c0_101, %c0_102] : memref<48x32x8xbf16, #tpu.memory_space<vmem>>, vector<1x32x8xbf16>
    %207 = vector.shape_cast %206 : vector<1x32x8xbf16> to vector<32x8xbf16>
    %cst_103 = arith.constant dense<0.000000e+00> : vector<16x8xf32>
    %208 = tpu.matmul %32, %207, %cst_103 {dimension_numbers = #tpu.dot_dimension_numbers<[1], [0], [0], [1], [0, 0, 1, 1], [], []>} : vector<16x32xbf16>, vector<32x8xbf16>, vector<16x8xf32> -> vector<16x8xf32>
    %c11_104 = arith.constant 11 : index
    %c0_105 = arith.constant 0 : index
    %209 = vector.load %arg5[%c11_104, %c0_105] : memref<48x8xf32, #tpu.memory_space<vmem>>, vector<1x8xf32>
    %210 = vector.shape_cast %209 : vector<1x8xf32> to vector<8xf32>
    %211 = vector.shape_cast %210 : vector<8xf32> to vector<1x8xf32>
    %212 = vector.broadcast %211 : vector<1x8xf32> to vector<16x8xf32>
    %213 = arith.addf %208, %212 : vector<16x8xf32>
    %214 = vector.shape_cast %197 : vector<16x8xf32> to vector<2x8x8xf32>
    %215 = arith.truncf %214 : vector<2x8x8xf32> to vector<2x8x8xbf16>
    %216 = vector.shape_cast %205 : vector<16x8xf32> to vector<2x8x8xf32>
    %217 = arith.truncf %216 : vector<2x8x8xf32> to vector<2x8x8xbf16>
    %218 = vector.shape_cast %213 : vector<16x8xf32> to vector<2x8x8xf32>
    %219 = arith.truncf %218 : vector<2x8x8xf32> to vector<2x8x8xbf16>
    "tpu.trace_start"() <{level = 10 : i32, message = "bqd,bkd->bqk"}> : () -> ()
    %cst_106 = arith.constant dense<0.000000e+00> : vector<2x8x8xf32>
    %220 = tpu.matmul %215, %217, %cst_106 {dimension_numbers = #tpu.dot_dimension_numbers<[2], [2], [1], [1], [0, 0, 0, 1, 1, 1], [0], [0]>} : vector<2x8x8xbf16>, vector<2x8x8xbf16>, vector<2x8x8xf32> -> vector<2x8x8xf32>
    "tpu.trace_stop"() : () -> ()
    %cst_107 = arith.constant 0.353553385 : f32
    %221 = vector.broadcast %cst_107 : f32 to vector<2x8x8xf32>
    %222 = arith.mulf %220, %221 : vector<2x8x8xf32>
    %223 = arith.addf %222, %3 : vector<2x8x8xf32>
    %cst_108 = arith.constant dense<0xFF800000> : vector<2x8xf32>
    %224 = vector.multi_reduction <maximumf>, %223, %cst_108 [2] : vector<2x8x8xf32> to vector<2x8xf32>
    %225 = vector.shape_cast %224 : vector<2x8xf32> to vector<2x8x1xf32>
    %226 = vector.broadcast %225 : vector<2x8x1xf32> to vector<2x8x8xf32>
    %227 = arith.subf %223, %226 : vector<2x8x8xf32>
    %228 = math.exp %227 : vector<2x8x8xf32>
    %cst_109 = arith.constant dense<0.000000e+00> : vector<2x8xf32>
    %229 = vector.multi_reduction <add>, %228, %cst_109 [2] : vector<2x8x8xf32> to vector<2x8xf32>
    %230 = vector.shape_cast %229 : vector<2x8xf32> to vector<2x8x1xf32>
    %231 = tpu.reciprocal %230 {approx = true} : vector<2x8x1xf32> -> vector<2x8x1xf32>
    %232 = vector.broadcast %231 : vector<2x8x1xf32> to vector<2x8x8xf32>
    %233 = arith.mulf %228, %232 : vector<2x8x8xf32>
    %234 = arith.truncf %233 : vector<2x8x8xf32> to vector<2x8x8xbf16>
    "tpu.trace_start"() <{level = 10 : i32, message = "bqk,bkd->bqd"}> : () -> ()
    %cst_110 = arith.constant dense<0.000000e+00> : vector<2x8x8xf32>
    %235 = tpu.matmul %234, %219, %cst_110 {dimension_numbers = #tpu.dot_dimension_numbers<[2], [1], [1], [2], [0, 0, 0, 1, 1, 2], [0], [0]>} : vector<2x8x8xbf16>, vector<2x8x8xbf16>, vector<2x8x8xf32> -> vector<2x8x8xf32>
    "tpu.trace_stop"() : () -> ()
    %236 = vector.shape_cast %235 : vector<2x8x8xf32> to vector<16x8xf32>
    %237 = arith.truncf %236 : vector<16x8xf32> to vector<16x8xbf16>
    %c3_111 = arith.constant 3 : index
    %c0_112 = arith.constant 0 : index
    %c0_113 = arith.constant 0 : index
    %238 = vector.load %arg6[%c3_111, %c0_112, %c0_113] : memref<16x8x32xbf16, #tpu.memory_space<vmem>>, vector<1x8x32xbf16>
    %239 = vector.shape_cast %238 : vector<1x8x32xbf16> to vector<8x32xbf16>
    %cst_114 = arith.constant dense<0.000000e+00> : vector<16x32xf32>
    %240 = tpu.matmul %237, %239, %cst_114 {dimension_numbers = #tpu.dot_dimension_numbers<[1], [0], [0], [1], [0, 0, 1, 1], [], []>} : vector<16x8xbf16>, vector<8x32xbf16>, vector<16x32xf32> -> vector<16x32xf32>
    %241 = arith.addf %189, %240 : vector<16x32xf32>
    %c0_115 = arith.constant 0 : index
    %c0_116 = arith.constant 0 : index
    %242 = vector.load %arg7[%c0_115, %c0_116] : memref<4x32xf32, #tpu.memory_space<vmem>>, vector<1x32xf32>
    %243 = vector.shape_cast %242 : vector<1x32xf32> to vector<32xf32>
    %244 = vector.shape_cast %243 : vector<32xf32> to vector<1x32xf32>
    %245 = vector.broadcast %244 : vector<1x32xf32> to vector<16x32xf32>
    %246 = arith.addf %241, %245 : vector<16x32xf32>
    %247 = arith.addf %0, %246 : vector<16x32xf32>
    %c1_117 = arith.constant 1 : index
    %c0_118 = arith.constant 0 : index
    %248 = vector.load %arg12[%c1_117, %c0_118] : memref<7x32xf32, #tpu.memory_space<vmem>>, vector<1x32xf32>
    %249 = vector.shape_cast %248 : vector<1x32xf32> to vector<32xf32>
    %c1_119 = arith.constant 1 : index
    %c0_120 = arith.constant 0 : index
    %250 = vector.load %arg13[%c1_119, %c0_120] : memref<7x32xf32, #tpu.memory_space<vmem>>, vector<1x32xf32>
    %251 = vector.shape_cast %250 : vector<1x32xf32> to vector<32xf32>
    %cst_121 = arith.constant dense<0.000000e+00> : vector<16xf32>
    %252 = vector.multi_reduction <add>, %247, %cst_121 [1] : vector<16x32xf32> to vector<16xf32>
    %253 = vector.shape_cast %252 : vector<16xf32> to vector<16x1xf32>
    %cst_122 = arith.constant 3.200000e+01 : f32
    %254 = vector.broadcast %cst_122 : f32 to vector<16x1xf32>
    %255 = arith.divf %253, %254 : vector<16x1xf32>
    %256 = vector.broadcast %255 : vector<16x1xf32> to vector<16x32xf32>
    %257 = arith.subf %247, %256 : vector<16x32xf32>
    %258 = arith.mulf %257, %257 : vector<16x32xf32>
    %cst_123 = arith.constant dense<0.000000e+00> : vector<16xf32>
    %259 = vector.multi_reduction <add>, %258, %cst_123 [1] : vector<16x32xf32> to vector<16xf32>
    %260 = vector.shape_cast %259 : vector<16xf32> to vector<16x1xf32>
    %cst_124 = arith.constant 0.0322580636 : f32
    %261 = vector.broadcast %cst_124 : f32 to vector<16x1xf32>
    %262 = arith.mulf %260, %261 : vector<16x1xf32>
    %263 = math.sqrt %262 : vector<16x1xf32>
    %cst_125 = arith.constant 9.99999997E-7 : f32
    %264 = vector.broadcast %cst_125 : f32 to vector<16x1xf32>
    %265 = arith.addf %263, %264 : vector<16x1xf32>
    %266 = tpu.reciprocal %265 {approx = true} : vector<16x1xf32> -> vector<16x1xf32>
    %267 = vector.broadcast %266 : vector<16x1xf32> to vector<16x32xf32>
    %268 = arith.mulf %257, %267 : vector<16x32xf32>
    %269 = vector.shape_cast %249 : vector<32xf32> to vector<1x32xf32>
    %270 = vector.broadcast %269 : vector<1x32xf32> to vector<16x32xf32>
    %271 = arith.mulf %270, %268 : vector<16x32xf32>
    %272 = vector.shape_cast %251 : vector<32xf32> to vector<1x32xf32>
    %273 = vector.broadcast %272 : vector<1x32xf32> to vector<16x32xf32>
    %274 = arith.addf %271, %273 : vector<16x32xf32>
    %275 = arith.truncf %274 : vector<16x32xf32> to vector<16x32xbf16>
    %cst_126 = arith.constant 0.000000e+00 : f32
    %276 = vector.broadcast %cst_126 : f32 to vector<16x32xf32>
    %c12 = arith.constant 12 : index
    %c0_127 = arith.constant 0 : index
    %c0_128 = arith.constant 0 : index
    %277 = vector.load %arg4[%c12, %c0_127, %c0_128] : memref<48x32x8xbf16, #tpu.memory_space<vmem>>, vector<1x32x8xbf16>
    %278 = vector.shape_cast %277 : vector<1x32x8xbf16> to vector<32x8xbf16>
    %cst_129 = arith.constant dense<0.000000e+00> : vector<16x8xf32>
    %279 = tpu.matmul %275, %278, %cst_129 {dimension_numbers = #tpu.dot_dimension_numbers<[1], [0], [0], [1], [0, 0, 1, 1], [], []>} : vector<16x32xbf16>, vector<32x8xbf16>, vector<16x8xf32> -> vector<16x8xf32>
    %c12_130 = arith.constant 12 : index
    %c0_131 = arith.constant 0 : index
    %280 = vector.load %arg5[%c12_130, %c0_131] : memref<48x8xf32, #tpu.memory_space<vmem>>, vector<1x8xf32>
    %281 = vector.shape_cast %280 : vector<1x8xf32> to vector<8xf32>
    %282 = vector.shape_cast %281 : vector<8xf32> to vector<1x8xf32>
    %283 = vector.broadcast %282 : vector<1x8xf32> to vector<16x8xf32>
    %284 = arith.addf %279, %283 : vector<16x8xf32>
    %c16 = arith.constant 16 : index
    %c0_132 = arith.constant 0 : index
    %c0_133 = arith.constant 0 : index
    %285 = vector.load %arg4[%c16, %c0_132, %c0_133] : memref<48x32x8xbf16, #tpu.memory_space<vmem>>, vector<1x32x8xbf16>
    %286 = vector.shape_cast %285 : vector<1x32x8xbf16> to vector<32x8xbf16>
    %cst_134 = arith.constant dense<0.000000e+00> : vector<16x8xf32>
    %287 = tpu.matmul %2, %286, %cst_134 {dimension_numbers = #tpu.dot_dimension_numbers<[1], [0], [0], [1], [0, 0, 1, 1], [], []>} : vector<16x32xbf16>, vector<32x8xbf16>, vector<16x8xf32> -> vector<16x8xf32>
    %c16_135 = arith.constant 16 : index
    %c0_136 = arith.constant 0 : index
    %288 = vector.load %arg5[%c16_135, %c0_136] : memref<48x8xf32, #tpu.memory_space<vmem>>, vector<1x8xf32>
    %289 = vector.shape_cast %288 : vector<1x8xf32> to vector<8xf32>
    %290 = vector.shape_cast %289 : vector<8xf32> to vector<1x8xf32>
    %291 = vector.broadcast %290 : vector<1x8xf32> to vector<16x8xf32>
    %292 = arith.addf %287, %291 : vector<16x8xf32>
    %c20 = arith.constant 20 : index
    %c0_137 = arith.constant 0 : index
    %c0_138 = arith.constant 0 : index
    %293 = vector.load %arg4[%c20, %c0_137, %c0_138] : memref<48x32x8xbf16, #tpu.memory_space<vmem>>, vector<1x32x8xbf16>
    %294 = vector.shape_cast %293 : vector<1x32x8xbf16> to vector<32x8xbf16>
    %cst_139 = arith.constant dense<0.000000e+00> : vector<16x8xf32>
    %295 = tpu.matmul %2, %294, %cst_139 {dimension_numbers = #tpu.dot_dimension_numbers<[1], [0], [0], [1], [0, 0, 1, 1], [], []>} : vector<16x32xbf16>, vector<32x8xbf16>, vector<16x8xf32> -> vector<16x8xf32>
    %c20_140 = arith.constant 20 : index
    %c0_141 = arith.constant 0 : index
    %296 = vector.load %arg5[%c20_140, %c0_141] : memref<48x8xf32, #tpu.memory_space<vmem>>, vector<1x8xf32>
    %297 = vector.shape_cast %296 : vector<1x8xf32> to vector<8xf32>
    %298 = vector.shape_cast %297 : vector<8xf32> to vector<1x8xf32>
    %299 = vector.broadcast %298 : vector<1x8xf32> to vector<16x8xf32>
    %300 = arith.addf %295, %299 : vector<16x8xf32>
    %301 = vector.shape_cast %284 : vector<16x8xf32> to vector<2x8x8xf32>
    %302 = arith.truncf %301 : vector<2x8x8xf32> to vector<2x8x8xbf16>
    %303 = vector.shape_cast %292 : vector<16x8xf32> to vector<2x8x8xf32>
    %304 = arith.truncf %303 : vector<2x8x8xf32> to vector<2x8x8xbf16>
    %305 = vector.shape_cast %300 : vector<16x8xf32> to vector<2x8x8xf32>
    %306 = arith.truncf %305 : vector<2x8x8xf32> to vector<2x8x8xbf16>
    "tpu.trace_start"() <{level = 10 : i32, message = "bqd,bkd->bqk"}> : () -> ()
    %cst_142 = arith.constant dense<0.000000e+00> : vector<2x8x8xf32>
    %307 = tpu.matmul %302, %304, %cst_142 {dimension_numbers = #tpu.dot_dimension_numbers<[2], [2], [1], [1], [0, 0, 0, 1, 1, 1], [0], [0]>} : vector<2x8x8xbf16>, vector<2x8x8xbf16>, vector<2x8x8xf32> -> vector<2x8x8xf32>
    "tpu.trace_stop"() : () -> ()
    %cst_143 = arith.constant 0.353553385 : f32
    %308 = vector.broadcast %cst_143 : f32 to vector<2x8x8xf32>
    %309 = arith.mulf %307, %308 : vector<2x8x8xf32>
    %310 = arith.addf %309, %4 : vector<2x8x8xf32>
    %cst_144 = arith.constant dense<0xFF800000> : vector<2x8xf32>
    %311 = vector.multi_reduction <maximumf>, %310, %cst_144 [2] : vector<2x8x8xf32> to vector<2x8xf32>
    %312 = vector.shape_cast %311 : vector<2x8xf32> to vector<2x8x1xf32>
    %313 = vector.broadcast %312 : vector<2x8x1xf32> to vector<2x8x8xf32>
    %314 = arith.subf %310, %313 : vector<2x8x8xf32>
    %315 = math.exp %314 : vector<2x8x8xf32>
    %cst_145 = arith.constant dense<0.000000e+00> : vector<2x8xf32>
    %316 = vector.multi_reduction <add>, %315, %cst_145 [2] : vector<2x8x8xf32> to vector<2x8xf32>
    %317 = vector.shape_cast %316 : vector<2x8xf32> to vector<2x8x1xf32>
    %318 = tpu.reciprocal %317 {approx = true} : vector<2x8x1xf32> -> vector<2x8x1xf32>
    %319 = vector.broadcast %318 : vector<2x8x1xf32> to vector<2x8x8xf32>
    %320 = arith.mulf %315, %319 : vector<2x8x8xf32>
    %321 = arith.truncf %320 : vector<2x8x8xf32> to vector<2x8x8xbf16>
    "tpu.trace_start"() <{level = 10 : i32, message = "bqk,bkd->bqd"}> : () -> ()
    %cst_146 = arith.constant dense<0.000000e+00> : vector<2x8x8xf32>
    %322 = tpu.matmul %321, %306, %cst_146 {dimension_numbers = #tpu.dot_dimension_numbers<[2], [1], [1], [2], [0, 0, 0, 1, 1, 2], [0], [0]>} : vector<2x8x8xbf16>, vector<2x8x8xbf16>, vector<2x8x8xf32> -> vector<2x8x8xf32>
    "tpu.trace_stop"() : () -> ()
    %323 = vector.shape_cast %322 : vector<2x8x8xf32> to vector<16x8xf32>
    %324 = arith.truncf %323 : vector<16x8xf32> to vector<16x8xbf16>
    %c4_147 = arith.constant 4 : index
    %c0_148 = arith.constant 0 : index
    %c0_149 = arith.constant 0 : index
    %325 = vector.load %arg6[%c4_147, %c0_148, %c0_149] : memref<16x8x32xbf16, #tpu.memory_space<vmem>>, vector<1x8x32xbf16>
    %326 = vector.shape_cast %325 : vector<1x8x32xbf16> to vector<8x32xbf16>
    %cst_150 = arith.constant dense<0.000000e+00> : vector<16x32xf32>
    %327 = tpu.matmul %324, %326, %cst_150 {dimension_numbers = #tpu.dot_dimension_numbers<[1], [0], [0], [1], [0, 0, 1, 1], [], []>} : vector<16x8xbf16>, vector<8x32xbf16>, vector<16x32xf32> -> vector<16x32xf32>
    %328 = arith.addf %276, %327 : vector<16x32xf32>
    %c13 = arith.constant 13 : index
    %c0_151 = arith.constant 0 : index
    %c0_152 = arith.constant 0 : index
    %329 = vector.load %arg4[%c13, %c0_151, %c0_152] : memref<48x32x8xbf16, #tpu.memory_space<vmem>>, vector<1x32x8xbf16>
    %330 = vector.shape_cast %329 : vector<1x32x8xbf16> to vector<32x8xbf16>
    %cst_153 = arith.constant dense<0.000000e+00> : vector<16x8xf32>
    %331 = tpu.matmul %275, %330, %cst_153 {dimension_numbers = #tpu.dot_dimension_numbers<[1], [0], [0], [1], [0, 0, 1, 1], [], []>} : vector<16x32xbf16>, vector<32x8xbf16>, vector<16x8xf32> -> vector<16x8xf32>
    %c13_154 = arith.constant 13 : index
    %c0_155 = arith.constant 0 : index
    %332 = vector.load %arg5[%c13_154, %c0_155] : memref<48x8xf32, #tpu.memory_space<vmem>>, vector<1x8xf32>
    %333 = vector.shape_cast %332 : vector<1x8xf32> to vector<8xf32>
    %334 = vector.shape_cast %333 : vector<8xf32> to vector<1x8xf32>
    %335 = vector.broadcast %334 : vector<1x8xf32> to vector<16x8xf32>
    %336 = arith.addf %331, %335 : vector<16x8xf32>
    %c17 = arith.constant 17 : index
    %c0_156 = arith.constant 0 : index
    %c0_157 = arith.constant 0 : index
    %337 = vector.load %arg4[%c17, %c0_156, %c0_157] : memref<48x32x8xbf16, #tpu.memory_space<vmem>>, vector<1x32x8xbf16>
    %338 = vector.shape_cast %337 : vector<1x32x8xbf16> to vector<32x8xbf16>
    %cst_158 = arith.constant dense<0.000000e+00> : vector<16x8xf32>
    %339 = tpu.matmul %2, %338, %cst_158 {dimension_numbers = #tpu.dot_dimension_numbers<[1], [0], [0], [1], [0, 0, 1, 1], [], []>} : vector<16x32xbf16>, vector<32x8xbf16>, vector<16x8xf32> -> vector<16x8xf32>
    %c17_159 = arith.constant 17 : index
    %c0_160 = arith.constant 0 : index
    %340 = vector.load %arg5[%c17_159, %c0_160] : memref<48x8xf32, #tpu.memory_space<vmem>>, vector<1x8xf32>
    %341 = vector.shape_cast %340 : vector<1x8xf32> to vector<8xf32>
    %342 = vector.shape_cast %341 : vector<8xf32> to vector<1x8xf32>
    %343 = vector.broadcast %342 : vector<1x8xf32> to vector<16x8xf32>
    %344 = arith.addf %339, %343 : vector<16x8xf32>
    %c21 = arith.constant 21 : index
    %c0_161 = arith.constant 0 : index
    %c0_162 = arith.constant 0 : index
    %345 = vector.load %arg4[%c21, %c0_161, %c0_162] : memref<48x32x8xbf16, #tpu.memory_space<vmem>>, vector<1x32x8xbf16>
    %346 = vector.shape_cast %345 : vector<1x32x8xbf16> to vector<32x8xbf16>
    %cst_163 = arith.constant dense<0.000000e+00> : vector<16x8xf32>
    %347 = tpu.matmul %2, %346, %cst_163 {dimension_numbers = #tpu.dot_dimension_numbers<[1], [0], [0], [1], [0, 0, 1, 1], [], []>} : vector<16x32xbf16>, vector<32x8xbf16>, vector<16x8xf32> -> vector<16x8xf32>
    %c21_164 = arith.constant 21 : index
    %c0_165 = arith.constant 0 : index
    %348 = vector.load %arg5[%c21_164, %c0_165] : memref<48x8xf32, #tpu.memory_space<vmem>>, vector<1x8xf32>
    %349 = vector.shape_cast %348 : vector<1x8xf32> to vector<8xf32>
    %350 = vector.shape_cast %349 : vector<8xf32> to vector<1x8xf32>
    %351 = vector.broadcast %350 : vector<1x8xf32> to vector<16x8xf32>
    %352 = arith.addf %347, %351 : vector<16x8xf32>
    %353 = vector.shape_cast %336 : vector<16x8xf32> to vector<2x8x8xf32>
    %354 = arith.truncf %353 : vector<2x8x8xf32> to vector<2x8x8xbf16>
    %355 = vector.shape_cast %344 : vector<16x8xf32> to vector<2x8x8xf32>
    %356 = arith.truncf %355 : vector<2x8x8xf32> to vector<2x8x8xbf16>
    %357 = vector.shape_cast %352 : vector<16x8xf32> to vector<2x8x8xf32>
    %358 = arith.truncf %357 : vector<2x8x8xf32> to vector<2x8x8xbf16>
    "tpu.trace_start"() <{level = 10 : i32, message = "bqd,bkd->bqk"}> : () -> ()
    %cst_166 = arith.constant dense<0.000000e+00> : vector<2x8x8xf32>
    %359 = tpu.matmul %354, %356, %cst_166 {dimension_numbers = #tpu.dot_dimension_numbers<[2], [2], [1], [1], [0, 0, 0, 1, 1, 1], [0], [0]>} : vector<2x8x8xbf16>, vector<2x8x8xbf16>, vector<2x8x8xf32> -> vector<2x8x8xf32>
    "tpu.trace_stop"() : () -> ()
    %cst_167 = arith.constant 0.353553385 : f32
    %360 = vector.broadcast %cst_167 : f32 to vector<2x8x8xf32>
    %361 = arith.mulf %359, %360 : vector<2x8x8xf32>
    %362 = arith.addf %361, %4 : vector<2x8x8xf32>
    %cst_168 = arith.constant dense<0xFF800000> : vector<2x8xf32>
    %363 = vector.multi_reduction <maximumf>, %362, %cst_168 [2] : vector<2x8x8xf32> to vector<2x8xf32>
    %364 = vector.shape_cast %363 : vector<2x8xf32> to vector<2x8x1xf32>
    %365 = vector.broadcast %364 : vector<2x8x1xf32> to vector<2x8x8xf32>
    %366 = arith.subf %362, %365 : vector<2x8x8xf32>
    %367 = math.exp %366 : vector<2x8x8xf32>
    %cst_169 = arith.constant dense<0.000000e+00> : vector<2x8xf32>
    %368 = vector.multi_reduction <add>, %367, %cst_169 [2] : vector<2x8x8xf32> to vector<2x8xf32>
    %369 = vector.shape_cast %368 : vector<2x8xf32> to vector<2x8x1xf32>
    %370 = tpu.reciprocal %369 {approx = true} : vector<2x8x1xf32> -> vector<2x8x1xf32>
    %371 = vector.broadcast %370 : vector<2x8x1xf32> to vector<2x8x8xf32>
    %372 = arith.mulf %367, %371 : vector<2x8x8xf32>
    %373 = arith.truncf %372 : vector<2x8x8xf32> to vector<2x8x8xbf16>
    "tpu.trace_start"() <{level = 10 : i32, message = "bqk,bkd->bqd"}> : () -> ()
    %cst_170 = arith.constant dense<0.000000e+00> : vector<2x8x8xf32>
    %374 = tpu.matmul %373, %358, %cst_170 {dimension_numbers = #tpu.dot_dimension_numbers<[2], [1], [1], [2], [0, 0, 0, 1, 1, 2], [0], [0]>} : vector<2x8x8xbf16>, vector<2x8x8xbf16>, vector<2x8x8xf32> -> vector<2x8x8xf32>
    "tpu.trace_stop"() : () -> ()
    %375 = vector.shape_cast %374 : vector<2x8x8xf32> to vector<16x8xf32>
    %376 = arith.truncf %375 : vector<16x8xf32> to vector<16x8xbf16>
    %c5_171 = arith.constant 5 : index
    %c0_172 = arith.constant 0 : index
    %c0_173 = arith.constant 0 : index
    %377 = vector.load %arg6[%c5_171, %c0_172, %c0_173] : memref<16x8x32xbf16, #tpu.memory_space<vmem>>, vector<1x8x32xbf16>
    %378 = vector.shape_cast %377 : vector<1x8x32xbf16> to vector<8x32xbf16>
    %cst_174 = arith.constant dense<0.000000e+00> : vector<16x32xf32>
    %379 = tpu.matmul %376, %378, %cst_174 {dimension_numbers = #tpu.dot_dimension_numbers<[1], [0], [0], [1], [0, 0, 1, 1], [], []>} : vector<16x8xbf16>, vector<8x32xbf16>, vector<16x32xf32> -> vector<16x32xf32>
    %380 = arith.addf %328, %379 : vector<16x32xf32>
    %c14 = arith.constant 14 : index
    %c0_175 = arith.constant 0 : index
    %c0_176 = arith.constant 0 : index
    %381 = vector.load %arg4[%c14, %c0_175, %c0_176] : memref<48x32x8xbf16, #tpu.memory_space<vmem>>, vector<1x32x8xbf16>
    %382 = vector.shape_cast %381 : vector<1x32x8xbf16> to vector<32x8xbf16>
    %cst_177 = arith.constant dense<0.000000e+00> : vector<16x8xf32>
    %383 = tpu.matmul %275, %382, %cst_177 {dimension_numbers = #tpu.dot_dimension_numbers<[1], [0], [0], [1], [0, 0, 1, 1], [], []>} : vector<16x32xbf16>, vector<32x8xbf16>, vector<16x8xf32> -> vector<16x8xf32>
    %c14_178 = arith.constant 14 : index
    %c0_179 = arith.constant 0 : index
    %384 = vector.load %arg5[%c14_178, %c0_179] : memref<48x8xf32, #tpu.memory_space<vmem>>, vector<1x8xf32>
    %385 = vector.shape_cast %384 : vector<1x8xf32> to vector<8xf32>
    %386 = vector.shape_cast %385 : vector<8xf32> to vector<1x8xf32>
    %387 = vector.broadcast %386 : vector<1x8xf32> to vector<16x8xf32>
    %388 = arith.addf %383, %387 : vector<16x8xf32>
    %c18 = arith.constant 18 : index
    %c0_180 = arith.constant 0 : index
    %c0_181 = arith.constant 0 : index
    %389 = vector.load %arg4[%c18, %c0_180, %c0_181] : memref<48x32x8xbf16, #tpu.memory_space<vmem>>, vector<1x32x8xbf16>
    %390 = vector.shape_cast %389 : vector<1x32x8xbf16> to vector<32x8xbf16>
    %cst_182 = arith.constant dense<0.000000e+00> : vector<16x8xf32>
    %391 = tpu.matmul %2, %390, %cst_182 {dimension_numbers = #tpu.dot_dimension_numbers<[1], [0], [0], [1], [0, 0, 1, 1], [], []>} : vector<16x32xbf16>, vector<32x8xbf16>, vector<16x8xf32> -> vector<16x8xf32>
    %c18_183 = arith.constant 18 : index
    %c0_184 = arith.constant 0 : index
    %392 = vector.load %arg5[%c18_183, %c0_184] : memref<48x8xf32, #tpu.memory_space<vmem>>, vector<1x8xf32>
    %393 = vector.shape_cast %392 : vector<1x8xf32> to vector<8xf32>
    %394 = vector.shape_cast %393 : vector<8xf32> to vector<1x8xf32>
    %395 = vector.broadcast %394 : vector<1x8xf32> to vector<16x8xf32>
    %396 = arith.addf %391, %395 : vector<16x8xf32>
    %c22 = arith.constant 22 : index
    %c0_185 = arith.constant 0 : index
    %c0_186 = arith.constant 0 : index
    %397 = vector.load %arg4[%c22, %c0_185, %c0_186] : memref<48x32x8xbf16, #tpu.memory_space<vmem>>, vector<1x32x8xbf16>
    %398 = vector.shape_cast %397 : vector<1x32x8xbf16> to vector<32x8xbf16>
    %cst_187 = arith.constant dense<0.000000e+00> : vector<16x8xf32>
    %399 = tpu.matmul %2, %398, %cst_187 {dimension_numbers = #tpu.dot_dimension_numbers<[1], [0], [0], [1], [0, 0, 1, 1], [], []>} : vector<16x32xbf16>, vector<32x8xbf16>, vector<16x8xf32> -> vector<16x8xf32>
    %c22_188 = arith.constant 22 : index
    %c0_189 = arith.constant 0 : index
    %400 = vector.load %arg5[%c22_188, %c0_189] : memref<48x8xf32, #tpu.memory_space<vmem>>, vector<1x8xf32>
    %401 = vector.shape_cast %400 : vector<1x8xf32> to vector<8xf32>
    %402 = vector.shape_cast %401 : vector<8xf32> to vector<1x8xf32>
    %403 = vector.broadcast %402 : vector<1x8xf32> to vector<16x8xf32>
    %404 = arith.addf %399, %403 : vector<16x8xf32>
    %405 = vector.shape_cast %388 : vector<16x8xf32> to vector<2x8x8xf32>
    %406 = arith.truncf %405 : vector<2x8x8xf32> to vector<2x8x8xbf16>
    %407 = vector.shape_cast %396 : vector<16x8xf32> to vector<2x8x8xf32>
    %408 = arith.truncf %407 : vector<2x8x8xf32> to vector<2x8x8xbf16>
    %409 = vector.shape_cast %404 : vector<16x8xf32> to vector<2x8x8xf32>
    %410 = arith.truncf %409 : vector<2x8x8xf32> to vector<2x8x8xbf16>
    "tpu.trace_start"() <{level = 10 : i32, message = "bqd,bkd->bqk"}> : () -> ()
    %cst_190 = arith.constant dense<0.000000e+00> : vector<2x8x8xf32>
    %411 = tpu.matmul %406, %408, %cst_190 {dimension_numbers = #tpu.dot_dimension_numbers<[2], [2], [1], [1], [0, 0, 0, 1, 1, 1], [0], [0]>} : vector<2x8x8xbf16>, vector<2x8x8xbf16>, vector<2x8x8xf32> -> vector<2x8x8xf32>
    "tpu.trace_stop"() : () -> ()
    %cst_191 = arith.constant 0.353553385 : f32
    %412 = vector.broadcast %cst_191 : f32 to vector<2x8x8xf32>
    %413 = arith.mulf %411, %412 : vector<2x8x8xf32>
    %414 = arith.addf %413, %4 : vector<2x8x8xf32>
    %cst_192 = arith.constant dense<0xFF800000> : vector<2x8xf32>
    %415 = vector.multi_reduction <maximumf>, %414, %cst_192 [2] : vector<2x8x8xf32> to vector<2x8xf32>
    %416 = vector.shape_cast %415 : vector<2x8xf32> to vector<2x8x1xf32>
    %417 = vector.broadcast %416 : vector<2x8x1xf32> to vector<2x8x8xf32>
    %418 = arith.subf %414, %417 : vector<2x8x8xf32>
    %419 = math.exp %418 : vector<2x8x8xf32>
    %cst_193 = arith.constant dense<0.000000e+00> : vector<2x8xf32>
    %420 = vector.multi_reduction <add>, %419, %cst_193 [2] : vector<2x8x8xf32> to vector<2x8xf32>
    %421 = vector.shape_cast %420 : vector<2x8xf32> to vector<2x8x1xf32>
    %422 = tpu.reciprocal %421 {approx = true} : vector<2x8x1xf32> -> vector<2x8x1xf32>
    %423 = vector.broadcast %422 : vector<2x8x1xf32> to vector<2x8x8xf32>
    %424 = arith.mulf %419, %423 : vector<2x8x8xf32>
    %425 = arith.truncf %424 : vector<2x8x8xf32> to vector<2x8x8xbf16>
    "tpu.trace_start"() <{level = 10 : i32, message = "bqk,bkd->bqd"}> : () -> ()
    %cst_194 = arith.constant dense<0.000000e+00> : vector<2x8x8xf32>
    %426 = tpu.matmul %425, %410, %cst_194 {dimension_numbers = #tpu.dot_dimension_numbers<[2], [1], [1], [2], [0, 0, 0, 1, 1, 2], [0], [0]>} : vector<2x8x8xbf16>, vector<2x8x8xbf16>, vector<2x8x8xf32> -> vector<2x8x8xf32>
    "tpu.trace_stop"() : () -> ()
    %427 = vector.shape_cast %426 : vector<2x8x8xf32> to vector<16x8xf32>
    %428 = arith.truncf %427 : vector<16x8xf32> to vector<16x8xbf16>
    %c6_195 = arith.constant 6 : index
    %c0_196 = arith.constant 0 : index
    %c0_197 = arith.constant 0 : index
    %429 = vector.load %arg6[%c6_195, %c0_196, %c0_197] : memref<16x8x32xbf16, #tpu.memory_space<vmem>>, vector<1x8x32xbf16>
    %430 = vector.shape_cast %429 : vector<1x8x32xbf16> to vector<8x32xbf16>
    %cst_198 = arith.constant dense<0.000000e+00> : vector<16x32xf32>
    %431 = tpu.matmul %428, %430, %cst_198 {dimension_numbers = #tpu.dot_dimension_numbers<[1], [0], [0], [1], [0, 0, 1, 1], [], []>} : vector<16x8xbf16>, vector<8x32xbf16>, vector<16x32xf32> -> vector<16x32xf32>
    %432 = arith.addf %380, %431 : vector<16x32xf32>
    %c15 = arith.constant 15 : index
    %c0_199 = arith.constant 0 : index
    %c0_200 = arith.constant 0 : index
    %433 = vector.load %arg4[%c15, %c0_199, %c0_200] : memref<48x32x8xbf16, #tpu.memory_space<vmem>>, vector<1x32x8xbf16>
    %434 = vector.shape_cast %433 : vector<1x32x8xbf16> to vector<32x8xbf16>
    %cst_201 = arith.constant dense<0.000000e+00> : vector<16x8xf32>
    %435 = tpu.matmul %275, %434, %cst_201 {dimension_numbers = #tpu.dot_dimension_numbers<[1], [0], [0], [1], [0, 0, 1, 1], [], []>} : vector<16x32xbf16>, vector<32x8xbf16>, vector<16x8xf32> -> vector<16x8xf32>
    %c15_202 = arith.constant 15 : index
    %c0_203 = arith.constant 0 : index
    %436 = vector.load %arg5[%c15_202, %c0_203] : memref<48x8xf32, #tpu.memory_space<vmem>>, vector<1x8xf32>
    %437 = vector.shape_cast %436 : vector<1x8xf32> to vector<8xf32>
    %438 = vector.shape_cast %437 : vector<8xf32> to vector<1x8xf32>
    %439 = vector.broadcast %438 : vector<1x8xf32> to vector<16x8xf32>
    %440 = arith.addf %435, %439 : vector<16x8xf32>
    %c19 = arith.constant 19 : index
    %c0_204 = arith.constant 0 : index
    %c0_205 = arith.constant 0 : index
    %441 = vector.load %arg4[%c19, %c0_204, %c0_205] : memref<48x32x8xbf16, #tpu.memory_space<vmem>>, vector<1x32x8xbf16>
    %442 = vector.shape_cast %441 : vector<1x32x8xbf16> to vector<32x8xbf16>
    %cst_206 = arith.constant dense<0.000000e+00> : vector<16x8xf32>
    %443 = tpu.matmul %2, %442, %cst_206 {dimension_numbers = #tpu.dot_dimension_numbers<[1], [0], [0], [1], [0, 0, 1, 1], [], []>} : vector<16x32xbf16>, vector<32x8xbf16>, vector<16x8xf32> -> vector<16x8xf32>
    %c19_207 = arith.constant 19 : index
    %c0_208 = arith.constant 0 : index
    %444 = vector.load %arg5[%c19_207, %c0_208] : memref<48x8xf32, #tpu.memory_space<vmem>>, vector<1x8xf32>
    %445 = vector.shape_cast %444 : vector<1x8xf32> to vector<8xf32>
    %446 = vector.shape_cast %445 : vector<8xf32> to vector<1x8xf32>
    %447 = vector.broadcast %446 : vector<1x8xf32> to vector<16x8xf32>
    %448 = arith.addf %443, %447 : vector<16x8xf32>
    %c23 = arith.constant 23 : index
    %c0_209 = arith.constant 0 : index
    %c0_210 = arith.constant 0 : index
    %449 = vector.load %arg4[%c23, %c0_209, %c0_210] : memref<48x32x8xbf16, #tpu.memory_space<vmem>>, vector<1x32x8xbf16>
    %450 = vector.shape_cast %449 : vector<1x32x8xbf16> to vector<32x8xbf16>
    %cst_211 = arith.constant dense<0.000000e+00> : vector<16x8xf32>
    %451 = tpu.matmul %2, %450, %cst_211 {dimension_numbers = #tpu.dot_dimension_numbers<[1], [0], [0], [1], [0, 0, 1, 1], [], []>} : vector<16x32xbf16>, vector<32x8xbf16>, vector<16x8xf32> -> vector<16x8xf32>
    %c23_212 = arith.constant 23 : index
    %c0_213 = arith.constant 0 : index
    %452 = vector.load %arg5[%c23_212, %c0_213] : memref<48x8xf32, #tpu.memory_space<vmem>>, vector<1x8xf32>
    %453 = vector.shape_cast %452 : vector<1x8xf32> to vector<8xf32>
    %454 = vector.shape_cast %453 : vector<8xf32> to vector<1x8xf32>
    %455 = vector.broadcast %454 : vector<1x8xf32> to vector<16x8xf32>
    %456 = arith.addf %451, %455 : vector<16x8xf32>
    %457 = vector.shape_cast %440 : vector<16x8xf32> to vector<2x8x8xf32>
    %458 = arith.truncf %457 : vector<2x8x8xf32> to vector<2x8x8xbf16>
    %459 = vector.shape_cast %448 : vector<16x8xf32> to vector<2x8x8xf32>
    %460 = arith.truncf %459 : vector<2x8x8xf32> to vector<2x8x8xbf16>
    %461 = vector.shape_cast %456 : vector<16x8xf32> to vector<2x8x8xf32>
    %462 = arith.truncf %461 : vector<2x8x8xf32> to vector<2x8x8xbf16>
    "tpu.trace_start"() <{level = 10 : i32, message = "bqd,bkd->bqk"}> : () -> ()
    %cst_214 = arith.constant dense<0.000000e+00> : vector<2x8x8xf32>
    %463 = tpu.matmul %458, %460, %cst_214 {dimension_numbers = #tpu.dot_dimension_numbers<[2], [2], [1], [1], [0, 0, 0, 1, 1, 1], [0], [0]>} : vector<2x8x8xbf16>, vector<2x8x8xbf16>, vector<2x8x8xf32> -> vector<2x8x8xf32>
    "tpu.trace_stop"() : () -> ()
    %cst_215 = arith.constant 0.353553385 : f32
    %464 = vector.broadcast %cst_215 : f32 to vector<2x8x8xf32>
    %465 = arith.mulf %463, %464 : vector<2x8x8xf32>
    %466 = arith.addf %465, %4 : vector<2x8x8xf32>
    %cst_216 = arith.constant dense<0xFF800000> : vector<2x8xf32>
    %467 = vector.multi_reduction <maximumf>, %466, %cst_216 [2] : vector<2x8x8xf32> to vector<2x8xf32>
    %468 = vector.shape_cast %467 : vector<2x8xf32> to vector<2x8x1xf32>
    %469 = vector.broadcast %468 : vector<2x8x1xf32> to vector<2x8x8xf32>
    %470 = arith.subf %466, %469 : vector<2x8x8xf32>
    %471 = math.exp %470 : vector<2x8x8xf32>
    %cst_217 = arith.constant dense<0.000000e+00> : vector<2x8xf32>
    %472 = vector.multi_reduction <add>, %471, %cst_217 [2] : vector<2x8x8xf32> to vector<2x8xf32>
    %473 = vector.shape_cast %472 : vector<2x8xf32> to vector<2x8x1xf32>
    %474 = tpu.reciprocal %473 {approx = true} : vector<2x8x1xf32> -> vector<2x8x1xf32>
    %475 = vector.broadcast %474 : vector<2x8x1xf32> to vector<2x8x8xf32>
    %476 = arith.mulf %471, %475 : vector<2x8x8xf32>
    %477 = arith.truncf %476 : vector<2x8x8xf32> to vector<2x8x8xbf16>
    "tpu.trace_start"() <{level = 10 : i32, message = "bqk,bkd->bqd"}> : () -> ()
    %cst_218 = arith.constant dense<0.000000e+00> : vector<2x8x8xf32>
    %478 = tpu.matmul %477, %462, %cst_218 {dimension_numbers = #tpu.dot_dimension_numbers<[2], [1], [1], [2], [0, 0, 0, 1, 1, 2], [0], [0]>} : vector<2x8x8xbf16>, vector<2x8x8xbf16>, vector<2x8x8xf32> -> vector<2x8x8xf32>
    "tpu.trace_stop"() : () -> ()
    %479 = vector.shape_cast %478 : vector<2x8x8xf32> to vector<16x8xf32>
    %480 = arith.truncf %479 : vector<16x8xf32> to vector<16x8xbf16>
    %c7_219 = arith.constant 7 : index
    %c0_220 = arith.constant 0 : index
    %c0_221 = arith.constant 0 : index
    %481 = vector.load %arg6[%c7_219, %c0_220, %c0_221] : memref<16x8x32xbf16, #tpu.memory_space<vmem>>, vector<1x8x32xbf16>
    %482 = vector.shape_cast %481 : vector<1x8x32xbf16> to vector<8x32xbf16>
    %cst_222 = arith.constant dense<0.000000e+00> : vector<16x32xf32>
    %483 = tpu.matmul %480, %482, %cst_222 {dimension_numbers = #tpu.dot_dimension_numbers<[1], [0], [0], [1], [0, 0, 1, 1], [], []>} : vector<16x8xbf16>, vector<8x32xbf16>, vector<16x32xf32> -> vector<16x32xf32>
    %484 = arith.addf %432, %483 : vector<16x32xf32>
    %c1_223 = arith.constant 1 : index
    %c0_224 = arith.constant 0 : index
    %485 = vector.load %arg7[%c1_223, %c0_224] : memref<4x32xf32, #tpu.memory_space<vmem>>, vector<1x32xf32>
    %486 = vector.shape_cast %485 : vector<1x32xf32> to vector<32xf32>
    %487 = vector.shape_cast %486 : vector<32xf32> to vector<1x32xf32>
    %488 = vector.broadcast %487 : vector<1x32xf32> to vector<16x32xf32>
    %489 = arith.addf %484, %488 : vector<16x32xf32>
    %490 = arith.addf %247, %489 : vector<16x32xf32>
    %c2_225 = arith.constant 2 : index
    %c0_226 = arith.constant 0 : index
    %491 = vector.load %arg12[%c2_225, %c0_226] : memref<7x32xf32, #tpu.memory_space<vmem>>, vector<1x32xf32>
    %492 = vector.shape_cast %491 : vector<1x32xf32> to vector<32xf32>
    %c2_227 = arith.constant 2 : index
    %c0_228 = arith.constant 0 : index
    %493 = vector.load %arg13[%c2_227, %c0_228] : memref<7x32xf32, #tpu.memory_space<vmem>>, vector<1x32xf32>
    %494 = vector.shape_cast %493 : vector<1x32xf32> to vector<32xf32>
    %cst_229 = arith.constant dense<0.000000e+00> : vector<16xf32>
    %495 = vector.multi_reduction <add>, %490, %cst_229 [1] : vector<16x32xf32> to vector<16xf32>
    %496 = vector.shape_cast %495 : vector<16xf32> to vector<16x1xf32>
    %cst_230 = arith.constant 3.200000e+01 : f32
    %497 = vector.broadcast %cst_230 : f32 to vector<16x1xf32>
    %498 = arith.divf %496, %497 : vector<16x1xf32>
    %499 = vector.broadcast %498 : vector<16x1xf32> to vector<16x32xf32>
    %500 = arith.subf %490, %499 : vector<16x32xf32>
    %501 = arith.mulf %500, %500 : vector<16x32xf32>
    %cst_231 = arith.constant dense<0.000000e+00> : vector<16xf32>
    %502 = vector.multi_reduction <add>, %501, %cst_231 [1] : vector<16x32xf32> to vector<16xf32>
    %503 = vector.shape_cast %502 : vector<16xf32> to vector<16x1xf32>
    %cst_232 = arith.constant 0.0322580636 : f32
    %504 = vector.broadcast %cst_232 : f32 to vector<16x1xf32>
    %505 = arith.mulf %503, %504 : vector<16x1xf32>
    %506 = math.sqrt %505 : vector<16x1xf32>
    %cst_233 = arith.constant 9.99999997E-7 : f32
    %507 = vector.broadcast %cst_233 : f32 to vector<16x1xf32>
    %508 = arith.addf %506, %507 : vector<16x1xf32>
    %509 = tpu.reciprocal %508 {approx = true} : vector<16x1xf32> -> vector<16x1xf32>
    %510 = vector.broadcast %509 : vector<16x1xf32> to vector<16x32xf32>
    %511 = arith.mulf %500, %510 : vector<16x32xf32>
    %512 = vector.shape_cast %492 : vector<32xf32> to vector<1x32xf32>
    %513 = vector.broadcast %512 : vector<1x32xf32> to vector<16x32xf32>
    %514 = arith.mulf %513, %511 : vector<16x32xf32>
    %515 = vector.shape_cast %494 : vector<32xf32> to vector<1x32xf32>
    %516 = vector.broadcast %515 : vector<1x32xf32> to vector<16x32xf32>
    %517 = arith.addf %514, %516 : vector<16x32xf32>
    %518 = arith.truncf %517 : vector<16x32xf32> to vector<16x32xbf16>
    %c0_234 = arith.constant 0 : index
    %c0_235 = arith.constant 0 : index
    %c0_236 = arith.constant 0 : index
    %519 = vector.load %arg8[%c0_234, %c0_235, %c0_236] : memref<2x32x64xbf16, #tpu.memory_space<vmem>>, vector<1x32x64xbf16>
    %520 = vector.shape_cast %519 : vector<1x32x64xbf16> to vector<32x64xbf16>
    %cst_237 = arith.constant dense<0.000000e+00> : vector<16x64xf32>
    %521 = tpu.matmul %518, %520, %cst_237 {dimension_numbers = #tpu.dot_dimension_numbers<[1], [0], [0], [1], [0, 0, 1, 1], [], []>} : vector<16x32xbf16>, vector<32x64xbf16>, vector<16x64xf32> -> vector<16x64xf32>
    %c0_238 = arith.constant 0 : index
    %c0_239 = arith.constant 0 : index
    %522 = vector.load %arg9[%c0_238, %c0_239] : memref<2x64xf32, #tpu.memory_space<vmem>>, vector<1x64xf32>
    %523 = vector.shape_cast %522 : vector<1x64xf32> to vector<64xf32>
    %524 = vector.shape_cast %523 : vector<64xf32> to vector<1x64xf32>
    %525 = vector.broadcast %524 : vector<1x64xf32> to vector<16x64xf32>
    %526 = arith.addf %521, %525 : vector<16x64xf32>
    %cst_240 = arith.constant 0.000000e+00 : f32
    %527 = vector.broadcast %cst_240 : f32 to vector<16x64xf32>
    %528 = arith.maximumf %526, %527 : vector<16x64xf32>
    %529 = arith.truncf %528 : vector<16x64xf32> to vector<16x64xbf16>
    %c0_241 = arith.constant 0 : index
    %c0_242 = arith.constant 0 : index
    %c0_243 = arith.constant 0 : index
    %530 = vector.load %arg10[%c0_241, %c0_242, %c0_243] : memref<2x64x32xbf16, #tpu.memory_space<vmem>>, vector<1x64x32xbf16>
    %531 = vector.shape_cast %530 : vector<1x64x32xbf16> to vector<64x32xbf16>
    %cst_244 = arith.constant dense<0.000000e+00> : vector<16x32xf32>
    %532 = tpu.matmul %529, %531, %cst_244 {dimension_numbers = #tpu.dot_dimension_numbers<[1], [0], [0], [1], [0, 0, 1, 1], [], []>} : vector<16x64xbf16>, vector<64x32xbf16>, vector<16x32xf32> -> vector<16x32xf32>
    %c0_245 = arith.constant 0 : index
    %c0_246 = arith.constant 0 : index
    %533 = vector.load %arg11[%c0_245, %c0_246] : memref<2x32xf32, #tpu.memory_space<vmem>>, vector<1x32xf32>
    %534 = vector.shape_cast %533 : vector<1x32xf32> to vector<32xf32>
    %535 = vector.shape_cast %534 : vector<32xf32> to vector<1x32xf32>
    %536 = vector.broadcast %535 : vector<1x32xf32> to vector<16x32xf32>
    %537 = arith.addf %532, %536 : vector<16x32xf32>
    %538 = arith.addf %490, %537 : vector<16x32xf32>
    %c3_247 = arith.constant 3 : index
    %c0_248 = arith.constant 0 : index
    %539 = vector.load %arg12[%c3_247, %c0_248] : memref<7x32xf32, #tpu.memory_space<vmem>>, vector<1x32xf32>
    %540 = vector.shape_cast %539 : vector<1x32xf32> to vector<32xf32>
    %c3_249 = arith.constant 3 : index
    %c0_250 = arith.constant 0 : index
    %541 = vector.load %arg13[%c3_249, %c0_250] : memref<7x32xf32, #tpu.memory_space<vmem>>, vector<1x32xf32>
    %542 = vector.shape_cast %541 : vector<1x32xf32> to vector<32xf32>
    %cst_251 = arith.constant dense<0.000000e+00> : vector<16xf32>
    %543 = vector.multi_reduction <add>, %538, %cst_251 [1] : vector<16x32xf32> to vector<16xf32>
    %544 = vector.shape_cast %543 : vector<16xf32> to vector<16x1xf32>
    %cst_252 = arith.constant 3.200000e+01 : f32
    %545 = vector.broadcast %cst_252 : f32 to vector<16x1xf32>
    %546 = arith.divf %544, %545 : vector<16x1xf32>
    %547 = vector.broadcast %546 : vector<16x1xf32> to vector<16x32xf32>
    %548 = arith.subf %538, %547 : vector<16x32xf32>
    %549 = arith.mulf %548, %548 : vector<16x32xf32>
    %cst_253 = arith.constant dense<0.000000e+00> : vector<16xf32>
    %550 = vector.multi_reduction <add>, %549, %cst_253 [1] : vector<16x32xf32> to vector<16xf32>
    %551 = vector.shape_cast %550 : vector<16xf32> to vector<16x1xf32>
    %cst_254 = arith.constant 0.0322580636 : f32
    %552 = vector.broadcast %cst_254 : f32 to vector<16x1xf32>
    %553 = arith.mulf %551, %552 : vector<16x1xf32>
    %554 = math.sqrt %553 : vector<16x1xf32>
    %cst_255 = arith.constant 9.99999997E-7 : f32
    %555 = vector.broadcast %cst_255 : f32 to vector<16x1xf32>
    %556 = arith.addf %554, %555 : vector<16x1xf32>
    %557 = tpu.reciprocal %556 {approx = true} : vector<16x1xf32> -> vector<16x1xf32>
    %558 = vector.broadcast %557 : vector<16x1xf32> to vector<16x32xf32>
    %559 = arith.mulf %548, %558 : vector<16x32xf32>
    %560 = vector.shape_cast %540 : vector<32xf32> to vector<1x32xf32>
    %561 = vector.broadcast %560 : vector<1x32xf32> to vector<16x32xf32>
    %562 = arith.mulf %561, %559 : vector<16x32xf32>
    %563 = vector.shape_cast %542 : vector<32xf32> to vector<1x32xf32>
    %564 = vector.broadcast %563 : vector<1x32xf32> to vector<16x32xf32>
    %565 = arith.addf %562, %564 : vector<16x32xf32>
    %566 = arith.truncf %565 : vector<16x32xf32> to vector<16x32xbf16>
    %cst_256 = arith.constant 0.000000e+00 : f32
    %567 = vector.broadcast %cst_256 : f32 to vector<16x32xf32>
    %c24 = arith.constant 24 : index
    %c0_257 = arith.constant 0 : index
    %c0_258 = arith.constant 0 : index
    %568 = vector.load %arg4[%c24, %c0_257, %c0_258] : memref<48x32x8xbf16, #tpu.memory_space<vmem>>, vector<1x32x8xbf16>
    %569 = vector.shape_cast %568 : vector<1x32x8xbf16> to vector<32x8xbf16>
    %cst_259 = arith.constant dense<0.000000e+00> : vector<16x8xf32>
    %570 = tpu.matmul %566, %569, %cst_259 {dimension_numbers = #tpu.dot_dimension_numbers<[1], [0], [0], [1], [0, 0, 1, 1], [], []>} : vector<16x32xbf16>, vector<32x8xbf16>, vector<16x8xf32> -> vector<16x8xf32>
    %c24_260 = arith.constant 24 : index
    %c0_261 = arith.constant 0 : index
    %571 = vector.load %arg5[%c24_260, %c0_261] : memref<48x8xf32, #tpu.memory_space<vmem>>, vector<1x8xf32>
    %572 = vector.shape_cast %571 : vector<1x8xf32> to vector<8xf32>
    %573 = vector.shape_cast %572 : vector<8xf32> to vector<1x8xf32>
    %574 = vector.broadcast %573 : vector<1x8xf32> to vector<16x8xf32>
    %575 = arith.addf %570, %574 : vector<16x8xf32>
    %c28 = arith.constant 28 : index
    %c0_262 = arith.constant 0 : index
    %c0_263 = arith.constant 0 : index
    %576 = vector.load %arg4[%c28, %c0_262, %c0_263] : memref<48x32x8xbf16, #tpu.memory_space<vmem>>, vector<1x32x8xbf16>
    %577 = vector.shape_cast %576 : vector<1x32x8xbf16> to vector<32x8xbf16>
    %cst_264 = arith.constant dense<0.000000e+00> : vector<16x8xf32>
    %578 = tpu.matmul %566, %577, %cst_264 {dimension_numbers = #tpu.dot_dimension_numbers<[1], [0], [0], [1], [0, 0, 1, 1], [], []>} : vector<16x32xbf16>, vector<32x8xbf16>, vector<16x8xf32> -> vector<16x8xf32>
    %c28_265 = arith.constant 28 : index
    %c0_266 = arith.constant 0 : index
    %579 = vector.load %arg5[%c28_265, %c0_266] : memref<48x8xf32, #tpu.memory_space<vmem>>, vector<1x8xf32>
    %580 = vector.shape_cast %579 : vector<1x8xf32> to vector<8xf32>
    %581 = vector.shape_cast %580 : vector<8xf32> to vector<1x8xf32>
    %582 = vector.broadcast %581 : vector<1x8xf32> to vector<16x8xf32>
    %583 = arith.addf %578, %582 : vector<16x8xf32>
    %c32 = arith.constant 32 : index
    %c0_267 = arith.constant 0 : index
    %c0_268 = arith.constant 0 : index
    %584 = vector.load %arg4[%c32, %c0_267, %c0_268] : memref<48x32x8xbf16, #tpu.memory_space<vmem>>, vector<1x32x8xbf16>
    %585 = vector.shape_cast %584 : vector<1x32x8xbf16> to vector<32x8xbf16>
    %cst_269 = arith.constant dense<0.000000e+00> : vector<16x8xf32>
    %586 = tpu.matmul %566, %585, %cst_269 {dimension_numbers = #tpu.dot_dimension_numbers<[1], [0], [0], [1], [0, 0, 1, 1], [], []>} : vector<16x32xbf16>, vector<32x8xbf16>, vector<16x8xf32> -> vector<16x8xf32>
    %c32_270 = arith.constant 32 : index
    %c0_271 = arith.constant 0 : index
    %587 = vector.load %arg5[%c32_270, %c0_271] : memref<48x8xf32, #tpu.memory_space<vmem>>, vector<1x8xf32>
    %588 = vector.shape_cast %587 : vector<1x8xf32> to vector<8xf32>
    %589 = vector.shape_cast %588 : vector<8xf32> to vector<1x8xf32>
    %590 = vector.broadcast %589 : vector<1x8xf32> to vector<16x8xf32>
    %591 = arith.addf %586, %590 : vector<16x8xf32>
    %592 = vector.shape_cast %575 : vector<16x8xf32> to vector<2x8x8xf32>
    %593 = arith.truncf %592 : vector<2x8x8xf32> to vector<2x8x8xbf16>
    %594 = vector.shape_cast %583 : vector<16x8xf32> to vector<2x8x8xf32>
    %595 = arith.truncf %594 : vector<2x8x8xf32> to vector<2x8x8xbf16>
    %596 = vector.shape_cast %591 : vector<16x8xf32> to vector<2x8x8xf32>
    %597 = arith.truncf %596 : vector<2x8x8xf32> to vector<2x8x8xbf16>
    "tpu.trace_start"() <{level = 10 : i32, message = "bqd,bkd->bqk"}> : () -> ()
    %cst_272 = arith.constant dense<0.000000e+00> : vector<2x8x8xf32>
    %598 = tpu.matmul %593, %595, %cst_272 {dimension_numbers = #tpu.dot_dimension_numbers<[2], [2], [1], [1], [0, 0, 0, 1, 1, 1], [0], [0]>} : vector<2x8x8xbf16>, vector<2x8x8xbf16>, vector<2x8x8xf32> -> vector<2x8x8xf32>
    "tpu.trace_stop"() : () -> ()
    %cst_273 = arith.constant 0.353553385 : f32
    %599 = vector.broadcast %cst_273 : f32 to vector<2x8x8xf32>
    %600 = arith.mulf %598, %599 : vector<2x8x8xf32>
    %601 = arith.addf %600, %3 : vector<2x8x8xf32>
    %cst_274 = arith.constant dense<0xFF800000> : vector<2x8xf32>
    %602 = vector.multi_reduction <maximumf>, %601, %cst_274 [2] : vector<2x8x8xf32> to vector<2x8xf32>
    %603 = vector.shape_cast %602 : vector<2x8xf32> to vector<2x8x1xf32>
    %604 = vector.broadcast %603 : vector<2x8x1xf32> to vector<2x8x8xf32>
    %605 = arith.subf %601, %604 : vector<2x8x8xf32>
    %606 = math.exp %605 : vector<2x8x8xf32>
    %cst_275 = arith.constant dense<0.000000e+00> : vector<2x8xf32>
    %607 = vector.multi_reduction <add>, %606, %cst_275 [2] : vector<2x8x8xf32> to vector<2x8xf32>
    %608 = vector.shape_cast %607 : vector<2x8xf32> to vector<2x8x1xf32>
    %609 = tpu.reciprocal %608 {approx = true} : vector<2x8x1xf32> -> vector<2x8x1xf32>
    %610 = vector.broadcast %609 : vector<2x8x1xf32> to vector<2x8x8xf32>
    %611 = arith.mulf %606, %610 : vector<2x8x8xf32>
    %612 = arith.truncf %611 : vector<2x8x8xf32> to vector<2x8x8xbf16>
    "tpu.trace_start"() <{level = 10 : i32, message = "bqk,bkd->bqd"}> : () -> ()
    %cst_276 = arith.constant dense<0.000000e+00> : vector<2x8x8xf32>
    %613 = tpu.matmul %612, %597, %cst_276 {dimension_numbers = #tpu.dot_dimension_numbers<[2], [1], [1], [2], [0, 0, 0, 1, 1, 2], [0], [0]>} : vector<2x8x8xbf16>, vector<2x8x8xbf16>, vector<2x8x8xf32> -> vector<2x8x8xf32>
    "tpu.trace_stop"() : () -> ()
    %614 = vector.shape_cast %613 : vector<2x8x8xf32> to vector<16x8xf32>
    %615 = arith.truncf %614 : vector<16x8xf32> to vector<16x8xbf16>
    %c8_277 = arith.constant 8 : index
    %c0_278 = arith.constant 0 : index
    %c0_279 = arith.constant 0 : index
    %616 = vector.load %arg6[%c8_277, %c0_278, %c0_279] : memref<16x8x32xbf16, #tpu.memory_space<vmem>>, vector<1x8x32xbf16>
    %617 = vector.shape_cast %616 : vector<1x8x32xbf16> to vector<8x32xbf16>
    %cst_280 = arith.constant dense<0.000000e+00> : vector<16x32xf32>
    %618 = tpu.matmul %615, %617, %cst_280 {dimension_numbers = #tpu.dot_dimension_numbers<[1], [0], [0], [1], [0, 0, 1, 1], [], []>} : vector<16x8xbf16>, vector<8x32xbf16>, vector<16x32xf32> -> vector<16x32xf32>
    %619 = arith.addf %567, %618 : vector<16x32xf32>
    %c25 = arith.constant 25 : index
    %c0_281 = arith.constant 0 : index
    %c0_282 = arith.constant 0 : index
    %620 = vector.load %arg4[%c25, %c0_281, %c0_282] : memref<48x32x8xbf16, #tpu.memory_space<vmem>>, vector<1x32x8xbf16>
    %621 = vector.shape_cast %620 : vector<1x32x8xbf16> to vector<32x8xbf16>
    %cst_283 = arith.constant dense<0.000000e+00> : vector<16x8xf32>
    %622 = tpu.matmul %566, %621, %cst_283 {dimension_numbers = #tpu.dot_dimension_numbers<[1], [0], [0], [1], [0, 0, 1, 1], [], []>} : vector<16x32xbf16>, vector<32x8xbf16>, vector<16x8xf32> -> vector<16x8xf32>
    %c25_284 = arith.constant 25 : index
    %c0_285 = arith.constant 0 : index
    %623 = vector.load %arg5[%c25_284, %c0_285] : memref<48x8xf32, #tpu.memory_space<vmem>>, vector<1x8xf32>
    %624 = vector.shape_cast %623 : vector<1x8xf32> to vector<8xf32>
    %625 = vector.shape_cast %624 : vector<8xf32> to vector<1x8xf32>
    %626 = vector.broadcast %625 : vector<1x8xf32> to vector<16x8xf32>
    %627 = arith.addf %622, %626 : vector<16x8xf32>
    %c29 = arith.constant 29 : index
    %c0_286 = arith.constant 0 : index
    %c0_287 = arith.constant 0 : index
    %628 = vector.load %arg4[%c29, %c0_286, %c0_287] : memref<48x32x8xbf16, #tpu.memory_space<vmem>>, vector<1x32x8xbf16>
    %629 = vector.shape_cast %628 : vector<1x32x8xbf16> to vector<32x8xbf16>
    %cst_288 = arith.constant dense<0.000000e+00> : vector<16x8xf32>
    %630 = tpu.matmul %566, %629, %cst_288 {dimension_numbers = #tpu.dot_dimension_numbers<[1], [0], [0], [1], [0, 0, 1, 1], [], []>} : vector<16x32xbf16>, vector<32x8xbf16>, vector<16x8xf32> -> vector<16x8xf32>
    %c29_289 = arith.constant 29 : index
    %c0_290 = arith.constant 0 : index
    %631 = vector.load %arg5[%c29_289, %c0_290] : memref<48x8xf32, #tpu.memory_space<vmem>>, vector<1x8xf32>
    %632 = vector.shape_cast %631 : vector<1x8xf32> to vector<8xf32>
    %633 = vector.shape_cast %632 : vector<8xf32> to vector<1x8xf32>
    %634 = vector.broadcast %633 : vector<1x8xf32> to vector<16x8xf32>
    %635 = arith.addf %630, %634 : vector<16x8xf32>
    %c33 = arith.constant 33 : index
    %c0_291 = arith.constant 0 : index
    %c0_292 = arith.constant 0 : index
    %636 = vector.load %arg4[%c33, %c0_291, %c0_292] : memref<48x32x8xbf16, #tpu.memory_space<vmem>>, vector<1x32x8xbf16>
    %637 = vector.shape_cast %636 : vector<1x32x8xbf16> to vector<32x8xbf16>
    %cst_293 = arith.constant dense<0.000000e+00> : vector<16x8xf32>
    %638 = tpu.matmul %566, %637, %cst_293 {dimension_numbers = #tpu.dot_dimension_numbers<[1], [0], [0], [1], [0, 0, 1, 1], [], []>} : vector<16x32xbf16>, vector<32x8xbf16>, vector<16x8xf32> -> vector<16x8xf32>
    %c33_294 = arith.constant 33 : index
    %c0_295 = arith.constant 0 : index
    %639 = vector.load %arg5[%c33_294, %c0_295] : memref<48x8xf32, #tpu.memory_space<vmem>>, vector<1x8xf32>
    %640 = vector.shape_cast %639 : vector<1x8xf32> to vector<8xf32>
    %641 = vector.shape_cast %640 : vector<8xf32> to vector<1x8xf32>
    %642 = vector.broadcast %641 : vector<1x8xf32> to vector<16x8xf32>
    %643 = arith.addf %638, %642 : vector<16x8xf32>
    %644 = vector.shape_cast %627 : vector<16x8xf32> to vector<2x8x8xf32>
    %645 = arith.truncf %644 : vector<2x8x8xf32> to vector<2x8x8xbf16>
    %646 = vector.shape_cast %635 : vector<16x8xf32> to vector<2x8x8xf32>
    %647 = arith.truncf %646 : vector<2x8x8xf32> to vector<2x8x8xbf16>
    %648 = vector.shape_cast %643 : vector<16x8xf32> to vector<2x8x8xf32>
    %649 = arith.truncf %648 : vector<2x8x8xf32> to vector<2x8x8xbf16>
    "tpu.trace_start"() <{level = 10 : i32, message = "bqd,bkd->bqk"}> : () -> ()
    %cst_296 = arith.constant dense<0.000000e+00> : vector<2x8x8xf32>
    %650 = tpu.matmul %645, %647, %cst_296 {dimension_numbers = #tpu.dot_dimension_numbers<[2], [2], [1], [1], [0, 0, 0, 1, 1, 1], [0], [0]>} : vector<2x8x8xbf16>, vector<2x8x8xbf16>, vector<2x8x8xf32> -> vector<2x8x8xf32>
    "tpu.trace_stop"() : () -> ()
    %cst_297 = arith.constant 0.353553385 : f32
    %651 = vector.broadcast %cst_297 : f32 to vector<2x8x8xf32>
    %652 = arith.mulf %650, %651 : vector<2x8x8xf32>
    %653 = arith.addf %652, %3 : vector<2x8x8xf32>
    %cst_298 = arith.constant dense<0xFF800000> : vector<2x8xf32>
    %654 = vector.multi_reduction <maximumf>, %653, %cst_298 [2] : vector<2x8x8xf32> to vector<2x8xf32>
    %655 = vector.shape_cast %654 : vector<2x8xf32> to vector<2x8x1xf32>
    %656 = vector.broadcast %655 : vector<2x8x1xf32> to vector<2x8x8xf32>
    %657 = arith.subf %653, %656 : vector<2x8x8xf32>
    %658 = math.exp %657 : vector<2x8x8xf32>
    %cst_299 = arith.constant dense<0.000000e+00> : vector<2x8xf32>
    %659 = vector.multi_reduction <add>, %658, %cst_299 [2] : vector<2x8x8xf32> to vector<2x8xf32>
    %660 = vector.shape_cast %659 : vector<2x8xf32> to vector<2x8x1xf32>
    %661 = tpu.reciprocal %660 {approx = true} : vector<2x8x1xf32> -> vector<2x8x1xf32>
    %662 = vector.broadcast %661 : vector<2x8x1xf32> to vector<2x8x8xf32>
    %663 = arith.mulf %658, %662 : vector<2x8x8xf32>
    %664 = arith.truncf %663 : vector<2x8x8xf32> to vector<2x8x8xbf16>
    "tpu.trace_start"() <{level = 10 : i32, message = "bqk,bkd->bqd"}> : () -> ()
    %cst_300 = arith.constant dense<0.000000e+00> : vector<2x8x8xf32>
    %665 = tpu.matmul %664, %649, %cst_300 {dimension_numbers = #tpu.dot_dimension_numbers<[2], [1], [1], [2], [0, 0, 0, 1, 1, 2], [0], [0]>} : vector<2x8x8xbf16>, vector<2x8x8xbf16>, vector<2x8x8xf32> -> vector<2x8x8xf32>
    "tpu.trace_stop"() : () -> ()
    %666 = vector.shape_cast %665 : vector<2x8x8xf32> to vector<16x8xf32>
    %667 = arith.truncf %666 : vector<16x8xf32> to vector<16x8xbf16>
    %c9_301 = arith.constant 9 : index
    %c0_302 = arith.constant 0 : index
    %c0_303 = arith.constant 0 : index
    %668 = vector.load %arg6[%c9_301, %c0_302, %c0_303] : memref<16x8x32xbf16, #tpu.memory_space<vmem>>, vector<1x8x32xbf16>
    %669 = vector.shape_cast %668 : vector<1x8x32xbf16> to vector<8x32xbf16>
    %cst_304 = arith.constant dense<0.000000e+00> : vector<16x32xf32>
    %670 = tpu.matmul %667, %669, %cst_304 {dimension_numbers = #tpu.dot_dimension_numbers<[1], [0], [0], [1], [0, 0, 1, 1], [], []>} : vector<16x8xbf16>, vector<8x32xbf16>, vector<16x32xf32> -> vector<16x32xf32>
    %671 = arith.addf %619, %670 : vector<16x32xf32>
    %c26 = arith.constant 26 : index
    %c0_305 = arith.constant 0 : index
    %c0_306 = arith.constant 0 : index
    %672 = vector.load %arg4[%c26, %c0_305, %c0_306] : memref<48x32x8xbf16, #tpu.memory_space<vmem>>, vector<1x32x8xbf16>
    %673 = vector.shape_cast %672 : vector<1x32x8xbf16> to vector<32x8xbf16>
    %cst_307 = arith.constant dense<0.000000e+00> : vector<16x8xf32>
    %674 = tpu.matmul %566, %673, %cst_307 {dimension_numbers = #tpu.dot_dimension_numbers<[1], [0], [0], [1], [0, 0, 1, 1], [], []>} : vector<16x32xbf16>, vector<32x8xbf16>, vector<16x8xf32> -> vector<16x8xf32>
    %c26_308 = arith.constant 26 : index
    %c0_309 = arith.constant 0 : index
    %675 = vector.load %arg5[%c26_308, %c0_309] : memref<48x8xf32, #tpu.memory_space<vmem>>, vector<1x8xf32>
    %676 = vector.shape_cast %675 : vector<1x8xf32> to vector<8xf32>
    %677 = vector.shape_cast %676 : vector<8xf32> to vector<1x8xf32>
    %678 = vector.broadcast %677 : vector<1x8xf32> to vector<16x8xf32>
    %679 = arith.addf %674, %678 : vector<16x8xf32>
    %c30 = arith.constant 30 : index
    %c0_310 = arith.constant 0 : index
    %c0_311 = arith.constant 0 : index
    %680 = vector.load %arg4[%c30, %c0_310, %c0_311] : memref<48x32x8xbf16, #tpu.memory_space<vmem>>, vector<1x32x8xbf16>
    %681 = vector.shape_cast %680 : vector<1x32x8xbf16> to vector<32x8xbf16>
    %cst_312 = arith.constant dense<0.000000e+00> : vector<16x8xf32>
    %682 = tpu.matmul %566, %681, %cst_312 {dimension_numbers = #tpu.dot_dimension_numbers<[1], [0], [0], [1], [0, 0, 1, 1], [], []>} : vector<16x32xbf16>, vector<32x8xbf16>, vector<16x8xf32> -> vector<16x8xf32>
    %c30_313 = arith.constant 30 : index
    %c0_314 = arith.constant 0 : index
    %683 = vector.load %arg5[%c30_313, %c0_314] : memref<48x8xf32, #tpu.memory_space<vmem>>, vector<1x8xf32>
    %684 = vector.shape_cast %683 : vector<1x8xf32> to vector<8xf32>
    %685 = vector.shape_cast %684 : vector<8xf32> to vector<1x8xf32>
    %686 = vector.broadcast %685 : vector<1x8xf32> to vector<16x8xf32>
    %687 = arith.addf %682, %686 : vector<16x8xf32>
    %c34 = arith.constant 34 : index
    %c0_315 = arith.constant 0 : index
    %c0_316 = arith.constant 0 : index
    %688 = vector.load %arg4[%c34, %c0_315, %c0_316] : memref<48x32x8xbf16, #tpu.memory_space<vmem>>, vector<1x32x8xbf16>
    %689 = vector.shape_cast %688 : vector<1x32x8xbf16> to vector<32x8xbf16>
    %cst_317 = arith.constant dense<0.000000e+00> : vector<16x8xf32>
    %690 = tpu.matmul %566, %689, %cst_317 {dimension_numbers = #tpu.dot_dimension_numbers<[1], [0], [0], [1], [0, 0, 1, 1], [], []>} : vector<16x32xbf16>, vector<32x8xbf16>, vector<16x8xf32> -> vector<16x8xf32>
    %c34_318 = arith.constant 34 : index
    %c0_319 = arith.constant 0 : index
    %691 = vector.load %arg5[%c34_318, %c0_319] : memref<48x8xf32, #tpu.memory_space<vmem>>, vector<1x8xf32>
    %692 = vector.shape_cast %691 : vector<1x8xf32> to vector<8xf32>
    %693 = vector.shape_cast %692 : vector<8xf32> to vector<1x8xf32>
    %694 = vector.broadcast %693 : vector<1x8xf32> to vector<16x8xf32>
    %695 = arith.addf %690, %694 : vector<16x8xf32>
    %696 = vector.shape_cast %679 : vector<16x8xf32> to vector<2x8x8xf32>
    %697 = arith.truncf %696 : vector<2x8x8xf32> to vector<2x8x8xbf16>
    %698 = vector.shape_cast %687 : vector<16x8xf32> to vector<2x8x8xf32>
    %699 = arith.truncf %698 : vector<2x8x8xf32> to vector<2x8x8xbf16>
    %700 = vector.shape_cast %695 : vector<16x8xf32> to vector<2x8x8xf32>
    %701 = arith.truncf %700 : vector<2x8x8xf32> to vector<2x8x8xbf16>
    "tpu.trace_start"() <{level = 10 : i32, message = "bqd,bkd->bqk"}> : () -> ()
    %cst_320 = arith.constant dense<0.000000e+00> : vector<2x8x8xf32>
    %702 = tpu.matmul %697, %699, %cst_320 {dimension_numbers = #tpu.dot_dimension_numbers<[2], [2], [1], [1], [0, 0, 0, 1, 1, 1], [0], [0]>} : vector<2x8x8xbf16>, vector<2x8x8xbf16>, vector<2x8x8xf32> -> vector<2x8x8xf32>
    "tpu.trace_stop"() : () -> ()
    %cst_321 = arith.constant 0.353553385 : f32
    %703 = vector.broadcast %cst_321 : f32 to vector<2x8x8xf32>
    %704 = arith.mulf %702, %703 : vector<2x8x8xf32>
    %705 = arith.addf %704, %3 : vector<2x8x8xf32>
    %cst_322 = arith.constant dense<0xFF800000> : vector<2x8xf32>
    %706 = vector.multi_reduction <maximumf>, %705, %cst_322 [2] : vector<2x8x8xf32> to vector<2x8xf32>
    %707 = vector.shape_cast %706 : vector<2x8xf32> to vector<2x8x1xf32>
    %708 = vector.broadcast %707 : vector<2x8x1xf32> to vector<2x8x8xf32>
    %709 = arith.subf %705, %708 : vector<2x8x8xf32>
    %710 = math.exp %709 : vector<2x8x8xf32>
    %cst_323 = arith.constant dense<0.000000e+00> : vector<2x8xf32>
    %711 = vector.multi_reduction <add>, %710, %cst_323 [2] : vector<2x8x8xf32> to vector<2x8xf32>
    %712 = vector.shape_cast %711 : vector<2x8xf32> to vector<2x8x1xf32>
    %713 = tpu.reciprocal %712 {approx = true} : vector<2x8x1xf32> -> vector<2x8x1xf32>
    %714 = vector.broadcast %713 : vector<2x8x1xf32> to vector<2x8x8xf32>
    %715 = arith.mulf %710, %714 : vector<2x8x8xf32>
    %716 = arith.truncf %715 : vector<2x8x8xf32> to vector<2x8x8xbf16>
    "tpu.trace_start"() <{level = 10 : i32, message = "bqk,bkd->bqd"}> : () -> ()
    %cst_324 = arith.constant dense<0.000000e+00> : vector<2x8x8xf32>
    %717 = tpu.matmul %716, %701, %cst_324 {dimension_numbers = #tpu.dot_dimension_numbers<[2], [1], [1], [2], [0, 0, 0, 1, 1, 2], [0], [0]>} : vector<2x8x8xbf16>, vector<2x8x8xbf16>, vector<2x8x8xf32> -> vector<2x8x8xf32>
    "tpu.trace_stop"() : () -> ()
    %718 = vector.shape_cast %717 : vector<2x8x8xf32> to vector<16x8xf32>
    %719 = arith.truncf %718 : vector<16x8xf32> to vector<16x8xbf16>
    %c10_325 = arith.constant 10 : index
    %c0_326 = arith.constant 0 : index
    %c0_327 = arith.constant 0 : index
    %720 = vector.load %arg6[%c10_325, %c0_326, %c0_327] : memref<16x8x32xbf16, #tpu.memory_space<vmem>>, vector<1x8x32xbf16>
    %721 = vector.shape_cast %720 : vector<1x8x32xbf16> to vector<8x32xbf16>
    %cst_328 = arith.constant dense<0.000000e+00> : vector<16x32xf32>
    %722 = tpu.matmul %719, %721, %cst_328 {dimension_numbers = #tpu.dot_dimension_numbers<[1], [0], [0], [1], [0, 0, 1, 1], [], []>} : vector<16x8xbf16>, vector<8x32xbf16>, vector<16x32xf32> -> vector<16x32xf32>
    %723 = arith.addf %671, %722 : vector<16x32xf32>
    %c27 = arith.constant 27 : index
    %c0_329 = arith.constant 0 : index
    %c0_330 = arith.constant 0 : index
    %724 = vector.load %arg4[%c27, %c0_329, %c0_330] : memref<48x32x8xbf16, #tpu.memory_space<vmem>>, vector<1x32x8xbf16>
    %725 = vector.shape_cast %724 : vector<1x32x8xbf16> to vector<32x8xbf16>
    %cst_331 = arith.constant dense<0.000000e+00> : vector<16x8xf32>
    %726 = tpu.matmul %566, %725, %cst_331 {dimension_numbers = #tpu.dot_dimension_numbers<[1], [0], [0], [1], [0, 0, 1, 1], [], []>} : vector<16x32xbf16>, vector<32x8xbf16>, vector<16x8xf32> -> vector<16x8xf32>
    %c27_332 = arith.constant 27 : index
    %c0_333 = arith.constant 0 : index
    %727 = vector.load %arg5[%c27_332, %c0_333] : memref<48x8xf32, #tpu.memory_space<vmem>>, vector<1x8xf32>
    %728 = vector.shape_cast %727 : vector<1x8xf32> to vector<8xf32>
    %729 = vector.shape_cast %728 : vector<8xf32> to vector<1x8xf32>
    %730 = vector.broadcast %729 : vector<1x8xf32> to vector<16x8xf32>
    %731 = arith.addf %726, %730 : vector<16x8xf32>
    %c31 = arith.constant 31 : index
    %c0_334 = arith.constant 0 : index
    %c0_335 = arith.constant 0 : index
    %732 = vector.load %arg4[%c31, %c0_334, %c0_335] : memref<48x32x8xbf16, #tpu.memory_space<vmem>>, vector<1x32x8xbf16>
    %733 = vector.shape_cast %732 : vector<1x32x8xbf16> to vector<32x8xbf16>
    %cst_336 = arith.constant dense<0.000000e+00> : vector<16x8xf32>
    %734 = tpu.matmul %566, %733, %cst_336 {dimension_numbers = #tpu.dot_dimension_numbers<[1], [0], [0], [1], [0, 0, 1, 1], [], []>} : vector<16x32xbf16>, vector<32x8xbf16>, vector<16x8xf32> -> vector<16x8xf32>
    %c31_337 = arith.constant 31 : index
    %c0_338 = arith.constant 0 : index
    %735 = vector.load %arg5[%c31_337, %c0_338] : memref<48x8xf32, #tpu.memory_space<vmem>>, vector<1x8xf32>
    %736 = vector.shape_cast %735 : vector<1x8xf32> to vector<8xf32>
    %737 = vector.shape_cast %736 : vector<8xf32> to vector<1x8xf32>
    %738 = vector.broadcast %737 : vector<1x8xf32> to vector<16x8xf32>
    %739 = arith.addf %734, %738 : vector<16x8xf32>
    %c35 = arith.constant 35 : index
    %c0_339 = arith.constant 0 : index
    %c0_340 = arith.constant 0 : index
    %740 = vector.load %arg4[%c35, %c0_339, %c0_340] : memref<48x32x8xbf16, #tpu.memory_space<vmem>>, vector<1x32x8xbf16>
    %741 = vector.shape_cast %740 : vector<1x32x8xbf16> to vector<32x8xbf16>
    %cst_341 = arith.constant dense<0.000000e+00> : vector<16x8xf32>
    %742 = tpu.matmul %566, %741, %cst_341 {dimension_numbers = #tpu.dot_dimension_numbers<[1], [0], [0], [1], [0, 0, 1, 1], [], []>} : vector<16x32xbf16>, vector<32x8xbf16>, vector<16x8xf32> -> vector<16x8xf32>
    %c35_342 = arith.constant 35 : index
    %c0_343 = arith.constant 0 : index
    %743 = vector.load %arg5[%c35_342, %c0_343] : memref<48x8xf32, #tpu.memory_space<vmem>>, vector<1x8xf32>
    %744 = vector.shape_cast %743 : vector<1x8xf32> to vector<8xf32>
    %745 = vector.shape_cast %744 : vector<8xf32> to vector<1x8xf32>
    %746 = vector.broadcast %745 : vector<1x8xf32> to vector<16x8xf32>
    %747 = arith.addf %742, %746 : vector<16x8xf32>
    %748 = vector.shape_cast %731 : vector<16x8xf32> to vector<2x8x8xf32>
    %749 = arith.truncf %748 : vector<2x8x8xf32> to vector<2x8x8xbf16>
    %750 = vector.shape_cast %739 : vector<16x8xf32> to vector<2x8x8xf32>
    %751 = arith.truncf %750 : vector<2x8x8xf32> to vector<2x8x8xbf16>
    %752 = vector.shape_cast %747 : vector<16x8xf32> to vector<2x8x8xf32>
    %753 = arith.truncf %752 : vector<2x8x8xf32> to vector<2x8x8xbf16>
    "tpu.trace_start"() <{level = 10 : i32, message = "bqd,bkd->bqk"}> : () -> ()
    %cst_344 = arith.constant dense<0.000000e+00> : vector<2x8x8xf32>
    %754 = tpu.matmul %749, %751, %cst_344 {dimension_numbers = #tpu.dot_dimension_numbers<[2], [2], [1], [1], [0, 0, 0, 1, 1, 1], [0], [0]>} : vector<2x8x8xbf16>, vector<2x8x8xbf16>, vector<2x8x8xf32> -> vector<2x8x8xf32>
    "tpu.trace_stop"() : () -> ()
    %cst_345 = arith.constant 0.353553385 : f32
    %755 = vector.broadcast %cst_345 : f32 to vector<2x8x8xf32>
    %756 = arith.mulf %754, %755 : vector<2x8x8xf32>
    %757 = arith.addf %756, %3 : vector<2x8x8xf32>
    %cst_346 = arith.constant dense<0xFF800000> : vector<2x8xf32>
    %758 = vector.multi_reduction <maximumf>, %757, %cst_346 [2] : vector<2x8x8xf32> to vector<2x8xf32>
    %759 = vector.shape_cast %758 : vector<2x8xf32> to vector<2x8x1xf32>
    %760 = vector.broadcast %759 : vector<2x8x1xf32> to vector<2x8x8xf32>
    %761 = arith.subf %757, %760 : vector<2x8x8xf32>
    %762 = math.exp %761 : vector<2x8x8xf32>
    %cst_347 = arith.constant dense<0.000000e+00> : vector<2x8xf32>
    %763 = vector.multi_reduction <add>, %762, %cst_347 [2] : vector<2x8x8xf32> to vector<2x8xf32>
    %764 = vector.shape_cast %763 : vector<2x8xf32> to vector<2x8x1xf32>
    %765 = tpu.reciprocal %764 {approx = true} : vector<2x8x1xf32> -> vector<2x8x1xf32>
    %766 = vector.broadcast %765 : vector<2x8x1xf32> to vector<2x8x8xf32>
    %767 = arith.mulf %762, %766 : vector<2x8x8xf32>
    %768 = arith.truncf %767 : vector<2x8x8xf32> to vector<2x8x8xbf16>
    "tpu.trace_start"() <{level = 10 : i32, message = "bqk,bkd->bqd"}> : () -> ()
    %cst_348 = arith.constant dense<0.000000e+00> : vector<2x8x8xf32>
    %769 = tpu.matmul %768, %753, %cst_348 {dimension_numbers = #tpu.dot_dimension_numbers<[2], [1], [1], [2], [0, 0, 0, 1, 1, 2], [0], [0]>} : vector<2x8x8xbf16>, vector<2x8x8xbf16>, vector<2x8x8xf32> -> vector<2x8x8xf32>
    "tpu.trace_stop"() : () -> ()
    %770 = vector.shape_cast %769 : vector<2x8x8xf32> to vector<16x8xf32>
    %771 = arith.truncf %770 : vector<16x8xf32> to vector<16x8xbf16>
    %c11_349 = arith.constant 11 : index
    %c0_350 = arith.constant 0 : index
    %c0_351 = arith.constant 0 : index
    %772 = vector.load %arg6[%c11_349, %c0_350, %c0_351] : memref<16x8x32xbf16, #tpu.memory_space<vmem>>, vector<1x8x32xbf16>
    %773 = vector.shape_cast %772 : vector<1x8x32xbf16> to vector<8x32xbf16>
    %cst_352 = arith.constant dense<0.000000e+00> : vector<16x32xf32>
    %774 = tpu.matmul %771, %773, %cst_352 {dimension_numbers = #tpu.dot_dimension_numbers<[1], [0], [0], [1], [0, 0, 1, 1], [], []>} : vector<16x8xbf16>, vector<8x32xbf16>, vector<16x32xf32> -> vector<16x32xf32>
    %775 = arith.addf %723, %774 : vector<16x32xf32>
    %c2_353 = arith.constant 2 : index
    %c0_354 = arith.constant 0 : index
    %776 = vector.load %arg7[%c2_353, %c0_354] : memref<4x32xf32, #tpu.memory_space<vmem>>, vector<1x32xf32>
    %777 = vector.shape_cast %776 : vector<1x32xf32> to vector<32xf32>
    %778 = vector.shape_cast %777 : vector<32xf32> to vector<1x32xf32>
    %779 = vector.broadcast %778 : vector<1x32xf32> to vector<16x32xf32>
    %780 = arith.addf %775, %779 : vector<16x32xf32>
    %781 = arith.addf %538, %780 : vector<16x32xf32>
    %c4_355 = arith.constant 4 : index
    %c0_356 = arith.constant 0 : index
    %782 = vector.load %arg12[%c4_355, %c0_356] : memref<7x32xf32, #tpu.memory_space<vmem>>, vector<1x32xf32>
    %783 = vector.shape_cast %782 : vector<1x32xf32> to vector<32xf32>
    %c4_357 = arith.constant 4 : index
    %c0_358 = arith.constant 0 : index
    %784 = vector.load %arg13[%c4_357, %c0_358] : memref<7x32xf32, #tpu.memory_space<vmem>>, vector<1x32xf32>
    %785 = vector.shape_cast %784 : vector<1x32xf32> to vector<32xf32>
    %cst_359 = arith.constant dense<0.000000e+00> : vector<16xf32>
    %786 = vector.multi_reduction <add>, %781, %cst_359 [1] : vector<16x32xf32> to vector<16xf32>
    %787 = vector.shape_cast %786 : vector<16xf32> to vector<16x1xf32>
    %cst_360 = arith.constant 3.200000e+01 : f32
    %788 = vector.broadcast %cst_360 : f32 to vector<16x1xf32>
    %789 = arith.divf %787, %788 : vector<16x1xf32>
    %790 = vector.broadcast %789 : vector<16x1xf32> to vector<16x32xf32>
    %791 = arith.subf %781, %790 : vector<16x32xf32>
    %792 = arith.mulf %791, %791 : vector<16x32xf32>
    %cst_361 = arith.constant dense<0.000000e+00> : vector<16xf32>
    %793 = vector.multi_reduction <add>, %792, %cst_361 [1] : vector<16x32xf32> to vector<16xf32>
    %794 = vector.shape_cast %793 : vector<16xf32> to vector<16x1xf32>
    %cst_362 = arith.constant 0.0322580636 : f32
    %795 = vector.broadcast %cst_362 : f32 to vector<16x1xf32>
    %796 = arith.mulf %794, %795 : vector<16x1xf32>
    %797 = math.sqrt %796 : vector<16x1xf32>
    %cst_363 = arith.constant 9.99999997E-7 : f32
    %798 = vector.broadcast %cst_363 : f32 to vector<16x1xf32>
    %799 = arith.addf %797, %798 : vector<16x1xf32>
    %800 = tpu.reciprocal %799 {approx = true} : vector<16x1xf32> -> vector<16x1xf32>
    %801 = vector.broadcast %800 : vector<16x1xf32> to vector<16x32xf32>
    %802 = arith.mulf %791, %801 : vector<16x32xf32>
    %803 = vector.shape_cast %783 : vector<32xf32> to vector<1x32xf32>
    %804 = vector.broadcast %803 : vector<1x32xf32> to vector<16x32xf32>
    %805 = arith.mulf %804, %802 : vector<16x32xf32>
    %806 = vector.shape_cast %785 : vector<32xf32> to vector<1x32xf32>
    %807 = vector.broadcast %806 : vector<1x32xf32> to vector<16x32xf32>
    %808 = arith.addf %805, %807 : vector<16x32xf32>
    %809 = arith.truncf %808 : vector<16x32xf32> to vector<16x32xbf16>
    %cst_364 = arith.constant 0.000000e+00 : f32
    %810 = vector.broadcast %cst_364 : f32 to vector<16x32xf32>
    %c36 = arith.constant 36 : index
    %c0_365 = arith.constant 0 : index
    %c0_366 = arith.constant 0 : index
    %811 = vector.load %arg4[%c36, %c0_365, %c0_366] : memref<48x32x8xbf16, #tpu.memory_space<vmem>>, vector<1x32x8xbf16>
    %812 = vector.shape_cast %811 : vector<1x32x8xbf16> to vector<32x8xbf16>
    %cst_367 = arith.constant dense<0.000000e+00> : vector<16x8xf32>
    %813 = tpu.matmul %809, %812, %cst_367 {dimension_numbers = #tpu.dot_dimension_numbers<[1], [0], [0], [1], [0, 0, 1, 1], [], []>} : vector<16x32xbf16>, vector<32x8xbf16>, vector<16x8xf32> -> vector<16x8xf32>
    %c36_368 = arith.constant 36 : index
    %c0_369 = arith.constant 0 : index
    %814 = vector.load %arg5[%c36_368, %c0_369] : memref<48x8xf32, #tpu.memory_space<vmem>>, vector<1x8xf32>
    %815 = vector.shape_cast %814 : vector<1x8xf32> to vector<8xf32>
    %816 = vector.shape_cast %815 : vector<8xf32> to vector<1x8xf32>
    %817 = vector.broadcast %816 : vector<1x8xf32> to vector<16x8xf32>
    %818 = arith.addf %813, %817 : vector<16x8xf32>
    %c40 = arith.constant 40 : index
    %c0_370 = arith.constant 0 : index
    %c0_371 = arith.constant 0 : index
    %819 = vector.load %arg4[%c40, %c0_370, %c0_371] : memref<48x32x8xbf16, #tpu.memory_space<vmem>>, vector<1x32x8xbf16>
    %820 = vector.shape_cast %819 : vector<1x32x8xbf16> to vector<32x8xbf16>
    %cst_372 = arith.constant dense<0.000000e+00> : vector<16x8xf32>
    %821 = tpu.matmul %2, %820, %cst_372 {dimension_numbers = #tpu.dot_dimension_numbers<[1], [0], [0], [1], [0, 0, 1, 1], [], []>} : vector<16x32xbf16>, vector<32x8xbf16>, vector<16x8xf32> -> vector<16x8xf32>
    %c40_373 = arith.constant 40 : index
    %c0_374 = arith.constant 0 : index
    %822 = vector.load %arg5[%c40_373, %c0_374] : memref<48x8xf32, #tpu.memory_space<vmem>>, vector<1x8xf32>
    %823 = vector.shape_cast %822 : vector<1x8xf32> to vector<8xf32>
    %824 = vector.shape_cast %823 : vector<8xf32> to vector<1x8xf32>
    %825 = vector.broadcast %824 : vector<1x8xf32> to vector<16x8xf32>
    %826 = arith.addf %821, %825 : vector<16x8xf32>
    %c44 = arith.constant 44 : index
    %c0_375 = arith.constant 0 : index
    %c0_376 = arith.constant 0 : index
    %827 = vector.load %arg4[%c44, %c0_375, %c0_376] : memref<48x32x8xbf16, #tpu.memory_space<vmem>>, vector<1x32x8xbf16>
    %828 = vector.shape_cast %827 : vector<1x32x8xbf16> to vector<32x8xbf16>
    %cst_377 = arith.constant dense<0.000000e+00> : vector<16x8xf32>
    %829 = tpu.matmul %2, %828, %cst_377 {dimension_numbers = #tpu.dot_dimension_numbers<[1], [0], [0], [1], [0, 0, 1, 1], [], []>} : vector<16x32xbf16>, vector<32x8xbf16>, vector<16x8xf32> -> vector<16x8xf32>
    %c44_378 = arith.constant 44 : index
    %c0_379 = arith.constant 0 : index
    %830 = vector.load %arg5[%c44_378, %c0_379] : memref<48x8xf32, #tpu.memory_space<vmem>>, vector<1x8xf32>
    %831 = vector.shape_cast %830 : vector<1x8xf32> to vector<8xf32>
    %832 = vector.shape_cast %831 : vector<8xf32> to vector<1x8xf32>
    %833 = vector.broadcast %832 : vector<1x8xf32> to vector<16x8xf32>
    %834 = arith.addf %829, %833 : vector<16x8xf32>
    %835 = vector.shape_cast %818 : vector<16x8xf32> to vector<2x8x8xf32>
    %836 = arith.truncf %835 : vector<2x8x8xf32> to vector<2x8x8xbf16>
    %837 = vector.shape_cast %826 : vector<16x8xf32> to vector<2x8x8xf32>
    %838 = arith.truncf %837 : vector<2x8x8xf32> to vector<2x8x8xbf16>
    %839 = vector.shape_cast %834 : vector<16x8xf32> to vector<2x8x8xf32>
    %840 = arith.truncf %839 : vector<2x8x8xf32> to vector<2x8x8xbf16>
    "tpu.trace_start"() <{level = 10 : i32, message = "bqd,bkd->bqk"}> : () -> ()
    %cst_380 = arith.constant dense<0.000000e+00> : vector<2x8x8xf32>
    %841 = tpu.matmul %836, %838, %cst_380 {dimension_numbers = #tpu.dot_dimension_numbers<[2], [2], [1], [1], [0, 0, 0, 1, 1, 1], [0], [0]>} : vector<2x8x8xbf16>, vector<2x8x8xbf16>, vector<2x8x8xf32> -> vector<2x8x8xf32>
    "tpu.trace_stop"() : () -> ()
    %cst_381 = arith.constant 0.353553385 : f32
    %842 = vector.broadcast %cst_381 : f32 to vector<2x8x8xf32>
    %843 = arith.mulf %841, %842 : vector<2x8x8xf32>
    %844 = arith.addf %843, %4 : vector<2x8x8xf32>
    %cst_382 = arith.constant dense<0xFF800000> : vector<2x8xf32>
    %845 = vector.multi_reduction <maximumf>, %844, %cst_382 [2] : vector<2x8x8xf32> to vector<2x8xf32>
    %846 = vector.shape_cast %845 : vector<2x8xf32> to vector<2x8x1xf32>
    %847 = vector.broadcast %846 : vector<2x8x1xf32> to vector<2x8x8xf32>
    %848 = arith.subf %844, %847 : vector<2x8x8xf32>
    %849 = math.exp %848 : vector<2x8x8xf32>
    %cst_383 = arith.constant dense<0.000000e+00> : vector<2x8xf32>
    %850 = vector.multi_reduction <add>, %849, %cst_383 [2] : vector<2x8x8xf32> to vector<2x8xf32>
    %851 = vector.shape_cast %850 : vector<2x8xf32> to vector<2x8x1xf32>
    %852 = tpu.reciprocal %851 {approx = true} : vector<2x8x1xf32> -> vector<2x8x1xf32>
    %853 = vector.broadcast %852 : vector<2x8x1xf32> to vector<2x8x8xf32>
    %854 = arith.mulf %849, %853 : vector<2x8x8xf32>
    %855 = arith.truncf %854 : vector<2x8x8xf32> to vector<2x8x8xbf16>
    "tpu.trace_start"() <{level = 10 : i32, message = "bqk,bkd->bqd"}> : () -> ()
    %cst_384 = arith.constant dense<0.000000e+00> : vector<2x8x8xf32>
    %856 = tpu.matmul %855, %840, %cst_384 {dimension_numbers = #tpu.dot_dimension_numbers<[2], [1], [1], [2], [0, 0, 0, 1, 1, 2], [0], [0]>} : vector<2x8x8xbf16>, vector<2x8x8xbf16>, vector<2x8x8xf32> -> vector<2x8x8xf32>
    "tpu.trace_stop"() : () -> ()
    %857 = vector.shape_cast %856 : vector<2x8x8xf32> to vector<16x8xf32>
    %858 = arith.truncf %857 : vector<16x8xf32> to vector<16x8xbf16>
    %c12_385 = arith.constant 12 : index
    %c0_386 = arith.constant 0 : index
    %c0_387 = arith.constant 0 : index
    %859 = vector.load %arg6[%c12_385, %c0_386, %c0_387] : memref<16x8x32xbf16, #tpu.memory_space<vmem>>, vector<1x8x32xbf16>
    %860 = vector.shape_cast %859 : vector<1x8x32xbf16> to vector<8x32xbf16>
    %cst_388 = arith.constant dense<0.000000e+00> : vector<16x32xf32>
    %861 = tpu.matmul %858, %860, %cst_388 {dimension_numbers = #tpu.dot_dimension_numbers<[1], [0], [0], [1], [0, 0, 1, 1], [], []>} : vector<16x8xbf16>, vector<8x32xbf16>, vector<16x32xf32> -> vector<16x32xf32>
    %862 = arith.addf %810, %861 : vector<16x32xf32>
    %c37 = arith.constant 37 : index
    %c0_389 = arith.constant 0 : index
    %c0_390 = arith.constant 0 : index
    %863 = vector.load %arg4[%c37, %c0_389, %c0_390] : memref<48x32x8xbf16, #tpu.memory_space<vmem>>, vector<1x32x8xbf16>
    %864 = vector.shape_cast %863 : vector<1x32x8xbf16> to vector<32x8xbf16>
    %cst_391 = arith.constant dense<0.000000e+00> : vector<16x8xf32>
    %865 = tpu.matmul %809, %864, %cst_391 {dimension_numbers = #tpu.dot_dimension_numbers<[1], [0], [0], [1], [0, 0, 1, 1], [], []>} : vector<16x32xbf16>, vector<32x8xbf16>, vector<16x8xf32> -> vector<16x8xf32>
    %c37_392 = arith.constant 37 : index
    %c0_393 = arith.constant 0 : index
    %866 = vector.load %arg5[%c37_392, %c0_393] : memref<48x8xf32, #tpu.memory_space<vmem>>, vector<1x8xf32>
    %867 = vector.shape_cast %866 : vector<1x8xf32> to vector<8xf32>
    %868 = vector.shape_cast %867 : vector<8xf32> to vector<1x8xf32>
    %869 = vector.broadcast %868 : vector<1x8xf32> to vector<16x8xf32>
    %870 = arith.addf %865, %869 : vector<16x8xf32>
    %c41 = arith.constant 41 : index
    %c0_394 = arith.constant 0 : index
    %c0_395 = arith.constant 0 : index
    %871 = vector.load %arg4[%c41, %c0_394, %c0_395] : memref<48x32x8xbf16, #tpu.memory_space<vmem>>, vector<1x32x8xbf16>
    %872 = vector.shape_cast %871 : vector<1x32x8xbf16> to vector<32x8xbf16>
    %cst_396 = arith.constant dense<0.000000e+00> : vector<16x8xf32>
    %873 = tpu.matmul %2, %872, %cst_396 {dimension_numbers = #tpu.dot_dimension_numbers<[1], [0], [0], [1], [0, 0, 1, 1], [], []>} : vector<16x32xbf16>, vector<32x8xbf16>, vector<16x8xf32> -> vector<16x8xf32>
    %c41_397 = arith.constant 41 : index
    %c0_398 = arith.constant 0 : index
    %874 = vector.load %arg5[%c41_397, %c0_398] : memref<48x8xf32, #tpu.memory_space<vmem>>, vector<1x8xf32>
    %875 = vector.shape_cast %874 : vector<1x8xf32> to vector<8xf32>
    %876 = vector.shape_cast %875 : vector<8xf32> to vector<1x8xf32>
    %877 = vector.broadcast %876 : vector<1x8xf32> to vector<16x8xf32>
    %878 = arith.addf %873, %877 : vector<16x8xf32>
    %c45 = arith.constant 45 : index
    %c0_399 = arith.constant 0 : index
    %c0_400 = arith.constant 0 : index
    %879 = vector.load %arg4[%c45, %c0_399, %c0_400] : memref<48x32x8xbf16, #tpu.memory_space<vmem>>, vector<1x32x8xbf16>
    %880 = vector.shape_cast %879 : vector<1x32x8xbf16> to vector<32x8xbf16>
    %cst_401 = arith.constant dense<0.000000e+00> : vector<16x8xf32>
    %881 = tpu.matmul %2, %880, %cst_401 {dimension_numbers = #tpu.dot_dimension_numbers<[1], [0], [0], [1], [0, 0, 1, 1], [], []>} : vector<16x32xbf16>, vector<32x8xbf16>, vector<16x8xf32> -> vector<16x8xf32>
    %c45_402 = arith.constant 45 : index
    %c0_403 = arith.constant 0 : index
    %882 = vector.load %arg5[%c45_402, %c0_403] : memref<48x8xf32, #tpu.memory_space<vmem>>, vector<1x8xf32>
    %883 = vector.shape_cast %882 : vector<1x8xf32> to vector<8xf32>
    %884 = vector.shape_cast %883 : vector<8xf32> to vector<1x8xf32>
    %885 = vector.broadcast %884 : vector<1x8xf32> to vector<16x8xf32>
    %886 = arith.addf %881, %885 : vector<16x8xf32>
    %887 = vector.shape_cast %870 : vector<16x8xf32> to vector<2x8x8xf32>
    %888 = arith.truncf %887 : vector<2x8x8xf32> to vector<2x8x8xbf16>
    %889 = vector.shape_cast %878 : vector<16x8xf32> to vector<2x8x8xf32>
    %890 = arith.truncf %889 : vector<2x8x8xf32> to vector<2x8x8xbf16>
    %891 = vector.shape_cast %886 : vector<16x8xf32> to vector<2x8x8xf32>
    %892 = arith.truncf %891 : vector<2x8x8xf32> to vector<2x8x8xbf16>
    "tpu.trace_start"() <{level = 10 : i32, message = "bqd,bkd->bqk"}> : () -> ()
    %cst_404 = arith.constant dense<0.000000e+00> : vector<2x8x8xf32>
    %893 = tpu.matmul %888, %890, %cst_404 {dimension_numbers = #tpu.dot_dimension_numbers<[2], [2], [1], [1], [0, 0, 0, 1, 1, 1], [0], [0]>} : vector<2x8x8xbf16>, vector<2x8x8xbf16>, vector<2x8x8xf32> -> vector<2x8x8xf32>
    "tpu.trace_stop"() : () -> ()
    %cst_405 = arith.constant 0.353553385 : f32
    %894 = vector.broadcast %cst_405 : f32 to vector<2x8x8xf32>
    %895 = arith.mulf %893, %894 : vector<2x8x8xf32>
    %896 = arith.addf %895, %4 : vector<2x8x8xf32>
    %cst_406 = arith.constant dense<0xFF800000> : vector<2x8xf32>
    %897 = vector.multi_reduction <maximumf>, %896, %cst_406 [2] : vector<2x8x8xf32> to vector<2x8xf32>
    %898 = vector.shape_cast %897 : vector<2x8xf32> to vector<2x8x1xf32>
    %899 = vector.broadcast %898 : vector<2x8x1xf32> to vector<2x8x8xf32>
    %900 = arith.subf %896, %899 : vector<2x8x8xf32>
    %901 = math.exp %900 : vector<2x8x8xf32>
    %cst_407 = arith.constant dense<0.000000e+00> : vector<2x8xf32>
    %902 = vector.multi_reduction <add>, %901, %cst_407 [2] : vector<2x8x8xf32> to vector<2x8xf32>
    %903 = vector.shape_cast %902 : vector<2x8xf32> to vector<2x8x1xf32>
    %904 = tpu.reciprocal %903 {approx = true} : vector<2x8x1xf32> -> vector<2x8x1xf32>
    %905 = vector.broadcast %904 : vector<2x8x1xf32> to vector<2x8x8xf32>
    %906 = arith.mulf %901, %905 : vector<2x8x8xf32>
    %907 = arith.truncf %906 : vector<2x8x8xf32> to vector<2x8x8xbf16>
    "tpu.trace_start"() <{level = 10 : i32, message = "bqk,bkd->bqd"}> : () -> ()
    %cst_408 = arith.constant dense<0.000000e+00> : vector<2x8x8xf32>
    %908 = tpu.matmul %907, %892, %cst_408 {dimension_numbers = #tpu.dot_dimension_numbers<[2], [1], [1], [2], [0, 0, 0, 1, 1, 2], [0], [0]>} : vector<2x8x8xbf16>, vector<2x8x8xbf16>, vector<2x8x8xf32> -> vector<2x8x8xf32>
    "tpu.trace_stop"() : () -> ()
    %909 = vector.shape_cast %908 : vector<2x8x8xf32> to vector<16x8xf32>
    %910 = arith.truncf %909 : vector<16x8xf32> to vector<16x8xbf16>
    %c13_409 = arith.constant 13 : index
    %c0_410 = arith.constant 0 : index
    %c0_411 = arith.constant 0 : index
    %911 = vector.load %arg6[%c13_409, %c0_410, %c0_411] : memref<16x8x32xbf16, #tpu.memory_space<vmem>>, vector<1x8x32xbf16>
    %912 = vector.shape_cast %911 : vector<1x8x32xbf16> to vector<8x32xbf16>
    %cst_412 = arith.constant dense<0.000000e+00> : vector<16x32xf32>
    %913 = tpu.matmul %910, %912, %cst_412 {dimension_numbers = #tpu.dot_dimension_numbers<[1], [0], [0], [1], [0, 0, 1, 1], [], []>} : vector<16x8xbf16>, vector<8x32xbf16>, vector<16x32xf32> -> vector<16x32xf32>
    %914 = arith.addf %862, %913 : vector<16x32xf32>
    %c38 = arith.constant 38 : index
    %c0_413 = arith.constant 0 : index
    %c0_414 = arith.constant 0 : index
    %915 = vector.load %arg4[%c38, %c0_413, %c0_414] : memref<48x32x8xbf16, #tpu.memory_space<vmem>>, vector<1x32x8xbf16>
    %916 = vector.shape_cast %915 : vector<1x32x8xbf16> to vector<32x8xbf16>
    %cst_415 = arith.constant dense<0.000000e+00> : vector<16x8xf32>
    %917 = tpu.matmul %809, %916, %cst_415 {dimension_numbers = #tpu.dot_dimension_numbers<[1], [0], [0], [1], [0, 0, 1, 1], [], []>} : vector<16x32xbf16>, vector<32x8xbf16>, vector<16x8xf32> -> vector<16x8xf32>
    %c38_416 = arith.constant 38 : index
    %c0_417 = arith.constant 0 : index
    %918 = vector.load %arg5[%c38_416, %c0_417] : memref<48x8xf32, #tpu.memory_space<vmem>>, vector<1x8xf32>
    %919 = vector.shape_cast %918 : vector<1x8xf32> to vector<8xf32>
    %920 = vector.shape_cast %919 : vector<8xf32> to vector<1x8xf32>
    %921 = vector.broadcast %920 : vector<1x8xf32> to vector<16x8xf32>
    %922 = arith.addf %917, %921 : vector<16x8xf32>
    %c42 = arith.constant 42 : index
    %c0_418 = arith.constant 0 : index
    %c0_419 = arith.constant 0 : index
    %923 = vector.load %arg4[%c42, %c0_418, %c0_419] : memref<48x32x8xbf16, #tpu.memory_space<vmem>>, vector<1x32x8xbf16>
    %924 = vector.shape_cast %923 : vector<1x32x8xbf16> to vector<32x8xbf16>
    %cst_420 = arith.constant dense<0.000000e+00> : vector<16x8xf32>
    %925 = tpu.matmul %2, %924, %cst_420 {dimension_numbers = #tpu.dot_dimension_numbers<[1], [0], [0], [1], [0, 0, 1, 1], [], []>} : vector<16x32xbf16>, vector<32x8xbf16>, vector<16x8xf32> -> vector<16x8xf32>
    %c42_421 = arith.constant 42 : index
    %c0_422 = arith.constant 0 : index
    %926 = vector.load %arg5[%c42_421, %c0_422] : memref<48x8xf32, #tpu.memory_space<vmem>>, vector<1x8xf32>
    %927 = vector.shape_cast %926 : vector<1x8xf32> to vector<8xf32>
    %928 = vector.shape_cast %927 : vector<8xf32> to vector<1x8xf32>
    %929 = vector.broadcast %928 : vector<1x8xf32> to vector<16x8xf32>
    %930 = arith.addf %925, %929 : vector<16x8xf32>
    %c46 = arith.constant 46 : index
    %c0_423 = arith.constant 0 : index
    %c0_424 = arith.constant 0 : index
    %931 = vector.load %arg4[%c46, %c0_423, %c0_424] : memref<48x32x8xbf16, #tpu.memory_space<vmem>>, vector<1x32x8xbf16>
    %932 = vector.shape_cast %931 : vector<1x32x8xbf16> to vector<32x8xbf16>
    %cst_425 = arith.constant dense<0.000000e+00> : vector<16x8xf32>
    %933 = tpu.matmul %2, %932, %cst_425 {dimension_numbers = #tpu.dot_dimension_numbers<[1], [0], [0], [1], [0, 0, 1, 1], [], []>} : vector<16x32xbf16>, vector<32x8xbf16>, vector<16x8xf32> -> vector<16x8xf32>
    %c46_426 = arith.constant 46 : index
    %c0_427 = arith.constant 0 : index
    %934 = vector.load %arg5[%c46_426, %c0_427] : memref<48x8xf32, #tpu.memory_space<vmem>>, vector<1x8xf32>
    %935 = vector.shape_cast %934 : vector<1x8xf32> to vector<8xf32>
    %936 = vector.shape_cast %935 : vector<8xf32> to vector<1x8xf32>
    %937 = vector.broadcast %936 : vector<1x8xf32> to vector<16x8xf32>
    %938 = arith.addf %933, %937 : vector<16x8xf32>
    %939 = vector.shape_cast %922 : vector<16x8xf32> to vector<2x8x8xf32>
    %940 = arith.truncf %939 : vector<2x8x8xf32> to vector<2x8x8xbf16>
    %941 = vector.shape_cast %930 : vector<16x8xf32> to vector<2x8x8xf32>
    %942 = arith.truncf %941 : vector<2x8x8xf32> to vector<2x8x8xbf16>
    %943 = vector.shape_cast %938 : vector<16x8xf32> to vector<2x8x8xf32>
    %944 = arith.truncf %943 : vector<2x8x8xf32> to vector<2x8x8xbf16>
    "tpu.trace_start"() <{level = 10 : i32, message = "bqd,bkd->bqk"}> : () -> ()
    %cst_428 = arith.constant dense<0.000000e+00> : vector<2x8x8xf32>
    %945 = tpu.matmul %940, %942, %cst_428 {dimension_numbers = #tpu.dot_dimension_numbers<[2], [2], [1], [1], [0, 0, 0, 1, 1, 1], [0], [0]>} : vector<2x8x8xbf16>, vector<2x8x8xbf16>, vector<2x8x8xf32> -> vector<2x8x8xf32>
    "tpu.trace_stop"() : () -> ()
    %cst_429 = arith.constant 0.353553385 : f32
    %946 = vector.broadcast %cst_429 : f32 to vector<2x8x8xf32>
    %947 = arith.mulf %945, %946 : vector<2x8x8xf32>
    %948 = arith.addf %947, %4 : vector<2x8x8xf32>
    %cst_430 = arith.constant dense<0xFF800000> : vector<2x8xf32>
    %949 = vector.multi_reduction <maximumf>, %948, %cst_430 [2] : vector<2x8x8xf32> to vector<2x8xf32>
    %950 = vector.shape_cast %949 : vector<2x8xf32> to vector<2x8x1xf32>
    %951 = vector.broadcast %950 : vector<2x8x1xf32> to vector<2x8x8xf32>
    %952 = arith.subf %948, %951 : vector<2x8x8xf32>
    %953 = math.exp %952 : vector<2x8x8xf32>
    %cst_431 = arith.constant dense<0.000000e+00> : vector<2x8xf32>
    %954 = vector.multi_reduction <add>, %953, %cst_431 [2] : vector<2x8x8xf32> to vector<2x8xf32>
    %955 = vector.shape_cast %954 : vector<2x8xf32> to vector<2x8x1xf32>
    %956 = tpu.reciprocal %955 {approx = true} : vector<2x8x1xf32> -> vector<2x8x1xf32>
    %957 = vector.broadcast %956 : vector<2x8x1xf32> to vector<2x8x8xf32>
    %958 = arith.mulf %953, %957 : vector<2x8x8xf32>
    %959 = arith.truncf %958 : vector<2x8x8xf32> to vector<2x8x8xbf16>
    "tpu.trace_start"() <{level = 10 : i32, message = "bqk,bkd->bqd"}> : () -> ()
    %cst_432 = arith.constant dense<0.000000e+00> : vector<2x8x8xf32>
    %960 = tpu.matmul %959, %944, %cst_432 {dimension_numbers = #tpu.dot_dimension_numbers<[2], [1], [1], [2], [0, 0, 0, 1, 1, 2], [0], [0]>} : vector<2x8x8xbf16>, vector<2x8x8xbf16>, vector<2x8x8xf32> -> vector<2x8x8xf32>
    "tpu.trace_stop"() : () -> ()
    %961 = vector.shape_cast %960 : vector<2x8x8xf32> to vector<16x8xf32>
    %962 = arith.truncf %961 : vector<16x8xf32> to vector<16x8xbf16>
    %c14_433 = arith.constant 14 : index
    %c0_434 = arith.constant 0 : index
    %c0_435 = arith.constant 0 : index
    %963 = vector.load %arg6[%c14_433, %c0_434, %c0_435] : memref<16x8x32xbf16, #tpu.memory_space<vmem>>, vector<1x8x32xbf16>
    %964 = vector.shape_cast %963 : vector<1x8x32xbf16> to vector<8x32xbf16>
    %cst_436 = arith.constant dense<0.000000e+00> : vector<16x32xf32>
    %965 = tpu.matmul %962, %964, %cst_436 {dimension_numbers = #tpu.dot_dimension_numbers<[1], [0], [0], [1], [0, 0, 1, 1], [], []>} : vector<16x8xbf16>, vector<8x32xbf16>, vector<16x32xf32> -> vector<16x32xf32>
    %966 = arith.addf %914, %965 : vector<16x32xf32>
    %c39 = arith.constant 39 : index
    %c0_437 = arith.constant 0 : index
    %c0_438 = arith.constant 0 : index
    %967 = vector.load %arg4[%c39, %c0_437, %c0_438] : memref<48x32x8xbf16, #tpu.memory_space<vmem>>, vector<1x32x8xbf16>
    %968 = vector.shape_cast %967 : vector<1x32x8xbf16> to vector<32x8xbf16>
    %cst_439 = arith.constant dense<0.000000e+00> : vector<16x8xf32>
    %969 = tpu.matmul %809, %968, %cst_439 {dimension_numbers = #tpu.dot_dimension_numbers<[1], [0], [0], [1], [0, 0, 1, 1], [], []>} : vector<16x32xbf16>, vector<32x8xbf16>, vector<16x8xf32> -> vector<16x8xf32>
    %c39_440 = arith.constant 39 : index
    %c0_441 = arith.constant 0 : index
    %970 = vector.load %arg5[%c39_440, %c0_441] : memref<48x8xf32, #tpu.memory_space<vmem>>, vector<1x8xf32>
    %971 = vector.shape_cast %970 : vector<1x8xf32> to vector<8xf32>
    %972 = vector.shape_cast %971 : vector<8xf32> to vector<1x8xf32>
    %973 = vector.broadcast %972 : vector<1x8xf32> to vector<16x8xf32>
    %974 = arith.addf %969, %973 : vector<16x8xf32>
    %c43 = arith.constant 43 : index
    %c0_442 = arith.constant 0 : index
    %c0_443 = arith.constant 0 : index
    %975 = vector.load %arg4[%c43, %c0_442, %c0_443] : memref<48x32x8xbf16, #tpu.memory_space<vmem>>, vector<1x32x8xbf16>
    %976 = vector.shape_cast %975 : vector<1x32x8xbf16> to vector<32x8xbf16>
    %cst_444 = arith.constant dense<0.000000e+00> : vector<16x8xf32>
    %977 = tpu.matmul %2, %976, %cst_444 {dimension_numbers = #tpu.dot_dimension_numbers<[1], [0], [0], [1], [0, 0, 1, 1], [], []>} : vector<16x32xbf16>, vector<32x8xbf16>, vector<16x8xf32> -> vector<16x8xf32>
    %c43_445 = arith.constant 43 : index
    %c0_446 = arith.constant 0 : index
    %978 = vector.load %arg5[%c43_445, %c0_446] : memref<48x8xf32, #tpu.memory_space<vmem>>, vector<1x8xf32>
    %979 = vector.shape_cast %978 : vector<1x8xf32> to vector<8xf32>
    %980 = vector.shape_cast %979 : vector<8xf32> to vector<1x8xf32>
    %981 = vector.broadcast %980 : vector<1x8xf32> to vector<16x8xf32>
    %982 = arith.addf %977, %981 : vector<16x8xf32>
    %c47 = arith.constant 47 : index
    %c0_447 = arith.constant 0 : index
    %c0_448 = arith.constant 0 : index
    %983 = vector.load %arg4[%c47, %c0_447, %c0_448] : memref<48x32x8xbf16, #tpu.memory_space<vmem>>, vector<1x32x8xbf16>
    %984 = vector.shape_cast %983 : vector<1x32x8xbf16> to vector<32x8xbf16>
    %cst_449 = arith.constant dense<0.000000e+00> : vector<16x8xf32>
    %985 = tpu.matmul %2, %984, %cst_449 {dimension_numbers = #tpu.dot_dimension_numbers<[1], [0], [0], [1], [0, 0, 1, 1], [], []>} : vector<16x32xbf16>, vector<32x8xbf16>, vector<16x8xf32> -> vector<16x8xf32>
    %c47_450 = arith.constant 47 : index
    %c0_451 = arith.constant 0 : index
    %986 = vector.load %arg5[%c47_450, %c0_451] : memref<48x8xf32, #tpu.memory_space<vmem>>, vector<1x8xf32>
    %987 = vector.shape_cast %986 : vector<1x8xf32> to vector<8xf32>
    %988 = vector.shape_cast %987 : vector<8xf32> to vector<1x8xf32>
    %989 = vector.broadcast %988 : vector<1x8xf32> to vector<16x8xf32>
    %990 = arith.addf %985, %989 : vector<16x8xf32>
    %991 = vector.shape_cast %974 : vector<16x8xf32> to vector<2x8x8xf32>
    %992 = arith.truncf %991 : vector<2x8x8xf32> to vector<2x8x8xbf16>
    %993 = vector.shape_cast %982 : vector<16x8xf32> to vector<2x8x8xf32>
    %994 = arith.truncf %993 : vector<2x8x8xf32> to vector<2x8x8xbf16>
    %995 = vector.shape_cast %990 : vector<16x8xf32> to vector<2x8x8xf32>
    %996 = arith.truncf %995 : vector<2x8x8xf32> to vector<2x8x8xbf16>
    "tpu.trace_start"() <{level = 10 : i32, message = "bqd,bkd->bqk"}> : () -> ()
    %cst_452 = arith.constant dense<0.000000e+00> : vector<2x8x8xf32>
    %997 = tpu.matmul %992, %994, %cst_452 {dimension_numbers = #tpu.dot_dimension_numbers<[2], [2], [1], [1], [0, 0, 0, 1, 1, 1], [0], [0]>} : vector<2x8x8xbf16>, vector<2x8x8xbf16>, vector<2x8x8xf32> -> vector<2x8x8xf32>
    "tpu.trace_stop"() : () -> ()
    %cst_453 = arith.constant 0.353553385 : f32
    %998 = vector.broadcast %cst_453 : f32 to vector<2x8x8xf32>
    %999 = arith.mulf %997, %998 : vector<2x8x8xf32>
    %1000 = arith.addf %999, %4 : vector<2x8x8xf32>
    %cst_454 = arith.constant dense<0xFF800000> : vector<2x8xf32>
    %1001 = vector.multi_reduction <maximumf>, %1000, %cst_454 [2] : vector<2x8x8xf32> to vector<2x8xf32>
    %1002 = vector.shape_cast %1001 : vector<2x8xf32> to vector<2x8x1xf32>
    %1003 = vector.broadcast %1002 : vector<2x8x1xf32> to vector<2x8x8xf32>
    %1004 = arith.subf %1000, %1003 : vector<2x8x8xf32>
    %1005 = math.exp %1004 : vector<2x8x8xf32>
    %cst_455 = arith.constant dense<0.000000e+00> : vector<2x8xf32>
    %1006 = vector.multi_reduction <add>, %1005, %cst_455 [2] : vector<2x8x8xf32> to vector<2x8xf32>
    %1007 = vector.shape_cast %1006 : vector<2x8xf32> to vector<2x8x1xf32>
    %1008 = tpu.reciprocal %1007 {approx = true} : vector<2x8x1xf32> -> vector<2x8x1xf32>
    %1009 = vector.broadcast %1008 : vector<2x8x1xf32> to vector<2x8x8xf32>
    %1010 = arith.mulf %1005, %1009 : vector<2x8x8xf32>
    %1011 = arith.truncf %1010 : vector<2x8x8xf32> to vector<2x8x8xbf16>
    "tpu.trace_start"() <{level = 10 : i32, message = "bqk,bkd->bqd"}> : () -> ()
    %cst_456 = arith.constant dense<0.000000e+00> : vector<2x8x8xf32>
    %1012 = tpu.matmul %1011, %996, %cst_456 {dimension_numbers = #tpu.dot_dimension_numbers<[2], [1], [1], [2], [0, 0, 0, 1, 1, 2], [0], [0]>} : vector<2x8x8xbf16>, vector<2x8x8xbf16>, vector<2x8x8xf32> -> vector<2x8x8xf32>
    "tpu.trace_stop"() : () -> ()
    %1013 = vector.shape_cast %1012 : vector<2x8x8xf32> to vector<16x8xf32>
    %1014 = arith.truncf %1013 : vector<16x8xf32> to vector<16x8xbf16>
    %c15_457 = arith.constant 15 : index
    %c0_458 = arith.constant 0 : index
    %c0_459 = arith.constant 0 : index
    %1015 = vector.load %arg6[%c15_457, %c0_458, %c0_459] : memref<16x8x32xbf16, #tpu.memory_space<vmem>>, vector<1x8x32xbf16>
    %1016 = vector.shape_cast %1015 : vector<1x8x32xbf16> to vector<8x32xbf16>
    %cst_460 = arith.constant dense<0.000000e+00> : vector<16x32xf32>
    %1017 = tpu.matmul %1014, %1016, %cst_460 {dimension_numbers = #tpu.dot_dimension_numbers<[1], [0], [0], [1], [0, 0, 1, 1], [], []>} : vector<16x8xbf16>, vector<8x32xbf16>, vector<16x32xf32> -> vector<16x32xf32>
    %1018 = arith.addf %966, %1017 : vector<16x32xf32>
    %c3_461 = arith.constant 3 : index
    %c0_462 = arith.constant 0 : index
    %1019 = vector.load %arg7[%c3_461, %c0_462] : memref<4x32xf32, #tpu.memory_space<vmem>>, vector<1x32xf32>
    %1020 = vector.shape_cast %1019 : vector<1x32xf32> to vector<32xf32>
    %1021 = vector.shape_cast %1020 : vector<32xf32> to vector<1x32xf32>
    %1022 = vector.broadcast %1021 : vector<1x32xf32> to vector<16x32xf32>
    %1023 = arith.addf %1018, %1022 : vector<16x32xf32>
    %1024 = arith.addf %781, %1023 : vector<16x32xf32>
    %c5_463 = arith.constant 5 : index
    %c0_464 = arith.constant 0 : index
    %1025 = vector.load %arg12[%c5_463, %c0_464] : memref<7x32xf32, #tpu.memory_space<vmem>>, vector<1x32xf32>
    %1026 = vector.shape_cast %1025 : vector<1x32xf32> to vector<32xf32>
    %c5_465 = arith.constant 5 : index
    %c0_466 = arith.constant 0 : index
    %1027 = vector.load %arg13[%c5_465, %c0_466] : memref<7x32xf32, #tpu.memory_space<vmem>>, vector<1x32xf32>
    %1028 = vector.shape_cast %1027 : vector<1x32xf32> to vector<32xf32>
    %cst_467 = arith.constant dense<0.000000e+00> : vector<16xf32>
    %1029 = vector.multi_reduction <add>, %1024, %cst_467 [1] : vector<16x32xf32> to vector<16xf32>
    %1030 = vector.shape_cast %1029 : vector<16xf32> to vector<16x1xf32>
    %cst_468 = arith.constant 3.200000e+01 : f32
    %1031 = vector.broadcast %cst_468 : f32 to vector<16x1xf32>
    %1032 = arith.divf %1030, %1031 : vector<16x1xf32>
    %1033 = vector.broadcast %1032 : vector<16x1xf32> to vector<16x32xf32>
    %1034 = arith.subf %1024, %1033 : vector<16x32xf32>
    %1035 = arith.mulf %1034, %1034 : vector<16x32xf32>
    %cst_469 = arith.constant dense<0.000000e+00> : vector<16xf32>
    %1036 = vector.multi_reduction <add>, %1035, %cst_469 [1] : vector<16x32xf32> to vector<16xf32>
    %1037 = vector.shape_cast %1036 : vector<16xf32> to vector<16x1xf32>
    %cst_470 = arith.constant 0.0322580636 : f32
    %1038 = vector.broadcast %cst_470 : f32 to vector<16x1xf32>
    %1039 = arith.mulf %1037, %1038 : vector<16x1xf32>
    %1040 = math.sqrt %1039 : vector<16x1xf32>
    %cst_471 = arith.constant 9.99999997E-7 : f32
    %1041 = vector.broadcast %cst_471 : f32 to vector<16x1xf32>
    %1042 = arith.addf %1040, %1041 : vector<16x1xf32>
    %1043 = tpu.reciprocal %1042 {approx = true} : vector<16x1xf32> -> vector<16x1xf32>
    %1044 = vector.broadcast %1043 : vector<16x1xf32> to vector<16x32xf32>
    %1045 = arith.mulf %1034, %1044 : vector<16x32xf32>
    %1046 = vector.shape_cast %1026 : vector<32xf32> to vector<1x32xf32>
    %1047 = vector.broadcast %1046 : vector<1x32xf32> to vector<16x32xf32>
    %1048 = arith.mulf %1047, %1045 : vector<16x32xf32>
    %1049 = vector.shape_cast %1028 : vector<32xf32> to vector<1x32xf32>
    %1050 = vector.broadcast %1049 : vector<1x32xf32> to vector<16x32xf32>
    %1051 = arith.addf %1048, %1050 : vector<16x32xf32>
    %1052 = arith.truncf %1051 : vector<16x32xf32> to vector<16x32xbf16>
    %c1_472 = arith.constant 1 : index
    %c0_473 = arith.constant 0 : index
    %c0_474 = arith.constant 0 : index
    %1053 = vector.load %arg8[%c1_472, %c0_473, %c0_474] : memref<2x32x64xbf16, #tpu.memory_space<vmem>>, vector<1x32x64xbf16>
    %1054 = vector.shape_cast %1053 : vector<1x32x64xbf16> to vector<32x64xbf16>
    %cst_475 = arith.constant dense<0.000000e+00> : vector<16x64xf32>
    %1055 = tpu.matmul %1052, %1054, %cst_475 {dimension_numbers = #tpu.dot_dimension_numbers<[1], [0], [0], [1], [0, 0, 1, 1], [], []>} : vector<16x32xbf16>, vector<32x64xbf16>, vector<16x64xf32> -> vector<16x64xf32>
    %c1_476 = arith.constant 1 : index
    %c0_477 = arith.constant 0 : index
    %1056 = vector.load %arg9[%c1_476, %c0_477] : memref<2x64xf32, #tpu.memory_space<vmem>>, vector<1x64xf32>
    %1057 = vector.shape_cast %1056 : vector<1x64xf32> to vector<64xf32>
    %1058 = vector.shape_cast %1057 : vector<64xf32> to vector<1x64xf32>
    %1059 = vector.broadcast %1058 : vector<1x64xf32> to vector<16x64xf32>
    %1060 = arith.addf %1055, %1059 : vector<16x64xf32>
    %cst_478 = arith.constant 0.000000e+00 : f32
    %1061 = vector.broadcast %cst_478 : f32 to vector<16x64xf32>
    %1062 = arith.maximumf %1060, %1061 : vector<16x64xf32>
    %1063 = arith.truncf %1062 : vector<16x64xf32> to vector<16x64xbf16>
    %c1_479 = arith.constant 1 : index
    %c0_480 = arith.constant 0 : index
    %c0_481 = arith.constant 0 : index
    %1064 = vector.load %arg10[%c1_479, %c0_480, %c0_481] : memref<2x64x32xbf16, #tpu.memory_space<vmem>>, vector<1x64x32xbf16>
    %1065 = vector.shape_cast %1064 : vector<1x64x32xbf16> to vector<64x32xbf16>
    %cst_482 = arith.constant dense<0.000000e+00> : vector<16x32xf32>
    %1066 = tpu.matmul %1063, %1065, %cst_482 {dimension_numbers = #tpu.dot_dimension_numbers<[1], [0], [0], [1], [0, 0, 1, 1], [], []>} : vector<16x64xbf16>, vector<64x32xbf16>, vector<16x32xf32> -> vector<16x32xf32>
    %c1_483 = arith.constant 1 : index
    %c0_484 = arith.constant 0 : index
    %1067 = vector.load %arg11[%c1_483, %c0_484] : memref<2x32xf32, #tpu.memory_space<vmem>>, vector<1x32xf32>
    %1068 = vector.shape_cast %1067 : vector<1x32xf32> to vector<32xf32>
    %1069 = vector.shape_cast %1068 : vector<32xf32> to vector<1x32xf32>
    %1070 = vector.broadcast %1069 : vector<1x32xf32> to vector<16x32xf32>
    %1071 = arith.addf %1066, %1070 : vector<16x32xf32>
    %1072 = arith.addf %1024, %1071 : vector<16x32xf32>
    %c6_485 = arith.constant 6 : index
    %c0_486 = arith.constant 0 : index
    %1073 = vector.load %arg12[%c6_485, %c0_486] : memref<7x32xf32, #tpu.memory_space<vmem>>, vector<1x32xf32>
    %1074 = vector.shape_cast %1073 : vector<1x32xf32> to vector<32xf32>
    %c6_487 = arith.constant 6 : index
    %c0_488 = arith.constant 0 : index
    %1075 = vector.load %arg13[%c6_487, %c0_488] : memref<7x32xf32, #tpu.memory_space<vmem>>, vector<1x32xf32>
    %1076 = vector.shape_cast %1075 : vector<1x32xf32> to vector<32xf32>
    %cst_489 = arith.constant dense<0.000000e+00> : vector<16xf32>
    %1077 = vector.multi_reduction <add>, %1072, %cst_489 [1] : vector<16x32xf32> to vector<16xf32>
    %1078 = vector.shape_cast %1077 : vector<16xf32> to vector<16x1xf32>
    %cst_490 = arith.constant 3.200000e+01 : f32
    %1079 = vector.broadcast %cst_490 : f32 to vector<16x1xf32>
    %1080 = arith.divf %1078, %1079 : vector<16x1xf32>
    %1081 = vector.broadcast %1080 : vector<16x1xf32> to vector<16x32xf32>
    %1082 = arith.subf %1072, %1081 : vector<16x32xf32>
    %1083 = arith.mulf %1082, %1082 : vector<16x32xf32>
    %cst_491 = arith.constant dense<0.000000e+00> : vector<16xf32>
    %1084 = vector.multi_reduction <add>, %1083, %cst_491 [1] : vector<16x32xf32> to vector<16xf32>
    %1085 = vector.shape_cast %1084 : vector<16xf32> to vector<16x1xf32>
    %cst_492 = arith.constant 0.0322580636 : f32
    %1086 = vector.broadcast %cst_492 : f32 to vector<16x1xf32>
    %1087 = arith.mulf %1085, %1086 : vector<16x1xf32>
    %1088 = math.sqrt %1087 : vector<16x1xf32>
    %cst_493 = arith.constant 9.99999997E-7 : f32
    %1089 = vector.broadcast %cst_493 : f32 to vector<16x1xf32>
    %1090 = arith.addf %1088, %1089 : vector<16x1xf32>
    %1091 = tpu.reciprocal %1090 {approx = true} : vector<16x1xf32> -> vector<16x1xf32>
    %1092 = vector.broadcast %1091 : vector<16x1xf32> to vector<16x32xf32>
    %1093 = arith.mulf %1082, %1092 : vector<16x32xf32>
    %1094 = vector.shape_cast %1074 : vector<32xf32> to vector<1x32xf32>
    %1095 = vector.broadcast %1094 : vector<1x32xf32> to vector<16x32xf32>
    %1096 = arith.mulf %1095, %1093 : vector<16x32xf32>
    %1097 = vector.shape_cast %1076 : vector<32xf32> to vector<1x32xf32>
    %1098 = vector.broadcast %1097 : vector<1x32xf32> to vector<16x32xf32>
    %1099 = arith.addf %1096, %1098 : vector<16x32xf32>
    %c0_494 = arith.constant 0 : index
    %c0_495 = arith.constant 0 : index
    %1100 = vector.load %arg14[%c0_494, %c0_495] : memref<16x32xf32, #tpu.memory_space<vmem>>, vector<16x32xf32>
    tpu.vector_store %arg14[%c0_494, %c0_495], %1099 {strides = array<i32>} : memref<16x32xf32, #tpu.memory_space<vmem>>, vector<16x32xf32>,
    return
  }
}

</mosaic_0001>

<bundles_post_ra>
// kernel: tpu_custom_call.1
= control target key start
LH: loop header
LB: loop body
LE: loop exit
PB: predicated region body
PF: predicated region fallthrough
CT: control target
= control target key end

     0   :  { %vm60_vm0 = vcmask 261120   ;;  %s11936_s0 = inlined_call_operand.vmem [shape: f32[16,32], index: 0, kind: input, shape index: {}]   ;;  %s11937_s1 = inlined_call_operand.vmem [shape: f32[16,32], index: 1, kind: input, shape index: {}]   ;;  %s11938_s2 = inlined_call_operand.vmem [shape: f32[2,8,8], index: 2, kind: input, shape index: {}]   ;;  %s11939_s3 = inlined_call_operand.vmem [shape: f32[2,8,8], index: 3, kind: input, shape index: {}]   ;;  %s11940_s4 = inlined_call_operand.vmem [shape: bf16[48,32,8], index: 4, kind: input, shape index: {}]   ;;  %s11941_s5 = inlined_call_operand.vmem [shape: f32[48,8], index: 5, kind: input, shape index: {}]   ;;  %s11942_s6 = inlined_call_operand.vmem [shape: bf16[16,8,32], index: 6, kind: input, shape index: {}]   ;;  %s11943_s7 = inlined_call_operand.vmem [shape: f32[4,32], index: 7, kind: input, shape index: {}]   ;;  %s11944_s8 = inlined_call_operand.vmem [shape: bf16[2,32,64], index: 8, kind: input, shape index: {}]   ;;  %s11945_s9 = inlined_call_operand.vmem [shape: f32[2,64], index: 9, kind: input, shape index: {}]   ;;  %s11946_s10 = inlined_call_operand.vmem [shape: bf16[2,64,32], index: 10, kind: input, shape index: {}]   ;;  %s11947_s11 = inlined_call_operand.vmem [shape: f32[2,32], index: 11, kind: input, shape index: {}]   ;;  %s11948_s12 = inlined_call_operand.vmem [shape: f32[7,32], index: 12, kind: input, shape index: {}]   ;;  %s11949_s13 = inlined_call_operand.vmem [shape: f32[7,32], index: 13, kind: input, shape index: {}]   ;;  %s11950_s14 = inlined_call_operand.hbm [shape: f32[16,32], index: 14, kind: output, shape index: {}]  }
   0x1   :  { %v49_v0 = vld [vmem:[%s11936_s0] sm:$0xff]  ;;  %v50_v1 = vld [vmem:[%s11936_s0 + $0x8] sm:$0xff] }
   0x2   :  { %v61_v2 = vsel %vm60_vm0, %v49_v0, 0.0  ;;  %v64_v3 = vsel %vm60_vm0, %v50_v1, 0.0 }
   0x3   :  { %62 = vadd.xlane.f32.xlu0 %v61_v2 }
   0x7   :  { %65 = vadd.xlane.f32.xlu0 %v64_v3 }
   0x8   :  { %19 = vsyncpa [#allocation3], 0  ;;  %v9900_v14 = vld [vmem:[%s11940_s4] sm:$0xff]   ;;  %v10222_v16 = vmov 0.0   ;;  %v9902_v17 = vld [vmem:[%s11940_s4 + $0x8] sm:$0xff]   ;;  %vm10223_vm1 = vmmov 0  }
   0x9   :  { %v9901_v15 = vld [vmem:[%s11940_s4 + $0x80] sm:$0xff]   ;;  %8991 = vmatprep.subr.bf16.mxu1 %v10222_v16  ;;  %9007 = vmatprep.subr.bf16.mxu0 %v10222_v16  ;;  %v9903_v18 = vld [vmem:[%s11940_s4 + $0x88] sm:$0xff]   ;;  %vm312_vm6 = vcmask 64512   ;;  %vm436_vm7 = vcmask 1043456  }
   0xa   :  { %8992 = vmatpush3.bf16.msra.mxu1 %v9900_v14  ;;  %9008 = vmatpush3.bf16.msra.mxu0 %v9901_v15  ;;  %v8146_v37 = vld [vmem:[%s11948_s12] ss:$0 sm:$0xff]  ;;  %v9905_v47 = vld [vmem:[%s11940_s4 + $0x48] sm:$0xff]   ;;  %v8156_v56 = vld [vmem:[%s11941_s5 + $0x4] ss:$0 sm:$0xff] }
   0xb   :  { %8993 = vmatprep.subr.bf16.mxu1 %v10222_v16  ;;  %9009 = vmatprep.subr.bf16.mxu0 %v10222_v16  ;;  %v8147_v41 = vld [vmem:[%s11949_s13] ss:$0 sm:$0xff]  ;;  %v8164_v60 = vld [vmem:[%s11941_s5 + $0x8] ss:$0 sm:$0xff] }
   0xc   :  { %8995 = vmatprep.mubr.msk.bf16.mxu1 %vm10223_vm1, %v10222_v16  ;;  %9011 = vmatprep.mubr.msk.bf16.mxu0 %vm10223_vm1, %v10222_v16  ;;  %v9904_v45 = vld [vmem:[%s11940_s4 + $0x40] sm:$0xff]  }
   0xe   :  { %8994 = vmatpush3.bf16.msra.mxu1 %v9902_v17  ;;  %9010 = vmatpush3.bf16.msra.mxu0 %v9903_v18  ;;  %v10388_v17 = vld [vmem:[%s11938_s2] sm:$0xff] }
   0xf   :  { %8999 = vmatprep.subr.bf16.mxu1 %v10222_v16  ;;  %9021 = vmatprep.subr.bf16.mxu0 %v10222_v16 }
  0x90   :  { %v63_v4 = vpop.xlane.xlu0 %62 }
  0x91   :  { %v68_v5 = vmul.f32 0.03125, %v63_v4 }
  0x93   :  { %v70_v6 = vsub.f32 %v49_v0, %v68_v5 }
  0x94   :  { %v66_v7 = vpop.xlane.xlu0 %65 }
  0x95   :  { %v69_v8 = vmul.f32 0.03125, %v66_v7  ;;  %v72_v9 = vmul.f32 %v70_v6, %v70_v6 }
  0x97   :  { %v71_v10 = vsub.f32 %v50_v1, %v69_v8  ;;  %v74_v11 = vsel %vm60_vm0, %v72_v9, 0.0  ;;  %v8148_v1 = vld [vmem:[%s11941_s5] ss:$0 sm:$0xff] }
  0x98   :  { %75 = vadd.xlane.f32.xlu1 %v74_v11 }
  0x99   :  { %v73_v12 = vmul.f32 %v71_v10, %v71_v10 }
  0x9b   :  { %v77_v13 = vsel %vm60_vm0, %v73_v12, 0.0 }
  0x9c   :  { %78 = vadd.xlane.f32.xlu1 %v77_v13 }
 0x125   :  { %v76_v19 = vpop.xlane.xlu1 %75 }
 0x126   :  { %v80_v20 = vmul.f32 0.032258064, %v76_v19 }
 0x128   :  { %10008 = vrsqrt.f32 %v80_v20  ;;  %vm84_vm2 = vcmp.eq.f32.partialorder %v80_v20, inf  ;;  %v87_v25 = vand.u32 2147483648, %v80_v20  ;;  %vm86_vm3 = vcmp.eq.f32.partialorder %v80_v20, 0.0 }
 0x129   :  { %v79_v21 = vpop.xlane.xlu1 %78 }
 0x12a   :  { %v81_v22 = vmul.f32 0.032258064, %v79_v21 }
 0x12c   :  { %10010 = vrsqrt.f32 %v81_v22  ;;  %vm91_vm4 = vcmp.eq.f32.partialorder %v81_v22, inf  ;;  %v94_v31 = vand.u32 2147483648, %v81_v22  ;;  %vm93_vm5 = vcmp.eq.f32.partialorder %v81_v22, 0.0 }
 0x132   :  { %v10009_v23 = vpop.eup %10008 }
 0x133   :  { %v83_v24 = vmul.f32 %v10009_v23, %v80_v20 }
 0x135   :  { %v85_v26 = vsel %vm84_vm2, %v80_v20, %v83_v24  ;;  %vm4021_vm2 = vcmask 523264  }
 0x136   :  { %v10011_v27 = vpop.eup %10010  ;;  %v88_v28 = vsel %vm86_vm3, %v87_v25, %v85_v26 }
 0x137   :  { %v96_v29 = vadd.f32 1e-06, %v88_v28  ;;  %v90_v30 = vmul.f32 %v10011_v27, %v81_v22 }
 0x139   :  { %10012 = vrcp.f32 %v96_v29  ;;  %v92_v32 = vsel %vm91_vm4, %v81_v22, %v90_v30  ;;  %v10393_v22 = vld [vmem:[%s11938_s2 + $0x8] sm:$0xff] }
 0x13a   :  { %v95_v33 = vsel %vm93_vm5, %v94_v31, %v92_v32 }
 0x13b   :  { %v97_v34 = vadd.f32 1e-06, %v95_v33 }
 0x13d   :  { %10014 = vrcp.f32 %v97_v34 }
 0x143   :  { %v10013_v35 = vpop.eup %10012 }
 0x144   :  { %v100_v36 = vmul.f32 %v10013_v35, %v70_v6 }
 0x146   :  { %v106_v39 = vmul.f32 %v8146_v37, %v100_v36 }
 0x147   :  { %v10015_v38 = vpop.eup %10014 }
 0x148   :  { %v101_v40 = vmul.f32 %v10015_v38, %v71_v10  ;;  %v112_v43 = vadd.f32 %v8147_v41, %v106_v39 }
 0x14a   :  { %v107_v42 = vmul.f32 %v8146_v37, %v101_v40 }
 0x14c   :  { %v113_v44 = vadd.f32 %v8147_v41, %v107_v42 }
 0x14e   :  { %v10343_v46 = vpack.c.bf16 %v113_v44, %v112_v43 }
 0x150   :  { %8996 = vmatmul.mubr.msk.bf16.vlgmr.msra.gmra.mrb[0].mxu1 %vm60_vm0, %v10343_v46  ;;  %9012 = vmatmul.mubr.msk.bf16.vlgmr.msra.gmra.mrb[0].mxu0 %vm60_vm0, %v10343_v46 }
 0x151   :  { %9000 = vmatpush3.bf16.msra.mxu1 %v9904_v45  ;;  %9003 = vmatprep.mubr.msk.bf16.mxu1 %vm10223_vm1, %v10222_v16 }
 0x152   :  { %9001 = vmatprep.subr.bf16.mxu1 %v10222_v16  ;;  %9023 = vmatprep.mubr.msk.bf16.mxu0 %vm10223_vm1, %v10222_v16 }
 0x155   :  { %9002 = vmatpush3.bf16.msra.mxu1 %v9905_v47 }
 0x156   :  { %9015 = vmatprep.subr.bf16.mxu1 %v10222_v16 }
 0x158   :  { %9004 = vmatmul.mubr.msk.bf16.vlgmr.msra.gmra.mrb[4].mxu1 %vm60_vm0, %v10343_v46 }
 0x159   :  { %9017 = vmatprep.mubr.msk.bf16.mxu1 %vm10223_vm1, %v10222_v16 }
 0x223   :  { %v173_v48 = vpop.f32.mrb[0].mxu1  ;;  %v299_v49 = vpop.f32.mrb[0].mxu0 }
 0x224   :  { %v8997_v50 = vpop.f32.mrb[1].mxu1  ;;  %v9013_v51 = vpop.f32.mrb[1].mxu0  ;;  %v300_v2 = vadd.f32 %v8164_v60, %v299_v49  ;;  %v174_v5 = vadd.f32 %v8148_v1, %v173_v48  ;;  %v9906_v48 = vld [vmem:[%s11940_s4 + $0x10] sm:$0xff]  }
 0x225   :  { %v176_v52 = vpop.f32.mrb[2].mxu1  ;;  %v302_v53 = vpop.f32.mrb[2].mxu0  ;;  %v9907_v51 = vld [vmem:[%s11940_s4 + $0x50] sm:$0xff]  }
 0x226   :  { %v8998_v54 = vpop.f32.mrb[3].mxu1  ;;  %v9014_v55 = vpop.f32.mrb[3].mxu0  ;;  %v303_v6 = vadd.f32 %v8164_v60, %v302_v53  ;;  %v310_v8 = vpack.c.bf16 %v300_v2, %v300_v2  ;;  %v177_v9 = vadd.f32 %v8148_v1, %v176_v52  ;;  %v306_v10 = vpack.c.bf16 %v174_v5, %v174_v5  ;;  %v9908_v53 = vld [vmem:[%s11940_s4 + $0x18] sm:$0xff]  }
 0x227   :  { %v9909_v54 = vld [vmem:[%s11940_s4 + $0x58] sm:$0xff]   ;;  %v9910_v55 = vld [vmem:[%s11940_s4 + $0x90] sm:$0xff]  }
 0x228   :  { %v311_v11 = vpack.c.bf16 %v303_v6, %v303_v6  ;;  %v307_v12 = vpack.c.bf16 %v177_v9, %v177_v9  ;;  %v438_v13 = vsel %vm436_vm7, %v310_v8, 0 }
 0x22a   :  { %v484_v14 = vsel %vm436_vm7, %v311_v11, 0 }
 0x22b   :  { %v236_v57 = vpop.f32.mrb[4].mxu1 }
 0x22c   :  { %v237_v58 = vadd.f32 %v8156_v56, %v236_v57  ;;  %v9005_v59 = vpop.f32.mrb[5].mxu1 }
 0x22d   :  { %v239_v61 = vpop.f32.mrb[6].mxu1 }
 0x22e   :  { %v308_v62 = vpack.c.bf16 %v237_v58, %v237_v58  ;;  %v240_v63 = vadd.f32 %v8156_v56, %v239_v61  ;;  %v9006_v0 = vpop.f32.mrb[7].mxu1  ;;  %v9911_v56 = vld [vmem:[%s11940_s4 + $0x98] sm:$0xff]  }
 0x230   :  { %v309_v3 = vpack.c.bf16 %v240_v63, %v240_v63  ;;  %v317_v4 = vsel %vm312_vm6, %v308_v62, 0 }
 0x231   :  { %9016 = vmatpush3.bf16.xpose.msra.mxu1 %v317_v4 }
 0x232   :  { %v363_v7 = vsel %vm312_vm6, %v309_v3, 0  ;;  %9027 = vmatprep.subr.bf16.mxu1 %v10222_v16  ;;  %v8184_v3 = vld [vmem:[%s11941_s5 + $0x5] ss:$0 sm:$0xff] }
 0x233   :  { %9022 = vmatpush3.bf16.xpose.msra.mxu0 %v363_v7 }
 0x234   :  { %9033 = vmatprep.subr.bf16.mxu0 %v10222_v16 }
 0x238   :  { %9018 = vmatmul.mubr.msk.bf16.vlgmr.msra.gmra.mrb[8].mxu1 %vm312_vm6, %v306_v10 }
 0x239   :  { %9028 = vmatpush3.bf16.msra.mxu1 %v438_v13  ;;  %9029 = vmatprep.mubr.msk.bf16.mxu1 %vm10223_vm1, %v10222_v16 }
 0x23a   :  { %9024 = vmatmul.mubr.msk.bf16.vlgmr.msra.gmra.mrb[4].mxu0 %vm312_vm6, %v307_v12  ;;  %9039 = vmatprep.subr.bf16.mxu1 %v10222_v16 }
 0x23b   :  { %9034 = vmatpush3.bf16.msra.mxu0 %v484_v14  ;;  %9035 = vmatprep.mubr.msk.bf16.mxu0 %vm10223_vm1, %v10222_v16  ;;  %v8176_v14 = vld [vmem:[%s11941_s5 + $0x1] ss:$0 sm:$0xff] }
 0x23c   :  { %9047 = vmatprep.subr.bf16.mxu0 %v10222_v16 }
 0x30b   :  { %v353_v15 = vpop.f32.mrb[8].mxu1 }
 0x30c   :  { %v405_v18 = vmul.f32 0.35355338, %v353_v15  ;;  %v9019_v19 = vpop.f32.mrb[9].mxu1  ;;  %v8192_v15 = vld [vmem:[%s11941_s5 + $0x9] ss:$0 sm:$0xff] }
 0x30d   :  { %v356_v20 = vpop.f32.mrb[10].mxu1  ;;  %v399_v21 = vpop.f32.mrb[4].mxu0 }
 0x30e   :  { %v406_v23 = vmul.f32 0.35355338, %v399_v21  ;;  %v9020_v24 = vpop.f32.mrb[11].mxu1  ;;  %v9025_v25 = vpop.f32.mrb[5].mxu0  ;;  %v407_v26 = vadd.f32 %v405_v18, %v10388_v17 }
 0x30f   :  { %v402_v27 = vpop.f32.mrb[6].mxu0 }
 0x310   :  { %v9026_v28 = vpop.f32.mrb[7].mxu0  ;;  %v409_v29 = vsel %vm312_vm6, %v407_v26, -inf  ;;  %v408_v30 = vadd.f32 %v406_v23, %v10393_v22 }
 0x311   :  { %410 = vmax.xlane.f32.xlu1 %v409_v29 }
 0x312   :  { %v412_v31 = vsel %vm312_vm6, %v408_v30, -inf }
 0x313   :  { %413 = vmax.xlane.f32.xlu0 %v412_v31 }
 0x39e   :  { %v411_v32 = vpop.xlane.xlu1 %410 }
 0x39f   :  { %v415_v33 = vsub.f32 %v407_v26, %v411_v32 }
 0x3a0   :  { %v414_v34 = vpop.xlane.xlu0 %413 }
 0x3a1   :  { %v417_v35 = vmul.f32 1.442695, %v415_v33  ;;  %v416_v36 = vsub.f32 %v408_v30, %v414_v34 }
 0x3a3   :  { %10016 = vpow2.f32 %v417_v35  ;;  %v419_v37 = vmul.f32 1.442695, %v416_v36 }
 0x3a5   :  { %10018 = vpow2.f32 %v419_v37 }
 0x3ad   :  { %v10017_v38 = vpop.eup %10016 }
 0x3ae   :  { %v421_v39 = vsel %vm312_vm6, %v10017_v38, 0.0 }
 0x3af   :  { %v10019_v40 = vpop.eup %10018  ;;  %422 = vadd.xlane.f32.xlu1 %v421_v39 }
 0x3b0   :  { %v424_v41 = vsel %vm312_vm6, %v10019_v40, 0.0 }
 0x3b1   :  { %425 = vadd.xlane.f32.xlu0 %v424_v41 }
 0x43c   :  { %v423_v42 = vpop.xlane.xlu1 %422 }
 0x43d   :  { %10020 = vrcp.f32 %v423_v42 }
 0x43e   :  { %v426_v43 = vpop.xlane.xlu0 %425 }
 0x43f   :  { %10022 = vrcp.f32 %v426_v43 }
 0x447   :  { %v10021_v44 = vpop.eup %10020 }
 0x448   :  { %v429_v45 = vmul.f32 %v10021_v44, %v10017_v38 }
 0x449   :  { %v10023_v47 = vpop.eup %10022 }
 0x44a   :  { %v430_v49 = vmul.f32 %v10023_v47, %v10019_v40  ;;  %v431_v50 = vpack.c.bf16 %v429_v45, %v429_v45 }
 0x44c   :  { %9030 = vmatmul.mubr.msk.bf16.vlgmr.msra.gmra.mrb[12].mxu1 %vm312_vm6, %v431_v50  ;;  %v432_v52 = vpack.c.bf16 %v430_v49, %v430_v49 }
 0x44d   :  { %9040 = vmatpush3.bf16.msra.mxu1 %v9906_v48  ;;  %9043 = vmatprep.mubr.msk.bf16.mxu1 %vm10223_vm1, %v10222_v16 }
 0x44e   :  { %9036 = vmatmul.mubr.msk.bf16.vlgmr.msra.gmra.mrb[8].mxu0 %vm312_vm6, %v432_v52  ;;  %9041 = vmatprep.subr.bf16.mxu1 %v10222_v16 }
 0x44f   :  { %9048 = vmatpush3.bf16.msra.mxu0 %v9907_v51  ;;  %9051 = vmatprep.mubr.msk.bf16.mxu0 %vm10223_vm1, %v10222_v16 }
 0x450   :  { %9049 = vmatprep.subr.bf16.mxu0 %v10222_v16 }
 0x451   :  { %9042 = vmatpush3.bf16.msra.mxu1 %v9908_v53 }
 0x452   :  { %9055 = vmatprep.subr.bf16.mxu1 %v10222_v16 }
 0x453   :  { %9050 = vmatpush3.bf16.msra.mxu0 %v9909_v54 }
 0x454   :  { %9044 = vmatmul.mubr.msk.bf16.vlgmr.msra.gmra.mrb[16].mxu1 %vm60_vm0, %v10343_v46  ;;  %9063 = vmatprep.subr.bf16.mxu0 %v10222_v16 }
 0x455   :  { %9056 = vmatpush3.bf16.msra.mxu1 %v9910_v55  ;;  %9059 = vmatprep.mubr.msk.bf16.mxu1 %vm10223_vm1, %v10222_v16 }
 0x456   :  { %9052 = vmatmul.mubr.msk.bf16.vlgmr.msra.gmra.mrb[12].mxu0 %vm60_vm0, %v10343_v46  ;;  %9057 = vmatprep.subr.bf16.mxu1 %v10222_v16 }
 0x457   :  { %9065 = vmatprep.mubr.msk.bf16.mxu0 %vm10223_vm1, %v10222_v16 }
 0x459   :  { %9058 = vmatpush3.bf16.msra.mxu1 %v9911_v56 }
 0x45a   :  { %9069 = vmatprep.subr.bf16.mxu1 %v10222_v16 }
 0x45c   :  { %9060 = vmatmul.mubr.msk.bf16.vlgmr.msra.gmra.mrb[20].mxu1 %vm60_vm0, %v10343_v46 }
 0x45d   :  { %9071 = vmatprep.mubr.msk.bf16.mxu1 %vm10223_vm1, %v10222_v16 }
 0x51f   :  { %v10443_v57 = vpop.f32.mrb[12].mxu1 }
 0x520   :  { %v9031_v58 = vpop.f32.mrb[13].mxu1 }
 0x521   :  { %v477_v59 = vpop.f32.mrb[14].mxu1  ;;  %v10445_v60 = vpop.f32.mrb[8].mxu0 }
 0x522   :  { %v526_v61 = vpack.c.bf16 %v10445_v60, %v10443_v57  ;;  %v9032_v62 = vpop.f32.mrb[15].mxu1  ;;  %v9037_v63 = vpop.f32.mrb[9].mxu0 }
 0x523   :  { %v523_v0 = vpop.f32.mrb[10].mxu0 }
 0x524   :  { %v9038_v1 = vpop.f32.mrb[11].mxu0 }
 0x527   :  { %v584_v2 = vpop.f32.mrb[16].mxu1 }
 0x528   :  { %v9045_v4 = vpop.f32.mrb[17].mxu1  ;;  %v585_v21 = vadd.f32 %v8176_v14, %v584_v2 }
 0x529   :  { %v587_v5 = vpop.f32.mrb[18].mxu1  ;;  %v647_v6 = vpop.f32.mrb[12].mxu0 }
 0x52a   :  { %v648_v7 = vadd.f32 %v8184_v3, %v647_v6  ;;  %v9046_v8 = vpop.f32.mrb[19].mxu1  ;;  %v9053_v9 = vpop.f32.mrb[13].mxu0  ;;  %v588_v27 = vadd.f32 %v8176_v14, %v587_v5  ;;  %v717_v31 = vpack.c.bf16 %v585_v21, %v585_v21  ;;  %v527_v6 = vld [vmem:[%s11942_s6] sm:$0xf] }
 0x52b   :  { %v650_v10 = vpop.f32.mrb[14].mxu0 }
 0x52c   :  { %v719_v11 = vpack.c.bf16 %v648_v7, %v648_v7  ;;  %v651_v12 = vadd.f32 %v8184_v3, %v650_v10  ;;  %v9054_v13 = vpop.f32.mrb[15].mxu0  ;;  %v718_v33 = vpack.c.bf16 %v588_v27, %v588_v27  ;;  %v8200_v3 = vld [vmem:[%s11942_s6 + $0x4] sm:$0xf] }
 0x52d   :  { %v942_v9 = vsel %vm436_vm7, %v8200_v3, 0  ;;  %v9913_v13 = vld [vmem:[%s11940_s4 + $0x68] sm:$0xff]  }
 0x52e   :  { %v727_v18 = vsel %vm312_vm6, %v719_v11, 0  ;;  %v720_v19 = vpack.c.bf16 %v651_v12, %v651_v12  ;;  %v989_v11 = vsel %vm436_vm7, %v527_v6, 0  ;;  %v9912_v12 = vld [vmem:[%s11940_s4 + $0x60] sm:$0xff]  }
 0x52f   :  { %v710_v20 = vpop.f32.mrb[20].mxu1  ;;  %9064 = vmatpush3.bf16.xpose.msra.mxu0 %v727_v18 }
 0x530   :  { %v773_v23 = vsel %vm312_vm6, %v720_v19, 0  ;;  %v711_v24 = vadd.f32 %v8192_v15, %v710_v20  ;;  %v9061_v25 = vpop.f32.mrb[21].mxu1  ;;  %9075 = vmatprep.subr.bf16.mxu0 %v10222_v16 }
 0x531   :  { %v713_v26 = vpop.f32.mrb[22].mxu1  ;;  %9070 = vmatpush3.bf16.xpose.msra.mxu1 %v773_v23 }
 0x532   :  { %v721_v28 = vpack.c.bf16 %v711_v24, %v711_v24  ;;  %v714_v29 = vadd.f32 %v8192_v15, %v713_v26  ;;  %v9062_v30 = vpop.f32.mrb[23].mxu1  ;;  %9081 = vmatprep.subr.bf16.mxu1 %v10222_v16  ;;  %v9914_v15 = vld [vmem:[%s11940_s4 + $0x20] sm:$0xff]   ;;  %v9915_v24 = vld [vmem:[%s11940_s4 + $0x28] sm:$0xff]  }
 0x533   :  { %v9916_v26 = vld [vmem:[%s11940_s4 + $0xa0] sm:$0xff]   ;;  %v9917_v30 = vld [vmem:[%s11940_s4 + $0xa8] sm:$0xff]  }
 0x534   :  { %v722_v32 = vpack.c.bf16 %v714_v29, %v714_v29  ;;  %v847_v34 = vsel %vm436_vm7, %v721_v28, 0 }
 0x536   :  { %9066 = vmatmul.mubr.msk.bf16.vlgmr.msra.gmra.mrb[16].mxu0 %vm312_vm6, %v717_v31  ;;  %v893_v35 = vsel %vm436_vm7, %v722_v32, 0  ;;  %v8215_v31 = vld [vmem:[%s11941_s5 + $0x6] ss:$0 sm:$0xff] }
 0x537   :  { %9076 = vmatpush3.bf16.msra.mxu0 %v847_v34  ;;  %9077 = vmatprep.mubr.msk.bf16.mxu0 %vm10223_vm1, %v10222_v16 }
 0x538   :  { %9072 = vmatmul.mubr.msk.bf16.vlgmr.msra.gmra.mrb[24].mxu1 %vm312_vm6, %v718_v33  ;;  %9087 = vmatprep.subr.bf16.mxu0 %v10222_v16 }
 0x539   :  { %9082 = vmatpush3.bf16.msra.mxu1 %v893_v35  ;;  %9083 = vmatprep.mubr.msk.bf16.mxu1 %vm10223_vm1, %v10222_v16 }
 0x53a   :  { %9093 = vmatprep.subr.bf16.mxu1 %v10222_v16 }
 0x609   :  { %v763_v36 = vpop.f32.mrb[16].mxu0 }
 0x60a   :  { %v815_v37 = vmul.f32 0.35355338, %v763_v36  ;;  %v9067_v38 = vpop.f32.mrb[17].mxu0 }
 0x60b   :  { %v766_v39 = vpop.f32.mrb[18].mxu0  ;;  %v809_v40 = vpop.f32.mrb[24].mxu1 }
 0x60c   :  { %v816_v41 = vmul.f32 0.35355338, %v809_v40  ;;  %v9068_v42 = vpop.f32.mrb[19].mxu0  ;;  %v9073_v43 = vpop.f32.mrb[25].mxu1  ;;  %v817_v44 = vadd.f32 %v815_v37, %v10388_v17 }
 0x60d   :  { %v812_v45 = vpop.f32.mrb[26].mxu1 }
 0x60e   :  { %v9074_v47 = vpop.f32.mrb[27].mxu1  ;;  %v819_v48 = vsel %vm312_vm6, %v817_v44, -inf  ;;  %v818_v49 = vadd.f32 %v816_v41, %v10393_v22 }
 0x60f   :  { %820 = vmax.xlane.f32.xlu0 %v819_v48 }
 0x610   :  { %v822_v50 = vsel %vm312_vm6, %v818_v49, -inf }
 0x611   :  { %823 = vmax.xlane.f32.xlu1 %v822_v50 }
 0x69c   :  { %v821_v51 = vpop.xlane.xlu0 %820 }
 0x69d   :  { %v825_v52 = vsub.f32 %v817_v44, %v821_v51 }
 0x69e   :  { %v824_v53 = vpop.xlane.xlu1 %823 }
 0x69f   :  { %v827_v54 = vmul.f32 1.442695, %v825_v52  ;;  %v826_v55 = vsub.f32 %v818_v49, %v824_v53  ;;  %v8207_v49 = vld [vmem:[%s11941_s5 + $0x2] ss:$0 sm:$0xff] }
 0x6a1   :  { %10024 = vpow2.f32 %v827_v54  ;;  %v829_v56 = vmul.f32 1.442695, %v826_v55 }
 0x6a3   :  { %10026 = vpow2.f32 %v829_v56 }
 0x6ab   :  { %v10025_v58 = vpop.eup %10024 }
 0x6ac   :  { %v831_v59 = vsel %vm312_vm6, %v10025_v58, 0.0 }
 0x6ad   :  { %v10027_v62 = vpop.eup %10026  ;;  %832 = vadd.xlane.f32.xlu0 %v831_v59  ;;  %v8223_v59 = vld [vmem:[%s11941_s5 + $0xa] ss:$0 sm:$0xff] }
 0x6ae   :  { %v834_v63 = vsel %vm312_vm6, %v10027_v62, 0.0 }
 0x6af   :  { %835 = vadd.xlane.f32.xlu1 %v834_v63 }
 0x73a   :  { %v833_v0 = vpop.xlane.xlu0 %832 }
 0x73b   :  { %10028 = vrcp.f32 %v833_v0 }
 0x73c   :  { %v836_v1 = vpop.xlane.xlu1 %835 }
 0x73d   :  { %10030 = vrcp.f32 %v836_v1 }
 0x745   :  { %v10029_v2 = vpop.eup %10028 }
 0x746   :  { %v839_v4 = vmul.f32 %v10029_v2, %v10025_v58 }
 0x747   :  { %v10031_v5 = vpop.eup %10030 }
 0x748   :  { %v840_v7 = vmul.f32 %v10031_v5, %v10027_v62  ;;  %v841_v8 = vpack.c.bf16 %v839_v4, %v839_v4 }
 0x74a   :  { %9078 = vmatmul.mubr.msk.bf16.vlgmr.msra.gmra.mrb[20].mxu0 %vm312_vm6, %v841_v8  ;;  %v842_v10 = vpack.c.bf16 %v840_v7, %v840_v7 }
 0x74b   :  { %9088 = vmatpush3.bf16.msra.mxu0 %v942_v9  ;;  %9089 = vmatprep.mubr.msk.bf16.mxu0 %vm10223_vm1, %v10222_v16 }
 0x74c   :  { %9084 = vmatmul.mubr.msk.bf16.vlgmr.msra.gmra.mrb[28].mxu1 %vm312_vm6, %v842_v10  ;;  %9099 = vmatprep.subr.bf16.mxu0 %v10222_v16 }
 0x74d   :  { %9094 = vmatpush3.bf16.msra.mxu1 %v989_v11  ;;  %9095 = vmatprep.mubr.msk.bf16.mxu1 %vm10223_vm1, %v10222_v16 }
 0x74e   :  { %9107 = vmatprep.subr.bf16.mxu1 %v10222_v16 }
 0x754   :  { %9096 = vmatmul.mubr.msk.bf16.vlgmr.msra.gmra.mrb[32].mxu1 %vm312_vm6, %v526_v61 }
 0x755   :  { %9108 = vmatpush3.bf16.msra.mxu1 %v9912_v12  ;;  %9111 = vmatprep.mubr.msk.bf16.mxu1 %vm10223_vm1, %v10222_v16 }
 0x756   :  { %9109 = vmatprep.subr.bf16.mxu1 %v10222_v16 }
 0x759   :  { %9110 = vmatpush3.bf16.msra.mxu1 %v9913_v13 }
 0x75a   :  { %9123 = vmatprep.subr.bf16.mxu1 %v10222_v16 }
 0x75c   :  { %9112 = vmatmul.mubr.msk.bf16.vlgmr.msra.gmra.mrb[36].mxu1 %vm60_vm0, %v10343_v46 }
 0x75d   :  { %9125 = vmatprep.mubr.msk.bf16.mxu1 %vm10223_vm1, %v10222_v16 }
 0x81d   :  { %v883_v57 = vpop.f32.mrb[20].mxu0 }
 0x81e   :  { %v9079_v60 = vpop.f32.mrb[21].mxu0 }
 0x81f   :  { %v886_v61 = vpop.f32.mrb[22].mxu0  ;;  %v929_v14 = vpop.f32.mrb[28].mxu1 }
 0x820   :  { %v935_v18 = vpack.c.bf16 %v929_v14, %v883_v57  ;;  %v9080_v19 = vpop.f32.mrb[23].mxu0  ;;  %v9085_v20 = vpop.f32.mrb[29].mxu1 }
 0x821   :  { %v932_v21 = vpop.f32.mrb[30].mxu1 }
 0x822   :  { %v9086_v23 = vpop.f32.mrb[31].mxu1  ;;  %9090 = vmatmul.mubr.msk.bf16.vlgmr.msra.gmra.mrb[24].mxu0 %vm312_vm6, %v935_v18 }
 0x823   :  { %9100 = vmatpush3.bf16.msra.mxu0 %v9914_v15  ;;  %9103 = vmatprep.mubr.msk.bf16.mxu0 %vm10223_vm1, %v10222_v16 }
 0x824   :  { %9101 = vmatprep.subr.bf16.mxu0 %v10222_v16 }
 0x827   :  { %9102 = vmatpush3.bf16.msra.mxu0 %v9915_v24  ;;  %v1025_v25 = vpop.f32.mrb[32].mxu1 }
 0x828   :  { %v9097_v27 = vpop.f32.mrb[33].mxu1  ;;  %9115 = vmatprep.subr.bf16.mxu0 %v10222_v16 }
 0x829   :  { %v1028_v28 = vpop.f32.mrb[34].mxu1 }
 0x82a   :  { %v9098_v29 = vpop.f32.mrb[35].mxu1  ;;  %9104 = vmatmul.mubr.msk.bf16.vlgmr.msra.gmra.mrb[28].mxu0 %vm60_vm0, %v10343_v46 }
 0x82b   :  { %9116 = vmatpush3.bf16.msra.mxu0 %v9916_v26  ;;  %9119 = vmatprep.mubr.msk.bf16.mxu0 %vm10223_vm1, %v10222_v16 }
 0x82c   :  { %9117 = vmatprep.subr.bf16.mxu0 %v10222_v16 }
 0x82f   :  { %9118 = vmatpush3.bf16.msra.mxu0 %v9917_v30  ;;  %v1151_v32 = vpop.f32.mrb[36].mxu1 }
 0x830   :  { %v1152_v33 = vadd.f32 %v8215_v31, %v1151_v32  ;;  %v9113_v34 = vpop.f32.mrb[37].mxu1  ;;  %9129 = vmatprep.subr.bf16.mxu0 %v10222_v16 }
 0x831   :  { %v1154_v35 = vpop.f32.mrb[38].mxu1 }
 0x832   :  { %v1223_v36 = vpack.c.bf16 %v1152_v33, %v1152_v33  ;;  %v1155_v37 = vadd.f32 %v8215_v31, %v1154_v35  ;;  %v9114_v38 = vpop.f32.mrb[39].mxu1  ;;  %9120 = vmatmul.mubr.msk.bf16.vlgmr.msra.gmra.mrb[32].mxu0 %vm60_vm0, %v10343_v46  ;;  %v8231_v35 = vld [vmem:[%s11942_s6 + $0x8] sm:$0xf] }
 0x833   :  { %9131 = vmatprep.mubr.msk.bf16.mxu0 %vm10223_vm1, %v10222_v16 }
 0x834   :  { %v1231_v39 = vsel %vm312_vm6, %v1223_v36, 0  ;;  %v1224_v40 = vpack.c.bf16 %v1155_v37, %v1155_v37 }
 0x835   :  { %9124 = vmatpush3.bf16.xpose.msra.mxu1 %v1231_v39 }
 0x836   :  { %v1277_v41 = vsel %vm312_vm6, %v1224_v40, 0  ;;  %9135 = vmatprep.subr.bf16.mxu1 %v10222_v16  ;;  %v1446_v40 = vsel %vm436_vm7, %v8231_v35, 0 }
 0x838   :  { %9130 = vmatpush3.bf16.xpose.msra.mxu0 %v1277_v41  ;;  %v9918_v41 = vld [vmem:[%s11940_s4 + $0x30] sm:$0xff]  }
 0x839   :  { %9141 = vmatprep.subr.bf16.mxu0 %v10222_v16 }
 0x8f5   :  { %v978_v42 = vpop.f32.mrb[24].mxu0 }
 0x8f6   :  { %v10546_v43 = vadd.f32 %v1025_v25, %v978_v42  ;;  %v9091_v44 = vpop.f32.mrb[25].mxu0 }
 0x8f7   :  { %v981_v45 = vpop.f32.mrb[26].mxu0  ;;  %v9919_v44 = vld [vmem:[%s11940_s4 + $0x38] sm:$0xff]  }
 0x8f8   :  { %v10548_v47 = vadd.f32 %v1028_v28, %v981_v45  ;;  %v9092_v48 = vpop.f32.mrb[27].mxu0  ;;  %v9920_v45 = vld [vmem:[%s11940_s4 + $0xb0] sm:$0xff]  }
 0x8f9   :  { %v9921_v48 = vld [vmem:[%s11940_s4 + $0xb8] sm:$0xff]  }
 0x8fd   :  { %v1088_v50 = vpop.f32.mrb[28].mxu0 }
 0x8fe   :  { %v1089_v51 = vadd.f32 %v8207_v49, %v1088_v50  ;;  %v9105_v52 = vpop.f32.mrb[29].mxu0 }
 0x8ff   :  { %v1091_v53 = vpop.f32.mrb[30].mxu0 }
 0x900   :  { %v1221_v54 = vpack.c.bf16 %v1089_v51, %v1089_v51  ;;  %v1092_v55 = vadd.f32 %v8207_v49, %v1091_v53  ;;  %v9106_v56 = vpop.f32.mrb[31].mxu0  ;;  %v9922_v53 = vld [vmem:[%s11940_s4 + $0x70] sm:$0xff]  }
 0x902   :  { %v1222_v58 = vpack.c.bf16 %v1092_v55, %v1092_v55  ;;  %9126 = vmatmul.mubr.msk.bf16.vlgmr.msra.gmra.mrb[40].mxu1 %vm312_vm6, %v1221_v54 }
 0x903   :  { %9137 = vmatprep.mubr.msk.bf16.mxu1 %vm10223_vm1, %v10222_v16 }
 0x904   :  { %9132 = vmatmul.mubr.msk.bf16.vlgmr.msra.gmra.mrb[36].mxu0 %vm312_vm6, %v1222_v58 }
 0x905   :  { %v1214_v62 = vpop.f32.mrb[32].mxu0  ;;  %9143 = vmatprep.mubr.msk.bf16.mxu0 %vm10223_vm1, %v10222_v16 }
 0x906   :  { %v1215_v63 = vadd.f32 %v8223_v59, %v1214_v62  ;;  %v9121_v0 = vpop.f32.mrb[33].mxu0  ;;  %v9923_v62 = vld [vmem:[%s11940_s4 + $0x78] sm:$0xff]  }
 0x907   :  { %v1217_v1 = vpop.f32.mrb[34].mxu0 }
 0x908   :  { %v1225_v2 = vpack.c.bf16 %v1215_v63, %v1215_v63  ;;  %v1218_v3 = vadd.f32 %v8223_v59, %v1217_v1  ;;  %v9122_v4 = vpop.f32.mrb[35].mxu0 }
 0x90a   :  { %v1351_v5 = vsel %vm436_vm7, %v1225_v2, 0  ;;  %v1226_v6 = vpack.c.bf16 %v1218_v3, %v1218_v3 }
 0x90b   :  { %9136 = vmatpush3.bf16.msra.mxu1 %v1351_v5 }
 0x90c   :  { %v1397_v7 = vsel %vm436_vm7, %v1226_v6, 0  ;;  %9147 = vmatprep.subr.bf16.mxu1 %v10222_v16 }
 0x90d   :  { %9142 = vmatpush3.bf16.msra.mxu0 %v1397_v7 }
 0x90e   :  { %9153 = vmatprep.subr.bf16.mxu0 %v10222_v16 }
 0x9d5   :  { %v1267_v8 = vpop.f32.mrb[40].mxu1 }
 0x9d6   :  { %v1319_v9 = vmul.f32 0.35355338, %v1267_v8  ;;  %v9127_v10 = vpop.f32.mrb[41].mxu1 }
 0x9d7   :  { %v1270_v11 = vpop.f32.mrb[42].mxu1  ;;  %v1313_v12 = vpop.f32.mrb[36].mxu0 }
 0x9d8   :  { %v1320_v13 = vmul.f32 0.35355338, %v1313_v12  ;;  %v9128_v57 = vpop.f32.mrb[43].mxu1  ;;  %v9133_v60 = vpop.f32.mrb[37].mxu0  ;;  %v1321_v61 = vadd.f32 %v1319_v9, %v10388_v17 }
 0x9d9   :  { %v1316_v14 = vpop.f32.mrb[38].mxu0 }
 0x9da   :  { %v9134_v15 = vpop.f32.mrb[39].mxu0  ;;  %v1323_v18 = vsel %vm312_vm6, %v1321_v61, -inf  ;;  %v1322_v19 = vadd.f32 %v1320_v13, %v10393_v22 }
 0x9db   :  { %1324 = vmax.xlane.f32.xlu0 %v1323_v18 }
 0x9dc   :  { %v1326_v20 = vsel %vm312_vm6, %v1322_v19, -inf }
 0x9dd   :  { %1327 = vmax.xlane.f32.xlu1 %v1326_v20 }
 0xa68   :  { %v1325_v21 = vpop.xlane.xlu0 %1324 }
 0xa69   :  { %v1329_v23 = vsub.f32 %v1321_v61, %v1325_v21  ;;  %v8253_v61 = vld [vmem:[%s11941_s5 + $0xb] ss:$0 sm:$0xff] }
 0xa6a   :  { %v1328_v24 = vpop.xlane.xlu1 %1327 }
 0xa6b   :  { %v1331_v25 = vmul.f32 1.442695, %v1329_v23  ;;  %v1330_v26 = vsub.f32 %v1322_v19, %v1328_v24 }
 0xa6d   :  { %10032 = vpow2.f32 %v1331_v25  ;;  %v1333_v27 = vmul.f32 1.442695, %v1330_v26 }
 0xa6f   :  { %10034 = vpow2.f32 %v1333_v27 }
 0xa77   :  { %v10033_v28 = vpop.eup %10032 }
 0xa78   :  { %v1335_v29 = vsel %vm312_vm6, %v10033_v28, 0.0 }
 0xa79   :  { %v10035_v30 = vpop.eup %10034  ;;  %1336 = vadd.xlane.f32.xlu0 %v1335_v29 }
 0xa7a   :  { %v1338_v31 = vsel %vm312_vm6, %v10035_v30, 0.0 }
 0xa7b   :  { %1339 = vadd.xlane.f32.xlu1 %v1338_v31 }
 0xb06   :  { %v1337_v32 = vpop.xlane.xlu0 %1336 }
 0xb07   :  { %10036 = vrcp.f32 %v1337_v32 }
 0xb08   :  { %v1340_v33 = vpop.xlane.xlu1 %1339 }
 0xb09   :  { %10038 = vrcp.f32 %v1340_v33 }
 0xb11   :  { %v10037_v34 = vpop.eup %10036 }
 0xb12   :  { %v1343_v36 = vmul.f32 %v10037_v34, %v10033_v28 }
 0xb13   :  { %v10039_v37 = vpop.eup %10038 }
 0xb14   :  { %v1344_v38 = vmul.f32 %v10039_v37, %v10035_v30  ;;  %v1345_v39 = vpack.c.bf16 %v1343_v36, %v1343_v36 }
 0xb16   :  { %9138 = vmatmul.mubr.msk.bf16.vlgmr.msra.gmra.mrb[44].mxu1 %vm312_vm6, %v1345_v39  ;;  %v1346_v42 = vpack.c.bf16 %v1344_v38, %v1344_v38 }
 0xb17   :  { %9148 = vmatpush3.bf16.msra.mxu1 %v1446_v40  ;;  %9149 = vmatprep.mubr.msk.bf16.mxu1 %vm10223_vm1, %v10222_v16 }
 0xb18   :  { %9144 = vmatmul.mubr.msk.bf16.vlgmr.msra.gmra.mrb[40].mxu0 %vm312_vm6, %v1346_v42  ;;  %9161 = vmatprep.subr.bf16.mxu1 %v10222_v16 }
 0xb19   :  { %9154 = vmatpush3.bf16.msra.mxu0 %v9918_v41  ;;  %9157 = vmatprep.mubr.msk.bf16.mxu0 %vm10223_vm1, %v10222_v16 }
 0xb1a   :  { %9155 = vmatprep.subr.bf16.mxu0 %v10222_v16 }
 0xb1d   :  { %9156 = vmatpush3.bf16.msra.mxu0 %v9919_v44 }
 0xb1e   :  { %9169 = vmatprep.subr.bf16.mxu0 %v10222_v16 }
 0xb20   :  { %9158 = vmatmul.mubr.msk.bf16.vlgmr.msra.gmra.mrb[44].mxu0 %vm60_vm0, %v10343_v46 }
 0xb21   :  { %9170 = vmatpush3.bf16.msra.mxu0 %v9920_v45  ;;  %9173 = vmatprep.mubr.msk.bf16.mxu0 %vm10223_vm1, %v10222_v16 }
 0xb22   :  { %9171 = vmatprep.subr.bf16.mxu0 %v10222_v16 }
 0xb25   :  { %9172 = vmatpush3.bf16.msra.mxu0 %v9921_v48 }
 0xb26   :  { %9183 = vmatprep.subr.bf16.mxu0 %v10222_v16 }
 0xb28   :  { %9174 = vmatmul.mubr.msk.bf16.vlgmr.msra.gmra.mrb[48].mxu0 %vm60_vm0, %v10343_v46 }
 0xb29   :  { %9185 = vmatprep.mubr.msk.bf16.mxu0 %vm10223_vm1, %v10222_v16 }
 0xbe9   :  { %v1387_v49 = vpop.f32.mrb[44].mxu1 }
 0xbea   :  { %v9139_v50 = vpop.f32.mrb[45].mxu1 }
 0xbeb   :  { %v1390_v51 = vpop.f32.mrb[46].mxu1  ;;  %v1433_v52 = vpop.f32.mrb[40].mxu0 }
 0xbec   :  { %v1439_v54 = vpack.c.bf16 %v1433_v52, %v1387_v49  ;;  %v9140_v55 = vpop.f32.mrb[47].mxu1  ;;  %v9145_v56 = vpop.f32.mrb[41].mxu0 }
 0xbed   :  { %v1436_v58 = vpop.f32.mrb[42].mxu0 }
 0xbee   :  { %v9146_v59 = vpop.f32.mrb[43].mxu0  ;;  %9150 = vmatmul.mubr.msk.bf16.vlgmr.msra.gmra.mrb[48].mxu1 %vm312_vm6, %v1439_v54 }
 0xbef   :  { %9162 = vmatpush3.bf16.msra.mxu1 %v9922_v53  ;;  %9165 = vmatprep.mubr.msk.bf16.mxu1 %vm10223_vm1, %v10222_v16 }
 0xbf0   :  { %9163 = vmatprep.subr.bf16.mxu1 %v10222_v16 }
 0xbf3   :  { %v1547_v63 = vpop.f32.mrb[44].mxu0  ;;  %9164 = vmatpush3.bf16.msra.mxu1 %v9923_v62 }
 0xbf4   :  { %v9159_v0 = vpop.f32.mrb[45].mxu0  ;;  %9177 = vmatprep.subr.bf16.mxu1 %v10222_v16 }
 0xbf5   :  { %v1550_v1 = vpop.f32.mrb[46].mxu0  ;;  %v8261_v0 = vld [vmem:[%s11942_s6 + $0xc] sm:$0xf] }
 0xbf6   :  { %v9160_v2 = vpop.f32.mrb[47].mxu0  ;;  %9166 = vmatmul.mubr.msk.bf16.vlgmr.msra.gmra.mrb[52].mxu1 %vm60_vm0, %v10343_v46  ;;  %v8245_v46 = vld [vmem:[%s11941_s5 + $0x7] ss:$0 sm:$0xff] }
 0xbf7   :  { %9179 = vmatprep.mubr.msk.bf16.mxu1 %vm10223_vm1, %v10222_v16 }
 0xbfb   :  { %v1673_v3 = vpop.f32.mrb[48].mxu0 }
 0xbfc   :  { %v9175_v4 = vpop.f32.mrb[49].mxu0  ;;  %v1674_v19 = vadd.f32 %v8253_v61, %v1673_v3 }
 0xbfd   :  { %v1676_v5 = vpop.f32.mrb[50].mxu0 }
 0xbfe   :  { %v9176_v6 = vpop.f32.mrb[51].mxu0  ;;  %v1677_v24 = vadd.f32 %v8253_v61, %v1676_v5  ;;  %v1684_v27 = vpack.c.bf16 %v1674_v19, %v1674_v19  ;;  %v1905_v5 = vsel %vm436_vm7, %v8261_v0, 0 }
 0xc00   :  { %v1685_v29 = vpack.c.bf16 %v1677_v24, %v1677_v24  ;;  %v1810_v31 = vsel %vm436_vm7, %v1684_v27, 0 }
 0xc02   :  { %v1856_v32 = vsel %vm436_vm7, %v1685_v29, 0 }
 0xcc1   :  { %v1482_v7 = vpop.f32.mrb[48].mxu1 }
 0xcc2   :  { %v10623_v8 = vadd.f32 %v1482_v7, %v10546_v43  ;;  %v9151_v9 = vpop.f32.mrb[49].mxu1 }
 0xcc3   :  { %v1485_v10 = vpop.f32.mrb[50].mxu1 }
 0xcc4   :  { %v10626_v11 = vadd.f32 %v1485_v10, %v10548_v47  ;;  %v9152_v12 = vpop.f32.mrb[51].mxu1  ;;  %v8237_v47 = vld [vmem:[%s11941_s5 + $0x3] ss:$0 sm:$0xff] }
 0xcc5   :  { %v1548_v23 = vadd.f32 %v8237_v47, %v1547_v63  ;;  %v1551_v26 = vadd.f32 %v8237_v47, %v1550_v1 }
 0xcc7   :  { %v1680_v28 = vpack.c.bf16 %v1548_v23, %v1548_v23  ;;  %v1681_v30 = vpack.c.bf16 %v1551_v26, %v1551_v26  ;;  %v10192_v23 = vld [vmem:[%s11936_s0] sm:$0xff]  ;;  %v10193_v26 = vld [vmem:[%s11936_s0 + $0x8] sm:$0xff] }
 0xcc9   :  { %v1610_v13 = vpop.f32.mrb[52].mxu1 }
 0xcca   :  { %v1611_v57 = vadd.f32 %v8245_v46, %v1610_v13  ;;  %v9167_v60 = vpop.f32.mrb[53].mxu1 }
 0xccb   :  { %v1613_v14 = vpop.f32.mrb[54].mxu1 }
 0xccc   :  { %v1682_v43 = vpack.c.bf16 %v1611_v57, %v1611_v57  ;;  %v1614_v15 = vadd.f32 %v8245_v46, %v1613_v14  ;;  %v9168_v18 = vpop.f32.mrb[55].mxu1 }
 0xcce   :  { %v1690_v20 = vsel %vm312_vm6, %v1682_v43, 0  ;;  %v1683_v21 = vpack.c.bf16 %v1614_v15, %v1614_v15  ;;  %v8263_v43 = vld [vmem:[%s11943_s7] ss:$0 sm:$0xff] }
 0xccf   :  { %9178 = vmatpush3.bf16.xpose.msra.mxu1 %v1690_v20 }
 0xcd0   :  { %v1736_v25 = vsel %vm312_vm6, %v1683_v21, 0  ;;  %9189 = vmatprep.subr.bf16.mxu1 %v10222_v16 }
 0xcd1   :  { %9184 = vmatpush3.bf16.xpose.msra.mxu0 %v1736_v25 }
 0xcd2   :  { %9195 = vmatprep.subr.bf16.mxu0 %v10222_v16 }
 0xcd6   :  { %9180 = vmatmul.mubr.msk.bf16.vlgmr.msra.gmra.mrb[56].mxu1 %vm312_vm6, %v1680_v28 }
 0xcd7   :  { %9190 = vmatpush3.bf16.msra.mxu1 %v1810_v31  ;;  %9191 = vmatprep.mubr.msk.bf16.mxu1 %vm10223_vm1, %v10222_v16 }
 0xcd8   :  { %9186 = vmatmul.mubr.msk.bf16.vlgmr.msra.gmra.mrb[52].mxu0 %vm312_vm6, %v1681_v30  ;;  %9201 = vmatprep.subr.bf16.mxu1 %v10222_v16 }
 0xcd9   :  { %9196 = vmatpush3.bf16.msra.mxu0 %v1856_v32  ;;  %9197 = vmatprep.mubr.msk.bf16.mxu0 %vm10223_vm1, %v10222_v16 }
 0xcda   :  { %9207 = vmatprep.subr.bf16.mxu0 %v10222_v16 }
 0xda9   :  { %v1726_v33 = vpop.f32.mrb[56].mxu1 }
 0xdaa   :  { %v1778_v34 = vmul.f32 0.35355338, %v1726_v33  ;;  %v9181_v35 = vpop.f32.mrb[57].mxu1 }
 0xdab   :  { %v1729_v36 = vpop.f32.mrb[58].mxu1  ;;  %v1772_v37 = vpop.f32.mrb[52].mxu0 }
 0xdac   :  { %v1779_v38 = vmul.f32 0.35355338, %v1772_v37  ;;  %v9182_v39 = vpop.f32.mrb[59].mxu1  ;;  %v9187_v40 = vpop.f32.mrb[53].mxu0  ;;  %v1780_v41 = vadd.f32 %v1778_v34, %v10388_v17 }
 0xdad   :  { %v1775_v42 = vpop.f32.mrb[54].mxu0  ;;  %v9925_v39 = vld [vmem:[%s11940_s4 + $0x108] sm:$0xff]   ;;  %v51_v40 = vld [vmem:[%s11937_s1] sm:$0xff] }
 0xdae   :  { %v9188_v44 = vpop.f32.mrb[55].mxu0  ;;  %v1782_v45 = vsel %vm312_vm6, %v1780_v41, -inf  ;;  %v1781_v48 = vadd.f32 %v1779_v38, %v10393_v22  ;;  %v9924_v38 = vld [vmem:[%s11940_s4 + $0x100] sm:$0xff]  }
 0xdaf   :  { %1783 = vmax.xlane.f32.xlu0 %v1782_v45  ;;  %v9926_v42 = vld [vmem:[%s11940_s4 + $0xc0] sm:$0xff]   ;;  %v9927_v44 = vld [vmem:[%s11940_s4 + $0xc8] sm:$0xff]  }
 0xdb0   :  { %v1785_v49 = vsel %vm312_vm6, %v1781_v48, -inf }
 0xdb1   :  { %1786 = vmax.xlane.f32.xlu1 %v1785_v49 }
 0xe3c   :  { %v1784_v50 = vpop.xlane.xlu0 %1783 }
 0xe3d   :  { %v1788_v51 = vsub.f32 %v1780_v41, %v1784_v50  ;;  %v52_v41 = vld [vmem:[%s11937_s1 + $0x8] sm:$0xff] }
 0xe3e   :  { %v1787_v52 = vpop.xlane.xlu1 %1786  ;;  %v10713_v45 = vpack.c.bf16 %v52_v41, %v51_v40 }
 0xe3f   :  { %v1790_v53 = vmul.f32 1.442695, %v1788_v51  ;;  %v1789_v54 = vsub.f32 %v1781_v48, %v1787_v52 }
 0xe41   :  { %10040 = vpow2.f32 %v1790_v53  ;;  %v1792_v55 = vmul.f32 1.442695, %v1789_v54 }
 0xe43   :  { %10042 = vpow2.f32 %v1792_v55 }
 0xe4b   :  { %v10041_v56 = vpop.eup %10040 }
 0xe4c   :  { %v1794_v17 = vsel %vm312_vm6, %v10041_v56, 0.0 }
 0xe4d   :  { %v10043_v58 = vpop.eup %10042  ;;  %1795 = vadd.xlane.f32.xlu0 %v1794_v17 }
 0xe4e   :  { %v1797_v59 = vsel %vm312_vm6, %v10043_v58, 0.0 }
 0xe4f   :  { %1798 = vadd.xlane.f32.xlu1 %v1797_v59 }
 0xeda   :  { %v1796_v22 = vpop.xlane.xlu0 %1795 }
 0xedb   :  { %10044 = vrcp.f32 %v1796_v22 }
 0xedc   :  { %v1799_v62 = vpop.xlane.xlu1 %1798 }
 0xedd   :  { %10046 = vrcp.f32 %v1799_v62 }
 0xee5   :  { %v10045_v63 = vpop.eup %10044 }
 0xee6   :  { %v1802_v1 = vmul.f32 %v10045_v63, %v10041_v56 }
 0xee7   :  { %v10047_v2 = vpop.eup %10046 }
 0xee8   :  { %v1803_v3 = vmul.f32 %v10047_v2, %v10043_v58  ;;  %v1804_v4 = vpack.c.bf16 %v1802_v1, %v1802_v1  ;;  %v8264_v2 = vld [vmem:[%s11948_s12 + $0x1] ss:$0 sm:$0xff] }
 0xeea   :  { %9192 = vmatmul.mubr.msk.bf16.vlgmr.msra.gmra.mrb[60].mxu1 %vm312_vm6, %v1804_v4  ;;  %v1805_v6 = vpack.c.bf16 %v1803_v3, %v1803_v3 }
 0xeeb   :  { %9202 = vmatpush3.bf16.msra.mxu1 %v1905_v5  ;;  %9203 = vmatprep.mubr.msk.bf16.mxu1 %vm10223_vm1, %v10222_v16 }
 0xeec   :  { %9198 = vmatmul.mubr.msk.bf16.vlgmr.msra.gmra.mrb[56].mxu0 %vm312_vm6, %v1805_v6  ;;  %9215 = vmatprep.subr.bf16.mxu1 %v10222_v16 }
 0xeed   :  { %9211 = vmatprep.mubr.msk.bf16.mxu0 %vm10223_vm1, %v10222_v16  ;;  %9208 = vmatpush3.bf16.msra.mxu0 %v9926_v42 }
 0xeee   :  { %9209 = vmatprep.subr.bf16.mxu0 %v10222_v16 }
 0xef1   :  { %9210 = vmatpush3.bf16.msra.mxu0 %v9927_v44 }
 0xef2   :  { %9223 = vmatprep.subr.bf16.mxu0 %v10222_v16 }
 0xfbd   :  { %v1846_v7 = vpop.f32.mrb[60].mxu1 }
 0xfbe   :  { %v9193_v9 = vpop.f32.mrb[61].mxu1 }
 0xfbf   :  { %v1849_v10 = vpop.f32.mrb[62].mxu1  ;;  %v1892_v12 = vpop.f32.mrb[56].mxu0 }
 0xfc0   :  { %v1898_v46 = vpack.c.bf16 %v1892_v12, %v1846_v7  ;;  %v9194_v13 = vpop.f32.mrb[63].mxu1  ;;  %v9199_v57 = vpop.f32.mrb[57].mxu0  ;;  %v8265_v7 = vld [vmem:[%s11949_s13 + $0x1] ss:$0 sm:$0xff] }
 0xfc1   :  { %v1895_v60 = vpop.f32.mrb[58].mxu0  ;;  %v9929_v57 = vld [vmem:[%s11940_s4 + $0x148] sm:$0xff]  }
 0xfc2   :  { %v9200_v61 = vpop.f32.mrb[59].mxu0  ;;  %9204 = vmatmul.mubr.msk.bf16.vlgmr.msra.gmra.mrb[64].mxu1 %vm312_vm6, %v1898_v46  ;;  %v9928_v46 = vld [vmem:[%s11940_s4 + $0x140] sm:$0xff]   ;;  %v8278_v60 = vld [vmem:[%s11941_s5 + $0x10] ss:$0 sm:$0xff] }
 0xfc3   :  { %9219 = vmatprep.mubr.msk.bf16.mxu1 %vm10223_vm1, %v10222_v16  ;;  %9216 = vmatpush3.bf16.msra.mxu1 %v9924_v38 }
 0xfc4   :  { %9217 = vmatprep.subr.bf16.mxu1 %v10222_v16 }
 0xfc7   :  { %9218 = vmatpush3.bf16.msra.mxu1 %v9925_v39 }
 0xfc8   :  { %9231 = vmatprep.subr.bf16.mxu1 %v10222_v16 }
 0xfca   :  { %9220 = vmatmul.mubr.msk.bf16.vlgmr.msra.gmra.mrb[68].mxu1 %vm60_vm0, %v10713_v45 }
 0xfcb   :  { %9233 = vmatprep.mubr.msk.bf16.mxu1 %vm10223_vm1, %v10222_v16 }
0x1095   :  { %v1941_v14 = vpop.f32.mrb[64].mxu1 }
0x1096   :  { %v1948_v15 = vadd.f32 %v1941_v14, %v10623_v8  ;;  %v9205_v18 = vpop.f32.mrb[65].mxu1 }
0x1097   :  { %v1944_v47 = vpop.f32.mrb[66].mxu1 }
0x1098   :  { %v1955_v19 = vadd.f32 %v8263_v43, %v1948_v15  ;;  %v1949_v20 = vadd.f32 %v1944_v47, %v10626_v11  ;;  %v9206_v21 = vpop.f32.mrb[67].mxu1 }
0x109a   :  { %v10679_v24 = vadd.f32 %v10192_v23, %v1955_v19  ;;  %v1956_v25 = vadd.f32 %v8263_v43, %v1949_v20 }
0x109c   :  { %v10684_v27 = vadd.f32 %v10193_v26, %v1956_v25  ;;  %v1961_v8 = vsel %vm60_vm0, %v10679_v24, 0.0  ;;  %v8270_v25 = vld [vmem:[%s11941_s5 + $0xc] ss:$0 sm:$0xff] }
0x109d   :  { %1962 = vadd.xlane.f32.xlu0 %v1961_v8  ;;  %v2139_v61 = vpop.f32.mrb[68].mxu1 }
0x109e   :  { %v1964_v11 = vsel %vm60_vm0, %v10684_v27, 0.0  ;;  %v2140_v14 = vadd.f32 %v8278_v60, %v2139_v61  ;;  %v9221_v43 = vpop.f32.mrb[69].mxu1 }
0x109f   :  { %1965 = vadd.xlane.f32.xlu1 %v1964_v11  ;;  %v2142_v15 = vpop.f32.mrb[70].mxu1  ;;  %v9930_v43 = vld [vmem:[%s11940_s4 + $0xd0] sm:$0xff]  }
0x10a0   :  { %v2211_v18 = vpack.c.bf16 %v2140_v14, %v2140_v14  ;;  %v2143_v47 = vadd.f32 %v8278_v60, %v2142_v15  ;;  %v9222_v19 = vpop.f32.mrb[71].mxu1 }
0x10a2   :  { %v2219_v20 = vsel %vm312_vm6, %v2211_v18, 0  ;;  %v2212_v21 = vpack.c.bf16 %v2143_v47, %v2143_v47  ;;  %v9931_v47 = vld [vmem:[%s11940_s4 + $0x110] sm:$0xff]  }
0x10a3   :  { %9232 = vmatpush3.bf16.xpose.msra.mxu1 %v2219_v20  ;;  %v9932_v20 = vld [vmem:[%s11940_s4 + $0xd8] sm:$0xff]  }
0x10a4   :  { %v2265_v23 = vsel %vm312_vm6, %v2212_v21, 0  ;;  %9243 = vmatprep.subr.bf16.mxu1 %v10222_v16  ;;  %v9933_v21 = vld [vmem:[%s11940_s4 + $0x118] sm:$0xff]  }
0x112a   :  { %v1963_v28 = vpop.xlane.xlu0 %1962 }
0x112b   :  { %v1967_v29 = vmul.f32 0.03125, %v1963_v28 }
0x112c   :  { %v1966_v30 = vpop.xlane.xlu1 %1965 }
0x112d   :  { %v1969_v31 = vsub.f32 %v10679_v24, %v1967_v29  ;;  %v1968_v32 = vmul.f32 0.03125, %v1966_v30 }
0x112f   :  { %v1970_v33 = vsub.f32 %v10684_v27, %v1968_v32  ;;  %v1971_v34 = vmul.f32 %v1969_v31, %v1969_v31 }
0x1131   :  { %v1973_v35 = vsel %vm60_vm0, %v1971_v34, 0.0  ;;  %v1972_v36 = vmul.f32 %v1970_v33, %v1970_v33 }
0x1132   :  { %1974 = vadd.xlane.f32.xlu0 %v1973_v35 }
0x1133   :  { %v1976_v37 = vsel %vm60_vm0, %v1972_v36, 0.0 }
0x1134   :  { %1977 = vadd.xlane.f32.xlu1 %v1976_v37 }
0x11bf   :  { %v1975_v48 = vpop.xlane.xlu0 %1974 }
0x11c0   :  { %v1979_v49 = vmul.f32 0.032258064, %v1975_v48 }
0x11c1   :  { %v1978_v50 = vpop.xlane.xlu1 %1977 }
0x11c2   :  { %10048 = vrsqrt.f32 %v1979_v49  ;;  %v1980_v51 = vmul.f32 0.032258064, %v1978_v50  ;;  %vm1983_vm8 = vcmp.eq.f32.partialorder %v1979_v49, inf  ;;  %v1986_v54 = vand.u32 2147483648, %v1979_v49 }
0x11c3   :  { %vm1985_vm9 = vcmp.eq.f32.partialorder %v1979_v49, 0.0 }
0x11c4   :  { %10050 = vrsqrt.f32 %v1980_v51  ;;  %vm1990_vm10 = vcmp.eq.f32.partialorder %v1980_v51, inf  ;;  %v1993_v22 = vand.u32 2147483648, %v1980_v51  ;;  %vm1992_vm11 = vcmp.eq.f32.partialorder %v1980_v51, 0.0 }
0x11cc   :  { %v10049_v52 = vpop.eup %10048 }
0x11cd   :  { %v1982_v53 = vmul.f32 %v10049_v52, %v1979_v49 }
0x11ce   :  { %v10051_v55 = vpop.eup %10050 }
0x11cf   :  { %v1984_v56 = vsel %vm1983_vm8, %v1979_v49, %v1982_v53  ;;  %v1989_v58 = vmul.f32 %v10051_v55, %v1980_v51  ;;  %v10772_v49 = vld [vmem:[%s11939_s3] sm:$0xff] }
0x11d0   :  { %v1987_v17 = vsel %vm1985_vm9, %v1986_v54, %v1984_v56  ;;  %v10777_v54 = vld [vmem:[%s11939_s3 + $0x8] sm:$0xff] }
0x11d1   :  { %v1995_v59 = vadd.f32 1e-06, %v1987_v17  ;;  %v1991_v62 = vsel %vm1990_vm10, %v1980_v51, %v1989_v58 }
0x11d2   :  { %v1994_v63 = vsel %vm1992_vm11, %v1993_v22, %v1991_v62 }
0x11d3   :  { %10052 = vrcp.f32 %v1995_v59  ;;  %v1996_v0 = vadd.f32 1e-06, %v1994_v63 }
0x11d5   :  { %10054 = vrcp.f32 %v1996_v0 }
0x11dd   :  { %v10053_v1 = vpop.eup %10052 }
0x11de   :  { %v1999_v3 = vmul.f32 %v10053_v1, %v1969_v31 }
0x11df   :  { %v10055_v4 = vpop.eup %10054 }
0x11e0   :  { %v2000_v5 = vmul.f32 %v10055_v4, %v1970_v33  ;;  %v2005_v6 = vmul.f32 %v8264_v2, %v1999_v3  ;;  %v8286_v33 = vld [vmem:[%s11941_s5 + $0x14] ss:$0 sm:$0xff] }
0x11e2   :  { %v2006_v9 = vmul.f32 %v8264_v2, %v2000_v5  ;;  %v2011_v10 = vadd.f32 %v8265_v7, %v2005_v6 }
0x11e4   :  { %v2012_v12 = vadd.f32 %v8265_v7, %v2006_v9 }
0x11e6   :  { %v10731_v13 = vpack.c.bf16 %v2012_v12, %v2011_v10 }
0x11e8   :  { %9212 = vmatmul.mubr.msk.bf16.vlgmr.msra.gmra.mrb[60].mxu0 %vm60_vm0, %v10731_v13 }
0x11e9   :  { %9224 = vmatpush3.bf16.msra.mxu0 %v9928_v46  ;;  %9227 = vmatprep.mubr.msk.bf16.mxu0 %vm10223_vm1, %v10222_v16 }
0x11ea   :  { %9225 = vmatprep.subr.bf16.mxu0 %v10222_v16 }
0x11ed   :  { %9226 = vmatpush3.bf16.msra.mxu0 %v9929_v57 }
0x11ee   :  { %9237 = vmatprep.subr.bf16.mxu0 %v10222_v16 }
0x11f0   :  { %9228 = vmatmul.mubr.msk.bf16.vlgmr.msra.gmra.mrb[64].mxu0 %vm60_vm0, %v10713_v45 }
0x11f1   :  { %9239 = vmatprep.mubr.msk.bf16.mxu0 %vm10223_vm1, %v10222_v16 }
0x11f6   :  { %9238 = vmatpush3.bf16.xpose.msra.mxu0 %v2265_v23  ;;  %v9934_v23 = vld [vmem:[%s11940_s4 + $0x150] sm:$0xff]  }
0x11f7   :  { %9249 = vmatprep.subr.bf16.mxu0 %v10222_v16 }
0x12bb   :  { %v2073_v26 = vpop.f32.mrb[60].mxu0 }
0x12bc   :  { %v2074_v8 = vadd.f32 %v8270_v25, %v2073_v26  ;;  %v9213_v11 = vpop.f32.mrb[61].mxu0 }
0x12bd   :  { %v2076_v28 = vpop.f32.mrb[62].mxu0 }
0x12be   :  { %v2209_v29 = vpack.c.bf16 %v2074_v8, %v2074_v8  ;;  %v2077_v30 = vadd.f32 %v8270_v25, %v2076_v28  ;;  %v9214_v31 = vpop.f32.mrb[63].mxu0  ;;  %v9935_v25 = vld [vmem:[%s11940_s4 + $0x158] sm:$0xff]  }
0x12c0   :  { %v2210_v32 = vpack.c.bf16 %v2077_v30, %v2077_v30  ;;  %9234 = vmatmul.mubr.msk.bf16.vlgmr.msra.gmra.mrb[72].mxu1 %vm312_vm6, %v2209_v29 }
0x12c1   :  { %9245 = vmatprep.mubr.msk.bf16.mxu1 %vm10223_vm1, %v10222_v16 }
0x12c2   :  { %9240 = vmatmul.mubr.msk.bf16.vlgmr.msra.gmra.mrb[68].mxu0 %vm312_vm6, %v2210_v32 }
0x12c3   :  { %v2202_v34 = vpop.f32.mrb[64].mxu0  ;;  %9251 = vmatprep.mubr.msk.bf16.mxu0 %vm10223_vm1, %v10222_v16 }
0x12c4   :  { %v2203_v35 = vadd.f32 %v8286_v33, %v2202_v34  ;;  %v9229_v36 = vpop.f32.mrb[65].mxu0 }
0x12c5   :  { %v2205_v37 = vpop.f32.mrb[66].mxu0 }
0x12c6   :  { %v2213_v38 = vpack.c.bf16 %v2203_v35, %v2203_v35  ;;  %v2206_v39 = vadd.f32 %v8286_v33, %v2205_v37  ;;  %v9230_v40 = vpop.f32.mrb[67].mxu0  ;;  %v8307_v35 = vld [vmem:[%s11941_s5 + $0x11] ss:$0 sm:$0xff] }
0x12c8   :  { %v2339_v41 = vsel %vm436_vm7, %v2213_v38, 0  ;;  %v2214_v42 = vpack.c.bf16 %v2206_v39, %v2206_v39 }
0x12c9   :  { %9244 = vmatpush3.bf16.msra.mxu1 %v2339_v41 }
0x12ca   :  { %v2385_v44 = vsel %vm436_vm7, %v2214_v42, 0  ;;  %9255 = vmatprep.subr.bf16.mxu1 %v10222_v16 }
0x12cb   :  { %9250 = vmatpush3.bf16.msra.mxu0 %v2385_v44 }
0x12cc   :  { %9263 = vmatprep.subr.bf16.mxu0 %v10222_v16 }
0x1393   :  { %v2255_v48 = vpop.f32.mrb[72].mxu1 }
0x1394   :  { %v2307_v50 = vmul.f32 0.35355338, %v2255_v48  ;;  %v9235_v51 = vpop.f32.mrb[73].mxu1 }
0x1395   :  { %v2258_v52 = vpop.f32.mrb[74].mxu1  ;;  %v2301_v53 = vpop.f32.mrb[68].mxu0  ;;  %v8299_v51 = vld [vmem:[%s11941_s5 + $0xd] ss:$0 sm:$0xff] }
0x1396   :  { %v2308_v55 = vmul.f32 0.35355338, %v2301_v53  ;;  %v9236_v56 = vpop.f32.mrb[75].mxu1  ;;  %v9241_v17 = vpop.f32.mrb[69].mxu0  ;;  %v2309_v58 = vadd.f32 %v2307_v50, %v10772_v49 }
0x1397   :  { %v2304_v59 = vpop.f32.mrb[70].mxu0 }
0x1398   :  { %v9242_v22 = vpop.f32.mrb[71].mxu0  ;;  %v2311_v62 = vsel %vm312_vm6, %v2309_v58, -inf  ;;  %v2310_v63 = vadd.f32 %v2308_v55, %v10777_v54 }
0x1399   :  { %2312 = vmax.xlane.f32.xlu1 %v2311_v62  ;;  %v8315_v22 = vld [vmem:[%s11941_s5 + $0x15] ss:$0 sm:$0xff] }
0x139a   :  { %v2314_v0 = vsel %vm312_vm6, %v2310_v63, -inf }
0x139b   :  { %2315 = vmax.xlane.f32.xlu0 %v2314_v0 }
0x1426   :  { %v2313_v1 = vpop.xlane.xlu1 %2312 }
0x1427   :  { %v2317_v2 = vsub.f32 %v2309_v58, %v2313_v1 }
0x1428   :  { %v2316_v3 = vpop.xlane.xlu0 %2315 }
0x1429   :  { %v2319_v4 = vmul.f32 1.442695, %v2317_v2  ;;  %v2318_v5 = vsub.f32 %v2310_v63, %v2316_v3 }
0x142b   :  { %10056 = vpow2.f32 %v2319_v4  ;;  %v2321_v6 = vmul.f32 1.442695, %v2318_v5 }
0x142d   :  { %10058 = vpow2.f32 %v2321_v6 }
0x1435   :  { %v10057_v7 = vpop.eup %10056 }
0x1436   :  { %v2323_v9 = vsel %vm312_vm6, %v10057_v7, 0.0 }
0x1437   :  { %v10059_v10 = vpop.eup %10058  ;;  %2324 = vadd.xlane.f32.xlu1 %v2323_v9 }
0x1438   :  { %v2326_v12 = vsel %vm312_vm6, %v10059_v10, 0.0 }
0x1439   :  { %2327 = vadd.xlane.f32.xlu0 %v2326_v12 }
0x14c4   :  { %v2325_v46 = vpop.xlane.xlu1 %2324 }
0x14c5   :  { %10060 = vrcp.f32 %v2325_v46 }
0x14c6   :  { %v2328_v57 = vpop.xlane.xlu0 %2327 }
0x14c7   :  { %10062 = vrcp.f32 %v2328_v57 }
0x14cf   :  { %v10061_v60 = vpop.eup %10060 }
0x14d0   :  { %v2331_v61 = vmul.f32 %v10061_v60, %v10057_v7 }
0x14d1   :  { %v10063_v14 = vpop.eup %10062 }
0x14d2   :  { %v2332_v15 = vmul.f32 %v10063_v14, %v10059_v10  ;;  %v2333_v18 = vpack.c.bf16 %v2331_v61, %v2331_v61 }
0x14d4   :  { %9246 = vmatmul.mubr.msk.bf16.vlgmr.msra.gmra.mrb[76].mxu1 %vm312_vm6, %v2333_v18  ;;  %v2334_v19 = vpack.c.bf16 %v2332_v15, %v2332_v15 }
0x14d5   :  { %9256 = vmatpush3.bf16.msra.mxu1 %v9930_v43  ;;  %9259 = vmatprep.mubr.msk.bf16.mxu1 %vm10223_vm1, %v10222_v16 }
0x14d6   :  { %9252 = vmatmul.mubr.msk.bf16.vlgmr.msra.gmra.mrb[72].mxu0 %vm312_vm6, %v2334_v19  ;;  %9257 = vmatprep.subr.bf16.mxu1 %v10222_v16 }
0x14d7   :  { %9264 = vmatpush3.bf16.msra.mxu0 %v9931_v47  ;;  %9267 = vmatprep.mubr.msk.bf16.mxu0 %vm10223_vm1, %v10222_v16 }
0x14d8   :  { %9265 = vmatprep.subr.bf16.mxu0 %v10222_v16 }
0x14d9   :  { %9258 = vmatpush3.bf16.msra.mxu1 %v9932_v20 }
0x14da   :  { %9271 = vmatprep.subr.bf16.mxu1 %v10222_v16 }
0x14db   :  { %9266 = vmatpush3.bf16.msra.mxu0 %v9933_v21 }
0x14dc   :  { %9260 = vmatmul.mubr.msk.bf16.vlgmr.msra.gmra.mrb[80].mxu1 %vm60_vm0, %v10731_v13  ;;  %9279 = vmatprep.subr.bf16.mxu0 %v10222_v16 }
0x14dd   :  { %9275 = vmatprep.mubr.msk.bf16.mxu1 %vm10223_vm1, %v10222_v16  ;;  %9272 = vmatpush3.bf16.msra.mxu1 %v9934_v23 }
0x14de   :  { %9268 = vmatmul.mubr.msk.bf16.vlgmr.msra.gmra.mrb[76].mxu0 %vm60_vm0, %v10713_v45  ;;  %9273 = vmatprep.subr.bf16.mxu1 %v10222_v16 }
0x14df   :  { %9281 = vmatprep.mubr.msk.bf16.mxu0 %vm10223_vm1, %v10222_v16 }
0x14e1   :  { %9274 = vmatpush3.bf16.msra.mxu1 %v9935_v25 }
0x14e2   :  { %9285 = vmatprep.subr.bf16.mxu1 %v10222_v16 }
0x14e4   :  { %9276 = vmatmul.mubr.msk.bf16.vlgmr.msra.gmra.mrb[84].mxu1 %vm60_vm0, %v10713_v45 }
0x14e5   :  { %9287 = vmatprep.mubr.msk.bf16.mxu1 %vm10223_vm1, %v10222_v16 }
0x15a7   :  { %v10827_v26 = vpop.f32.mrb[76].mxu1 }
0x15a8   :  { %v9247_v8 = vpop.f32.mrb[77].mxu1 }
0x15a9   :  { %v2378_v11 = vpop.f32.mrb[78].mxu1  ;;  %v10829_v28 = vpop.f32.mrb[72].mxu0 }
0x15aa   :  { %v2427_v29 = vpack.c.bf16 %v10829_v28, %v10827_v26  ;;  %v9248_v30 = vpop.f32.mrb[79].mxu1  ;;  %v9253_v31 = vpop.f32.mrb[73].mxu0 }
0x15ab   :  { %v2424_v32 = vpop.f32.mrb[74].mxu0 }
0x15ac   :  { %v9254_v33 = vpop.f32.mrb[75].mxu0 }
0x15af   :  { %v2486_v34 = vpop.f32.mrb[80].mxu1 }
0x15b0   :  { %v9261_v36 = vpop.f32.mrb[81].mxu1  ;;  %v2487_v55 = vadd.f32 %v8299_v51, %v2486_v34 }
0x15b1   :  { %v2489_v37 = vpop.f32.mrb[82].mxu1  ;;  %v2549_v38 = vpop.f32.mrb[76].mxu0 }
0x15b2   :  { %v2550_v39 = vadd.f32 %v8307_v35, %v2549_v38  ;;  %v9262_v40 = vpop.f32.mrb[83].mxu1  ;;  %v9269_v41 = vpop.f32.mrb[77].mxu0  ;;  %v2490_v17 = vadd.f32 %v8299_v51, %v2489_v37  ;;  %v2619_v58 = vpack.c.bf16 %v2487_v55, %v2487_v55  ;;  %v8323_v38 = vld [vmem:[%s11942_s6 + $0x14] sm:$0xf] }
0x15b3   :  { %v2552_v42 = vpop.f32.mrb[78].mxu0  ;;  %v8294_v41 = vld [vmem:[%s11942_s6 + $0x10] sm:$0xf] }
0x15b4   :  { %v2621_v44 = vpack.c.bf16 %v2550_v39, %v2550_v39  ;;  %v2553_v48 = vadd.f32 %v8307_v35, %v2552_v42  ;;  %v9270_v50 = vpop.f32.mrb[79].mxu0  ;;  %v2620_v59 = vpack.c.bf16 %v2490_v17, %v2490_v17  ;;  %v2891_v51 = vsel %vm436_vm7, %v8294_v41, 0 }
0x15b6   :  { %v2629_v52 = vsel %vm312_vm6, %v2621_v44, 0  ;;  %v2622_v53 = vpack.c.bf16 %v2553_v48, %v2553_v48  ;;  %v2844_v48 = vsel %vm436_vm7, %v8323_v38, 0 }
0x15b7   :  { %9280 = vmatpush3.bf16.xpose.msra.mxu0 %v2629_v52  ;;  %v2612_v62 = vpop.f32.mrb[84].mxu1  ;;  %v9936_v52 = vld [vmem:[%s11940_s4 + $0x120] sm:$0xff]  }
0x15b8   :  { %v2675_v56 = vsel %vm312_vm6, %v2622_v53, 0  ;;  %9291 = vmatprep.subr.bf16.mxu0 %v10222_v16  ;;  %v2613_v63 = vadd.f32 %v8315_v22, %v2612_v62  ;;  %v9277_v0 = vpop.f32.mrb[85].mxu1  ;;  %v9937_v53 = vld [vmem:[%s11940_s4 + $0x128] sm:$0xff]  }
0x15b9   :  { %9286 = vmatpush3.bf16.xpose.msra.mxu1 %v2675_v56  ;;  %v2615_v1 = vpop.f32.mrb[86].mxu1  ;;  %v9938_v56 = vld [vmem:[%s11940_s4 + $0xe0] sm:$0xff]  }
0x15ba   :  { %9297 = vmatprep.subr.bf16.mxu1 %v10222_v16  ;;  %v2623_v2 = vpack.c.bf16 %v2613_v63, %v2613_v63  ;;  %v2616_v3 = vadd.f32 %v8315_v22, %v2615_v1  ;;  %v9278_v4 = vpop.f32.mrb[87].mxu1  ;;  %v9939_v63 = vld [vmem:[%s11940_s4 + $0xe8] sm:$0xff]   ;;  %v9940_v1 = vld [vmem:[%s11940_s4 + $0x160] sm:$0xff]  }
0x15bc   :  { %v2749_v5 = vsel %vm436_vm7, %v2623_v2, 0  ;;  %v2624_v6 = vpack.c.bf16 %v2616_v3, %v2616_v3 }
0x15be   :  { %9282 = vmatmul.mubr.msk.bf16.vlgmr.msra.gmra.mrb[80].mxu0 %vm312_vm6, %v2619_v58  ;;  %v2795_v7 = vsel %vm436_vm7, %v2624_v6, 0  ;;  %v8338_v6 = vld [vmem:[%s11941_s5 + $0x12] ss:$0 sm:$0xff] }
0x15bf   :  { %9293 = vmatprep.mubr.msk.bf16.mxu0 %vm10223_vm1, %v10222_v16  ;;  %9292 = vmatpush3.bf16.msra.mxu0 %v2749_v5  ;;  %v9941_v5 = vld [vmem:[%s11940_s4 + $0x168] sm:$0xff]  }
0x15c0   :  { %9288 = vmatmul.mubr.msk.bf16.vlgmr.msra.gmra.mrb[88].mxu1 %vm312_vm6, %v2620_v59  ;;  %9303 = vmatprep.subr.bf16.mxu0 %v10222_v16 }
0x15c1   :  { %9299 = vmatprep.mubr.msk.bf16.mxu1 %vm10223_vm1, %v10222_v16  ;;  %9298 = vmatpush3.bf16.msra.mxu1 %v2795_v7 }
0x15c2   :  { %9309 = vmatprep.subr.bf16.mxu1 %v10222_v16 }
0x1691   :  { %v2665_v9 = vpop.f32.mrb[80].mxu0 }
0x1692   :  { %v2717_v10 = vmul.f32 0.35355338, %v2665_v9  ;;  %v9283_v12 = vpop.f32.mrb[81].mxu0 }
0x1693   :  { %v2668_v46 = vpop.f32.mrb[82].mxu0  ;;  %v2711_v57 = vpop.f32.mrb[88].mxu1 }
0x1694   :  { %v2718_v60 = vmul.f32 0.35355338, %v2711_v57  ;;  %v9284_v61 = vpop.f32.mrb[83].mxu0  ;;  %v9289_v14 = vpop.f32.mrb[89].mxu1  ;;  %v2719_v43 = vadd.f32 %v2717_v10, %v10772_v49 }
0x1695   :  { %v2714_v15 = vpop.f32.mrb[90].mxu1 }
0x1696   :  { %v9290_v18 = vpop.f32.mrb[91].mxu1  ;;  %v2721_v47 = vsel %vm312_vm6, %v2719_v43, -inf  ;;  %v2720_v19 = vadd.f32 %v2718_v60, %v10777_v54 }
0x1697   :  { %2722 = vmax.xlane.f32.xlu0 %v2721_v47 }
0x1698   :  { %v2724_v20 = vsel %vm312_vm6, %v2720_v19, -inf }
0x1699   :  { %2725 = vmax.xlane.f32.xlu1 %v2724_v20 }
0x1724   :  { %v2723_v21 = vpop.xlane.xlu0 %2722 }
0x1725   :  { %v2727_v23 = vsub.f32 %v2719_v43, %v2723_v21 }
0x1726   :  { %v2726_v25 = vpop.xlane.xlu1 %2725 }
0x1727   :  { %v2729_v8 = vmul.f32 1.442695, %v2727_v23  ;;  %v2728_v11 = vsub.f32 %v2720_v19, %v2726_v25  ;;  %v8330_v23 = vld [vmem:[%s11941_s5 + $0xe] ss:$0 sm:$0xff] }
0x1729   :  { %10064 = vpow2.f32 %v2729_v8  ;;  %v2731_v30 = vmul.f32 1.442695, %v2728_v11 }
0x172b   :  { %10066 = vpow2.f32 %v2731_v30 }
0x1733   :  { %v10065_v31 = vpop.eup %10064 }
0x1734   :  { %v2733_v32 = vsel %vm312_vm6, %v10065_v31, 0.0 }
0x1735   :  { %v10067_v33 = vpop.eup %10066  ;;  %2734 = vadd.xlane.f32.xlu0 %v2733_v32 }
0x1736   :  { %v2736_v34 = vsel %vm312_vm6, %v10067_v33, 0.0 }
0x1737   :  { %2737 = vadd.xlane.f32.xlu1 %v2736_v34 }
0x17c2   :  { %v2735_v35 = vpop.xlane.xlu0 %2734 }
0x17c3   :  { %10068 = vrcp.f32 %v2735_v35  ;;  %v8346_v35 = vld [vmem:[%s11941_s5 + $0x16] ss:$0 sm:$0xff] }
0x17c4   :  { %v2738_v36 = vpop.xlane.xlu1 %2737 }
0x17c5   :  { %10070 = vrcp.f32 %v2738_v36 }
0x17cd   :  { %v10069_v37 = vpop.eup %10068 }
0x17ce   :  { %v2741_v39 = vmul.f32 %v10069_v37, %v10065_v31 }
0x17cf   :  { %v10071_v40 = vpop.eup %10070 }
0x17d0   :  { %v2742_v42 = vmul.f32 %v10071_v40, %v10067_v33  ;;  %v2743_v44 = vpack.c.bf16 %v2741_v39, %v2741_v39 }
0x17d2   :  { %9294 = vmatmul.mubr.msk.bf16.vlgmr.msra.gmra.mrb[84].mxu0 %vm312_vm6, %v2743_v44  ;;  %v2744_v50 = vpack.c.bf16 %v2742_v42, %v2742_v42 }
0x17d3   :  { %9304 = vmatpush3.bf16.msra.mxu0 %v2844_v48  ;;  %9305 = vmatprep.mubr.msk.bf16.mxu0 %vm10223_vm1, %v10222_v16 }
0x17d4   :  { %9300 = vmatmul.mubr.msk.bf16.vlgmr.msra.gmra.mrb[92].mxu1 %vm312_vm6, %v2744_v50  ;;  %9315 = vmatprep.subr.bf16.mxu0 %v10222_v16 }
0x17d5   :  { %9310 = vmatpush3.bf16.msra.mxu1 %v2891_v51  ;;  %9311 = vmatprep.mubr.msk.bf16.mxu1 %vm10223_vm1, %v10222_v16 }
0x17d6   :  { %9323 = vmatprep.subr.bf16.mxu1 %v10222_v16 }
0x17dc   :  { %9312 = vmatmul.mubr.msk.bf16.vlgmr.msra.gmra.mrb[96].mxu1 %vm312_vm6, %v2427_v29 }
0x17dd   :  { %9324 = vmatpush3.bf16.msra.mxu1 %v9936_v52  ;;  %9327 = vmatprep.mubr.msk.bf16.mxu1 %vm10223_vm1, %v10222_v16 }
0x17de   :  { %9325 = vmatprep.subr.bf16.mxu1 %v10222_v16 }
0x17e1   :  { %9326 = vmatpush3.bf16.msra.mxu1 %v9937_v53 }
0x17e2   :  { %9339 = vmatprep.subr.bf16.mxu1 %v10222_v16 }
0x17e4   :  { %9328 = vmatmul.mubr.msk.bf16.vlgmr.msra.gmra.mrb[100].mxu1 %vm60_vm0, %v10713_v45 }
0x17e5   :  { %9341 = vmatprep.mubr.msk.bf16.mxu1 %vm10223_vm1, %v10222_v16 }
0x18a5   :  { %v2785_v26 = vpop.f32.mrb[84].mxu0 }
0x18a6   :  { %v9295_v28 = vpop.f32.mrb[85].mxu0 }
0x18a7   :  { %v2788_v29 = vpop.f32.mrb[86].mxu0  ;;  %v2831_v55 = vpop.f32.mrb[92].mxu1 }
0x18a8   :  { %v2837_v17 = vpack.c.bf16 %v2831_v55, %v2785_v26  ;;  %v9296_v58 = vpop.f32.mrb[87].mxu0  ;;  %v9301_v59 = vpop.f32.mrb[93].mxu1 }
0x18a9   :  { %v2834_v22 = vpop.f32.mrb[94].mxu1 }
0x18aa   :  { %v9302_v62 = vpop.f32.mrb[95].mxu1  ;;  %9306 = vmatmul.mubr.msk.bf16.vlgmr.msra.gmra.mrb[88].mxu0 %vm312_vm6, %v2837_v17 }
0x18ab   :  { %9316 = vmatpush3.bf16.msra.mxu0 %v9938_v56  ;;  %9319 = vmatprep.mubr.msk.bf16.mxu0 %vm10223_vm1, %v10222_v16 }
0x18ac   :  { %9317 = vmatprep.subr.bf16.mxu0 %v10222_v16 }
0x18af   :  { %v2927_v0 = vpop.f32.mrb[96].mxu1  ;;  %9318 = vmatpush3.bf16.msra.mxu0 %v9939_v63 }
0x18b0   :  { %v9313_v2 = vpop.f32.mrb[97].mxu1  ;;  %9331 = vmatprep.subr.bf16.mxu0 %v10222_v16 }
0x18b1   :  { %v2930_v3 = vpop.f32.mrb[98].mxu1 }
0x18b2   :  { %v9314_v4 = vpop.f32.mrb[99].mxu1  ;;  %9320 = vmatmul.mubr.msk.bf16.vlgmr.msra.gmra.mrb[92].mxu0 %vm60_vm0, %v10731_v13 }
0x18b3   :  { %9332 = vmatpush3.bf16.msra.mxu0 %v9940_v1  ;;  %9335 = vmatprep.mubr.msk.bf16.mxu0 %vm10223_vm1, %v10222_v16 }
0x18b4   :  { %9333 = vmatprep.subr.bf16.mxu0 %v10222_v16 }
0x18b7   :  { %v3053_v7 = vpop.f32.mrb[100].mxu1  ;;  %9334 = vmatpush3.bf16.msra.mxu0 %v9941_v5 }
0x18b8   :  { %v3054_v9 = vadd.f32 %v8338_v6, %v3053_v7  ;;  %v9329_v10 = vpop.f32.mrb[101].mxu1  ;;  %9345 = vmatprep.subr.bf16.mxu0 %v10222_v16 }
0x18b9   :  { %v3056_v12 = vpop.f32.mrb[102].mxu1 }
0x18ba   :  { %v3125_v46 = vpack.c.bf16 %v3054_v9, %v3054_v9  ;;  %v3057_v57 = vadd.f32 %v8338_v6, %v3056_v12  ;;  %v9330_v60 = vpop.f32.mrb[103].mxu1  ;;  %9336 = vmatmul.mubr.msk.bf16.vlgmr.msra.gmra.mrb[96].mxu0 %vm60_vm0, %v10713_v45 }
0x18bb   :  { %9347 = vmatprep.mubr.msk.bf16.mxu0 %vm10223_vm1, %v10222_v16  ;;  %v8354_v60 = vld [vmem:[%s11942_s6 + $0x18] sm:$0xf] }
0x18bc   :  { %v3133_v61 = vsel %vm312_vm6, %v3125_v46, 0  ;;  %v3126_v14 = vpack.c.bf16 %v3057_v57, %v3057_v57 }
0x18bd   :  { %9340 = vmatpush3.bf16.xpose.msra.mxu1 %v3133_v61 }
0x18be   :  { %v3179_v43 = vsel %vm312_vm6, %v3126_v14, 0  ;;  %9351 = vmatprep.subr.bf16.mxu1 %v10222_v16 }
0x18c0   :  { %9346 = vmatpush3.bf16.xpose.msra.mxu0 %v3179_v43 }
0x18c1   :  { %9357 = vmatprep.subr.bf16.mxu0 %v10222_v16 }
0x197d   :  { %v2880_v15 = vpop.f32.mrb[88].mxu0 }
0x197e   :  { %v10930_v18 = vadd.f32 %v2927_v0, %v2880_v15  ;;  %v9307_v47 = vpop.f32.mrb[89].mxu0 }
0x197f   :  { %v2883_v19 = vpop.f32.mrb[90].mxu0  ;;  %v3348_v47 = vsel %vm436_vm7, %v8354_v60, 0 }
0x1980   :  { %v10932_v20 = vadd.f32 %v2930_v3, %v2883_v19  ;;  %v9308_v21 = vpop.f32.mrb[91].mxu0  ;;  %v9942_v19 = vld [vmem:[%s11940_s4 + $0xf0] sm:$0xff]  }
0x1985   :  { %v2990_v25 = vpop.f32.mrb[92].mxu0 }
0x1986   :  { %v2991_v8 = vadd.f32 %v8330_v23, %v2990_v25  ;;  %v9321_v11 = vpop.f32.mrb[93].mxu0 }
0x1987   :  { %v2993_v30 = vpop.f32.mrb[94].mxu0 }
0x1988   :  { %v3123_v31 = vpack.c.bf16 %v2991_v8, %v2991_v8  ;;  %v2994_v32 = vadd.f32 %v8330_v23, %v2993_v30  ;;  %v9322_v33 = vpop.f32.mrb[95].mxu0  ;;  %v9943_v23 = vld [vmem:[%s11940_s4 + $0xf8] sm:$0xff]  }
0x198a   :  { %v3124_v34 = vpack.c.bf16 %v2994_v32, %v2994_v32  ;;  %9342 = vmatmul.mubr.msk.bf16.vlgmr.msra.gmra.mrb[104].mxu1 %vm312_vm6, %v3123_v31  ;;  %v9944_v31 = vld [vmem:[%s11940_s4 + $0x130] sm:$0xff]  }
0x198b   :  { %9353 = vmatprep.mubr.msk.bf16.mxu1 %vm10223_vm1, %v10222_v16 }
0x198c   :  { %9348 = vmatmul.mubr.msk.bf16.vlgmr.msra.gmra.mrb[100].mxu0 %vm312_vm6, %v3124_v34 }
0x198d   :  { %v3116_v36 = vpop.f32.mrb[96].mxu0  ;;  %9359 = vmatprep.mubr.msk.bf16.mxu0 %vm10223_vm1, %v10222_v16 }
0x198e   :  { %v3117_v37 = vadd.f32 %v8346_v35, %v3116_v36  ;;  %v9337_v38 = vpop.f32.mrb[97].mxu0 }
0x198f   :  { %v3119_v39 = vpop.f32.mrb[98].mxu0 }
0x1990   :  { %v3127_v40 = vpack.c.bf16 %v3117_v37, %v3117_v37  ;;  %v3120_v41 = vadd.f32 %v8346_v35, %v3119_v39  ;;  %v9338_v42 = vpop.f32.mrb[99].mxu0 }
0x1991   :  { %v9947_v42 = vld [vmem:[%s11940_s4 + $0x178] sm:$0xff]  }
0x1992   :  { %v3253_v44 = vsel %vm436_vm7, %v3127_v40, 0  ;;  %v3128_v48 = vpack.c.bf16 %v3120_v41, %v3120_v41  ;;  %v9946_v41 = vld [vmem:[%s11940_s4 + $0x170] sm:$0xff]  }
0x1993   :  { %9352 = vmatpush3.bf16.msra.mxu1 %v3253_v44 }
0x1994   :  { %v3299_v50 = vsel %vm436_vm7, %v3128_v48, 0  ;;  %9363 = vmatprep.subr.bf16.mxu1 %v10222_v16 }
0x1995   :  { %9358 = vmatpush3.bf16.msra.mxu0 %v3299_v50 }
0x1996   :  { %9369 = vmatprep.subr.bf16.mxu0 %v10222_v16 }
0x1a5d   :  { %v3169_v51 = vpop.f32.mrb[104].mxu1 }
0x1a5e   :  { %v3221_v52 = vmul.f32 0.35355338, %v3169_v51  ;;  %v9343_v53 = vpop.f32.mrb[105].mxu1 }
0x1a5f   :  { %v3172_v26 = vpop.f32.mrb[106].mxu1  ;;  %v3215_v28 = vpop.f32.mrb[100].mxu0 }
0x1a60   :  { %v3222_v29 = vmul.f32 0.35355338, %v3215_v28  ;;  %v9344_v55 = vpop.f32.mrb[107].mxu1  ;;  %v9349_v56 = vpop.f32.mrb[101].mxu0  ;;  %v3223_v17 = vadd.f32 %v3221_v52, %v10772_v49  ;;  %v8368_v26 = vld [vmem:[%s11941_s5 + $0x13] ss:$0 sm:$0xff] }
0x1a61   :  { %v3218_v58 = vpop.f32.mrb[102].mxu0 }
0x1a62   :  { %v9350_v59 = vpop.f32.mrb[103].mxu0  ;;  %v3225_v22 = vsel %vm312_vm6, %v3223_v17, -inf  ;;  %v3224_v62 = vadd.f32 %v3222_v29, %v10777_v54 }
0x1a63   :  { %3226 = vmax.xlane.f32.xlu0 %v3225_v22 }
0x1a64   :  { %v3228_v63 = vsel %vm312_vm6, %v3224_v62, -inf }
0x1a65   :  { %3229 = vmax.xlane.f32.xlu1 %v3228_v63 }
0x1af0   :  { %v3227_v0 = vpop.xlane.xlu0 %3226 }
0x1af1   :  { %v3231_v1 = vsub.f32 %v3223_v17, %v3227_v0 }
0x1af2   :  { %v3230_v2 = vpop.xlane.xlu1 %3229 }
0x1af3   :  { %v3233_v3 = vmul.f32 1.442695, %v3231_v1  ;;  %v3232_v4 = vsub.f32 %v3224_v62, %v3230_v2 }
0x1af5   :  { %10072 = vpow2.f32 %v3233_v3  ;;  %v3235_v5 = vmul.f32 1.442695, %v3232_v4  ;;  %v8376_v3 = vld [vmem:[%s11941_s5 + $0x17] ss:$0 sm:$0xff] }
0x1af7   :  { %10074 = vpow2.f32 %v3235_v5 }
0x1aff   :  { %v10073_v6 = vpop.eup %10072 }
0x1b00   :  { %v3237_v7 = vsel %vm312_vm6, %v10073_v6, 0.0 }
0x1b01   :  { %v10075_v9 = vpop.eup %10074  ;;  %3238 = vadd.xlane.f32.xlu0 %v3237_v7 }
0x1b02   :  { %v3240_v10 = vsel %vm312_vm6, %v10075_v9, 0.0 }
0x1b03   :  { %3241 = vadd.xlane.f32.xlu1 %v3240_v10 }
0x1b8e   :  { %v3239_v12 = vpop.xlane.xlu0 %3238 }
0x1b8f   :  { %10076 = vrcp.f32 %v3239_v12 }
0x1b90   :  { %v3242_v46 = vpop.xlane.xlu1 %3241 }
0x1b91   :  { %10078 = vrcp.f32 %v3242_v46 }
0x1b99   :  { %v10077_v57 = vpop.eup %10076 }
0x1b9a   :  { %v3245_v61 = vmul.f32 %v10077_v57, %v10073_v6 }
0x1b9b   :  { %v10079_v14 = vpop.eup %10078 }
0x1b9c   :  { %v3246_v43 = vmul.f32 %v10079_v14, %v10075_v9  ;;  %v3247_v15 = vpack.c.bf16 %v3245_v61, %v3245_v61 }
0x1b9e   :  { %9354 = vmatmul.mubr.msk.bf16.vlgmr.msra.gmra.mrb[108].mxu1 %vm312_vm6, %v3247_v15  ;;  %v3248_v21 = vpack.c.bf16 %v3246_v43, %v3246_v43 }
0x1b9f   :  { %9364 = vmatpush3.bf16.msra.mxu1 %v3348_v47  ;;  %9365 = vmatprep.mubr.msk.bf16.mxu1 %vm10223_vm1, %v10222_v16 }
0x1ba0   :  { %9360 = vmatmul.mubr.msk.bf16.vlgmr.msra.gmra.mrb[104].mxu0 %vm312_vm6, %v3248_v21  ;;  %9377 = vmatprep.subr.bf16.mxu1 %v10222_v16 }
0x1ba1   :  { %9370 = vmatpush3.bf16.msra.mxu0 %v9942_v19  ;;  %9373 = vmatprep.mubr.msk.bf16.mxu0 %vm10223_vm1, %v10222_v16 }
0x1ba2   :  { %9371 = vmatprep.subr.bf16.mxu0 %v10222_v16 }
0x1ba5   :  { %9372 = vmatpush3.bf16.msra.mxu0 %v9943_v23 }
0x1ba6   :  { %9385 = vmatprep.subr.bf16.mxu0 %v10222_v16 }
0x1ba8   :  { %9374 = vmatmul.mubr.msk.bf16.vlgmr.msra.gmra.mrb[108].mxu0 %vm60_vm0, %v10731_v13  ;;  %v9945_v13 = vld [vmem:[%s11940_s4 + $0x138] sm:$0xff]  }
0x1ba9   :  { %9389 = vmatprep.mubr.msk.bf16.mxu0 %vm10223_vm1, %v10222_v16  ;;  %9386 = vmatpush3.bf16.msra.mxu0 %v9946_v41 }
0x1baa   :  { %9387 = vmatprep.subr.bf16.mxu0 %v10222_v16 }
0x1bad   :  { %9388 = vmatpush3.bf16.msra.mxu0 %v9947_v42 }
0x1bae   :  { %9399 = vmatprep.subr.bf16.mxu0 %v10222_v16 }
0x1bb0   :  { %9390 = vmatmul.mubr.msk.bf16.vlgmr.msra.gmra.mrb[112].mxu0 %vm60_vm0, %v10713_v45 }
0x1bb1   :  { %9401 = vmatprep.mubr.msk.bf16.mxu0 %vm10223_vm1, %v10222_v16 }
0x1c71   :  { %v3289_v25 = vpop.f32.mrb[108].mxu1 }
0x1c72   :  { %v9355_v8 = vpop.f32.mrb[109].mxu1 }
0x1c73   :  { %v3292_v11 = vpop.f32.mrb[110].mxu1  ;;  %v3335_v30 = vpop.f32.mrb[104].mxu0 }
0x1c74   :  { %v3341_v32 = vpack.c.bf16 %v3335_v30, %v3289_v25  ;;  %v9356_v33 = vpop.f32.mrb[111].mxu1  ;;  %v9361_v34 = vpop.f32.mrb[105].mxu0 }
0x1c75   :  { %v3338_v35 = vpop.f32.mrb[106].mxu0 }
0x1c76   :  { %v9362_v36 = vpop.f32.mrb[107].mxu0  ;;  %9366 = vmatmul.mubr.msk.bf16.vlgmr.msra.gmra.mrb[112].mxu1 %vm312_vm6, %v3341_v32 }
0x1c77   :  { %9378 = vmatpush3.bf16.msra.mxu1 %v9944_v31  ;;  %9381 = vmatprep.mubr.msk.bf16.mxu1 %vm10223_vm1, %v10222_v16 }
0x1c78   :  { %9379 = vmatprep.subr.bf16.mxu1 %v10222_v16 }
0x1c7b   :  { %v3449_v37 = vpop.f32.mrb[108].mxu0  ;;  %9380 = vmatpush3.bf16.msra.mxu1 %v9945_v13 }
0x1c7c   :  { %v9375_v38 = vpop.f32.mrb[109].mxu0  ;;  %9393 = vmatprep.subr.bf16.mxu1 %v10222_v16 }
0x1c7d   :  { %v3452_v39 = vpop.f32.mrb[110].mxu0 }
0x1c7e   :  { %v9376_v40 = vpop.f32.mrb[111].mxu0  ;;  %9382 = vmatmul.mubr.msk.bf16.vlgmr.msra.gmra.mrb[116].mxu1 %vm60_vm0, %v10713_v45 }
0x1c7f   :  { %9395 = vmatprep.mubr.msk.bf16.mxu1 %vm10223_vm1, %v10222_v16 }
0x1c83   :  { %v3575_v4 = vpop.f32.mrb[112].mxu0 }
0x1c84   :  { %v3576_v5 = vadd.f32 %v8376_v3, %v3575_v4  ;;  %v9391_v6 = vpop.f32.mrb[113].mxu0 }
0x1c85   :  { %v3578_v7 = vpop.f32.mrb[114].mxu0 }
0x1c86   :  { %v3586_v9 = vpack.c.bf16 %v3576_v5, %v3576_v5  ;;  %v3579_v10 = vadd.f32 %v8376_v3, %v3578_v7  ;;  %v9392_v12 = vpop.f32.mrb[115].mxu0 }
0x1c88   :  { %v3712_v46 = vsel %vm436_vm7, %v3586_v9, 0  ;;  %v3587_v57 = vpack.c.bf16 %v3579_v10, %v3579_v10 }
0x1c8a   :  { %v3758_v60 = vsel %vm436_vm7, %v3587_v57, 0 }
0x1d49   :  { %v3384_v44 = vpop.f32.mrb[112].mxu1 }
0x1d4a   :  { %v11007_v48 = vadd.f32 %v3384_v44, %v10930_v18  ;;  %v9367_v50 = vpop.f32.mrb[113].mxu1  ;;  %v8360_v18 = vld [vmem:[%s11941_s5 + $0xf] ss:$0 sm:$0xff]  ;;  %v8384_v44 = vld [vmem:[%s11942_s6 + $0x1c] sm:$0xf] }
0x1d4b   :  { %v3387_v51 = vpop.f32.mrb[114].mxu1  ;;  %v3450_v62 = vadd.f32 %v8360_v18, %v3449_v37  ;;  %v3453_v0 = vadd.f32 %v8360_v18, %v3452_v39 }
0x1d4c   :  { %v11010_v52 = vadd.f32 %v3387_v51, %v10932_v20  ;;  %v9368_v53 = vpop.f32.mrb[115].mxu1 }
0x1d4d   :  { %v3582_v1 = vpack.c.bf16 %v3450_v62, %v3450_v62  ;;  %v3583_v2 = vpack.c.bf16 %v3453_v0, %v3453_v0  ;;  %v8386_v0 = vld [vmem:[%s11943_s7 + $0x1] ss:$0 sm:$0xff] }
0x1d51   :  { %v3512_v28 = vpop.f32.mrb[116].mxu1 }
0x1d52   :  { %v3513_v29 = vadd.f32 %v8368_v26, %v3512_v28  ;;  %v9383_v55 = vpop.f32.mrb[117].mxu1  ;;  %v3807_v28 = vsel %vm436_vm7, %v8384_v44, 0 }
0x1d53   :  { %v3515_v56 = vpop.f32.mrb[118].mxu1 }
0x1d54   :  { %v3584_v17 = vpack.c.bf16 %v3513_v29, %v3513_v29  ;;  %v3516_v58 = vadd.f32 %v8368_v26, %v3515_v56  ;;  %v9384_v59 = vpop.f32.mrb[119].mxu1 }
0x1d56   :  { %v3592_v22 = vsel %vm312_vm6, %v3584_v17, 0  ;;  %v3585_v20 = vpack.c.bf16 %v3516_v58, %v3516_v58 }
0x1d57   :  { %9394 = vmatpush3.bf16.xpose.msra.mxu1 %v3592_v22 }
0x1d58   :  { %v3638_v63 = vsel %vm312_vm6, %v3585_v20, 0  ;;  %9405 = vmatprep.subr.bf16.mxu1 %v10222_v16 }
0x1d59   :  { %9400 = vmatpush3.bf16.xpose.msra.mxu0 %v3638_v63 }
0x1d5a   :  { %9411 = vmatprep.subr.bf16.mxu0 %v10222_v16 }
0x1d5e   :  { %9396 = vmatmul.mubr.msk.bf16.vlgmr.msra.gmra.mrb[120].mxu1 %vm312_vm6, %v3582_v1 }
0x1d5f   :  { %9407 = vmatprep.mubr.msk.bf16.mxu1 %vm10223_vm1, %v10222_v16  ;;  %9406 = vmatpush3.bf16.msra.mxu1 %v3712_v46 }
0x1d60   :  { %9402 = vmatmul.mubr.msk.bf16.vlgmr.msra.gmra.mrb[116].mxu0 %vm312_vm6, %v3583_v2  ;;  %9417 = vmatprep.subr.bf16.mxu1 %v10222_v16 }
0x1d61   :  { %9413 = vmatprep.mubr.msk.bf16.mxu0 %vm10223_vm1, %v10222_v16  ;;  %9412 = vmatpush3.bf16.msra.mxu0 %v3758_v60 }
0x1d62   :  { %9423 = vmatprep.subr.bf16.mxu0 %v10222_v16 }
0x1e31   :  { %v3628_v61 = vpop.f32.mrb[120].mxu1 }
0x1e32   :  { %v3680_v14 = vmul.f32 0.35355338, %v3628_v61  ;;  %v9397_v43 = vpop.f32.mrb[121].mxu1 }
0x1e33   :  { %v3631_v15 = vpop.f32.mrb[122].mxu1  ;;  %v3674_v47 = vpop.f32.mrb[116].mxu0 }
0x1e34   :  { %v3681_v19 = vmul.f32 0.35355338, %v3674_v47  ;;  %v9398_v21 = vpop.f32.mrb[123].mxu1  ;;  %v9403_v23 = vpop.f32.mrb[117].mxu0  ;;  %v3682_v25 = vadd.f32 %v3680_v14, %v10772_v49  ;;  %v9948_v47 = vld [vmem:[%s11944_s8] sm:$0xff]  }
0x1e35   :  { %v3677_v8 = vpop.f32.mrb[118].mxu0  ;;  %v9950_v21 = vld [vmem:[%s11946_s10] sm:$0xff]   ;;  %v9951_v23 = vld [vmem:[%s11946_s10 + $0x8] sm:$0xff]  }
0x1e36   :  { %v9404_v11 = vpop.f32.mrb[119].mxu0  ;;  %v3684_v30 = vsel %vm312_vm6, %v3682_v25, -inf  ;;  %v3683_v31 = vadd.f32 %v3681_v19, %v10777_v54  ;;  %v9949_v19 = vld [vmem:[%s11944_s8 + $0x8] sm:$0xff]  }
0x1e37   :  { %3685 = vmax.xlane.f32.xlu0 %v3684_v30 }
0x1e38   :  { %v3687_v32 = vsel %vm312_vm6, %v3683_v31, -inf }
0x1e39   :  { %3688 = vmax.xlane.f32.xlu1 %v3687_v32 }
0x1ec4   :  { %v3686_v33 = vpop.xlane.xlu0 %3685 }
0x1ec5   :  { %v3690_v34 = vsub.f32 %v3682_v25, %v3686_v33 }
0x1ec6   :  { %v3689_v35 = vpop.xlane.xlu1 %3688 }
0x1ec7   :  { %v3692_v36 = vmul.f32 1.442695, %v3690_v34  ;;  %v3691_v13 = vsub.f32 %v3683_v31, %v3689_v35 }
0x1ec9   :  { %10080 = vpow2.f32 %v3692_v36  ;;  %v3694_v37 = vmul.f32 1.442695, %v3691_v13 }
0x1ecb   :  { %10082 = vpow2.f32 %v3694_v37 }
0x1ed3   :  { %v10081_v38 = vpop.eup %10080 }
0x1ed4   :  { %v3696_v49 = vsel %vm312_vm6, %v10081_v38, 0.0 }
0x1ed5   :  { %v10083_v39 = vpop.eup %10082  ;;  %3697 = vadd.xlane.f32.xlu0 %v3696_v49 }
0x1ed6   :  { %v3699_v40 = vsel %vm312_vm6, %v10083_v39, 0.0 }
0x1ed7   :  { %3700 = vadd.xlane.f32.xlu1 %v3699_v40 }
0x1f62   :  { %v3698_v54 = vpop.xlane.xlu0 %3697 }
0x1f63   :  { %10084 = vrcp.f32 %v3698_v54 }
0x1f64   :  { %v3701_v41 = vpop.xlane.xlu1 %3700 }
0x1f65   :  { %10086 = vrcp.f32 %v3701_v41  ;;  %v8387_v41 = vld [vmem:[%s11948_s12 + $0x2] ss:$0 sm:$0xff] }
0x1f6d   :  { %v10085_v42 = vpop.eup %10084 }
0x1f6e   :  { %v3704_v50 = vmul.f32 %v10085_v42, %v10081_v38 }
0x1f6f   :  { %v10087_v51 = vpop.eup %10086 }
0x1f70   :  { %v3705_v53 = vmul.f32 %v10087_v51, %v10083_v39  ;;  %v3706_v26 = vpack.c.bf16 %v3704_v50, %v3704_v50 }
0x1f72   :  { %9408 = vmatmul.mubr.msk.bf16.vlgmr.msra.gmra.mrb[124].mxu1 %vm312_vm6, %v3706_v26  ;;  %v3707_v29 = vpack.c.bf16 %v3705_v53, %v3705_v53  ;;  %v8388_v53 = vld [vmem:[%s11949_s13 + $0x2] ss:$0 sm:$0xff] }
0x1f73   :  { %9418 = vmatpush3.bf16.msra.mxu1 %v3807_v28  ;;  %9419 = vmatprep.mubr.msk.bf16.mxu1 %vm10223_vm1, %v10222_v16 }
0x1f74   :  { %9414 = vmatmul.mubr.msk.bf16.vlgmr.msra.gmra.mrb[120].mxu0 %vm312_vm6, %v3707_v29  ;;  %9431 = vmatprep.subr.bf16.mxu1 %v10222_v16 }
0x1f75   :  { %9427 = vmatprep.mubr.msk.bf16.mxu0 %vm10223_vm1, %v10222_v16  ;;  %9424 = vmatpush3.bf16.msra.mxu0 %v9948_v47 }
0x1f76   :  { %9425 = vmatprep.subr.bf16.mxu0 %v10222_v16 }
0x1f79   :  { %9426 = vmatpush3.bf16.msra.mxu0 %v9949_v19 }
0x1f7a   :  { %9443 = vmatprep.subr.bf16.mxu0 %v10222_v16 }
0x2045   :  { %v3748_v55 = vpop.f32.mrb[124].mxu1 }
0x2046   :  { %v9409_v56 = vpop.f32.mrb[125].mxu1 }
0x2047   :  { %v3751_v17 = vpop.f32.mrb[126].mxu1  ;;  %v3794_v58 = vpop.f32.mrb[120].mxu0  ;;  %v9952_v56 = vld [vmem:[%s11946_s10 + $0x10] sm:$0xff]  }
0x2048   :  { %v3800_v59 = vpack.c.bf16 %v3794_v58, %v3748_v55  ;;  %v9410_v18 = vpop.f32.mrb[127].mxu1  ;;  %v9415_v22 = vpop.f32.mrb[121].mxu0  ;;  %v9953_v17 = vld [vmem:[%s11946_s10 + $0x18] sm:$0xff]   ;;  %v8389_v58 = vld [vmem:[%s11945_s9] ss:$0 sm:$0xff] }
0x2049   :  { %v3797_v20 = vpop.f32.mrb[122].mxu0 }
0x204a   :  { %v9416_v62 = vpop.f32.mrb[123].mxu0  ;;  %9420 = vmatmul.mubr.msk.bf16.vlgmr.msra.gmra.mrb[128].mxu1 %vm312_vm6, %v3800_v59 }
0x204b   :  { %9439 = vmatprep.mubr.msk.bf16.mxu1 %vm10223_vm1, %v10222_v16  ;;  %9432 = vmatpush3.bf16.msra.mxu1 %v9950_v21  ;;  %v9954_v21 = vld [vmem:[%s11940_s4 + $0x180] sm:$0xff]  }
0x204c   :  { %9433 = vmatprep.subr.bf16.mxu1 %v10222_v16 }
0x204f   :  { %9434 = vmatpush3.bf16.msra.mxu1 %v9951_v23  ;;  %v9955_v23 = vld [vmem:[%s11940_s4 + $0x200] sm:$0xff]  }
0x2050   :  { %9435 = vmatprep.subr.bf16.mxu1 %v10222_v16 }
0x2053   :  { %9436 = vmatpush3.bf16.msra.mxu1 %v9952_v56 }
0x2054   :  { %9437 = vmatprep.subr.bf16.mxu1 %v10222_v16 }
0x2057   :  { %9438 = vmatpush3.bf16.msra.mxu1 %v9953_v17  ;;  %v9958_v17 = vld [vmem:[%s11940_s4 + $0x1c0] sm:$0xff]  }
0x2058   :  { %9459 = vmatprep.subr.bf16.mxu1 %v10222_v16 }
0x211d   :  { %v3843_v63 = vpop.f32.mrb[128].mxu1 }
0x211e   :  { %v3850_v1 = vadd.f32 %v3843_v63, %v11007_v48  ;;  %v9421_v2 = vpop.f32.mrb[129].mxu1 }
0x211f   :  { %v3846_v3 = vpop.f32.mrb[130].mxu1 }
0x2120   :  { %v3857_v4 = vadd.f32 %v8386_v0, %v3850_v1  ;;  %v3851_v5 = vadd.f32 %v3846_v3, %v11010_v52  ;;  %v9422_v6 = vpop.f32.mrb[131].mxu1  ;;  %v8393_v3 = vld [vmem:[%s11947_s11] ss:$0 sm:$0xff] }
0x2122   :  { %v11061_v7 = vadd.f32 %v3857_v4, %v10679_v24  ;;  %v3858_v9 = vadd.f32 %v8386_v0, %v3851_v5 }
0x2124   :  { %v11064_v10 = vadd.f32 %v3858_v9, %v10684_v27  ;;  %v3863_v12 = vsel %vm60_vm0, %v11061_v7, 0.0 }
0x2125   :  { %3864 = vadd.xlane.f32.xlu0 %v3863_v12 }
0x2126   :  { %v3866_v48 = vsel %vm60_vm0, %v11064_v10, 0.0 }
0x2127   :  { %3867 = vadd.xlane.f32.xlu1 %v3866_v48 }
0x21b2   :  { %v3865_v46 = vpop.xlane.xlu0 %3864 }
0x21b3   :  { %v3869_v57 = vmul.f32 0.03125, %v3865_v46 }
0x21b4   :  { %v3868_v60 = vpop.xlane.xlu1 %3867 }
0x21b5   :  { %v3871_v52 = vsub.f32 %v11061_v7, %v3869_v57  ;;  %v3870_v61 = vmul.f32 0.03125, %v3868_v60 }
0x21b7   :  { %v3872_v24 = vsub.f32 %v11064_v10, %v3870_v61  ;;  %v3873_v14 = vmul.f32 %v3871_v52, %v3871_v52 }
0x21b9   :  { %v3875_v27 = vsel %vm60_vm0, %v3873_v14, 0.0  ;;  %v3874_v43 = vmul.f32 %v3872_v24, %v3872_v24 }
0x21ba   :  { %3876 = vadd.xlane.f32.xlu0 %v3875_v27 }
0x21bb   :  { %v3878_v15 = vsel %vm60_vm0, %v3874_v43, 0.0 }
0x21bc   :  { %3879 = vadd.xlane.f32.xlu1 %v3878_v15 }
0x2247   :  { %v3877_v25 = vpop.xlane.xlu0 %3876 }
0x2248   :  { %v3881_v8 = vmul.f32 0.032258064, %v3877_v25  ;;  %v9956_v25 = vld [vmem:[%s11940_s4 + $0x188] sm:$0xff]  }
0x2249   :  { %v3880_v11 = vpop.xlane.xlu1 %3879 }
0x224a   :  { %10088 = vrsqrt.f32 %v3881_v8  ;;  %v3882_v30 = vmul.f32 0.032258064, %v3880_v11  ;;  %vm3885_vm12 = vcmp.eq.f32.partialorder %v3881_v8, inf  ;;  %v3888_v33 = vand.u32 2147483648, %v3881_v8 }
0x224b   :  { %vm3887_vm13 = vcmp.eq.f32.partialorder %v3881_v8, 0.0 }
0x224c   :  { %10090 = vrsqrt.f32 %v3882_v30  ;;  %vm3892_vm14 = vcmp.eq.f32.partialorder %v3882_v30, inf  ;;  %v3895_v38 = vand.u32 2147483648, %v3882_v30  ;;  %vm3894_vm15 = vcmp.eq.f32.partialorder %v3882_v30, 0.0 }
0x2254   :  { %v10089_v31 = vpop.eup %10088 }
0x2255   :  { %v3884_v32 = vmul.f32 %v10089_v31, %v3881_v8 }
0x2256   :  { %v10091_v34 = vpop.eup %10090 }
0x2257   :  { %v3886_v35 = vsel %vm3885_vm12, %v3881_v8, %v3884_v32  ;;  %v3891_v13 = vmul.f32 %v10091_v34, %v3882_v30  ;;  %v9957_v8 = vld [vmem:[%s11940_s4 + $0x208] sm:$0xff]  }
0x2258   :  { %v3889_v36 = vsel %vm3887_vm13, %v3888_v33, %v3886_v35 }
0x2259   :  { %v3897_v37 = vadd.f32 1e-06, %v3889_v36  ;;  %v3893_v49 = vsel %vm3892_vm14, %v3882_v30, %v3891_v13 }
0x225a   :  { %v3896_v39 = vsel %vm3894_vm15, %v3895_v38, %v3893_v49 }
0x225b   :  { %10092 = vrcp.f32 %v3897_v37  ;;  %v3898_v40 = vadd.f32 1e-06, %v3896_v39 }
0x225d   :  { %10094 = vrcp.f32 %v3898_v40 }
0x2265   :  { %v10093_v54 = vpop.eup %10092 }
0x2266   :  { %v3901_v42 = vmul.f32 %v10093_v54, %v3871_v52 }
0x2267   :  { %v10095_v44 = vpop.eup %10094 }
0x2268   :  { %v3902_v50 = vmul.f32 %v10095_v44, %v3872_v24  ;;  %v3907_v51 = vmul.f32 %v8387_v41, %v3901_v42  ;;  %v8399_v44 = vld [vmem:[%s11948_s12 + $0x3] ss:$0 sm:$0xff] }
0x226a   :  { %v3908_v26 = vmul.f32 %v8387_v41, %v3902_v50  ;;  %v3913_v28 = vadd.f32 %v8388_v53, %v3907_v51 }
0x226c   :  { %v3914_v29 = vadd.f32 %v8388_v53, %v3908_v26 }
0x226e   :  { %v3915_v55 = vpack.c.bf16 %v3914_v29, %v3913_v28  ;;  %v8400_v28 = vld [vmem:[%s11949_s13 + $0x3] ss:$0 sm:$0xff] }
0x2270   :  { %9428 = vmatmul.mubr.msk.bf16.vlgmr.msra.gmra.mrb[124].mxu0 %vm60_vm0, %v3915_v55 }
0x2271   :  { %9447 = vmatprep.mubr.msk.bf16.mxu0 %vm10223_vm1, %v10222_v16  ;;  %9444 = vmatpush3.bf16.msra.mxu0 %v9954_v21 }
0x2272   :  { %9445 = vmatprep.subr.bf16.mxu0 %v10222_v16 }
0x2275   :  { %9446 = vmatpush3.bf16.msra.mxu0 %v9956_v25 }
0x2276   :  { %9451 = vmatprep.subr.bf16.mxu0 %v10222_v16 }
0x2343   :  { %v3974_v59 = vpop.f32.mrb[124].mxu0 }
0x2344   :  { %v3975_v18 = vadd.f32 %v8389_v58, %v3974_v59  ;;  %v9429_v22 = vpop.f32.mrb[125].mxu0  ;;  %v9959_v59 = vld [vmem:[%s11940_s4 + $0x1c8] sm:$0xff]  }
0x2345   :  { %v3977_v20 = vpop.f32.mrb[126].mxu0 }
0x2346   :  { %v3978_v62 = vadd.f32 %v8389_v58, %v3977_v20  ;;  %v9430_v63 = vpop.f32.mrb[127].mxu0  ;;  %v3981_v0 = vmax.f32 %v3975_v18, 0.0 }
0x2348   :  { %v3982_v1 = vmax.f32 %v3978_v62, 0.0 }
0x234a   :  { %v3983_v2 = vpack.c.bf16 %v3982_v1, %v3981_v0 }
0x234c   :  { %9440 = vmatmul.mubr.msk.bf16.vlgmr.msra.gmra.mrb[132].mxu1 %vm4021_vm2, %v3983_v2 }
0x234d   :  { %9463 = vmatprep.mubr.msk.bf16.mxu1 %vm10223_vm1, %v10222_v16  ;;  %9460 = vmatpush3.bf16.msra.mxu1 %v9955_v23 }
0x234e   :  { %9461 = vmatprep.subr.bf16.mxu1 %v10222_v16 }
0x2351   :  { %9462 = vmatpush3.bf16.msra.mxu1 %v9957_v8 }
0x2352   :  { %9473 = vmatprep.subr.bf16.mxu1 %v10222_v16 }
0x241f   :  { %v4059_v4 = vpop.f32.mrb[132].mxu1 }
0x2420   :  { %v4060_v5 = vadd.f32 %v8393_v3, %v4059_v4  ;;  %v9441_v6 = vpop.f32.mrb[133].mxu1 }
0x2421   :  { %v4062_v9 = vpop.f32.mrb[134].mxu1 }
0x2422   :  { %v11117_v12 = vadd.f32 %v4060_v5, %v11061_v7  ;;  %v4063_v48 = vadd.f32 %v8393_v3, %v4062_v9  ;;  %v9442_v46 = vpop.f32.mrb[135].mxu1  ;;  %v8413_v3 = vld [vmem:[%s11941_s5 + $0x1c] ss:$0 sm:$0xff]  ;;  %v8421_v9 = vld [vmem:[%s11941_s5 + $0x20] ss:$0 sm:$0xff] }
0x2424   :  { %v11120_v57 = vadd.f32 %v4063_v48, %v11064_v10  ;;  %v4070_v60 = vsel %vm60_vm0, %v11117_v12, 0.0 }
0x2425   :  { %4071 = vadd.xlane.f32.xlu0 %v4070_v60 }
0x2426   :  { %v4073_v52 = vsel %vm60_vm0, %v11120_v57, 0.0 }
0x2427   :  { %4074 = vadd.xlane.f32.xlu1 %v4073_v52 }
0x24b2   :  { %v4072_v61 = vpop.xlane.xlu0 %4071 }
0x24b3   :  { %v4076_v24 = vmul.f32 0.03125, %v4072_v61  ;;  %v8405_v61 = vld [vmem:[%s11941_s5 + $0x18] ss:$0 sm:$0xff] }
0x24b4   :  { %v4075_v14 = vpop.xlane.xlu1 %4074 }
0x24b5   :  { %v4078_v27 = vsub.f32 %v11117_v12, %v4076_v24  ;;  %v4077_v7 = vmul.f32 0.03125, %v4075_v14 }
0x24b7   :  { %v4079_v43 = vsub.f32 %v11120_v57, %v4077_v7  ;;  %v4080_v15 = vmul.f32 %v4078_v27, %v4078_v27 }
0x24b9   :  { %v4082_v10 = vsel %vm60_vm0, %v4080_v15, 0.0  ;;  %v4081_v47 = vmul.f32 %v4079_v43, %v4079_v43 }
0x24ba   :  { %4083 = vadd.xlane.f32.xlu0 %v4082_v10 }
0x24bb   :  { %v4085_v19 = vsel %vm60_vm0, %v4081_v47, 0.0 }
0x24bc   :  { %4086 = vadd.xlane.f32.xlu1 %v4085_v19 }
0x2547   :  { %v4084_v11 = vpop.xlane.xlu0 %4083 }
0x2548   :  { %v4088_v30 = vmul.f32 0.032258064, %v4084_v11 }
0x2549   :  { %v4087_v31 = vpop.xlane.xlu1 %4086 }
0x254a   :  { %10096 = vrsqrt.f32 %v4088_v30  ;;  %v4089_v32 = vmul.f32 0.032258064, %v4087_v31  ;;  %vm4092_vm3 = vcmp.eq.f32.partialorder %v4088_v30, inf  ;;  %v4095_v35 = vand.u32 2147483648, %v4088_v30 }
0x254b   :  { %vm4094_vm4 = vcmp.eq.f32.partialorder %v4088_v30, 0.0 }
0x254c   :  { %10098 = vrsqrt.f32 %v4089_v32  ;;  %vm4099_vm5 = vcmp.eq.f32.partialorder %v4089_v32, inf  ;;  %v4102_v39 = vand.u32 2147483648, %v4089_v32  ;;  %vm4101_vm8 = vcmp.eq.f32.partialorder %v4089_v32, 0.0 }
0x2554   :  { %v10097_v33 = vpop.eup %10096 }
0x2555   :  { %v4091_v34 = vmul.f32 %v10097_v33, %v4088_v30 }
0x2556   :  { %v10099_v36 = vpop.eup %10098 }
0x2557   :  { %v4093_v13 = vsel %vm4092_vm3, %v4088_v30, %v4091_v34  ;;  %v4098_v38 = vmul.f32 %v10099_v36, %v4089_v32 }
0x2558   :  { %v4096_v37 = vsel %vm4094_vm4, %v4095_v35, %v4093_v13  ;;  %v11200_v13 = vld [vmem:[%s11938_s2] sm:$0xff] }
0x2559   :  { %v4104_v49 = vadd.f32 1e-06, %v4096_v37  ;;  %v4100_v40 = vsel %vm4099_vm5, %v4089_v32, %v4098_v38 }
0x255a   :  { %v4103_v54 = vsel %vm4101_vm8, %v4102_v39, %v4100_v40  ;;  %v11207_v40 = vld [vmem:[%s11938_s2 + $0x8] sm:$0xff] }
0x255b   :  { %10100 = vrcp.f32 %v4104_v49  ;;  %v4105_v41 = vadd.f32 1e-06, %v4103_v54 }
0x255d   :  { %10102 = vrcp.f32 %v4105_v41 }
0x2565   :  { %v10101_v42 = vpop.eup %10100 }
0x2566   :  { %v4108_v50 = vmul.f32 %v10101_v42, %v4078_v27 }
0x2567   :  { %v10103_v51 = vpop.eup %10102 }
0x2568   :  { %v4114_v53 = vmul.f32 %v8399_v44, %v4108_v50  ;;  %v4109_v26 = vmul.f32 %v10103_v51, %v4079_v43 }
0x256a   :  { %v4115_v29 = vmul.f32 %v8399_v44, %v4109_v26  ;;  %v4120_v55 = vadd.f32 %v8400_v28, %v4114_v53 }
0x256c   :  { %v4121_v56 = vadd.f32 %v8400_v28, %v4115_v29 }
0x256e   :  { %v11155_v58 = vpack.c.bf16 %v4121_v56, %v4120_v55 }
0x2570   :  { %9448 = vmatmul.mubr.msk.bf16.vlgmr.msra.gmra.mrb[128].mxu0 %vm60_vm0, %v11155_v58  ;;  %9464 = vmatmul.mubr.msk.bf16.vlgmr.msra.gmra.mrb[136].mxu1 %vm60_vm0, %v11155_v58 }
0x2571   :  { %9452 = vmatpush3.bf16.msra.mxu0 %v9958_v17  ;;  %9455 = vmatprep.mubr.msk.bf16.mxu0 %vm10223_vm1, %v10222_v16 }
0x2572   :  { %9453 = vmatprep.subr.bf16.mxu0 %v10222_v16  ;;  %9475 = vmatprep.mubr.msk.bf16.mxu1 %vm10223_vm1, %v10222_v16 }
0x2575   :  { %9454 = vmatpush3.bf16.msra.mxu0 %v9959_v59 }
0x2576   :  { %9467 = vmatprep.subr.bf16.mxu0 %v10222_v16 }
0x2578   :  { %9456 = vmatmul.mubr.msk.bf16.vlgmr.msra.gmra.mrb[132].mxu0 %vm60_vm0, %v11155_v58 }
0x2579   :  { %9469 = vmatprep.mubr.msk.bf16.mxu0 %vm10223_vm1, %v10222_v16 }
0x2643   :  { %v4182_v18 = vpop.f32.mrb[128].mxu0  ;;  %v4308_v22 = vpop.f32.mrb[136].mxu1 }
0x2644   :  { %v9449_v20 = vpop.f32.mrb[129].mxu0  ;;  %v9465_v62 = vpop.f32.mrb[137].mxu1  ;;  %v4309_v24 = vadd.f32 %v8421_v9, %v4308_v22  ;;  %v4183_v7 = vadd.f32 %v8405_v61, %v4182_v18 }
0x2645   :  { %v4185_v63 = vpop.f32.mrb[130].mxu0  ;;  %v4311_v0 = vpop.f32.mrb[138].mxu1  ;;  %v9960_v62 = vld [vmem:[%s11940_s4 + $0x190] sm:$0xff]  }
0x2646   :  { %v9450_v1 = vpop.f32.mrb[131].mxu0  ;;  %v9466_v2 = vpop.f32.mrb[139].mxu1  ;;  %v4312_v43 = vadd.f32 %v8421_v9, %v4311_v0  ;;  %v4319_v10 = vpack.c.bf16 %v4309_v24, %v4309_v24  ;;  %v4186_v47 = vadd.f32 %v8405_v61, %v4185_v63  ;;  %v4315_v19 = vpack.c.bf16 %v4183_v7, %v4183_v7 }
0x2647   :  { %v9961_v1 = vld [vmem:[%s11940_s4 + $0x1d0] sm:$0xff]  }
0x2648   :  { %v4320_v21 = vpack.c.bf16 %v4312_v43, %v4312_v43  ;;  %v4445_v23 = vsel %vm436_vm7, %v4319_v10, 0  ;;  %v4316_v25 = vpack.c.bf16 %v4186_v47, %v4186_v47  ;;  %v8442_v43 = vld [vmem:[%s11941_s5 + $0x1d] ss:$0 sm:$0xff] }
0x264a   :  { %v4491_v8 = vsel %vm436_vm7, %v4320_v21, 0 }
0x264b   :  { %v4245_v4 = vpop.f32.mrb[132].mxu0 }
0x264c   :  { %v4246_v5 = vadd.f32 %v8413_v3, %v4245_v4  ;;  %v9457_v6 = vpop.f32.mrb[133].mxu0  ;;  %v9963_v4 = vld [vmem:[%s11940_s4 + $0x1d8] sm:$0xff]  }
0x264d   :  { %v4248_v48 = vpop.f32.mrb[134].mxu0  ;;  %v9965_v6 = vld [vmem:[%s11940_s4 + $0x218] sm:$0xff]  }
0x264e   :  { %v4317_v46 = vpack.c.bf16 %v4246_v5, %v4246_v5  ;;  %v4249_v60 = vadd.f32 %v8413_v3, %v4248_v48  ;;  %v9458_v52 = vpop.f32.mrb[135].mxu0  ;;  %v9962_v3 = vld [vmem:[%s11940_s4 + $0x198] sm:$0xff]   ;;  %v9964_v5 = vld [vmem:[%s11940_s4 + $0x210] sm:$0xff]  }
0x2650   :  { %v4325_v14 = vsel %vm312_vm6, %v4317_v46, 0  ;;  %v4318_v27 = vpack.c.bf16 %v4249_v60, %v4249_v60 }
0x2651   :  { %9468 = vmatpush3.bf16.xpose.msra.mxu0 %v4325_v14 }
0x2652   :  { %v4371_v15 = vsel %vm312_vm6, %v4318_v27, 0  ;;  %9479 = vmatprep.subr.bf16.mxu0 %v10222_v16 }
0x2653   :  { %9474 = vmatpush3.bf16.xpose.msra.mxu1 %v4371_v15 }
0x2654   :  { %9485 = vmatprep.subr.bf16.mxu1 %v10222_v16 }
0x2658   :  { %9470 = vmatmul.mubr.msk.bf16.vlgmr.msra.gmra.mrb[136].mxu0 %vm312_vm6, %v4315_v19 }
0x2659   :  { %9480 = vmatpush3.bf16.msra.mxu0 %v4445_v23  ;;  %9481 = vmatprep.mubr.msk.bf16.mxu0 %vm10223_vm1, %v10222_v16 }
0x265a   :  { %9476 = vmatmul.mubr.msk.bf16.vlgmr.msra.gmra.mrb[140].mxu1 %vm312_vm6, %v4316_v25  ;;  %9491 = vmatprep.subr.bf16.mxu0 %v10222_v16 }
0x265b   :  { %9486 = vmatpush3.bf16.msra.mxu1 %v4491_v8  ;;  %9487 = vmatprep.mubr.msk.bf16.mxu1 %vm10223_vm1, %v10222_v16 }
0x265c   :  { %9499 = vmatprep.subr.bf16.mxu1 %v10222_v16 }
0x272b   :  { %v4361_v11 = vpop.f32.mrb[136].mxu0 }
0x272c   :  { %v4413_v30 = vmul.f32 0.35355338, %v4361_v11  ;;  %v9471_v31 = vpop.f32.mrb[137].mxu0 }
0x272d   :  { %v4364_v32 = vpop.f32.mrb[138].mxu0  ;;  %v4407_v33 = vpop.f32.mrb[140].mxu1  ;;  %v8434_v31 = vld [vmem:[%s11941_s5 + $0x19] ss:$0 sm:$0xff] }
0x272e   :  { %v4414_v34 = vmul.f32 0.35355338, %v4407_v33  ;;  %v9472_v35 = vpop.f32.mrb[139].mxu0  ;;  %v9477_v36 = vpop.f32.mrb[141].mxu1  ;;  %v4415_v37 = vadd.f32 %v11200_v13, %v4413_v30  ;;  %v8450_v32 = vld [vmem:[%s11941_s5 + $0x21] ss:$0 sm:$0xff] }
0x272f   :  { %v4410_v38 = vpop.f32.mrb[142].mxu1 }
0x2730   :  { %v9478_v49 = vpop.f32.mrb[143].mxu1  ;;  %v4417_v39 = vsel %vm312_vm6, %v4415_v37, -inf  ;;  %v4416_v54 = vadd.f32 %v11207_v40, %v4414_v34 }
0x2731   :  { %4418 = vmax.xlane.f32.xlu1 %v4417_v39 }
0x2732   :  { %v4420_v41 = vsel %vm312_vm6, %v4416_v54, -inf }
0x2733   :  { %4421 = vmax.xlane.f32.xlu0 %v4420_v41 }
0x27be   :  { %v4419_v42 = vpop.xlane.xlu1 %4418 }
0x27bf   :  { %v4423_v44 = vsub.f32 %v4415_v37, %v4419_v42 }
0x27c0   :  { %v4422_v50 = vpop.xlane.xlu0 %4421 }
0x27c1   :  { %v4425_v51 = vmul.f32 1.442695, %v4423_v44  ;;  %v4424_v53 = vsub.f32 %v4416_v54, %v4422_v50 }
0x27c3   :  { %10104 = vpow2.f32 %v4425_v51  ;;  %v4427_v26 = vmul.f32 1.442695, %v4424_v53 }
0x27c5   :  { %10106 = vpow2.f32 %v4427_v26 }
0x27cd   :  { %v10105_v28 = vpop.eup %10104 }
0x27ce   :  { %v4429_v29 = vsel %vm312_vm6, %v10105_v28, 0.0 }
0x27cf   :  { %v10107_v55 = vpop.eup %10106  ;;  %4430 = vadd.xlane.f32.xlu1 %v4429_v29 }
0x27d0   :  { %v4432_v56 = vsel %vm312_vm6, %v10107_v55, 0.0 }
0x27d1   :  { %4433 = vadd.xlane.f32.xlu0 %v4432_v56 }
0x285c   :  { %v4431_v17 = vpop.xlane.xlu1 %4430 }
0x285d   :  { %10108 = vrcp.f32 %v4431_v17 }
0x285e   :  { %v4434_v59 = vpop.xlane.xlu0 %4433 }
0x285f   :  { %10110 = vrcp.f32 %v4434_v59 }
0x2867   :  { %v10109_v18 = vpop.eup %10108 }
0x2868   :  { %v4437_v22 = vmul.f32 %v10109_v18, %v10105_v28 }
0x2869   :  { %v10111_v20 = vpop.eup %10110 }
0x286a   :  { %v4438_v63 = vmul.f32 %v10111_v20, %v10107_v55  ;;  %v4439_v0 = vpack.c.bf16 %v4437_v22, %v4437_v22 }
0x286c   :  { %9482 = vmatmul.mubr.msk.bf16.vlgmr.msra.gmra.mrb[140].mxu0 %vm312_vm6, %v4439_v0  ;;  %v4440_v2 = vpack.c.bf16 %v4438_v63, %v4438_v63 }
0x286d   :  { %9492 = vmatpush3.bf16.msra.mxu0 %v9960_v62  ;;  %9495 = vmatprep.mubr.msk.bf16.mxu0 %vm10223_vm1, %v10222_v16 }
0x286e   :  { %9488 = vmatmul.mubr.msk.bf16.vlgmr.msra.gmra.mrb[144].mxu1 %vm312_vm6, %v4440_v2  ;;  %9493 = vmatprep.subr.bf16.mxu0 %v10222_v16 }
0x286f   :  { %9500 = vmatpush3.bf16.msra.mxu1 %v9961_v1  ;;  %9503 = vmatprep.mubr.msk.bf16.mxu1 %vm10223_vm1, %v10222_v16 }
0x2870   :  { %9501 = vmatprep.subr.bf16.mxu1 %v10222_v16 }
0x2871   :  { %9494 = vmatpush3.bf16.msra.mxu0 %v9962_v3 }
0x2872   :  { %9507 = vmatprep.subr.bf16.mxu0 %v10222_v16 }
0x2873   :  { %9502 = vmatpush3.bf16.msra.mxu1 %v9963_v4 }
0x2874   :  { %9496 = vmatmul.mubr.msk.bf16.vlgmr.msra.gmra.mrb[144].mxu0 %vm60_vm0, %v11155_v58  ;;  %9515 = vmatprep.subr.bf16.mxu1 %v10222_v16 }
0x2875   :  { %9508 = vmatpush3.bf16.msra.mxu0 %v9964_v5  ;;  %9511 = vmatprep.mubr.msk.bf16.mxu0 %vm10223_vm1, %v10222_v16 }
0x2876   :  { %9504 = vmatmul.mubr.msk.bf16.vlgmr.msra.gmra.mrb[148].mxu1 %vm60_vm0, %v11155_v58  ;;  %9509 = vmatprep.subr.bf16.mxu0 %v10222_v16 }
0x2877   :  { %9517 = vmatprep.mubr.msk.bf16.mxu1 %vm10223_vm1, %v10222_v16 }
0x2879   :  { %9510 = vmatpush3.bf16.msra.mxu0 %v9965_v6 }
0x287a   :  { %9521 = vmatprep.subr.bf16.mxu0 %v10222_v16 }
0x287c   :  { %9512 = vmatmul.mubr.msk.bf16.vlgmr.msra.gmra.mrb[148].mxu0 %vm60_vm0, %v11155_v58 }
0x287d   :  { %9523 = vmatprep.mubr.msk.bf16.mxu0 %vm10223_vm1, %v10222_v16 }
0x293f   :  { %v11255_v9 = vpop.f32.mrb[140].mxu0 }
0x2940   :  { %v9483_v48 = vpop.f32.mrb[141].mxu0 }
0x2941   :  { %v4484_v46 = vpop.f32.mrb[142].mxu0  ;;  %v11257_v60 = vpop.f32.mrb[144].mxu1 }
0x2942   :  { %v4533_v52 = vpack.c.bf16 %v11257_v60, %v11255_v9  ;;  %v9484_v61 = vpop.f32.mrb[143].mxu0  ;;  %v9489_v24 = vpop.f32.mrb[145].mxu1 }
0x2943   :  { %v4530_v14 = vpop.f32.mrb[146].mxu1 }
0x2944   :  { %v9490_v27 = vpop.f32.mrb[147].mxu1 }
0x2947   :  { %v4592_v7 = vpop.f32.mrb[144].mxu0 }
0x2948   :  { %v9497_v15 = vpop.f32.mrb[145].mxu0  ;;  %v4593_v36 = vadd.f32 %v8434_v31, %v4592_v7 }
0x2949   :  { %v4595_v10 = vpop.f32.mrb[146].mxu0  ;;  %v4655_v47 = vpop.f32.mrb[148].mxu1 }
0x294a   :  { %v4656_v19 = vadd.f32 %v8442_v43, %v4655_v47  ;;  %v9498_v21 = vpop.f32.mrb[147].mxu0  ;;  %v9505_v23 = vpop.f32.mrb[149].mxu1  ;;  %v4596_v54 = vadd.f32 %v8434_v31, %v4595_v10  ;;  %v4725_v50 = vpack.c.bf16 %v4593_v36, %v4593_v36  ;;  %v8458_v47 = vld [vmem:[%s11942_s6 + $0x24] sm:$0xf] }
0x294b   :  { %v4658_v25 = vpop.f32.mrb[150].mxu1  ;;  %v8429_v23 = vld [vmem:[%s11942_s6 + $0x20] sm:$0xf] }
0x294c   :  { %v4727_v8 = vpack.c.bf16 %v4656_v19, %v4656_v19  ;;  %v4659_v11 = vadd.f32 %v8442_v43, %v4658_v25  ;;  %v9506_v30 = vpop.f32.mrb[151].mxu1  ;;  %v4726_v53 = vpack.c.bf16 %v4596_v54, %v4596_v54  ;;  %v4997_v31 = vsel %vm436_vm7, %v8429_v23, 0  ;;  %v9969_v54 = vld [vmem:[%s11940_s4 + $0x1a8] sm:$0xff]  }
0x294e   :  { %v4735_v33 = vsel %vm312_vm6, %v4727_v8, 0  ;;  %v4728_v34 = vpack.c.bf16 %v4659_v11, %v4659_v11  ;;  %v4950_v11 = vsel %vm436_vm7, %v8458_v47, 0 }
0x294f   :  { %v4718_v35 = vpop.f32.mrb[148].mxu0  ;;  %9516 = vmatpush3.bf16.xpose.msra.mxu1 %v4735_v33  ;;  %v9967_v33 = vld [vmem:[%s11940_s4 + $0x1e8] sm:$0xff]  }
0x2950   :  { %v4781_v37 = vsel %vm312_vm6, %v4728_v34, 0  ;;  %v4719_v38 = vadd.f32 %v8450_v32, %v4718_v35  ;;  %v9513_v49 = vpop.f32.mrb[149].mxu0  ;;  %9527 = vmatprep.subr.bf16.mxu1 %v10222_v16  ;;  %v9968_v35 = vld [vmem:[%s11940_s4 + $0x1a0] sm:$0xff]  }
0x2951   :  { %v4721_v39 = vpop.f32.mrb[150].mxu0  ;;  %9522 = vmatpush3.bf16.xpose.msra.mxu0 %v4781_v37 }
0x2952   :  { %v4729_v41 = vpack.c.bf16 %v4719_v38, %v4719_v38  ;;  %v4722_v42 = vadd.f32 %v8450_v32, %v4721_v39  ;;  %v9514_v44 = vpop.f32.mrb[151].mxu0  ;;  %9533 = vmatprep.subr.bf16.mxu0 %v10222_v16  ;;  %v9966_v32 = vld [vmem:[%s11940_s4 + $0x1e0] sm:$0xff]  }
0x2954   :  { %v4730_v51 = vpack.c.bf16 %v4722_v42, %v4722_v42  ;;  %v4855_v26 = vsel %vm436_vm7, %v4729_v41, 0  ;;  %v9970_v42 = vld [vmem:[%s11940_s4 + $0x220] sm:$0xff]  }
0x2956   :  { %9518 = vmatmul.mubr.msk.bf16.vlgmr.msra.gmra.mrb[152].mxu1 %vm312_vm6, %v4725_v50  ;;  %v4901_v28 = vsel %vm436_vm7, %v4730_v51, 0 }
0x2957   :  { %9528 = vmatpush3.bf16.msra.mxu1 %v4855_v26  ;;  %9529 = vmatprep.mubr.msk.bf16.mxu1 %vm10223_vm1, %v10222_v16  ;;  %v8473_v26 = vld [vmem:[%s11941_s5 + $0x1e] ss:$0 sm:$0xff] }
0x2958   :  { %9524 = vmatmul.mubr.msk.bf16.vlgmr.msra.gmra.mrb[152].mxu0 %vm312_vm6, %v4726_v53  ;;  %9539 = vmatprep.subr.bf16.mxu1 %v10222_v16  ;;  %v9971_v53 = vld [vmem:[%s11940_s4 + $0x228] sm:$0xff]  }
0x2959   :  { %9534 = vmatpush3.bf16.msra.mxu0 %v4901_v28  ;;  %9535 = vmatprep.mubr.msk.bf16.mxu0 %vm10223_vm1, %v10222_v16 }
0x295a   :  { %9545 = vmatprep.subr.bf16.mxu0 %v10222_v16 }
0x2a29   :  { %v4771_v29 = vpop.f32.mrb[152].mxu1 }
0x2a2a   :  { %v4823_v55 = vmul.f32 0.35355338, %v4771_v29  ;;  %v9519_v56 = vpop.f32.mrb[153].mxu1 }
0x2a2b   :  { %v4774_v17 = vpop.f32.mrb[154].mxu1  ;;  %v4817_v59 = vpop.f32.mrb[152].mxu0 }
0x2a2c   :  { %v4824_v18 = vmul.f32 0.35355338, %v4817_v59  ;;  %v9520_v22 = vpop.f32.mrb[155].mxu1  ;;  %v9525_v20 = vpop.f32.mrb[153].mxu0  ;;  %v4825_v62 = vadd.f32 %v11200_v13, %v4823_v55 }
0x2a2d   :  { %v4820_v63 = vpop.f32.mrb[154].mxu0 }
0x2a2e   :  { %v9526_v0 = vpop.f32.mrb[155].mxu0  ;;  %v4827_v1 = vsel %vm312_vm6, %v4825_v62, -inf  ;;  %v4826_v2 = vadd.f32 %v11207_v40, %v4824_v18 }
0x2a2f   :  { %4828 = vmax.xlane.f32.xlu0 %v4827_v1 }
0x2a30   :  { %v4830_v3 = vsel %vm312_vm6, %v4826_v2, -inf }
0x2a31   :  { %4831 = vmax.xlane.f32.xlu1 %v4830_v3 }
0x2abc   :  { %v4829_v4 = vpop.xlane.xlu0 %4828 }
0x2abd   :  { %v4833_v5 = vsub.f32 %v4825_v62, %v4829_v4 }
0x2abe   :  { %v4832_v6 = vpop.xlane.xlu1 %4831 }
0x2abf   :  { %v4835_v48 = vmul.f32 1.442695, %v4833_v5  ;;  %v4834_v46 = vsub.f32 %v4826_v2, %v4832_v6  ;;  %v8465_v5 = vld [vmem:[%s11941_s5 + $0x1a] ss:$0 sm:$0xff] }
0x2ac1   :  { %10112 = vpow2.f32 %v4835_v48  ;;  %v4837_v61 = vmul.f32 1.442695, %v4834_v46 }
0x2ac3   :  { %10114 = vpow2.f32 %v4837_v61 }
0x2acb   :  { %v10113_v24 = vpop.eup %10112 }
0x2acc   :  { %v4839_v14 = vsel %vm312_vm6, %v10113_v24, 0.0 }
0x2acd   :  { %v10115_v27 = vpop.eup %10114  ;;  %4840 = vadd.xlane.f32.xlu0 %v4839_v14 }
0x2ace   :  { %v4842_v7 = vsel %vm312_vm6, %v10115_v27, 0.0 }
0x2acf   :  { %4843 = vadd.xlane.f32.xlu1 %v4842_v7 }
0x2b5a   :  { %v4841_v43 = vpop.xlane.xlu0 %4840 }
0x2b5b   :  { %10116 = vrcp.f32 %v4841_v43  ;;  %v8481_v43 = vld [vmem:[%s11941_s5 + $0x22] ss:$0 sm:$0xff] }
0x2b5c   :  { %v4844_v15 = vpop.xlane.xlu1 %4843 }
0x2b5d   :  { %10118 = vrcp.f32 %v4844_v15 }
0x2b65   :  { %v10117_v10 = vpop.eup %10116 }
0x2b66   :  { %v4847_v19 = vmul.f32 %v10117_v10, %v10113_v24 }
0x2b67   :  { %v10119_v21 = vpop.eup %10118 }
0x2b68   :  { %v4848_v25 = vmul.f32 %v10119_v21, %v10115_v27  ;;  %v4849_v8 = vpack.c.bf16 %v4847_v19, %v4847_v19 }
0x2b6a   :  { %9530 = vmatmul.mubr.msk.bf16.vlgmr.msra.gmra.mrb[156].mxu1 %vm312_vm6, %v4849_v8  ;;  %v4850_v30 = vpack.c.bf16 %v4848_v25, %v4848_v25 }
0x2b6b   :  { %9540 = vmatpush3.bf16.msra.mxu1 %v4950_v11  ;;  %9541 = vmatprep.mubr.msk.bf16.mxu1 %vm10223_vm1, %v10222_v16 }
0x2b6c   :  { %9536 = vmatmul.mubr.msk.bf16.vlgmr.msra.gmra.mrb[156].mxu0 %vm312_vm6, %v4850_v30  ;;  %9551 = vmatprep.subr.bf16.mxu1 %v10222_v16 }
0x2b6d   :  { %9546 = vmatpush3.bf16.msra.mxu0 %v4997_v31  ;;  %9547 = vmatprep.mubr.msk.bf16.mxu0 %vm10223_vm1, %v10222_v16 }
0x2b6e   :  { %9559 = vmatprep.subr.bf16.mxu0 %v10222_v16 }
0x2b74   :  { %9548 = vmatmul.mubr.msk.bf16.vlgmr.msra.gmra.mrb[160].mxu0 %vm312_vm6, %v4533_v52 }
0x2b75   :  { %9560 = vmatpush3.bf16.msra.mxu0 %v9966_v32  ;;  %9563 = vmatprep.mubr.msk.bf16.mxu0 %vm10223_vm1, %v10222_v16 }
0x2b76   :  { %9561 = vmatprep.subr.bf16.mxu0 %v10222_v16 }
0x2b79   :  { %9562 = vmatpush3.bf16.msra.mxu0 %v9967_v33 }
0x2b7a   :  { %9575 = vmatprep.subr.bf16.mxu0 %v10222_v16 }
0x2b7c   :  { %9564 = vmatmul.mubr.msk.bf16.vlgmr.msra.gmra.mrb[164].mxu0 %vm60_vm0, %v11155_v58 }
0x2b7d   :  { %9577 = vmatprep.mubr.msk.bf16.mxu0 %vm10223_vm1, %v10222_v16 }
0x2c3d   :  { %v4891_v9 = vpop.f32.mrb[156].mxu1 }
0x2c3e   :  { %v9531_v60 = vpop.f32.mrb[157].mxu1 }
0x2c3f   :  { %v4894_v52 = vpop.f32.mrb[158].mxu1  ;;  %v4937_v34 = vpop.f32.mrb[156].mxu0 }
0x2c40   :  { %v4943_v36 = vpack.c.bf16 %v4937_v34, %v4891_v9  ;;  %v9532_v37 = vpop.f32.mrb[159].mxu1  ;;  %v9537_v38 = vpop.f32.mrb[157].mxu0 }
0x2c41   :  { %v4940_v49 = vpop.f32.mrb[158].mxu0 }
0x2c42   :  { %v9538_v39 = vpop.f32.mrb[159].mxu0  ;;  %9542 = vmatmul.mubr.msk.bf16.vlgmr.msra.gmra.mrb[160].mxu1 %vm312_vm6, %v4943_v36 }
0x2c43   :  { %9552 = vmatpush3.bf16.msra.mxu1 %v9968_v35  ;;  %9555 = vmatprep.mubr.msk.bf16.mxu1 %vm10223_vm1, %v10222_v16 }
0x2c44   :  { %9553 = vmatprep.subr.bf16.mxu1 %v10222_v16 }
0x2c47   :  { %9554 = vmatpush3.bf16.msra.mxu1 %v9969_v54  ;;  %v5033_v41 = vpop.f32.mrb[160].mxu0 }
0x2c48   :  { %v9549_v44 = vpop.f32.mrb[161].mxu0  ;;  %9567 = vmatprep.subr.bf16.mxu1 %v10222_v16 }
0x2c49   :  { %v5036_v50 = vpop.f32.mrb[162].mxu0 }
0x2c4a   :  { %v9550_v51 = vpop.f32.mrb[163].mxu0  ;;  %9556 = vmatmul.mubr.msk.bf16.vlgmr.msra.gmra.mrb[164].mxu1 %vm60_vm0, %v11155_v58 }
0x2c4b   :  { %9568 = vmatpush3.bf16.msra.mxu1 %v9970_v42  ;;  %9571 = vmatprep.mubr.msk.bf16.mxu1 %vm10223_vm1, %v10222_v16 }
0x2c4c   :  { %9569 = vmatprep.subr.bf16.mxu1 %v10222_v16 }
0x2c4f   :  { %9570 = vmatpush3.bf16.msra.mxu1 %v9971_v53  ;;  %v5159_v28 = vpop.f32.mrb[164].mxu0 }
0x2c50   :  { %v5160_v29 = vadd.f32 %v8473_v26, %v5159_v28  ;;  %v9565_v55 = vpop.f32.mrb[165].mxu0  ;;  %9581 = vmatprep.subr.bf16.mxu1 %v10222_v16 }
0x2c51   :  { %v5162_v56 = vpop.f32.mrb[166].mxu0 }
0x2c52   :  { %v5231_v17 = vpack.c.bf16 %v5160_v29, %v5160_v29  ;;  %v5163_v59 = vadd.f32 %v8473_v26, %v5162_v56  ;;  %v9566_v18 = vpop.f32.mrb[167].mxu0  ;;  %9572 = vmatmul.mubr.msk.bf16.vlgmr.msra.gmra.mrb[168].mxu1 %vm60_vm0, %v11155_v58 }
0x2c53   :  { %9583 = vmatprep.mubr.msk.bf16.mxu1 %vm10223_vm1, %v10222_v16  ;;  %v8489_v18 = vld [vmem:[%s11942_s6 + $0x28] sm:$0xf] }
0x2c54   :  { %v5239_v22 = vsel %vm312_vm6, %v5231_v17, 0  ;;  %v5232_v20 = vpack.c.bf16 %v5163_v59, %v5163_v59 }
0x2c55   :  { %9576 = vmatpush3.bf16.xpose.msra.mxu0 %v5239_v22 }
0x2c56   :  { %v5285_v62 = vsel %vm312_vm6, %v5232_v20, 0  ;;  %9587 = vmatprep.subr.bf16.mxu0 %v10222_v16 }
0x2c58   :  { %9582 = vmatpush3.bf16.xpose.msra.mxu1 %v5285_v62 }
0x2c59   :  { %9593 = vmatprep.subr.bf16.mxu1 %v10222_v16 }
0x2d15   :  { %v4986_v63 = vpop.f32.mrb[160].mxu1 }
0x2d16   :  { %v11358_v0 = vadd.f32 %v5033_v41, %v4986_v63  ;;  %v9543_v1 = vpop.f32.mrb[161].mxu1 }
0x2d17   :  { %v4989_v2 = vpop.f32.mrb[162].mxu1  ;;  %v5454_v1 = vsel %vm436_vm7, %v8489_v18, 0 }
0x2d18   :  { %v11360_v3 = vadd.f32 %v5036_v50, %v4989_v2  ;;  %v9544_v4 = vpop.f32.mrb[163].mxu1  ;;  %v9972_v2 = vld [vmem:[%s11940_s4 + $0x1b0] sm:$0xff]  }
0x2d1d   :  { %v5096_v6 = vpop.f32.mrb[164].mxu1 }
0x2d1e   :  { %v5097_v48 = vadd.f32 %v8465_v5, %v5096_v6  ;;  %v9557_v46 = vpop.f32.mrb[165].mxu1  ;;  %v9974_v6 = vld [vmem:[%s11940_s4 + $0x230] sm:$0xff]  }
0x2d1f   :  { %v5099_v61 = vpop.f32.mrb[166].mxu1 }
0x2d20   :  { %v5229_v24 = vpack.c.bf16 %v5097_v48, %v5097_v48  ;;  %v5100_v14 = vadd.f32 %v8465_v5, %v5099_v61  ;;  %v9558_v27 = vpop.f32.mrb[167].mxu1  ;;  %v9973_v5 = vld [vmem:[%s11940_s4 + $0x1b8] sm:$0xff]  }
0x2d21   :  { %v9975_v48 = vld [vmem:[%s11940_s4 + $0x238] sm:$0xff]   ;;  %v9976_v27 = vld [vmem:[%s11940_s4 + $0x1f0] sm:$0xff]  }
0x2d22   :  { %v5230_v7 = vpack.c.bf16 %v5100_v14, %v5100_v14  ;;  %9578 = vmatmul.mubr.msk.bf16.vlgmr.msra.gmra.mrb[168].mxu0 %vm312_vm6, %v5229_v24 }
0x2d23   :  { %9589 = vmatprep.mubr.msk.bf16.mxu0 %vm10223_vm1, %v10222_v16 }
0x2d24   :  { %9584 = vmatmul.mubr.msk.bf16.vlgmr.msra.gmra.mrb[172].mxu1 %vm312_vm6, %v5230_v7 }
0x2d25   :  { %v5222_v15 = vpop.f32.mrb[168].mxu1  ;;  %9595 = vmatprep.mubr.msk.bf16.mxu1 %vm10223_vm1, %v10222_v16 }
0x2d26   :  { %v5223_v10 = vadd.f32 %v8481_v43, %v5222_v15  ;;  %v9573_v47 = vpop.f32.mrb[169].mxu1 }
0x2d27   :  { %v5225_v19 = vpop.f32.mrb[170].mxu1 }
0x2d28   :  { %v5233_v21 = vpack.c.bf16 %v5223_v10, %v5223_v10  ;;  %v5226_v23 = vadd.f32 %v8481_v43, %v5225_v19  ;;  %v9574_v25 = vpop.f32.mrb[171].mxu1  ;;  %v9977_v19 = vld [vmem:[%s11940_s4 + $0x1f8] sm:$0xff]  }
0x2d2a   :  { %v5359_v8 = vsel %vm436_vm7, %v5233_v21, 0  ;;  %v5234_v11 = vpack.c.bf16 %v5226_v23, %v5226_v23 }
0x2d2b   :  { %9588 = vmatpush3.bf16.msra.mxu0 %v5359_v8 }
0x2d2c   :  { %v5405_v30 = vsel %vm436_vm7, %v5234_v11, 0  ;;  %9599 = vmatprep.subr.bf16.mxu0 %v10222_v16 }
0x2d2d   :  { %9594 = vmatpush3.bf16.msra.mxu1 %v5405_v30 }
0x2d2e   :  { %9605 = vmatprep.subr.bf16.mxu1 %v10222_v16 }
0x2df5   :  { %v5275_v31 = vpop.f32.mrb[168].mxu0 }
0x2df6   :  { %v5327_v32 = vmul.f32 0.35355338, %v5275_v31  ;;  %v9579_v33 = vpop.f32.mrb[169].mxu0 }
0x2df7   :  { %v5278_v9 = vpop.f32.mrb[170].mxu0  ;;  %v5321_v60 = vpop.f32.mrb[172].mxu1 }
0x2df8   :  { %v5328_v52 = vmul.f32 0.35355338, %v5321_v60  ;;  %v9580_v34 = vpop.f32.mrb[171].mxu0  ;;  %v9585_v35 = vpop.f32.mrb[173].mxu1  ;;  %v5329_v36 = vadd.f32 %v11200_v13, %v5327_v32 }
0x2df9   :  { %v5324_v37 = vpop.f32.mrb[174].mxu1 }
0x2dfa   :  { %v9586_v38 = vpop.f32.mrb[175].mxu1  ;;  %v5331_v49 = vsel %vm312_vm6, %v5329_v36, -inf  ;;  %v5330_v39 = vadd.f32 %v11207_v40, %v5328_v52 }
0x2dfb   :  { %5332 = vmax.xlane.f32.xlu0 %v5331_v49  ;;  %v8511_v49 = vld [vmem:[%s11941_s5 + $0x23] ss:$0 sm:$0xff] }
0x2dfc   :  { %v5334_v54 = vsel %vm312_vm6, %v5330_v39, -inf }
0x2dfd   :  { %5335 = vmax.xlane.f32.xlu1 %v5334_v54 }
0x2e88   :  { %v5333_v41 = vpop.xlane.xlu0 %5332 }
0x2e89   :  { %v5337_v42 = vsub.f32 %v5329_v36, %v5333_v41 }
0x2e8a   :  { %v5336_v44 = vpop.xlane.xlu1 %5335 }
0x2e8b   :  { %v5339_v50 = vmul.f32 1.442695, %v5337_v42  ;;  %v5338_v51 = vsub.f32 %v5330_v39, %v5336_v44 }
0x2e8d   :  { %10120 = vpow2.f32 %v5339_v50  ;;  %v5341_v53 = vmul.f32 1.442695, %v5338_v51 }
0x2e8f   :  { %10122 = vpow2.f32 %v5341_v53 }
0x2e97   :  { %v10121_v26 = vpop.eup %10120 }
0x2e98   :  { %v5343_v28 = vsel %vm312_vm6, %v10121_v26, 0.0 }
0x2e99   :  { %v10123_v29 = vpop.eup %10122  ;;  %5344 = vadd.xlane.f32.xlu0 %v5343_v28 }
0x2e9a   :  { %v5346_v55 = vsel %vm312_vm6, %v10123_v29, 0.0 }
0x2e9b   :  { %5347 = vadd.xlane.f32.xlu1 %v5346_v55 }
0x2f26   :  { %v5345_v56 = vpop.xlane.xlu0 %5344 }
0x2f27   :  { %10124 = vrcp.f32 %v5345_v56 }
0x2f28   :  { %v5348_v17 = vpop.xlane.xlu1 %5347 }
0x2f29   :  { %10126 = vrcp.f32 %v5348_v17 }
0x2f31   :  { %v10125_v59 = vpop.eup %10124 }
0x2f32   :  { %v5351_v22 = vmul.f32 %v10125_v59, %v10121_v26 }
0x2f33   :  { %v10127_v20 = vpop.eup %10126 }
0x2f34   :  { %v5352_v62 = vmul.f32 %v10127_v20, %v10123_v29  ;;  %v5353_v63 = vpack.c.bf16 %v5351_v22, %v5351_v22 }
0x2f36   :  { %9590 = vmatmul.mubr.msk.bf16.vlgmr.msra.gmra.mrb[172].mxu0 %vm312_vm6, %v5353_v63  ;;  %v5354_v4 = vpack.c.bf16 %v5352_v62, %v5352_v62 }
0x2f37   :  { %9600 = vmatpush3.bf16.msra.mxu0 %v5454_v1  ;;  %9601 = vmatprep.mubr.msk.bf16.mxu0 %vm10223_vm1, %v10222_v16 }
0x2f38   :  { %9596 = vmatmul.mubr.msk.bf16.vlgmr.msra.gmra.mrb[176].mxu1 %vm312_vm6, %v5354_v4  ;;  %9613 = vmatprep.subr.bf16.mxu0 %v10222_v16 }
0x2f39   :  { %9606 = vmatpush3.bf16.msra.mxu1 %v9972_v2  ;;  %9609 = vmatprep.mubr.msk.bf16.mxu1 %vm10223_vm1, %v10222_v16 }
0x2f3a   :  { %9607 = vmatprep.subr.bf16.mxu1 %v10222_v16 }
0x2f3d   :  { %9608 = vmatpush3.bf16.msra.mxu1 %v9973_v5 }
0x2f3e   :  { %9621 = vmatprep.subr.bf16.mxu1 %v10222_v16 }
0x2f40   :  { %9610 = vmatmul.mubr.msk.bf16.vlgmr.msra.gmra.mrb[180].mxu1 %vm60_vm0, %v11155_v58 }
0x2f41   :  { %9622 = vmatpush3.bf16.msra.mxu1 %v9974_v6  ;;  %9625 = vmatprep.mubr.msk.bf16.mxu1 %vm10223_vm1, %v10222_v16 }
0x2f42   :  { %9623 = vmatprep.subr.bf16.mxu1 %v10222_v16 }
0x2f45   :  { %9624 = vmatpush3.bf16.msra.mxu1 %v9975_v48 }
0x2f46   :  { %9635 = vmatprep.subr.bf16.mxu1 %v10222_v16 }
0x2f48   :  { %9626 = vmatmul.mubr.msk.bf16.vlgmr.msra.gmra.mrb[184].mxu1 %vm60_vm0, %v11155_v58 }
0x2f49   :  { %9637 = vmatprep.mubr.msk.bf16.mxu1 %vm10223_vm1, %v10222_v16 }
0x3009   :  { %v5395_v46 = vpop.f32.mrb[172].mxu0 }
0x300a   :  { %v9591_v61 = vpop.f32.mrb[173].mxu0 }
0x300b   :  { %v5398_v24 = vpop.f32.mrb[174].mxu0  ;;  %v5441_v14 = vpop.f32.mrb[176].mxu1 }
0x300c   :  { %v5447_v7 = vpack.c.bf16 %v5441_v14, %v5395_v46  ;;  %v9592_v43 = vpop.f32.mrb[175].mxu0  ;;  %v9597_v15 = vpop.f32.mrb[177].mxu1 }
0x300d   :  { %v5444_v10 = vpop.f32.mrb[178].mxu1 }
0x300e   :  { %v9598_v47 = vpop.f32.mrb[179].mxu1  ;;  %9602 = vmatmul.mubr.msk.bf16.vlgmr.msra.gmra.mrb[176].mxu0 %vm312_vm6, %v5447_v7 }
0x300f   :  { %9614 = vmatpush3.bf16.msra.mxu0 %v9976_v27  ;;  %9617 = vmatprep.mubr.msk.bf16.mxu0 %vm10223_vm1, %v10222_v16 }
0x3010   :  { %9615 = vmatprep.subr.bf16.mxu0 %v10222_v16 }
0x3013   :  { %v5555_v21 = vpop.f32.mrb[180].mxu1  ;;  %9616 = vmatpush3.bf16.msra.mxu0 %v9977_v19 }
0x3014   :  { %v9611_v23 = vpop.f32.mrb[181].mxu1  ;;  %9629 = vmatprep.subr.bf16.mxu0 %v10222_v16 }
0x3015   :  { %v5558_v25 = vpop.f32.mrb[182].mxu1 }
0x3016   :  { %v9612_v8 = vpop.f32.mrb[183].mxu1  ;;  %9618 = vmatmul.mubr.msk.bf16.vlgmr.msra.gmra.mrb[180].mxu0 %vm60_vm0, %v11155_v58  ;;  %v8503_v58 = vld [vmem:[%s11941_s5 + $0x1f] ss:$0 sm:$0xff] }
0x3017   :  { %9631 = vmatprep.mubr.msk.bf16.mxu0 %vm10223_vm1, %v10222_v16 }
0x301b   :  { %v5681_v11 = vpop.f32.mrb[184].mxu1 }
0x301c   :  { %v9627_v30 = vpop.f32.mrb[185].mxu1  ;;  %v5682_v42 = vadd.f32 %v8511_v49, %v5681_v11  ;;  %v8519_v11 = vld [vmem:[%s11942_s6 + $0x2c] sm:$0xf] }
0x301d   :  { %v5684_v31 = vpop.f32.mrb[186].mxu1 }
0x301e   :  { %v9628_v32 = vpop.f32.mrb[187].mxu1  ;;  %v5685_v53 = vadd.f32 %v8511_v49, %v5684_v31  ;;  %v5692_v29 = vpack.c.bf16 %v5682_v42, %v5682_v42 }
0x3020   :  { %v5693_v56 = vpack.c.bf16 %v5685_v53, %v5685_v53  ;;  %v5818_v59 = vsel %vm436_vm7, %v5692_v29, 0 }
0x3022   :  { %v5864_v18 = vsel %vm436_vm7, %v5693_v56, 0 }
0x30e1   :  { %v5490_v33 = vpop.f32.mrb[176].mxu0 }
0x30e2   :  { %v11435_v9 = vadd.f32 %v5490_v33, %v11358_v0  ;;  %v9603_v60 = vpop.f32.mrb[177].mxu0 }
0x30e3   :  { %v5493_v52 = vpop.f32.mrb[178].mxu0  ;;  %v5913_v60 = vsel %vm436_vm7, %v8519_v11, 0 }
0x30e4   :  { %v11438_v34 = vadd.f32 %v5493_v52, %v11360_v3  ;;  %v9604_v35 = vpop.f32.mrb[179].mxu0  ;;  %v8495_v3 = vld [vmem:[%s11941_s5 + $0x1b] ss:$0 sm:$0xff] }
0x30e5   :  { %v5556_v51 = vadd.f32 %v8495_v3, %v5555_v21  ;;  %v5559_v28 = vadd.f32 %v8495_v3, %v5558_v25  ;;  %v8521_v3 = vld [vmem:[%s11943_s7 + $0x2] ss:$0 sm:$0xff] }
0x30e7   :  { %v5688_v55 = vpack.c.bf16 %v5556_v51, %v5556_v51  ;;  %v5689_v17 = vpack.c.bf16 %v5559_v28, %v5559_v28 }
0x30e9   :  { %v5618_v36 = vpop.f32.mrb[180].mxu0 }
0x30ea   :  { %v5619_v37 = vadd.f32 %v8503_v58, %v5618_v36  ;;  %v9619_v38 = vpop.f32.mrb[181].mxu0 }
0x30eb   :  { %v5621_v39 = vpop.f32.mrb[182].mxu0 }
0x30ec   :  { %v5690_v0 = vpack.c.bf16 %v5619_v37, %v5619_v37  ;;  %v5622_v54 = vadd.f32 %v8503_v58, %v5621_v39  ;;  %v9620_v41 = vpop.f32.mrb[183].mxu0 }
0x30ee   :  { %v5698_v44 = vsel %vm312_vm6, %v5690_v0, 0  ;;  %v5691_v50 = vpack.c.bf16 %v5622_v54, %v5622_v54 }
0x30ef   :  { %9630 = vmatpush3.bf16.xpose.msra.mxu0 %v5698_v44 }
0x30f0   :  { %v5744_v26 = vsel %vm312_vm6, %v5691_v50, 0  ;;  %9641 = vmatprep.subr.bf16.mxu0 %v10222_v16 }
0x30f1   :  { %9636 = vmatpush3.bf16.xpose.msra.mxu1 %v5744_v26 }
0x30f2   :  { %9647 = vmatprep.subr.bf16.mxu1 %v10222_v16 }
0x30f6   :  { %9632 = vmatmul.mubr.msk.bf16.vlgmr.msra.gmra.mrb[184].mxu0 %vm312_vm6, %v5688_v55 }
0x30f7   :  { %9642 = vmatpush3.bf16.msra.mxu0 %v5818_v59  ;;  %9643 = vmatprep.mubr.msk.bf16.mxu0 %vm10223_vm1, %v10222_v16 }
0x30f8   :  { %9638 = vmatmul.mubr.msk.bf16.vlgmr.msra.gmra.mrb[188].mxu1 %vm312_vm6, %v5689_v17  ;;  %9653 = vmatprep.subr.bf16.mxu0 %v10222_v16 }
0x30f9   :  { %9648 = vmatpush3.bf16.msra.mxu1 %v5864_v18  ;;  %9649 = vmatprep.mubr.msk.bf16.mxu1 %vm10223_vm1, %v10222_v16 }
0x30fa   :  { %9659 = vmatprep.subr.bf16.mxu1 %v10222_v16 }
0x31c9   :  { %v5734_v22 = vpop.f32.mrb[184].mxu0 }
0x31ca   :  { %v5786_v20 = vmul.f32 0.35355338, %v5734_v22  ;;  %v9633_v62 = vpop.f32.mrb[185].mxu0 }
0x31cb   :  { %v5737_v63 = vpop.f32.mrb[186].mxu0  ;;  %v5780_v1 = vpop.f32.mrb[188].mxu1 }
0x31cc   :  { %v5787_v2 = vmul.f32 0.35355338, %v5780_v1  ;;  %v9634_v4 = vpop.f32.mrb[187].mxu0  ;;  %v9639_v5 = vpop.f32.mrb[189].mxu1  ;;  %v5788_v6 = vadd.f32 %v11200_v13, %v5786_v20  ;;  %v9978_v1 = vld [vmem:[%s11940_s4 + $0x280] sm:$0xff]  }
0x31cd   :  { %v5783_v48 = vpop.f32.mrb[190].mxu1  ;;  %v9979_v4 = vld [vmem:[%s11940_s4 + $0x288] sm:$0xff]  }
0x31ce   :  { %v9640_v46 = vpop.f32.mrb[191].mxu1  ;;  %v5790_v61 = vsel %vm312_vm6, %v5788_v6, -inf  ;;  %v5789_v24 = vadd.f32 %v11207_v40, %v5787_v2  ;;  %v9980_v2 = vld [vmem:[%s11940_s4 + $0x240] sm:$0xff]   ;;  %v9981_v5 = vld [vmem:[%s11940_s4 + $0x248] sm:$0xff]  }
0x31cf   :  { %5791 = vmax.xlane.f32.xlu0 %v5790_v61 }
0x31d0   :  { %v5793_v14 = vsel %vm312_vm6, %v5789_v24, -inf }
0x31d1   :  { %5794 = vmax.xlane.f32.xlu1 %v5793_v14 }
0x325c   :  { %v5792_v27 = vpop.xlane.xlu0 %5791 }
0x325d   :  { %v5796_v7 = vsub.f32 %v5788_v6, %v5792_v27 }
0x325e   :  { %v5795_v43 = vpop.xlane.xlu1 %5794 }
0x325f   :  { %v5798_v15 = vmul.f32 1.442695, %v5796_v7  ;;  %v5797_v10 = vsub.f32 %v5789_v24, %v5795_v43 }
0x3261   :  { %10128 = vpow2.f32 %v5798_v15  ;;  %v5800_v47 = vmul.f32 1.442695, %v5797_v10 }
0x3263   :  { %10130 = vpow2.f32 %v5800_v47 }
0x326b   :  { %v10129_v19 = vpop.eup %10128 }
0x326c   :  { %v5802_v13 = vsel %vm312_vm6, %v10129_v19, 0.0 }
0x326d   :  { %v10131_v21 = vpop.eup %10130  ;;  %5803 = vadd.xlane.f32.xlu0 %v5802_v13 }
0x326e   :  { %v5805_v23 = vsel %vm312_vm6, %v10131_v21, 0.0 }
0x326f   :  { %5806 = vadd.xlane.f32.xlu1 %v5805_v23 }
0x32fa   :  { %v5804_v40 = vpop.xlane.xlu0 %5803 }
0x32fb   :  { %10132 = vrcp.f32 %v5804_v40 }
0x32fc   :  { %v5807_v25 = vpop.xlane.xlu1 %5806 }
0x32fd   :  { %10134 = vrcp.f32 %v5807_v25  ;;  %v8522_v25 = vld [vmem:[%s11948_s12 + $0x4] ss:$0 sm:$0xff] }
0x3305   :  { %v10133_v8 = vpop.eup %10132 }
0x3306   :  { %v5810_v30 = vmul.f32 %v10133_v8, %v10129_v19 }
0x3307   :  { %v10135_v31 = vpop.eup %10134 }
0x3308   :  { %v5811_v32 = vmul.f32 %v10135_v31, %v10131_v21  ;;  %v5812_v33 = vpack.c.bf16 %v5810_v30, %v5810_v30 }
0x330a   :  { %9644 = vmatmul.mubr.msk.bf16.vlgmr.msra.gmra.mrb[188].mxu0 %vm312_vm6, %v5812_v33  ;;  %v5813_v52 = vpack.c.bf16 %v5811_v32, %v5811_v32  ;;  %v8523_v32 = vld [vmem:[%s11949_s13 + $0x4] ss:$0 sm:$0xff] }
0x330b   :  { %9654 = vmatpush3.bf16.msra.mxu0 %v5913_v60  ;;  %9655 = vmatprep.mubr.msk.bf16.mxu0 %vm10223_vm1, %v10222_v16 }
0x330c   :  { %9650 = vmatmul.mubr.msk.bf16.vlgmr.msra.gmra.mrb[192].mxu1 %vm312_vm6, %v5813_v52  ;;  %9667 = vmatprep.subr.bf16.mxu0 %v10222_v16 }
0x330d   :  { %9663 = vmatprep.mubr.msk.bf16.mxu1 %vm10223_vm1, %v10222_v16  ;;  %9660 = vmatpush3.bf16.msra.mxu1 %v9980_v2 }
0x330e   :  { %9661 = vmatprep.subr.bf16.mxu1 %v10222_v16 }
0x3311   :  { %9662 = vmatpush3.bf16.msra.mxu1 %v9981_v5 }
0x3312   :  { %9675 = vmatprep.subr.bf16.mxu1 %v10222_v16 }
0x33dd   :  { %v5854_v35 = vpop.f32.mrb[188].mxu0 }
0x33de   :  { %v9645_v58 = vpop.f32.mrb[189].mxu0 }
0x33df   :  { %v5857_v36 = vpop.f32.mrb[190].mxu0  ;;  %v5900_v37 = vpop.f32.mrb[192].mxu1 }
0x33e0   :  { %v5906_v38 = vpack.c.bf16 %v5900_v37, %v5854_v35  ;;  %v9646_v49 = vpop.f32.mrb[191].mxu0  ;;  %v9651_v39 = vpop.f32.mrb[193].mxu1  ;;  %v9982_v35 = vld [vmem:[%s11940_s4 + $0x2c0] sm:$0xff]   ;;  %v9983_v36 = vld [vmem:[%s11940_s4 + $0x2c8] sm:$0xff]  }
0x33e1   :  { %v5903_v0 = vpop.f32.mrb[194].mxu1  ;;  %v8536_v37 = vld [vmem:[%s11941_s5 + $0x28] ss:$0 sm:$0xff] }
0x33e2   :  { %v9652_v54 = vpop.f32.mrb[195].mxu1  ;;  %9656 = vmatmul.mubr.msk.bf16.vlgmr.msra.gmra.mrb[192].mxu0 %vm312_vm6, %v5906_v38 }
0x33e3   :  { %9671 = vmatprep.mubr.msk.bf16.mxu0 %vm10223_vm1, %v10222_v16  ;;  %9668 = vmatpush3.bf16.msra.mxu0 %v9978_v1 }
0x33e4   :  { %9669 = vmatprep.subr.bf16.mxu0 %v10222_v16 }
0x33e7   :  { %9670 = vmatpush3.bf16.msra.mxu0 %v9979_v4 }
0x33e8   :  { %9683 = vmatprep.subr.bf16.mxu0 %v10222_v16 }
0x33ea   :  { %9672 = vmatmul.mubr.msk.bf16.vlgmr.msra.gmra.mrb[196].mxu0 %vm60_vm0, %v10713_v45 }
0x33eb   :  { %9685 = vmatprep.mubr.msk.bf16.mxu0 %vm10223_vm1, %v10222_v16 }
0x34b5   :  { %v5949_v41 = vpop.f32.mrb[192].mxu0 }
0x34b6   :  { %v5956_v42 = vadd.f32 %v5949_v41, %v11435_v9  ;;  %v9657_v44 = vpop.f32.mrb[193].mxu0 }
0x34b7   :  { %v5952_v50 = vpop.f32.mrb[194].mxu0 }
0x34b8   :  { %v5963_v51 = vadd.f32 %v8521_v3, %v5956_v42  ;;  %v5957_v53 = vadd.f32 %v5952_v50, %v11438_v34  ;;  %v9658_v26 = vpop.f32.mrb[195].mxu0 }
0x34ba   :  { %v11489_v28 = vadd.f32 %v5963_v51, %v11117_v12  ;;  %v5964_v29 = vadd.f32 %v8521_v3, %v5957_v53  ;;  %v8528_v51 = vld [vmem:[%s11941_s5 + $0x24] ss:$0 sm:$0xff] }
0x34bc   :  { %v11492_v55 = vadd.f32 %v5964_v29, %v11120_v57  ;;  %v5969_v56 = vsel %vm60_vm0, %v11489_v28, 0.0 }
0x34bd   :  { %5970 = vadd.xlane.f32.xlu0 %v5969_v56  ;;  %v6144_v38 = vpop.f32.mrb[196].mxu0 }
0x34be   :  { %v5972_v9 = vsel %vm60_vm0, %v11492_v55, 0.0  ;;  %v6145_v49 = vadd.f32 %v8536_v37, %v6144_v38  ;;  %v9673_v39 = vpop.f32.mrb[197].mxu0 }
0x34bf   :  { %5973 = vadd.xlane.f32.xlu1 %v5972_v9  ;;  %v6147_v0 = vpop.f32.mrb[198].mxu0  ;;  %v9984_v39 = vld [vmem:[%s11940_s4 + $0x250] sm:$0xff]  }
0x34c0   :  { %v6216_v54 = vpack.c.bf16 %v6145_v49, %v6145_v49  ;;  %v6148_v41 = vadd.f32 %v8536_v37, %v6147_v0  ;;  %v9674_v3 = vpop.f32.mrb[199].mxu0 }
0x34c2   :  { %v6224_v42 = vsel %vm312_vm6, %v6216_v54, 0  ;;  %v6217_v44 = vpack.c.bf16 %v6148_v41, %v6148_v41  ;;  %v9985_v41 = vld [vmem:[%s11940_s4 + $0x290] sm:$0xff]  }
0x34c3   :  { %9684 = vmatpush3.bf16.xpose.msra.mxu0 %v6224_v42  ;;  %v9986_v42 = vld [vmem:[%s11940_s4 + $0x258] sm:$0xff]  }
0x34c4   :  { %v6270_v50 = vsel %vm312_vm6, %v6217_v44, 0  ;;  %9695 = vmatprep.subr.bf16.mxu0 %v10222_v16  ;;  %v9987_v44 = vld [vmem:[%s11940_s4 + $0x298] sm:$0xff]  }
0x354a   :  { %v5971_v17 = vpop.xlane.xlu0 %5970 }
0x354b   :  { %v5975_v59 = vmul.f32 0.03125, %v5971_v17 }
0x354c   :  { %v5974_v18 = vpop.xlane.xlu1 %5973 }
0x354d   :  { %v5977_v34 = vsub.f32 %v11489_v28, %v5975_v59  ;;  %v5976_v22 = vmul.f32 0.03125, %v5974_v18 }
0x354f   :  { %v5978_v12 = vsub.f32 %v11492_v55, %v5976_v22  ;;  %v5979_v20 = vmul.f32 %v5977_v34, %v5977_v34 }
0x3551   :  { %v5981_v57 = vsel %vm60_vm0, %v5979_v20, 0.0  ;;  %v5980_v62 = vmul.f32 %v5978_v12, %v5978_v12 }
0x3552   :  { %5982 = vadd.xlane.f32.xlu0 %v5981_v57 }
0x3553   :  { %v5984_v63 = vsel %vm60_vm0, %v5980_v62, 0.0 }
0x3554   :  { %5985 = vadd.xlane.f32.xlu1 %v5984_v63 }
0x35df   :  { %v5983_v6 = vpop.xlane.xlu0 %5982 }
0x35e0   :  { %v5987_v48 = vmul.f32 0.032258064, %v5983_v6 }
0x35e1   :  { %v5986_v46 = vpop.xlane.xlu1 %5985 }
0x35e2   :  { %10136 = vrsqrt.f32 %v5987_v48  ;;  %v5988_v61 = vmul.f32 0.032258064, %v5986_v46  ;;  %vm5991_vm9 = vcmp.eq.f32.partialorder %v5987_v48, inf  ;;  %v5994_v27 = vand.u32 2147483648, %v5987_v48 }
0x35e3   :  { %vm5993_vm10 = vcmp.eq.f32.partialorder %v5987_v48, 0.0 }
0x35e4   :  { %10138 = vrsqrt.f32 %v5988_v61  ;;  %vm5998_vm11 = vcmp.eq.f32.partialorder %v5988_v61, inf  ;;  %v6001_v19 = vand.u32 2147483648, %v5988_v61  ;;  %vm6000_vm12 = vcmp.eq.f32.partialorder %v5988_v61, 0.0 }
0x35ec   :  { %v10137_v24 = vpop.eup %10136 }
0x35ed   :  { %v5990_v14 = vmul.f32 %v10137_v24, %v5987_v48 }
0x35ee   :  { %v10139_v7 = vpop.eup %10138 }
0x35ef   :  { %v5992_v43 = vsel %vm5991_vm9, %v5987_v48, %v5990_v14  ;;  %v5997_v10 = vmul.f32 %v10139_v7, %v5988_v61 }
0x35f0   :  { %v5995_v15 = vsel %vm5993_vm10, %v5994_v27, %v5992_v43  ;;  %v11572_v43 = vld [vmem:[%s11939_s3] sm:$0xff] }
0x35f1   :  { %v6003_v47 = vadd.f32 1e-06, %v5995_v15  ;;  %v5999_v13 = vsel %vm5998_vm11, %v5988_v61, %v5997_v10 }
0x35f2   :  { %v6002_v21 = vsel %vm6000_vm12, %v6001_v19, %v5999_v13  ;;  %v11579_v13 = vld [vmem:[%s11939_s3 + $0x8] sm:$0xff] }
0x35f3   :  { %10140 = vrcp.f32 %v6003_v47  ;;  %v6004_v23 = vadd.f32 1e-06, %v6002_v21 }
0x35f5   :  { %10142 = vrcp.f32 %v6004_v23 }
0x35fd   :  { %v10141_v40 = vpop.eup %10140 }
0x35fe   :  { %v6007_v8 = vmul.f32 %v10141_v40, %v5977_v34  ;;  %v8544_v34 = vld [vmem:[%s11941_s5 + $0x2c] ss:$0 sm:$0xff] }
0x35ff   :  { %v10143_v11 = vpop.eup %10142 }
0x3600   :  { %v6008_v30 = vmul.f32 %v10143_v11, %v5978_v12  ;;  %v6013_v31 = vmul.f32 %v8522_v25, %v6007_v8 }
0x3602   :  { %v6014_v33 = vmul.f32 %v8522_v25, %v6008_v30  ;;  %v6019_v60 = vadd.f32 %v8523_v32, %v6013_v31 }
0x3604   :  { %v6020_v52 = vadd.f32 %v8523_v32, %v6014_v33 }
0x3606   :  { %v11531_v58 = vpack.c.bf16 %v6020_v52, %v6019_v60 }
0x3608   :  { %9664 = vmatmul.mubr.msk.bf16.vlgmr.msra.gmra.mrb[196].mxu1 %vm60_vm0, %v11531_v58 }
0x3609   :  { %9676 = vmatpush3.bf16.msra.mxu1 %v9982_v35  ;;  %9679 = vmatprep.mubr.msk.bf16.mxu1 %vm10223_vm1, %v10222_v16 }
0x360a   :  { %9677 = vmatprep.subr.bf16.mxu1 %v10222_v16 }
0x360d   :  { %9678 = vmatpush3.bf16.msra.mxu1 %v9983_v36 }
0x360e   :  { %9689 = vmatprep.subr.bf16.mxu1 %v10222_v16 }
0x3610   :  { %9680 = vmatmul.mubr.msk.bf16.vlgmr.msra.gmra.mrb[200].mxu1 %vm60_vm0, %v10713_v45 }
0x3611   :  { %9691 = vmatprep.mubr.msk.bf16.mxu1 %vm10223_vm1, %v10222_v16 }
0x3616   :  { %9690 = vmatpush3.bf16.xpose.msra.mxu1 %v6270_v50  ;;  %v9988_v50 = vld [vmem:[%s11940_s4 + $0x2d0] sm:$0xff]  }
0x3617   :  { %9701 = vmatprep.subr.bf16.mxu1 %v10222_v16 }
0x36db   :  { %v6081_v53 = vpop.f32.mrb[196].mxu1 }
0x36dc   :  { %v6082_v26 = vadd.f32 %v8528_v51, %v6081_v53  ;;  %v9665_v29 = vpop.f32.mrb[197].mxu1 }
0x36dd   :  { %v6084_v56 = vpop.f32.mrb[198].mxu1 }
0x36de   :  { %v6214_v9 = vpack.c.bf16 %v6082_v26, %v6082_v26  ;;  %v6085_v17 = vadd.f32 %v8528_v51, %v6084_v56  ;;  %v9666_v59 = vpop.f32.mrb[199].mxu1  ;;  %v9989_v51 = vld [vmem:[%s11940_s4 + $0x2d8] sm:$0xff]  }
0x36e0   :  { %v6215_v18 = vpack.c.bf16 %v6085_v17, %v6085_v17  ;;  %9686 = vmatmul.mubr.msk.bf16.vlgmr.msra.gmra.mrb[200].mxu0 %vm312_vm6, %v6214_v9 }
0x36e1   :  { %9697 = vmatprep.mubr.msk.bf16.mxu0 %vm10223_vm1, %v10222_v16 }
0x36e2   :  { %9692 = vmatmul.mubr.msk.bf16.vlgmr.msra.gmra.mrb[204].mxu1 %vm312_vm6, %v6215_v18 }
0x36e3   :  { %v6207_v22 = vpop.f32.mrb[200].mxu1  ;;  %9703 = vmatprep.mubr.msk.bf16.mxu1 %vm10223_vm1, %v10222_v16 }
0x36e4   :  { %v6208_v12 = vadd.f32 %v8544_v34, %v6207_v22  ;;  %v9681_v20 = vpop.f32.mrb[201].mxu1 }
0x36e5   :  { %v6210_v57 = vpop.f32.mrb[202].mxu1 }
0x36e6   :  { %v6218_v62 = vpack.c.bf16 %v6208_v12, %v6208_v12  ;;  %v6211_v63 = vadd.f32 %v8544_v34, %v6210_v57  ;;  %v9682_v1 = vpop.f32.mrb[203].mxu1  ;;  %v8565_v12 = vld [vmem:[%s11941_s5 + $0x29] ss:$0 sm:$0xff] }
0x36e8   :  { %v6344_v2 = vsel %vm436_vm7, %v6218_v62, 0  ;;  %v6219_v4 = vpack.c.bf16 %v6211_v63, %v6211_v63 }
0x36e9   :  { %9696 = vmatpush3.bf16.msra.mxu0 %v6344_v2 }
0x36ea   :  { %v6390_v5 = vsel %vm436_vm7, %v6219_v4, 0  ;;  %9707 = vmatprep.subr.bf16.mxu0 %v10222_v16 }
0x36eb   :  { %9702 = vmatpush3.bf16.msra.mxu1 %v6390_v5 }
0x36ec   :  { %9715 = vmatprep.subr.bf16.mxu1 %v10222_v16 }
0x37b3   :  { %v6260_v6 = vpop.f32.mrb[200].mxu0 }
0x37b4   :  { %v6312_v48 = vmul.f32 0.35355338, %v6260_v6  ;;  %v9687_v46 = vpop.f32.mrb[201].mxu0 }
0x37b5   :  { %v6263_v61 = vpop.f32.mrb[202].mxu0  ;;  %v6306_v24 = vpop.f32.mrb[204].mxu1  ;;  %v8557_v46 = vld [vmem:[%s11941_s5 + $0x25] ss:$0 sm:$0xff] }
0x37b6   :  { %v6313_v14 = vmul.f32 0.35355338, %v6306_v24  ;;  %v9688_v27 = vpop.f32.mrb[203].mxu0  ;;  %v9693_v7 = vpop.f32.mrb[205].mxu1  ;;  %v6314_v15 = vadd.f32 %v11572_v43, %v6312_v48 }
0x37b7   :  { %v6309_v10 = vpop.f32.mrb[206].mxu1 }
0x37b8   :  { %v9694_v47 = vpop.f32.mrb[207].mxu1  ;;  %v6316_v19 = vsel %vm312_vm6, %v6314_v15, -inf  ;;  %v6315_v21 = vadd.f32 %v11579_v13, %v6313_v14 }
0x37b9   :  { %6317 = vmax.xlane.f32.xlu1 %v6316_v19  ;;  %v8573_v47 = vld [vmem:[%s11941_s5 + $0x2d] ss:$0 sm:$0xff] }
0x37ba   :  { %v6319_v23 = vsel %vm312_vm6, %v6315_v21, -inf }
0x37bb   :  { %6320 = vmax.xlane.f32.xlu0 %v6319_v23 }
0x3846   :  { %v6318_v40 = vpop.xlane.xlu1 %6317 }
0x3847   :  { %v6322_v25 = vsub.f32 %v6314_v15, %v6318_v40 }
0x3848   :  { %v6321_v8 = vpop.xlane.xlu0 %6320 }
0x3849   :  { %v6324_v11 = vmul.f32 1.442695, %v6322_v25  ;;  %v6323_v30 = vsub.f32 %v6315_v21, %v6321_v8 }
0x384b   :  { %10144 = vpow2.f32 %v6324_v11  ;;  %v6326_v31 = vmul.f32 1.442695, %v6323_v30 }
0x384d   :  { %10146 = vpow2.f32 %v6326_v31 }
0x3855   :  { %v10145_v32 = vpop.eup %10144 }
0x3856   :  { %v6328_v33 = vsel %vm312_vm6, %v10145_v32, 0.0 }
0x3857   :  { %v10147_v60 = vpop.eup %10146  ;;  %6329 = vadd.xlane.f32.xlu1 %v6328_v33 }
0x3858   :  { %v6331_v52 = vsel %vm312_vm6, %v10147_v60, 0.0 }
0x3859   :  { %6332 = vadd.xlane.f32.xlu0 %v6331_v52 }
0x38e4   :  { %v6330_v35 = vpop.xlane.xlu1 %6329 }
0x38e5   :  { %10148 = vrcp.f32 %v6330_v35 }
0x38e6   :  { %v6333_v36 = vpop.xlane.xlu0 %6332 }
0x38e7   :  { %10150 = vrcp.f32 %v6333_v36 }
0x38ef   :  { %v10149_v37 = vpop.eup %10148 }
0x38f0   :  { %v6336_v38 = vmul.f32 %v10149_v37, %v10145_v32 }
0x38f1   :  { %v10151_v49 = vpop.eup %10150 }
0x38f2   :  { %v6337_v0 = vmul.f32 %v10151_v49, %v10147_v60  ;;  %v6338_v54 = vpack.c.bf16 %v6336_v38, %v6336_v38 }
0x38f4   :  { %9698 = vmatmul.mubr.msk.bf16.vlgmr.msra.gmra.mrb[204].mxu0 %vm312_vm6, %v6338_v54  ;;  %v6339_v3 = vpack.c.bf16 %v6337_v0, %v6337_v0 }
0x38f5   :  { %9708 = vmatpush3.bf16.msra.mxu0 %v9984_v39  ;;  %9711 = vmatprep.mubr.msk.bf16.mxu0 %vm10223_vm1, %v10222_v16 }
0x38f6   :  { %9704 = vmatmul.mubr.msk.bf16.vlgmr.msra.gmra.mrb[208].mxu1 %vm312_vm6, %v6339_v3  ;;  %9709 = vmatprep.subr.bf16.mxu0 %v10222_v16 }
0x38f7   :  { %9716 = vmatpush3.bf16.msra.mxu1 %v9985_v41  ;;  %9719 = vmatprep.mubr.msk.bf16.mxu1 %vm10223_vm1, %v10222_v16 }
0x38f8   :  { %9717 = vmatprep.subr.bf16.mxu1 %v10222_v16 }
0x38f9   :  { %9710 = vmatpush3.bf16.msra.mxu0 %v9986_v42 }
0x38fa   :  { %9723 = vmatprep.subr.bf16.mxu0 %v10222_v16 }
0x38fb   :  { %9718 = vmatpush3.bf16.msra.mxu1 %v9987_v44 }
0x38fc   :  { %9712 = vmatmul.mubr.msk.bf16.vlgmr.msra.gmra.mrb[208].mxu0 %vm60_vm0, %v11531_v58  ;;  %9731 = vmatprep.subr.bf16.mxu1 %v10222_v16 }
0x38fd   :  { %9727 = vmatprep.mubr.msk.bf16.mxu0 %vm10223_vm1, %v10222_v16  ;;  %9724 = vmatpush3.bf16.msra.mxu0 %v9988_v50 }
0x38fe   :  { %9720 = vmatmul.mubr.msk.bf16.vlgmr.msra.gmra.mrb[212].mxu1 %vm60_vm0, %v10713_v45  ;;  %9725 = vmatprep.subr.bf16.mxu0 %v10222_v16 }
0x38ff   :  { %9733 = vmatprep.mubr.msk.bf16.mxu1 %vm10223_vm1, %v10222_v16 }
0x3901   :  { %9726 = vmatpush3.bf16.msra.mxu0 %v9989_v51 }
0x3902   :  { %9737 = vmatprep.subr.bf16.mxu0 %v10222_v16 }
0x3904   :  { %9728 = vmatmul.mubr.msk.bf16.vlgmr.msra.gmra.mrb[212].mxu0 %vm60_vm0, %v10713_v45 }
0x3905   :  { %9739 = vmatprep.mubr.msk.bf16.mxu0 %vm10223_vm1, %v10222_v16 }
0x39c7   :  { %v11627_v53 = vpop.f32.mrb[204].mxu0 }
0x39c8   :  { %v9699_v26 = vpop.f32.mrb[205].mxu0 }
0x39c9   :  { %v6383_v29 = vpop.f32.mrb[206].mxu0  ;;  %v11629_v56 = vpop.f32.mrb[208].mxu1 }
0x39ca   :  { %v6432_v9 = vpack.c.bf16 %v11629_v56, %v11627_v53  ;;  %v9700_v17 = vpop.f32.mrb[207].mxu0  ;;  %v9705_v59 = vpop.f32.mrb[209].mxu1 }
0x39cb   :  { %v6429_v18 = vpop.f32.mrb[210].mxu1 }
0x39cc   :  { %v9706_v34 = vpop.f32.mrb[211].mxu1 }
0x39cf   :  { %v6491_v22 = vpop.f32.mrb[208].mxu0 }
0x39d0   :  { %v9713_v20 = vpop.f32.mrb[209].mxu0  ;;  %v6492_v14 = vadd.f32 %v8557_v46, %v6491_v22 }
0x39d1   :  { %v6494_v57 = vpop.f32.mrb[210].mxu0  ;;  %v6554_v62 = vpop.f32.mrb[212].mxu1 }
0x39d2   :  { %v6555_v63 = vadd.f32 %v8565_v12, %v6554_v62  ;;  %v9714_v1 = vpop.f32.mrb[211].mxu0  ;;  %v9721_v2 = vpop.f32.mrb[213].mxu1  ;;  %v6495_v7 = vadd.f32 %v8557_v46, %v6494_v57  ;;  %v6624_v15 = vpack.c.bf16 %v6492_v14, %v6492_v14  ;;  %v8581_v62 = vld [vmem:[%s11942_s6 + $0x34] sm:$0xf] }
0x39d3   :  { %v6557_v4 = vpop.f32.mrb[214].mxu1  ;;  %v8552_v2 = vld [vmem:[%s11942_s6 + $0x30] sm:$0xf] }
0x39d4   :  { %v6626_v5 = vpack.c.bf16 %v6555_v63, %v6555_v63  ;;  %v6558_v6 = vadd.f32 %v8565_v12, %v6557_v4  ;;  %v9722_v48 = vpop.f32.mrb[215].mxu1  ;;  %v6625_v10 = vpack.c.bf16 %v6495_v7, %v6495_v7  ;;  %v6896_v46 = vsel %vm436_vm7, %v8552_v2, 0 }
0x39d6   :  { %v6634_v61 = vsel %vm312_vm6, %v6626_v5, 0  ;;  %v6627_v24 = vpack.c.bf16 %v6558_v6, %v6558_v6  ;;  %v6849_v6 = vsel %vm436_vm7, %v8581_v62, 0 }
0x39d7   :  { %9732 = vmatpush3.bf16.xpose.msra.mxu1 %v6634_v61  ;;  %v6617_v19 = vpop.f32.mrb[212].mxu0  ;;  %v9990_v61 = vld [vmem:[%s11940_s4 + $0x2a0] sm:$0xff]  }
0x39d8   :  { %v6680_v27 = vsel %vm312_vm6, %v6627_v24, 0  ;;  %9743 = vmatprep.subr.bf16.mxu1 %v10222_v16  ;;  %v6618_v21 = vadd.f32 %v8573_v47, %v6617_v19  ;;  %v9729_v23 = vpop.f32.mrb[213].mxu0  ;;  %v9991_v24 = vld [vmem:[%s11940_s4 + $0x2a8] sm:$0xff]  }
0x39d9   :  { %9738 = vmatpush3.bf16.xpose.msra.mxu0 %v6680_v27  ;;  %v6620_v40 = vpop.f32.mrb[214].mxu0  ;;  %v9992_v27 = vld [vmem:[%s11940_s4 + $0x260] sm:$0xff]  }
0x39da   :  { %9749 = vmatprep.subr.bf16.mxu0 %v10222_v16  ;;  %v6628_v25 = vpack.c.bf16 %v6618_v21, %v6618_v21  ;;  %v6621_v8 = vadd.f32 %v8573_v47, %v6620_v40  ;;  %v9730_v11 = vpop.f32.mrb[215].mxu0  ;;  %v9993_v21 = vld [vmem:[%s11940_s4 + $0x268] sm:$0xff]   ;;  %v9994_v40 = vld [vmem:[%s11940_s4 + $0x2e0] sm:$0xff]  }
0x39dc   :  { %v6754_v30 = vsel %vm436_vm7, %v6628_v25, 0  ;;  %v6629_v31 = vpack.c.bf16 %v6621_v8, %v6621_v8 }
0x39de   :  { %9734 = vmatmul.mubr.msk.bf16.vlgmr.msra.gmra.mrb[216].mxu1 %vm312_vm6, %v6624_v15  ;;  %v6800_v32 = vsel %vm436_vm7, %v6629_v31, 0  ;;  %v8596_v31 = vld [vmem:[%s11941_s5 + $0x2a] ss:$0 sm:$0xff] }
0x39df   :  { %9745 = vmatprep.mubr.msk.bf16.mxu1 %vm10223_vm1, %v10222_v16  ;;  %9744 = vmatpush3.bf16.msra.mxu1 %v6754_v30  ;;  %v9995_v30 = vld [vmem:[%s11940_s4 + $0x2e8] sm:$0xff]  }
0x39e0   :  { %9740 = vmatmul.mubr.msk.bf16.vlgmr.msra.gmra.mrb[216].mxu0 %vm312_vm6, %v6625_v10  ;;  %9755 = vmatprep.subr.bf16.mxu1 %v10222_v16 }
0x39e1   :  { %9751 = vmatprep.mubr.msk.bf16.mxu0 %vm10223_vm1, %v10222_v16  ;;  %9750 = vmatpush3.bf16.msra.mxu0 %v6800_v32 }
0x39e2   :  { %9761 = vmatprep.subr.bf16.mxu0 %v10222_v16 }
0x3ab1   :  { %v6670_v33 = vpop.f32.mrb[216].mxu1 }
0x3ab2   :  { %v6722_v60 = vmul.f32 0.35355338, %v6670_v33  ;;  %v9735_v52 = vpop.f32.mrb[217].mxu1 }
0x3ab3   :  { %v6673_v35 = vpop.f32.mrb[218].mxu1  ;;  %v6716_v36 = vpop.f32.mrb[216].mxu0 }
0x3ab4   :  { %v6723_v37 = vmul.f32 0.35355338, %v6716_v36  ;;  %v9736_v38 = vpop.f32.mrb[219].mxu1  ;;  %v9741_v49 = vpop.f32.mrb[217].mxu0  ;;  %v6724_v39 = vadd.f32 %v11572_v43, %v6722_v60 }
0x3ab5   :  { %v6719_v0 = vpop.f32.mrb[218].mxu0 }
0x3ab6   :  { %v9742_v54 = vpop.f32.mrb[219].mxu0  ;;  %v6726_v41 = vsel %vm312_vm6, %v6724_v39, -inf  ;;  %v6725_v3 = vadd.f32 %v11579_v13, %v6723_v37 }
0x3ab7   :  { %6727 = vmax.xlane.f32.xlu0 %v6726_v41 }
0x3ab8   :  { %v6729_v42 = vsel %vm312_vm6, %v6725_v3, -inf }
0x3ab9   :  { %6730 = vmax.xlane.f32.xlu1 %v6729_v42 }
0x3b44   :  { %v6728_v44 = vpop.xlane.xlu0 %6727 }
0x3b45   :  { %v6732_v50 = vsub.f32 %v6724_v39, %v6728_v44 }
0x3b46   :  { %v6731_v51 = vpop.xlane.xlu1 %6730 }
0x3b47   :  { %v6734_v26 = vmul.f32 1.442695, %v6732_v50  ;;  %v6733_v29 = vsub.f32 %v6725_v3, %v6731_v51  ;;  %v8588_v50 = vld [vmem:[%s11941_s5 + $0x26] ss:$0 sm:$0xff] }
0x3b49   :  { %10152 = vpow2.f32 %v6734_v26  ;;  %v6736_v17 = vmul.f32 1.442695, %v6733_v29 }
0x3b4b   :  { %10154 = vpow2.f32 %v6736_v17 }
0x3b53   :  { %v10153_v59 = vpop.eup %10152 }
0x3b54   :  { %v6738_v18 = vsel %vm312_vm6, %v10153_v59, 0.0 }
0x3b55   :  { %v10155_v34 = vpop.eup %10154  ;;  %6739 = vadd.xlane.f32.xlu0 %v6738_v18 }
0x3b56   :  { %v6741_v22 = vsel %vm312_vm6, %v10155_v34, 0.0 }
0x3b57   :  { %6742 = vadd.xlane.f32.xlu1 %v6741_v22 }
0x3be2   :  { %v6740_v12 = vpop.xlane.xlu0 %6739 }
0x3be3   :  { %10156 = vrcp.f32 %v6740_v12  ;;  %v8604_v12 = vld [vmem:[%s11941_s5 + $0x2e] ss:$0 sm:$0xff] }
0x3be4   :  { %v6743_v20 = vpop.xlane.xlu1 %6742 }
0x3be5   :  { %10158 = vrcp.f32 %v6743_v20 }
0x3bed   :  { %v10157_v57 = vpop.eup %10156 }
0x3bee   :  { %v6746_v63 = vmul.f32 %v10157_v57, %v10153_v59 }
0x3bef   :  { %v10159_v1 = vpop.eup %10158 }
0x3bf0   :  { %v6747_v4 = vmul.f32 %v10159_v1, %v10155_v34  ;;  %v6748_v5 = vpack.c.bf16 %v6746_v63, %v6746_v63 }
0x3bf2   :  { %9746 = vmatmul.mubr.msk.bf16.vlgmr.msra.gmra.mrb[220].mxu1 %vm312_vm6, %v6748_v5  ;;  %v6749_v48 = vpack.c.bf16 %v6747_v4, %v6747_v4 }
0x3bf3   :  { %9756 = vmatpush3.bf16.msra.mxu1 %v6849_v6  ;;  %9757 = vmatprep.mubr.msk.bf16.mxu1 %vm10223_vm1, %v10222_v16 }
0x3bf4   :  { %9752 = vmatmul.mubr.msk.bf16.vlgmr.msra.gmra.mrb[220].mxu0 %vm312_vm6, %v6749_v48  ;;  %9767 = vmatprep.subr.bf16.mxu1 %v10222_v16 }
0x3bf5   :  { %9762 = vmatpush3.bf16.msra.mxu0 %v6896_v46  ;;  %9763 = vmatprep.mubr.msk.bf16.mxu0 %vm10223_vm1, %v10222_v16 }
0x3bf6   :  { %9775 = vmatprep.subr.bf16.mxu0 %v10222_v16 }
0x3bfc   :  { %9764 = vmatmul.mubr.msk.bf16.vlgmr.msra.gmra.mrb[224].mxu0 %vm312_vm6, %v6432_v9 }
0x3bfd   :  { %9776 = vmatpush3.bf16.msra.mxu0 %v9990_v61  ;;  %9779 = vmatprep.mubr.msk.bf16.mxu0 %vm10223_vm1, %v10222_v16 }
0x3bfe   :  { %9777 = vmatprep.subr.bf16.mxu0 %v10222_v16 }
0x3c01   :  { %9778 = vmatpush3.bf16.msra.mxu0 %v9991_v24 }
0x3c02   :  { %9791 = vmatprep.subr.bf16.mxu0 %v10222_v16 }
0x3c04   :  { %9780 = vmatmul.mubr.msk.bf16.vlgmr.msra.gmra.mrb[228].mxu0 %vm60_vm0, %v10713_v45 }
0x3c05   :  { %9793 = vmatprep.mubr.msk.bf16.mxu0 %vm10223_vm1, %v10222_v16 }
0x3cc5   :  { %v6790_v53 = vpop.f32.mrb[220].mxu1 }
0x3cc6   :  { %v9747_v56 = vpop.f32.mrb[221].mxu1 }
0x3cc7   :  { %v6793_v9 = vpop.f32.mrb[222].mxu1  ;;  %v6836_v14 = vpop.f32.mrb[220].mxu0 }
0x3cc8   :  { %v6842_v7 = vpack.c.bf16 %v6836_v14, %v6790_v53  ;;  %v9748_v15 = vpop.f32.mrb[223].mxu1  ;;  %v9753_v10 = vpop.f32.mrb[221].mxu0 }
0x3cc9   :  { %v6839_v47 = vpop.f32.mrb[222].mxu0 }
0x3cca   :  { %v9754_v19 = vpop.f32.mrb[223].mxu0  ;;  %9758 = vmatmul.mubr.msk.bf16.vlgmr.msra.gmra.mrb[224].mxu1 %vm312_vm6, %v6842_v7 }
0x3ccb   :  { %9768 = vmatpush3.bf16.msra.mxu1 %v9992_v27  ;;  %9771 = vmatprep.mubr.msk.bf16.mxu1 %vm10223_vm1, %v10222_v16 }
0x3ccc   :  { %9769 = vmatprep.subr.bf16.mxu1 %v10222_v16 }
0x3ccf   :  { %v6932_v23 = vpop.f32.mrb[224].mxu0  ;;  %9770 = vmatpush3.bf16.msra.mxu1 %v9993_v21 }
0x3cd0   :  { %v9765_v25 = vpop.f32.mrb[225].mxu0  ;;  %9783 = vmatprep.subr.bf16.mxu1 %v10222_v16 }
0x3cd1   :  { %v6935_v8 = vpop.f32.mrb[226].mxu0 }
0x3cd2   :  { %v9766_v11 = vpop.f32.mrb[227].mxu0  ;;  %9772 = vmatmul.mubr.msk.bf16.vlgmr.msra.gmra.mrb[228].mxu1 %vm60_vm0, %v11531_v58 }
0x3cd3   :  { %9784 = vmatpush3.bf16.msra.mxu1 %v9994_v40  ;;  %9787 = vmatprep.mubr.msk.bf16.mxu1 %vm10223_vm1, %v10222_v16 }
0x3cd4   :  { %9785 = vmatprep.subr.bf16.mxu1 %v10222_v16 }
0x3cd7   :  { %v7058_v32 = vpop.f32.mrb[228].mxu0  ;;  %9786 = vmatpush3.bf16.msra.mxu1 %v9995_v30 }
0x3cd8   :  { %v7059_v33 = vadd.f32 %v8596_v31, %v7058_v32  ;;  %v9781_v60 = vpop.f32.mrb[229].mxu0  ;;  %9797 = vmatprep.subr.bf16.mxu1 %v10222_v16 }
0x3cd9   :  { %v7061_v52 = vpop.f32.mrb[230].mxu0 }
0x3cda   :  { %v7130_v35 = vpack.c.bf16 %v7059_v33, %v7059_v33  ;;  %v7062_v36 = vadd.f32 %v8596_v31, %v7061_v52  ;;  %v9782_v37 = vpop.f32.mrb[231].mxu0  ;;  %9788 = vmatmul.mubr.msk.bf16.vlgmr.msra.gmra.mrb[232].mxu1 %vm60_vm0, %v10713_v45 }
0x3cdb   :  { %9799 = vmatprep.mubr.msk.bf16.mxu1 %vm10223_vm1, %v10222_v16  ;;  %v8612_v37 = vld [vmem:[%s11942_s6 + $0x38] sm:$0xf] }
0x3cdc   :  { %v7138_v38 = vsel %vm312_vm6, %v7130_v35, 0  ;;  %v7131_v49 = vpack.c.bf16 %v7062_v36, %v7062_v36 }
0x3cdd   :  { %9792 = vmatpush3.bf16.xpose.msra.mxu0 %v7138_v38 }
0x3cde   :  { %v7184_v39 = vsel %vm312_vm6, %v7131_v49, 0  ;;  %9803 = vmatprep.subr.bf16.mxu0 %v10222_v16 }
0x3ce0   :  { %9798 = vmatpush3.bf16.xpose.msra.mxu1 %v7184_v39 }
0x3ce1   :  { %9809 = vmatprep.subr.bf16.mxu1 %v10222_v16 }
0x3d9d   :  { %v6885_v0 = vpop.f32.mrb[224].mxu1 }
0x3d9e   :  { %v11730_v54 = vadd.f32 %v6932_v23, %v6885_v0  ;;  %v9759_v41 = vpop.f32.mrb[225].mxu1 }
0x3d9f   :  { %v6888_v3 = vpop.f32.mrb[226].mxu1  ;;  %v7353_v41 = vsel %vm436_vm7, %v8612_v37, 0 }
0x3da0   :  { %v11732_v42 = vadd.f32 %v6935_v8, %v6888_v3  ;;  %v9760_v44 = vpop.f32.mrb[227].mxu1  ;;  %v9996_v3 = vld [vmem:[%s11940_s4 + $0x270] sm:$0xff]  }
0x3da5   :  { %v6995_v51 = vpop.f32.mrb[228].mxu1 }
0x3da6   :  { %v6996_v26 = vadd.f32 %v8588_v50, %v6995_v51  ;;  %v9773_v29 = vpop.f32.mrb[229].mxu1 }
0x3da7   :  { %v6998_v17 = vpop.f32.mrb[230].mxu1 }
0x3da8   :  { %v7128_v59 = vpack.c.bf16 %v6996_v26, %v6996_v26  ;;  %v6999_v18 = vadd.f32 %v8588_v50, %v6998_v17  ;;  %v9774_v34 = vpop.f32.mrb[231].mxu1  ;;  %v9997_v50 = vld [vmem:[%s11940_s4 + $0x278] sm:$0xff]  }
0x3daa   :  { %v7129_v22 = vpack.c.bf16 %v6999_v18, %v6999_v18  ;;  %9794 = vmatmul.mubr.msk.bf16.vlgmr.msra.gmra.mrb[232].mxu0 %vm312_vm6, %v7128_v59  ;;  %v9998_v59 = vld [vmem:[%s11940_s4 + $0x2b0] sm:$0xff]  }
0x3dab   :  { %9805 = vmatprep.mubr.msk.bf16.mxu0 %vm10223_vm1, %v10222_v16 }
0x3dac   :  { %9800 = vmatmul.mubr.msk.bf16.vlgmr.msra.gmra.mrb[236].mxu1 %vm312_vm6, %v7129_v22 }
0x3dad   :  { %v7121_v20 = vpop.f32.mrb[232].mxu1  ;;  %9811 = vmatprep.mubr.msk.bf16.mxu1 %vm10223_vm1, %v10222_v16 }
0x3dae   :  { %v7122_v57 = vadd.f32 %v8604_v12, %v7121_v20  ;;  %v9789_v62 = vpop.f32.mrb[233].mxu1 }
0x3daf   :  { %v7124_v63 = vpop.f32.mrb[234].mxu1 }
0x3db0   :  { %v7132_v1 = vpack.c.bf16 %v7122_v57, %v7122_v57  ;;  %v7125_v2 = vadd.f32 %v8604_v12, %v7124_v63  ;;  %v9790_v4 = vpop.f32.mrb[235].mxu1 }
0x3db1   :  { %v10001_v4 = vld [vmem:[%s11940_s4 + $0x2f8] sm:$0xff]  }
0x3db2   :  { %v7258_v5 = vsel %vm436_vm7, %v7132_v1, 0  ;;  %v7133_v6 = vpack.c.bf16 %v7125_v2, %v7125_v2  ;;  %v10000_v2 = vld [vmem:[%s11940_s4 + $0x2f0] sm:$0xff]  }
0x3db3   :  { %9804 = vmatpush3.bf16.msra.mxu0 %v7258_v5 }
0x3db4   :  { %v7304_v48 = vsel %vm436_vm7, %v7133_v6, 0  ;;  %9815 = vmatprep.subr.bf16.mxu0 %v10222_v16 }
0x3db5   :  { %9810 = vmatpush3.bf16.msra.mxu1 %v7304_v48 }
0x3db6   :  { %9821 = vmatprep.subr.bf16.mxu1 %v10222_v16 }
0x3e7d   :  { %v7174_v46 = vpop.f32.mrb[232].mxu0 }
0x3e7e   :  { %v7226_v61 = vmul.f32 0.35355338, %v7174_v46  ;;  %v9795_v24 = vpop.f32.mrb[233].mxu0 }
0x3e7f   :  { %v7177_v53 = vpop.f32.mrb[234].mxu0  ;;  %v7220_v56 = vpop.f32.mrb[236].mxu1 }
0x3e80   :  { %v7227_v9 = vmul.f32 0.35355338, %v7220_v56  ;;  %v9796_v14 = vpop.f32.mrb[235].mxu0  ;;  %v9801_v27 = vpop.f32.mrb[237].mxu1  ;;  %v7228_v7 = vadd.f32 %v11572_v43, %v7226_v61  ;;  %v8626_v53 = vld [vmem:[%s11941_s5 + $0x2b] ss:$0 sm:$0xff] }
0x3e81   :  { %v7223_v15 = vpop.f32.mrb[238].mxu1 }
0x3e82   :  { %v9802_v10 = vpop.f32.mrb[239].mxu1  ;;  %v7230_v47 = vsel %vm312_vm6, %v7228_v7, -inf  ;;  %v7229_v19 = vadd.f32 %v11579_v13, %v7227_v9 }
0x3e83   :  { %7231 = vmax.xlane.f32.xlu0 %v7230_v47 }
0x3e84   :  { %v7233_v21 = vsel %vm312_vm6, %v7229_v19, -inf }
0x3e85   :  { %7234 = vmax.xlane.f32.xlu1 %v7233_v21 }
0x3f10   :  { %v7232_v23 = vpop.xlane.xlu0 %7231 }
0x3f11   :  { %v7236_v40 = vsub.f32 %v7228_v7, %v7232_v23 }
0x3f12   :  { %v7235_v25 = vpop.xlane.xlu1 %7234 }
0x3f13   :  { %v7238_v8 = vmul.f32 1.442695, %v7236_v40  ;;  %v7237_v11 = vsub.f32 %v7229_v19, %v7235_v25  ;;  %v8634_v25 = vld [vmem:[%s11941_s5 + $0x2f] ss:$0 sm:$0xff] }
0x3f15   :  { %10160 = vpow2.f32 %v7238_v8  ;;  %v7240_v30 = vmul.f32 1.442695, %v7237_v11 }
0x3f17   :  { %10162 = vpow2.f32 %v7240_v30 }
0x3f1f   :  { %v10161_v31 = vpop.eup %10160 }
0x3f20   :  { %v7242_v32 = vsel %vm312_vm6, %v10161_v31, 0.0 }
0x3f21   :  { %v10163_v33 = vpop.eup %10162  ;;  %7243 = vadd.xlane.f32.xlu0 %v7242_v32 }
0x3f22   :  { %v7245_v60 = vsel %vm312_vm6, %v10163_v33, 0.0 }
0x3f23   :  { %7246 = vadd.xlane.f32.xlu1 %v7245_v60 }
0x3fae   :  { %v7244_v52 = vpop.xlane.xlu0 %7243 }
0x3faf   :  { %10164 = vrcp.f32 %v7244_v52 }
0x3fb0   :  { %v7247_v35 = vpop.xlane.xlu1 %7246 }
0x3fb1   :  { %10166 = vrcp.f32 %v7247_v35 }
0x3fb9   :  { %v10165_v36 = vpop.eup %10164 }
0x3fba   :  { %v7250_v38 = vmul.f32 %v10165_v36, %v10161_v31 }
0x3fbb   :  { %v10167_v49 = vpop.eup %10166 }
0x3fbc   :  { %v7251_v39 = vmul.f32 %v10167_v49, %v10163_v33  ;;  %v7252_v0 = vpack.c.bf16 %v7250_v38, %v7250_v38 }
0x3fbe   :  { %9806 = vmatmul.mubr.msk.bf16.vlgmr.msra.gmra.mrb[236].mxu0 %vm312_vm6, %v7252_v0  ;;  %v7253_v44 = vpack.c.bf16 %v7251_v39, %v7251_v39 }
0x3fbf   :  { %9816 = vmatpush3.bf16.msra.mxu0 %v7353_v41  ;;  %9817 = vmatprep.mubr.msk.bf16.mxu0 %vm10223_vm1, %v10222_v16 }
0x3fc0   :  { %9812 = vmatmul.mubr.msk.bf16.vlgmr.msra.gmra.mrb[240].mxu1 %vm312_vm6, %v7253_v44  ;;  %9829 = vmatprep.subr.bf16.mxu0 %v10222_v16 }
0x3fc1   :  { %9822 = vmatpush3.bf16.msra.mxu1 %v9996_v3  ;;  %9825 = vmatprep.mubr.msk.bf16.mxu1 %vm10223_vm1, %v10222_v16 }
0x3fc2   :  { %9823 = vmatprep.subr.bf16.mxu1 %v10222_v16 }
0x3fc5   :  { %9824 = vmatpush3.bf16.msra.mxu1 %v9997_v50 }
0x3fc6   :  { %9837 = vmatprep.subr.bf16.mxu1 %v10222_v16 }
0x3fc8   :  { %9826 = vmatmul.mubr.msk.bf16.vlgmr.msra.gmra.mrb[244].mxu1 %vm60_vm0, %v11531_v58  ;;  %v9999_v58 = vld [vmem:[%s11940_s4 + $0x2b8] sm:$0xff]  }
0x3fc9   :  { %9841 = vmatprep.mubr.msk.bf16.mxu1 %vm10223_vm1, %v10222_v16  ;;  %9838 = vmatpush3.bf16.msra.mxu1 %v10000_v2 }
0x3fca   :  { %9839 = vmatprep.subr.bf16.mxu1 %v10222_v16 }
0x3fcd   :  { %9840 = vmatpush3.bf16.msra.mxu1 %v10001_v4  ;;  %v8642_v4 = vld [vmem:[%s11942_s6 + $0x3c] sm:$0xf] }
0x3fce   :  { %9851 = vmatprep.subr.bf16.mxu1 %v10222_v16 }
0x3fd0   :  { %9842 = vmatmul.mubr.msk.bf16.vlgmr.msra.gmra.mrb[248].mxu1 %vm60_vm0, %v10713_v45 }
0x3fd1   :  { %9853 = vmatprep.mubr.msk.bf16.mxu1 %vm10223_vm1, %v10222_v16 }
0x4091   :  { %v7294_v51 = vpop.f32.mrb[236].mxu0 }
0x4092   :  { %v9807_v26 = vpop.f32.mrb[237].mxu0 }
0x4093   :  { %v7297_v29 = vpop.f32.mrb[238].mxu0  ;;  %v7340_v17 = vpop.f32.mrb[240].mxu1 }
0x4094   :  { %v7346_v18 = vpack.c.bf16 %v7340_v17, %v7294_v51  ;;  %v9808_v34 = vpop.f32.mrb[239].mxu0  ;;  %v9813_v22 = vpop.f32.mrb[241].mxu1 }
0x4095   :  { %v7343_v12 = vpop.f32.mrb[242].mxu1 }
0x4096   :  { %v9814_v20 = vpop.f32.mrb[243].mxu1  ;;  %9818 = vmatmul.mubr.msk.bf16.vlgmr.msra.gmra.mrb[240].mxu0 %vm312_vm6, %v7346_v18 }
0x4097   :  { %9830 = vmatpush3.bf16.msra.mxu0 %v9998_v59  ;;  %9833 = vmatprep.mubr.msk.bf16.mxu0 %vm10223_vm1, %v10222_v16 }
0x4098   :  { %9831 = vmatprep.subr.bf16.mxu0 %v10222_v16 }
0x409b   :  { %v7454_v57 = vpop.f32.mrb[244].mxu1  ;;  %9832 = vmatpush3.bf16.msra.mxu0 %v9999_v58 }
0x409c   :  { %v9827_v62 = vpop.f32.mrb[245].mxu1  ;;  %9845 = vmatprep.subr.bf16.mxu0 %v10222_v16 }
0x409d   :  { %v7457_v63 = vpop.f32.mrb[246].mxu1 }
0x409e   :  { %v9828_v1 = vpop.f32.mrb[247].mxu1  ;;  %9834 = vmatmul.mubr.msk.bf16.vlgmr.msra.gmra.mrb[244].mxu0 %vm60_vm0, %v10713_v45 }
0x409f   :  { %9847 = vmatprep.mubr.msk.bf16.mxu0 %vm10223_vm1, %v10222_v16 }
0x40a3   :  { %v7580_v8 = vpop.f32.mrb[248].mxu1 }
0x40a4   :  { %v7581_v11 = vadd.f32 %v8634_v25, %v7580_v8  ;;  %v9843_v30 = vpop.f32.mrb[249].mxu1 }
0x40a5   :  { %v7583_v31 = vpop.f32.mrb[250].mxu1 }
0x40a6   :  { %v7591_v32 = vpack.c.bf16 %v7581_v11, %v7581_v11  ;;  %v7584_v33 = vadd.f32 %v8634_v25, %v7583_v31  ;;  %v9844_v60 = vpop.f32.mrb[251].mxu1 }
0x40a8   :  { %v7717_v52 = vsel %vm436_vm7, %v7591_v32, 0  ;;  %v7592_v35 = vpack.c.bf16 %v7584_v33, %v7584_v33 }
0x40aa   :  { %v7763_v36 = vsel %vm436_vm7, %v7592_v35, 0 }
0x4169   :  { %v7389_v5 = vpop.f32.mrb[240].mxu0 }
0x416a   :  { %v11807_v6 = vadd.f32 %v7389_v5, %v11730_v54  ;;  %v9819_v48 = vpop.f32.mrb[241].mxu0  ;;  %v8618_v54 = vld [vmem:[%s11941_s5 + $0x27] ss:$0 sm:$0xff]  ;;  %s10224_s5 = smov [#allocation2]  }
0x416b   :  { %v7392_v46 = vpop.f32.mrb[242].mxu0  ;;  %v7455_v47 = vadd.f32 %v8618_v54, %v7454_v57  ;;  %v7458_v21 = vadd.f32 %v8618_v54, %v7457_v63  ;;  %s8135_s22 = sshll.u32 %s10224_s5, 4  ;;  %s8136_s22 = int_to_ptr.vmem [resolvable:$true] %s8135_s22 }
0x416c   :  { %v11810_v61 = vadd.f32 %v7392_v46, %v11732_v42  ;;  %v9820_v24 = vpop.f32.mrb[243].mxu0  ;;  %s10198_s6 = scalar_lea.vmem %s8136_s22, 256  ;;  %p10203_p1 = scmp.lt.s32.totalorder %s8136_s22, %s8136_s22 }
0x416d   :  { %v7587_v23 = vpack.c.bf16 %v7455_v47, %v7455_v47  ;;  %v7588_v40 = vpack.c.bf16 %v7458_v21, %v7458_v21  ;;  %p10199_p0 = scmp.ne.s32.totalorder %s8136_s22, %s10198_s6  ;;  %p10204_p2 = scmp.lt.s32.totalorder %s10198_s6, %s10198_s6 }
0x416f   :  { %p10205_p3 = por %p10204_p2, %p10203_p1 }
0x4171   :  { %v7517_v56 = vpop.f32.mrb[244].mxu0  ;;  %p10206_p4 = pnand %p10205_p3, %p10199_p0 }
0x4172   :  { %v7518_v9 = vadd.f32 %v8626_v53, %v7517_v56  ;;  %v9835_v45 = vpop.f32.mrb[245].mxu0 }
0x4173   :  { %v7520_v14 = vpop.f32.mrb[246].mxu0 }
0x4174   :  { %v7589_v27 = vpack.c.bf16 %v7518_v9, %v7518_v9  ;;  %v7521_v7 = vadd.f32 %v8626_v53, %v7520_v14  ;;  %v9836_v15 = vpop.f32.mrb[247].mxu0  ;;  %v7812_v53 = vsel %vm436_vm7, %v8642_v4, 0 }
0x4176   :  { %v7597_v10 = vsel %vm312_vm6, %v7589_v27, 0  ;;  %v7590_v42 = vpack.c.bf16 %v7521_v7, %v7521_v7 }
0x4177   :  { %9846 = vmatpush3.bf16.xpose.msra.mxu0 %v7597_v10 }
0x4178   :  { %v7643_v19 = vsel %vm312_vm6, %v7590_v42, 0  ;;  %9857 = vmatprep.subr.bf16.mxu0 %v10222_v16 }
0x4179   :  { %9852 = vmatpush3.bf16.xpose.msra.mxu1 %v7643_v19  ;;  %v8644_v19 = vld [vmem:[%s11943_s7 + $0x3] ss:$0 sm:$0xff] }
0x417a   :  { %9863 = vmatprep.subr.bf16.mxu1 %v10222_v16 }
0x417e   :  { %9848 = vmatmul.mubr.msk.bf16.vlgmr.msra.gmra.mrb[248].mxu0 %vm312_vm6, %v7587_v23 }
0x417f   :  { %9859 = vmatprep.mubr.msk.bf16.mxu0 %vm10223_vm1, %v10222_v16  ;;  %9858 = vmatpush3.bf16.msra.mxu0 %v7717_v52 }
0x4180   :  { %9854 = vmatmul.mubr.msk.bf16.vlgmr.msra.gmra.mrb[252].mxu1 %vm312_vm6, %v7588_v40  ;;  %9869 = vmatprep.subr.bf16.mxu0 %v10222_v16 }
0x4181   :  { %9865 = vmatprep.mubr.msk.bf16.mxu1 %vm10223_vm1, %v10222_v16  ;;  %9864 = vmatpush3.bf16.msra.mxu1 %v7763_v36 }
0x4182   :  { %9875 = vmatprep.subr.bf16.mxu1 %v10222_v16 }
0x4251   :  { %v7633_v37 = vpop.f32.mrb[248].mxu0 }
0x4252   :  { %v7685_v38 = vmul.f32 0.35355338, %v7633_v37  ;;  %v9849_v49 = vpop.f32.mrb[249].mxu0 }
0x4253   :  { %v7636_v39 = vpop.f32.mrb[250].mxu0  ;;  %v7679_v0 = vpop.f32.mrb[252].mxu1 }
0x4254   :  { %v7686_v41 = vmul.f32 0.35355338, %v7679_v0  ;;  %v9850_v3 = vpop.f32.mrb[251].mxu0  ;;  %v9855_v44 = vpop.f32.mrb[253].mxu1  ;;  %v7687_v50 = vadd.f32 %v11572_v43, %v7685_v38  ;;  %v10002_v39 = vld [vmem:[%s11944_s8 + $0x10] sm:$0xff]   ;;  %v10003_v0 = vld [vmem:[%s11944_s8 + $0x18] sm:$0xff]  }
0x4255   :  { %v7682_v51 = vpop.f32.mrb[254].mxu1  ;;  %v10005_v3 = vld [vmem:[%s11946_s10 + $0x28] sm:$0xff]  }
0x4256   :  { %v9856_v26 = vpop.f32.mrb[255].mxu1  ;;  %v7689_v29 = vsel %vm312_vm6, %v7687_v50, -inf  ;;  %v7688_v17 = vadd.f32 %v11579_v13, %v7686_v41  ;;  %v10004_v41 = vld [vmem:[%s11946_s10 + $0x20] sm:$0xff]  }
0x4257   :  { %7690 = vmax.xlane.f32.xlu0 %v7689_v29 }
0x4258   :  { %v7692_v59 = vsel %vm312_vm6, %v7688_v17, -inf }
0x4259   :  { %7693 = vmax.xlane.f32.xlu1 %v7692_v59 }
0x42e4   :  { %v7691_v18 = vpop.xlane.xlu0 %7690 }
0x42e5   :  { %v7695_v34 = vsub.f32 %v7687_v50, %v7691_v18 }
0x42e6   :  { %v7694_v22 = vpop.xlane.xlu1 %7693 }
0x42e7   :  { %v7697_v12 = vmul.f32 1.442695, %v7695_v34  ;;  %v7696_v20 = vsub.f32 %v7688_v17, %v7694_v22 }
0x42e9   :  { %10168 = vpow2.f32 %v7697_v12  ;;  %v7699_v58 = vmul.f32 1.442695, %v7696_v20 }
0x42eb   :  { %10170 = vpow2.f32 %v7699_v58 }
0x42f3   :  { %v10169_v57 = vpop.eup %10168 }
0x42f4   :  { %v7701_v43 = vsel %vm312_vm6, %v10169_v57, 0.0 }
0x42f5   :  { %v10171_v62 = vpop.eup %10170  ;;  %7702 = vadd.xlane.f32.xlu0 %v7701_v43 }
0x42f6   :  { %v7704_v63 = vsel %vm312_vm6, %v10171_v62, 0.0 }
0x42f7   :  { %7705 = vadd.xlane.f32.xlu1 %v7704_v63 }
0x4382   :  { %v7703_v13 = vpop.xlane.xlu0 %7702 }
0x4383   :  { %10172 = vrcp.f32 %v7703_v13  ;;  %v8645_v13 = vld [vmem:[%s11948_s12 + $0x5] ss:$0 sm:$0xff] }
0x4384   :  { %v7706_v1 = vpop.xlane.xlu1 %7705 }
0x4385   :  { %10174 = vrcp.f32 %v7706_v1 }
0x438d   :  { %v10173_v2 = vpop.eup %10172 }
0x438e   :  { %v7709_v5 = vmul.f32 %v10173_v2, %v10169_v57 }
0x438f   :  { %v10175_v48 = vpop.eup %10174 }
0x4390   :  { %v7710_v46 = vmul.f32 %v10175_v48, %v10171_v62  ;;  %v7711_v24 = vpack.c.bf16 %v7709_v5, %v7709_v5  ;;  %v8646_v48 = vld [vmem:[%s11949_s13 + $0x5] ss:$0 sm:$0xff] }
0x4392   :  { %v7712_v56 = vpack.c.bf16 %v7710_v46, %v7710_v46  ;;  %9860 = vmatmul.mubr.msk.bf16.vlgmr.msra.gmra.mrb[252].mxu0 %vm312_vm6, %v7711_v24 }
0x4393   :  { %9870 = vmatpush3.bf16.msra.mxu0 %v7812_v53  ;;  %9871 = vmatprep.mubr.msk.bf16.mxu0 %vm10223_vm1, %v10222_v16 }
0x4394   :  { %9866 = vmatmul.mubr.msk.bf16.vlgmr.msra.gmra.mrb[0].mxu1 %vm312_vm6, %v7712_v56  ;;  %9883 = vmatprep.subr.bf16.mxu0 %v10222_v16 }
0x4395   :  { %9879 = vmatprep.mubr.msk.bf16.mxu1 %vm10223_vm1, %v10222_v16  ;;  %9876 = vmatpush3.bf16.msra.mxu1 %v10002_v39 }
0x4396   :  { %9877 = vmatprep.subr.bf16.mxu1 %v10222_v16 }
0x4399   :  { %9878 = vmatpush3.bf16.msra.mxu1 %v10003_v0 }
0x4465   :  { %v7753_v9 = vpop.f32.mrb[252].mxu0 }
0x4466   :  { %v9861_v45 = vpop.f32.mrb[253].mxu0 }
0x4467   :  { %v7756_v14 = vpop.f32.mrb[254].mxu0  ;;  %v7799_v27 = vpop.f32.mrb[0].mxu1  ;;  %v10007_v45 = vld [vmem:[%s11946_s10 + $0x38] sm:$0xff]  }
0x4468   :  { %v7805_v7 = vpack.c.bf16 %v7799_v27, %v7753_v9  ;;  %v9862_v15 = vpop.f32.mrb[255].mxu0  ;;  %v9867_v54 = vpop.f32.mrb[1].mxu1  ;;  %v10006_v9 = vld [vmem:[%s11946_s10 + $0x30] sm:$0xff]   ;;  %v8651_v14 = vld [vmem:[%s11945_s9 + $0x1] ss:$0 sm:$0xff] }
0x4469   :  { %v7802_v10 = vpop.f32.mrb[2].mxu1 }
0x446a   :  { %v9868_v42 = vpop.f32.mrb[3].mxu1  ;;  %9872 = vmatmul.mubr.msk.bf16.vlgmr.msra.gmra.mrb[0].mxu0 %vm312_vm6, %v7805_v7 }
0x446b   :  { %9891 = vmatprep.mubr.msk.bf16.mxu0 %vm10223_vm1, %v10222_v16  ;;  %9884 = vmatpush3.bf16.msra.mxu0 %v10004_v41 }
0x446c   :  { %9885 = vmatprep.subr.bf16.mxu0 %v10222_v16 }
0x446f   :  { %9886 = vmatpush3.bf16.msra.mxu0 %v10005_v3 }
0x4470   :  { %9887 = vmatprep.subr.bf16.mxu0 %v10222_v16 }
0x4473   :  { %9888 = vmatpush3.bf16.msra.mxu0 %v10006_v9 }
0x4474   :  { %9889 = vmatprep.subr.bf16.mxu0 %v10222_v16  ;;  %v8663_v16 = vld [vmem:[%s11947_s11 + $0x1] ss:$0 sm:$0xff] }
0x4477   :  { %9890 = vmatpush3.bf16.msra.mxu0 %v10007_v45 }
0x453d   :  { %v7848_v47 = vpop.f32.mrb[0].mxu0 }
0x453e   :  { %v7855_v21 = vadd.f32 %v7848_v47, %v11807_v6  ;;  %v9873_v23 = vpop.f32.mrb[1].mxu0 }
0x453f   :  { %v7851_v40 = vpop.f32.mrb[2].mxu0 }
0x4540   :  { %v7862_v25 = vadd.f32 %v8644_v19, %v7855_v21  ;;  %v7856_v8 = vadd.f32 %v7851_v40, %v11810_v61  ;;  %v9874_v11 = vpop.f32.mrb[3].mxu0 }
0x4542   :  { %v11861_v30 = vadd.f32 %v7862_v25, %v11489_v28  ;;  %v7863_v31 = vadd.f32 %v8644_v19, %v7856_v8 }
0x4544   :  { %v11864_v32 = vadd.f32 %v7863_v31, %v11492_v55  ;;  %v7868_v33 = vsel %vm60_vm0, %v11861_v30, 0.0 }
0x4545   :  { %7869 = vadd.xlane.f32.xlu0 %v7868_v33 }
0x4546   :  { %v7871_v6 = vsel %vm60_vm0, %v11864_v32, 0.0 }
0x4547   :  { %7872 = vadd.xlane.f32.xlu1 %v7871_v6 }
0x45d2   :  { %v7870_v60 = vpop.xlane.xlu0 %7869 }
0x45d3   :  { %v7874_v52 = vmul.f32 0.03125, %v7870_v60 }
0x45d4   :  { %v7873_v35 = vpop.xlane.xlu1 %7872 }
0x45d5   :  { %v7876_v61 = vsub.f32 %v11861_v30, %v7874_v52  ;;  %v7875_v36 = vmul.f32 0.03125, %v7873_v35 }
0x45d7   :  { %v7877_v28 = vsub.f32 %v11864_v32, %v7875_v36  ;;  %v7878_v37 = vmul.f32 %v7876_v61, %v7876_v61 }
0x45d9   :  { %v7880_v55 = vsel %vm60_vm0, %v7878_v37, 0.0  ;;  %v7879_v38 = vmul.f32 %v7877_v28, %v7877_v28 }
0x45da   :  { %7881 = vadd.xlane.f32.xlu0 %v7880_v55 }
0x45db   :  { %v7883_v49 = vsel %vm60_vm0, %v7879_v38, 0.0 }
0x45dc   :  { %7884 = vadd.xlane.f32.xlu1 %v7883_v49 }
0x4667   :  { %v7882_v44 = vpop.xlane.xlu0 %7881 }
0x4668   :  { %v7886_v50 = vmul.f32 0.032258064, %v7882_v44 }
0x4669   :  { %v7885_v51 = vpop.xlane.xlu1 %7884 }
0x466a   :  { %10176 = vrsqrt.f32 %v7886_v50  ;;  %v7887_v26 = vmul.f32 0.032258064, %v7885_v51  ;;  %vm7890_vm1 = vcmp.eq.f32.partialorder %v7886_v50, inf  ;;  %v7893_v59 = vand.u32 2147483648, %v7886_v50 }
0x466b   :  { %vm7892_vm6 = vcmp.eq.f32.partialorder %v7886_v50, 0.0 }
0x466c   :  { %10178 = vrsqrt.f32 %v7887_v26  ;;  %vm7897_vm7 = vcmp.eq.f32.partialorder %v7887_v26, inf  ;;  %v7900_v58 = vand.u32 2147483648, %v7887_v26  ;;  %vm7899_vm13 = vcmp.eq.f32.partialorder %v7887_v26, 0.0 }
0x4674   :  { %v10177_v29 = vpop.eup %10176 }
0x4675   :  { %v7889_v17 = vmul.f32 %v10177_v29, %v7886_v50 }
0x4676   :  { %v10179_v18 = vpop.eup %10178 }
0x4677   :  { %v7891_v34 = vsel %vm7890_vm1, %v7886_v50, %v7889_v17  ;;  %v7896_v12 = vmul.f32 %v10179_v18, %v7887_v26 }
0x4678   :  { %v7894_v22 = vsel %vm7892_vm6, %v7893_v59, %v7891_v34 }
0x4679   :  { %v7902_v20 = vadd.f32 1e-06, %v7894_v22  ;;  %v7898_v57 = vsel %vm7897_vm7, %v7887_v26, %v7896_v12 }
0x467a   :  { %v7901_v43 = vsel %vm7899_vm13, %v7900_v58, %v7898_v57  ;;  %v8669_v57 = vld [vmem:[%s11948_s12 + $0x6] ss:$0 sm:$0xff] }
0x467b   :  { %10180 = vrcp.f32 %v7902_v20  ;;  %v7903_v62 = vadd.f32 1e-06, %v7901_v43 }
0x467d   :  { %10182 = vrcp.f32 %v7903_v62  ;;  %v8670_v62 = vld [vmem:[%s11949_s13 + $0x6] ss:$0 sm:$0xff] }
0x4685   :  { %v10181_v63 = vpop.eup %10180 }
0x4686   :  { %v7906_v1 = vmul.f32 %v10181_v63, %v7876_v61 }
0x4687   :  { %v10183_v2 = vpop.eup %10182 }
0x4688   :  { %v7912_v4 = vmul.f32 %v8645_v13, %v7906_v1  ;;  %v7907_v5 = vmul.f32 %v10183_v2, %v7877_v28 }
0x468a   :  { %v7913_v46 = vmul.f32 %v8645_v13, %v7907_v5  ;;  %v7918_v24 = vadd.f32 %v8646_v48, %v7912_v4 }
0x468c   :  { %v7919_v53 = vadd.f32 %v8646_v48, %v7913_v46 }
0x468e   :  { %v7920_v56 = vpack.c.bf16 %v7919_v53, %v7918_v24 }
0x4690   :  { %9880 = vmatmul.mubr.msk.bf16.vlgmr.msra.gmra.mrb[4].mxu1 %vm60_vm0, %v7920_v56 }
0x4763   :  { %v7980_v27 = vpop.f32.mrb[4].mxu1 }
0x4764   :  { %v7981_v7 = vadd.f32 %v8651_v14, %v7980_v27  ;;  %v9881_v15 = vpop.f32.mrb[5].mxu1 }
0x4765   :  { %v7983_v54 = vpop.f32.mrb[6].mxu1 }
0x4766   :  { %v7984_v10 = vadd.f32 %v8651_v14, %v7983_v54  ;;  %v9882_v42 = vpop.f32.mrb[7].mxu1  ;;  %v7987_v47 = vmax.f32 %v7981_v7, 0.0 }
0x4768   :  { %v7988_v19 = vmax.f32 %v7984_v10, 0.0 }
0x476a   :  { %v7989_v21 = vpack.c.bf16 %v7988_v19, %v7987_v47 }
0x476c   :  { %9892 = vmatmul.mubr.msk.bf16.vlgmr.msra.gmra.mrb[4].mxu0 %vm4021_vm2, %v7989_v21 }
0x483f   :  { %v8065_v23 = vpop.f32.mrb[4].mxu0 }
0x4840   :  { %v8066_v40 = vadd.f32 %v8663_v16, %v8065_v23  ;;  %v9893_v25 = vpop.f32.mrb[5].mxu0 }
0x4841   :  { %v8068_v8 = vpop.f32.mrb[6].mxu0 }
0x4842   :  { %v8069_v11 = vadd.f32 %v8663_v16, %v8068_v8  ;;  %v9894_v31 = vpop.f32.mrb[7].mxu0  ;;  %v8072_v33 = vadd.f32 %v8066_v40, %v11861_v30 }
0x4844   :  { %v8076_v6 = vsel %vm60_vm0, %v8072_v33, 0.0  ;;  %v8073_v60 = vadd.f32 %v8069_v11, %v11864_v32 }
0x4845   :  { %8077 = vadd.xlane.f32.xlu0 %v8076_v6 }
0x4846   :  { %v8079_v52 = vsel %vm60_vm0, %v8073_v60, 0.0 }
0x4847   :  { %8080 = vadd.xlane.f32.xlu1 %v8079_v52 }
0x48d2   :  { %v8078_v35 = vpop.xlane.xlu0 %8077 }
0x48d3   :  { %v8082_v61 = vmul.f32 0.03125, %v8078_v35 }
0x48d4   :  { %v8081_v36 = vpop.xlane.xlu1 %8080 }
0x48d5   :  { %v8084_v28 = vsub.f32 %v8072_v33, %v8082_v61  ;;  %v8083_v37 = vmul.f32 0.03125, %v8081_v36 }
0x48d7   :  { %v8085_v55 = vsub.f32 %v8073_v60, %v8083_v37  ;;  %v8086_v38 = vmul.f32 %v8084_v28, %v8084_v28 }
0x48d9   :  { %v8088_v49 = vsel %vm60_vm0, %v8086_v38, 0.0  ;;  %v8087_v39 = vmul.f32 %v8085_v55, %v8085_v55 }
0x48da   :  { %8089 = vadd.xlane.f32.xlu0 %v8088_v49 }
0x48db   :  { %v8091_v30 = vsel %vm60_vm0, %v8087_v39, 0.0 }
0x48dc   :  { %8092 = vadd.xlane.f32.xlu1 %v8091_v30 }
0x4967   :  { %v8090_v0 = vpop.xlane.xlu0 %8089 }
0x4968   :  { %v8094_v32 = vmul.f32 0.032258064, %v8090_v0 }
0x4969   :  { %v8093_v41 = vpop.xlane.xlu1 %8092 }
0x496a   :  { %10184 = vrsqrt.f32 %v8094_v32  ;;  %v8095_v3 = vmul.f32 0.032258064, %v8093_v41  ;;  %vm8098_vm14 = vcmp.eq.f32.partialorder %v8094_v32, inf  ;;  %v8101_v51 = vand.u32 2147483648, %v8094_v32 }
0x496b   :  { %vm8100_vm15 = vcmp.eq.f32.partialorder %v8094_v32, 0.0 }
0x496c   :  { %10186 = vrsqrt.f32 %v8095_v3  ;;  %vm8105_vm2 = vcmp.eq.f32.partialorder %v8095_v3, inf  ;;  %v8108_v34 = vand.u32 2147483648, %v8095_v3  ;;  %vm8107_vm3 = vcmp.eq.f32.partialorder %v8095_v3, 0.0 }
0x4974   :  { %v10185_v44 = vpop.eup %10184 }
0x4975   :  { %v8097_v50 = vmul.f32 %v10185_v44, %v8094_v32 }
0x4976   :  { %v10187_v26 = vpop.eup %10186 }
0x4977   :  { %v8099_v29 = vsel %vm8098_vm14, %v8094_v32, %v8097_v50  ;;  %v8104_v59 = vmul.f32 %v10187_v26, %v8095_v3 }
0x4978   :  { %v8102_v17 = vsel %vm8100_vm15, %v8101_v51, %v8099_v29 }
0x4979   :  { %v8110_v18 = vadd.f32 1e-06, %v8102_v17  ;;  %v8106_v22 = vsel %vm8105_vm2, %v8095_v3, %v8104_v59 }
0x497a   :  { %v8109_v12 = vsel %vm8107_vm3, %v8108_v34, %v8106_v22 }
0x497b   :  { %10188 = vrcp.f32 %v8110_v18  ;;  %v8111_v20 = vadd.f32 1e-06, %v8109_v12 }
0x497d   :  { %10190 = vrcp.f32 %v8111_v20 }
0x4985   :  { %v10189_v58 = vpop.eup %10188 }
0x4986   :  { %v8114_v43 = vmul.f32 %v10189_v58, %v8084_v28 }
0x4987   :  { %v10191_v63 = vpop.eup %10190 }
0x4988   :  { %v8120_v13 = vmul.f32 %v8669_v57, %v8114_v43  ;;  %v8115_v1 = vmul.f32 %v10191_v63, %v8085_v55 }
0x498a   :  { %v8126_v2 = vadd.f32 %v8670_v62, %v8120_v13  ;;  %v8121_v4 = vmul.f32 %v8669_v57, %v8115_v1 }
0x498c   :  { %8128 = vst.msk [vmem:[#allocation2] sm:$0xff] %vm60_vm0, %v8126_v2  ;;  %v8127_v5 = vadd.f32 %v8670_v62, %v8121_v4 }
0x498e   :  { %8129 = vst.msk [vmem:[#allocation2 + $0x8] sm:$0xff] %vm60_vm0, %v8127_v5 }
0x498f   :  { %10209 = shalt.err (!%p10206_p4)
}
0x4990   :  { %s10210_s3 = scalar_lea.hbm %s11950_s14, 256 }
0x4991   :  { %p10211_p5 = scmp.ne.s32.totalorder %s11950_s14, %s10210_s3  ;;  %p10214_p6 = scmp.lt.u32.totalorder %s10210_s3, %s11950_s14 }
0x4993   :  { %p10216_p7 = pnand %p10214_p6, %p10211_p5 }
0x4995   :  { %10219 = shalt.err (!%p10216_p7)
}
0x4996   :  { %s10225_s1 = smov 128   ;;  %s10226_s26 = smov 8  }
0x4997   :  { %8141 = dma.vmem_to_hbm [thread:$0]  %s8136_s22, 256, %s11950_s14, [#allocation3], %s10225_s1, %s10225_s1, %s10226_s26  }
0x4998   :  { %10220 = dma.done.wait [#allocation3], 256  }
0x4999   :  { %10221 = vsyncadd [#allocation3], 4294967040 }
0x499a   :  { %8145 = vsyncpa [#allocation3], 1 }

</bundles_post_ra>
